<compile_context>
chip_gen: v7x
topology: tpu7x:2x2x1
jax: 0.10.0
libtpu: 0.0.40
codegen_flags: <defaults>
</compile_context>

<pallas_src>
import math
import numpy as np
import jax
import jax.numpy as jnp
from jax.experimental import pallas as pl
from jax.experimental.pallas import tpu as pltpu

d_k = d_v = 64
d_model = 512
n_heads = 8
d_ff = 2048
n_layers = 6
src_vocab_size = 6
LN_EPS = 1e-5  # fresh nn.LayerNorm(d_model): weight=1, bias=0, eps=1e-5


def _layernorm(y):
    # LayerNorm over last dim, biased variance (matches torch.nn.LayerNorm), f32.
    mu = jnp.mean(y, axis=-1, keepdims=True)
    var = jnp.mean((y - mu) ** 2, axis=-1, keepdims=True)
    return (y - mu) * jax.lax.rsqrt(var + LN_EPS)


# ---------------------------------------------------------------------------
# Fused encoder kernel: one grid step = one layer, batch folded into the block.
# The [B*L, D] activation lives in a VMEM scratch across the layer axis.
# ---------------------------------------------------------------------------
def encoder_layer_kernel(x_emb_ref, bias_ref, wqkv_ref, wo_ref, w1_ref, w2_ref,
                         out_ref, attn_ref, x_scr):
    layer = pl.program_id(0)
    B, L, D = x_emb_ref.shape
    BL = B * L
    hk = n_heads * d_k

    @pl.when(layer == 0)
    def _():
        # Load embedding+posenc into the resident activation buffer (flattened).
        x_scr[...] = x_emb_ref[...].reshape(BL, D)

    x = x_scr[...]            # [B*L, D] float32, resident across layers
    bias = bias_ref[...]      # [B, 1, L] additive key-pad bias (0 or -1e9), f32

    # ---- Multi-head self-attention -------------------------------------
    # Fused Q|K|V projection: bf16 operands, f32 accumulation on the MXU,
    # M = B*L for better MXU occupancy.
    xb = x.astype(jnp.bfloat16)
    qkv = jnp.dot(xb, wqkv_ref[0], preferred_element_type=jnp.float32)  # [B*L, 3*H*dk]
    q = qkv[:, :hk].reshape(B, L, hk)
    k = qkv[:, hk:2 * hk].reshape(B, L, hk)
    v = qkv[:, 2 * hk:].reshape(B, L, hk)

    scale = 1.0 / math.sqrt(d_k)
    attn_parts = []
    ctx_parts = []
    # Static unroll over heads; each head's score/context matmul is batched
    # over the whole batch (3-D einsum), so there are 2 MXU pushes per head
    # per layer instead of 2 per (head, batch element).
    for h in range(n_heads):
        qh = q[:, :, h * d_k:(h + 1) * d_k]            # [B, L, dk] f32
        kh = k[:, :, h * d_k:(h + 1) * d_k]
        vh = v[:, :, h * d_v:(h + 1) * d_v]
        s = jnp.einsum('bqd,bkd->bqk', qh, kh,
                       preferred_element_type=jnp.float32) * scale + bias
        s = s - jnp.max(s, axis=-1, keepdims=True)
        e = jnp.exp(s)
        # Exact divide (not approx reciprocal) so softmax rows sum to 1 exactly.
        a = e / jnp.sum(e, axis=-1, keepdims=True)     # [B, L, L] f32
        attn_parts.append(a)
        ctx_parts.append(jnp.einsum('bqk,bkd->bqd', a.astype(jnp.bfloat16),
                                    vh.astype(jnp.bfloat16),
                                    preferred_element_type=jnp.float32))
    # One store of the whole layer's attention probs (avoids 8 lane-sparse stores).
    attn_ref[0] = jnp.stack(attn_parts, axis=1)        # [B, H, L, L]

    ctx = jnp.concatenate(ctx_parts, axis=-1).reshape(BL, n_heads * d_v)
    o = jnp.dot(ctx.astype(jnp.bfloat16), wo_ref[0],
                preferred_element_type=jnp.float32)
    x = _layernorm(o + x)                              # residual + LayerNorm (f32)

    # ---- Position-wise FFN ----------------------------------------------
    ff = jnp.dot(x.astype(jnp.bfloat16), w1_ref[0],
                 preferred_element_type=jnp.float32)
    ff = jnp.maximum(ff, 0.0)                          # ReLU in f32
    o2 = jnp.dot(ff.astype(jnp.bfloat16), w2_ref[0],
                 preferred_element_type=jnp.float32)
    x = _layernorm(o2 + x)                             # residual + LayerNorm (f32)

    x_scr[...] = x

    @pl.when(layer == n_layers - 1)
    def _():
        out_ref[...] = x.reshape(B, L, D)              # write once, on final layer


def encoder_stack(x_emb, bias, wqkv, wo, w1, w2):
    """x_emb: [B, L, D] f32; bias: [B, 1, L] f32; weights stacked [n_layers, ...] bf16."""
    B, L, D = x_emb.shape
    out, attn = pl.pallas_call(
        encoder_layer_kernel,
        out_shape=(
            jax.ShapeDtypeStruct((B, L, D), jnp.float32),
            jax.ShapeDtypeStruct((n_layers, B, n_heads, L, L), jnp.float32),
        ),
        grid_spec=pltpu.PrefetchScalarGridSpec(
            num_scalar_prefetch=0,
            grid=(n_layers,),
            in_specs=[
                pl.BlockSpec((B, L, D), lambda l: (0, 0, 0)),    # embedding (resident)
                pl.BlockSpec((B, 1, L), lambda l: (0, 0, 0)),    # pad bias (resident)
                pl.BlockSpec((1, D, 3 * n_heads * d_k), lambda l: (l, 0, 0)),  # fused W_QKV
                pl.BlockSpec((1, n_heads * d_v, D), lambda l: (l, 0, 0)),      # W_O
                pl.BlockSpec((1, D, d_ff), lambda l: (l, 0, 0)),               # FFN W1
                pl.BlockSpec((1, d_ff, D), lambda l: (l, 0, 0)),               # FFN W2
            ],
            out_specs=(
                pl.BlockSpec((B, L, D), lambda l: (0, 0, 0)),    # enc output (resident over l)
                pl.BlockSpec((1, B, n_heads, L, L), lambda l: (l, 0, 0, 0, 0)),
            ),
            scratch_shapes=[pltpu.VMEM((B * L, D), jnp.float32)],  # resident activation
        ),
        compiler_params=pltpu.CompilerParams(
            dimension_semantics=("arbitrary",),          # layers are sequential
            # ~6 MiB/layer bf16 weights double-buffered (~12 MiB) + activations;
            # right-sized with headroom, well under v7x's 64 MiB physical VMEM.
            vmem_limit_bytes=32 * 1024 * 1024,
        ),
    )(x_emb, bias, wqkv, wo, w1, w2)
    return out, attn


# ---------------------------------------------------------------------------
# Glue: parameters, embedding, positional encoding, pad bias.
# ---------------------------------------------------------------------------
def init_params(key):
    k_emb, k_layers = jax.random.split(key)
    emb = jax.random.normal(k_emb, (src_vocab_size, d_model), jnp.float32)
    wqkv, wo, w1, w2 = [], [], [], []
    scale = 0.02
    for i in range(n_layers):
        ks = jax.random.split(jax.random.fold_in(k_layers, i), 4)
        wqkv.append(scale * jax.random.normal(ks[0], (d_model, 3 * n_heads * d_k), jnp.float32))
        wo.append(scale * jax.random.normal(ks[1], (n_heads * d_v, d_model), jnp.float32))
        w1.append(scale * jax.random.normal(ks[2], (d_model, d_ff), jnp.float32))
        w2.append(scale * jax.random.normal(ks[3], (d_ff, d_model), jnp.float32))
    return {
        "emb": emb,
        "wqkv": jnp.stack(wqkv).astype(jnp.bfloat16),   # [n_layers, D, 3*H*dk]
        "wo": jnp.stack(wo).astype(jnp.bfloat16),       # [n_layers, H*dv, D]
        "w1": jnp.stack(w1).astype(jnp.bfloat16),       # [n_layers, D, d_ff]
        "w2": jnp.stack(w2).astype(jnp.bfloat16),       # [n_layers, d_ff, D]
    }


def positional_encoding(seq_len, d):
    pos = np.arange(seq_len, dtype=np.float32)[:, None]
    div = np.exp(np.arange(0, d, 2, dtype=np.float32) * (-math.log(10000.0) / d))
    pe = np.zeros((seq_len, d), dtype=np.float32)
    pe[:, 0::2] = np.sin(pos * div)
    pe[:, 1::2] = np.cos(pos * div)
    return jnp.asarray(pe)


@jax.jit
def encoder_forward(params, enc_inputs):
    """enc_inputs: int32 [batch, src_len] -> (enc_outputs [B, L, D], [attn]*n_layers)."""
    B, L = enc_inputs.shape
    x = jnp.take(params["emb"], enc_inputs, axis=0)        # embedding lookup (glue)
    x = x + positional_encoding(L, d_model)[None, :, :]
    # TODO(synk): PositionalEncoding dropout (p=0.1) is treated as eval-mode identity.
    # Additive key-pad bias (-1e9 where key token is 'P'==0), instead of a [B,L,L] mask.
    bias = jnp.where(enc_inputs == 0, -1e9, 0.0).astype(jnp.float32)[:, None, :]  # [B,1,L]
    out, attn = encoder_stack(x, bias, params["wqkv"], params["wo"],
                              params["w1"], params["w2"])
    attns = [attn[i] for i in range(n_layers)]              # each [B, H, L, L]
    return out, attns


if __name__ == "__main__":
    key = jax.random.PRNGKey(0)
    k_in, k_par = jax.random.split(key)

    B, L = 2, 8
    enc_inputs = jax.random.randint(k_in, (B, L), 0, src_vocab_size, dtype=jnp.int32)
    enc_inputs = enc_inputs.at[:, -2:].set(0)   # force some pad tokens ('P' == 0)

    params = init_params(k_par)
    enc_outputs, enc_self_attns = encoder_forward(params, enc_inputs)
    enc_outputs = jax.block_until_ready(enc_outputs)
    enc_self_attns = [jax.block_until_ready(a) for a in enc_self_attns]

    assert enc_outputs.shape == (B, L, d_model)
    assert len(enc_self_attns) == n_layers
    assert all(a.shape == (B, n_heads, L, L) for a in enc_self_attns)
    assert bool(jnp.all(jnp.isfinite(enc_outputs)))
    # attention rows sum to 1 (softmax over keys); exact divide in-kernel
    for a in enc_self_attns:
        assert bool(jnp.allclose(jnp.sum(a, axis=-1), 1.0, atol=1e-3))
    # pad-key columns get ~zero attention
    assert bool(jnp.all(enc_self_attns[0][..., -2:] < 1e-6))

    print("KERNEL_OK")
</pallas_src>

<mosaic_0001>
module attributes {stable_mosaic.version = 11 : i64} {
  func.func @encoder_layer_kernel(%arg0: i32, %arg1: memref<2x8x512xf32, #tpu.memory_space<vmem>>, %arg2: memref<2x1x8xf32, #tpu.memory_space<vmem>>, %arg3: memref<1x512x1536xbf16, #tpu.memory_space<vmem>>, %arg4: memref<1x512x512xbf16, #tpu.memory_space<vmem>>, %arg5: memref<1x512x2048xbf16, #tpu.memory_space<vmem>>, %arg6: memref<1x2048x512xbf16, #tpu.memory_space<vmem>>, %arg7: memref<2x8x512xf32, #tpu.memory_space<vmem>>, %arg8: memref<1x2x8x8x8xf32, #tpu.memory_space<vmem>>, %arg9: memref<16x512xf32, #tpu.memory_space<vmem>>) attributes {dimension_semantics = [#tpu.dimension_semantics<arbitrary>], iteration_bounds = array<i64: 6>, scalar_prefetch = 0 : i64, scratch_operands = 1 : i64, tpu.core_type = #tpu.core_type<tc>, window_params = [{pipeline_mode = #tpu.pipeline_mode<synchronous>, transform_indices = @transform_0, window_bounds = array<i64: 2, 8, 512>}, {pipeline_mode = #tpu.pipeline_mode<synchronous>, transform_indices = @transform_1, window_bounds = array<i64: 2, 1, 8>}, {transform_indices = @transform_2, window_bounds = array<i64: 1, 512, 1536>}, {transform_indices = @transform_3, window_bounds = array<i64: 1, 512, 512>}, {transform_indices = @transform_4, window_bounds = array<i64: 1, 512, 2048>}, {transform_indices = @transform_5, window_bounds = array<i64: 1, 2048, 512>}, {pipeline_mode = #tpu.pipeline_mode<synchronous>, transform_indices = @transform_6, window_bounds = array<i64: 2, 8, 512>}, {transform_indices = @transform_7, window_bounds = array<i64: 1, 2, 8, 8, 8>}]} {
    %c0_i32 = arith.constant 0 : i32
    %0 = arith.cmpi eq, %arg0, %c0_i32 : i32
    %1 = arith.extui %0 : i1 to i32
    %c0_i32_0 = arith.constant 0 : i32
    %2 = arith.cmpi ne, %1, %c0_i32_0 : i32
    scf.if %2 {
      %c0_79 = arith.constant 0 : index
      %c0_80 = arith.constant 0 : index
      %c0_81 = arith.constant 0 : index
      %245 = vector.load %arg1[%c0_79, %c0_80, %c0_81] : memref<2x8x512xf32, #tpu.memory_space<vmem>>, vector<2x8x512xf32>
      %246 = vector.shape_cast %245 : vector<2x8x512xf32> to vector<16x512xf32>
      %c0_82 = arith.constant 0 : index
      %c0_83 = arith.constant 0 : index
      %247 = vector.load %arg9[%c0_82, %c0_83] : memref<16x512xf32, #tpu.memory_space<vmem>>, vector<16x512xf32>
      tpu.vector_store %arg9[%c0_82, %c0_83], %246 {strides = array<i32>} : memref<16x512xf32, #tpu.memory_space<vmem>>, vector<16x512xf32>,
    } else {
    }
    %c0 = arith.constant 0 : index
    %c0_1 = arith.constant 0 : index
    %3 = vector.load %arg9[%c0, %c0_1] : memref<16x512xf32, #tpu.memory_space<vmem>>, vector<16x512xf32>
    %c0_2 = arith.constant 0 : index
    %c0_3 = arith.constant 0 : index
    %c0_4 = arith.constant 0 : index
    %4 = vector.load %arg2[%c0_2, %c0_3, %c0_4] : memref<2x1x8xf32, #tpu.memory_space<vmem>>, vector<2x1x8xf32>
    %5 = arith.truncf %3 : vector<16x512xf32> to vector<16x512xbf16>
    %c0_5 = arith.constant 0 : index
    %c0_6 = arith.constant 0 : index
    %c0_7 = arith.constant 0 : index
    %6 = vector.load %arg3[%c0_5, %c0_6, %c0_7] : memref<1x512x1536xbf16, #tpu.memory_space<vmem>>, vector<1x512x1536xbf16>
    %7 = vector.shape_cast %6 : vector<1x512x1536xbf16> to vector<512x1536xbf16>
    %cst = arith.constant dense<0.000000e+00> : vector<16x1536xf32>
    %8 = tpu.matmul %5, %7, %cst {dimension_numbers = #tpu.dot_dimension_numbers<[1], [0], [0], [1], [0, 0, 1, 1], [], []>} : vector<16x512xbf16>, vector<512x1536xbf16>, vector<16x1536xf32> -> vector<16x1536xf32>
    %9 = vector.extract_strided_slice %8 {offsets = [0, 0], sizes = [16, 512], strides = [1, 1]} : vector<16x1536xf32> to vector<16x512xf32>
    %10 = vector.shape_cast %9 : vector<16x512xf32> to vector<2x8x512xf32>
    %11 = vector.extract_strided_slice %8 {offsets = [0, 512], sizes = [16, 512], strides = [1, 1]} : vector<16x1536xf32> to vector<16x512xf32>
    %12 = vector.shape_cast %11 : vector<16x512xf32> to vector<2x8x512xf32>
    %13 = vector.extract_strided_slice %8 {offsets = [0, 1024], sizes = [16, 512], strides = [1, 1]} : vector<16x1536xf32> to vector<16x512xf32>
    %14 = vector.shape_cast %13 : vector<16x512xf32> to vector<2x8x512xf32>
    %15 = vector.extract_strided_slice %10 {offsets = [0, 0, 0], sizes = [2, 8, 64], strides = [1, 1, 1]} : vector<2x8x512xf32> to vector<2x8x64xf32>
    %16 = vector.extract_strided_slice %12 {offsets = [0, 0, 0], sizes = [2, 8, 64], strides = [1, 1, 1]} : vector<2x8x512xf32> to vector<2x8x64xf32>
    %17 = vector.extract_strided_slice %14 {offsets = [0, 0, 0], sizes = [2, 8, 64], strides = [1, 1, 1]} : vector<2x8x512xf32> to vector<2x8x64xf32>
    "tpu.trace_start"() <{level = 10 : i32, message = "bqd,bkd->bqk"}> : () -> ()
    %cst_8 = arith.constant dense<0.000000e+00> : vector<2x8x8xf32>
    %18 = tpu.matmul %15, %16, %cst_8 {dimension_numbers = #tpu.dot_dimension_numbers<[2], [2], [1], [1], [0, 0, 0, 1, 1, 1], [0], [0]>} : vector<2x8x64xf32>, vector<2x8x64xf32>, vector<2x8x8xf32> -> vector<2x8x8xf32>
    "tpu.trace_stop"() : () -> ()
    %cst_9 = arith.constant 1.250000e-01 : f32
    %19 = vector.broadcast %cst_9 : f32 to vector<2x8x8xf32>
    %20 = arith.mulf %18, %19 : vector<2x8x8xf32>
    %21 = vector.broadcast %4 : vector<2x1x8xf32> to vector<2x8x8xf32>
    %22 = arith.addf %20, %21 : vector<2x8x8xf32>
    %cst_10 = arith.constant dense<0xFF800000> : vector<2x8xf32>
    %23 = vector.multi_reduction <maximumf>, %22, %cst_10 [2] : vector<2x8x8xf32> to vector<2x8xf32>
    %24 = vector.shape_cast %23 : vector<2x8xf32> to vector<2x8x1xf32>
    %25 = vector.broadcast %24 : vector<2x8x1xf32> to vector<2x8x8xf32>
    %26 = arith.subf %22, %25 : vector<2x8x8xf32>
    %27 = math.exp %26 : vector<2x8x8xf32>
    %cst_11 = arith.constant dense<0.000000e+00> : vector<2x8xf32>
    %28 = vector.multi_reduction <add>, %27, %cst_11 [2] : vector<2x8x8xf32> to vector<2x8xf32>
    %29 = vector.shape_cast %28 : vector<2x8xf32> to vector<2x8x1xf32>
    %30 = vector.broadcast %29 : vector<2x8x1xf32> to vector<2x8x8xf32>
    %31 = arith.divf %27, %30 : vector<2x8x8xf32>
    %32 = arith.truncf %31 : vector<2x8x8xf32> to vector<2x8x8xbf16>
    %33 = arith.truncf %17 : vector<2x8x64xf32> to vector<2x8x64xbf16>
    "tpu.trace_start"() <{level = 10 : i32, message = "bqk,bkd->bqd"}> : () -> ()
    %cst_12 = arith.constant dense<0.000000e+00> : vector<2x8x64xf32>
    %34 = tpu.matmul %32, %33, %cst_12 {dimension_numbers = #tpu.dot_dimension_numbers<[2], [1], [1], [2], [0, 0, 0, 1, 1, 2], [0], [0]>} : vector<2x8x8xbf16>, vector<2x8x64xbf16>, vector<2x8x64xf32> -> vector<2x8x64xf32>
    "tpu.trace_stop"() : () -> ()
    %35 = vector.extract_strided_slice %10 {offsets = [0, 0, 64], sizes = [2, 8, 64], strides = [1, 1, 1]} : vector<2x8x512xf32> to vector<2x8x64xf32>
    %36 = vector.extract_strided_slice %12 {offsets = [0, 0, 64], sizes = [2, 8, 64], strides = [1, 1, 1]} : vector<2x8x512xf32> to vector<2x8x64xf32>
    %37 = vector.extract_strided_slice %14 {offsets = [0, 0, 64], sizes = [2, 8, 64], strides = [1, 1, 1]} : vector<2x8x512xf32> to vector<2x8x64xf32>
    "tpu.trace_start"() <{level = 10 : i32, message = "bqd,bkd->bqk"}> : () -> ()
    %cst_13 = arith.constant dense<0.000000e+00> : vector<2x8x8xf32>
    %38 = tpu.matmul %35, %36, %cst_13 {dimension_numbers = #tpu.dot_dimension_numbers<[2], [2], [1], [1], [0, 0, 0, 1, 1, 1], [0], [0]>} : vector<2x8x64xf32>, vector<2x8x64xf32>, vector<2x8x8xf32> -> vector<2x8x8xf32>
    "tpu.trace_stop"() : () -> ()
    %cst_14 = arith.constant 1.250000e-01 : f32
    %39 = vector.broadcast %cst_14 : f32 to vector<2x8x8xf32>
    %40 = arith.mulf %38, %39 : vector<2x8x8xf32>
    %41 = vector.broadcast %4 : vector<2x1x8xf32> to vector<2x8x8xf32>
    %42 = arith.addf %40, %41 : vector<2x8x8xf32>
    %cst_15 = arith.constant dense<0xFF800000> : vector<2x8xf32>
    %43 = vector.multi_reduction <maximumf>, %42, %cst_15 [2] : vector<2x8x8xf32> to vector<2x8xf32>
    %44 = vector.shape_cast %43 : vector<2x8xf32> to vector<2x8x1xf32>
    %45 = vector.broadcast %44 : vector<2x8x1xf32> to vector<2x8x8xf32>
    %46 = arith.subf %42, %45 : vector<2x8x8xf32>
    %47 = math.exp %46 : vector<2x8x8xf32>
    %cst_16 = arith.constant dense<0.000000e+00> : vector<2x8xf32>
    %48 = vector.multi_reduction <add>, %47, %cst_16 [2] : vector<2x8x8xf32> to vector<2x8xf32>
    %49 = vector.shape_cast %48 : vector<2x8xf32> to vector<2x8x1xf32>
    %50 = vector.broadcast %49 : vector<2x8x1xf32> to vector<2x8x8xf32>
    %51 = arith.divf %47, %50 : vector<2x8x8xf32>
    %52 = arith.truncf %51 : vector<2x8x8xf32> to vector<2x8x8xbf16>
    %53 = arith.truncf %37 : vector<2x8x64xf32> to vector<2x8x64xbf16>
    "tpu.trace_start"() <{level = 10 : i32, message = "bqk,bkd->bqd"}> : () -> ()
    %cst_17 = arith.constant dense<0.000000e+00> : vector<2x8x64xf32>
    %54 = tpu.matmul %52, %53, %cst_17 {dimension_numbers = #tpu.dot_dimension_numbers<[2], [1], [1], [2], [0, 0, 0, 1, 1, 2], [0], [0]>} : vector<2x8x8xbf16>, vector<2x8x64xbf16>, vector<2x8x64xf32> -> vector<2x8x64xf32>
    "tpu.trace_stop"() : () -> ()
    %55 = vector.extract_strided_slice %10 {offsets = [0, 0, 128], sizes = [2, 8, 64], strides = [1, 1, 1]} : vector<2x8x512xf32> to vector<2x8x64xf32>
    %56 = vector.extract_strided_slice %12 {offsets = [0, 0, 128], sizes = [2, 8, 64], strides = [1, 1, 1]} : vector<2x8x512xf32> to vector<2x8x64xf32>
    %57 = vector.extract_strided_slice %14 {offsets = [0, 0, 128], sizes = [2, 8, 64], strides = [1, 1, 1]} : vector<2x8x512xf32> to vector<2x8x64xf32>
    "tpu.trace_start"() <{level = 10 : i32, message = "bqd,bkd->bqk"}> : () -> ()
    %cst_18 = arith.constant dense<0.000000e+00> : vector<2x8x8xf32>
    %58 = tpu.matmul %55, %56, %cst_18 {dimension_numbers = #tpu.dot_dimension_numbers<[2], [2], [1], [1], [0, 0, 0, 1, 1, 1], [0], [0]>} : vector<2x8x64xf32>, vector<2x8x64xf32>, vector<2x8x8xf32> -> vector<2x8x8xf32>
    "tpu.trace_stop"() : () -> ()
    %cst_19 = arith.constant 1.250000e-01 : f32
    %59 = vector.broadcast %cst_19 : f32 to vector<2x8x8xf32>
    %60 = arith.mulf %58, %59 : vector<2x8x8xf32>
    %61 = vector.broadcast %4 : vector<2x1x8xf32> to vector<2x8x8xf32>
    %62 = arith.addf %60, %61 : vector<2x8x8xf32>
    %cst_20 = arith.constant dense<0xFF800000> : vector<2x8xf32>
    %63 = vector.multi_reduction <maximumf>, %62, %cst_20 [2] : vector<2x8x8xf32> to vector<2x8xf32>
    %64 = vector.shape_cast %63 : vector<2x8xf32> to vector<2x8x1xf32>
    %65 = vector.broadcast %64 : vector<2x8x1xf32> to vector<2x8x8xf32>
    %66 = arith.subf %62, %65 : vector<2x8x8xf32>
    %67 = math.exp %66 : vector<2x8x8xf32>
    %cst_21 = arith.constant dense<0.000000e+00> : vector<2x8xf32>
    %68 = vector.multi_reduction <add>, %67, %cst_21 [2] : vector<2x8x8xf32> to vector<2x8xf32>
    %69 = vector.shape_cast %68 : vector<2x8xf32> to vector<2x8x1xf32>
    %70 = vector.broadcast %69 : vector<2x8x1xf32> to vector<2x8x8xf32>
    %71 = arith.divf %67, %70 : vector<2x8x8xf32>
    %72 = arith.truncf %71 : vector<2x8x8xf32> to vector<2x8x8xbf16>
    %73 = arith.truncf %57 : vector<2x8x64xf32> to vector<2x8x64xbf16>
    "tpu.trace_start"() <{level = 10 : i32, message = "bqk,bkd->bqd"}> : () -> ()
    %cst_22 = arith.constant dense<0.000000e+00> : vector<2x8x64xf32>
    %74 = tpu.matmul %72, %73, %cst_22 {dimension_numbers = #tpu.dot_dimension_numbers<[2], [1], [1], [2], [0, 0, 0, 1, 1, 2], [0], [0]>} : vector<2x8x8xbf16>, vector<2x8x64xbf16>, vector<2x8x64xf32> -> vector<2x8x64xf32>
    "tpu.trace_stop"() : () -> ()
    %75 = vector.extract_strided_slice %10 {offsets = [0, 0, 192], sizes = [2, 8, 64], strides = [1, 1, 1]} : vector<2x8x512xf32> to vector<2x8x64xf32>
    %76 = vector.extract_strided_slice %12 {offsets = [0, 0, 192], sizes = [2, 8, 64], strides = [1, 1, 1]} : vector<2x8x512xf32> to vector<2x8x64xf32>
    %77 = vector.extract_strided_slice %14 {offsets = [0, 0, 192], sizes = [2, 8, 64], strides = [1, 1, 1]} : vector<2x8x512xf32> to vector<2x8x64xf32>
    "tpu.trace_start"() <{level = 10 : i32, message = "bqd,bkd->bqk"}> : () -> ()
    %cst_23 = arith.constant dense<0.000000e+00> : vector<2x8x8xf32>
    %78 = tpu.matmul %75, %76, %cst_23 {dimension_numbers = #tpu.dot_dimension_numbers<[2], [2], [1], [1], [0, 0, 0, 1, 1, 1], [0], [0]>} : vector<2x8x64xf32>, vector<2x8x64xf32>, vector<2x8x8xf32> -> vector<2x8x8xf32>
    "tpu.trace_stop"() : () -> ()
    %cst_24 = arith.constant 1.250000e-01 : f32
    %79 = vector.broadcast %cst_24 : f32 to vector<2x8x8xf32>
    %80 = arith.mulf %78, %79 : vector<2x8x8xf32>
    %81 = vector.broadcast %4 : vector<2x1x8xf32> to vector<2x8x8xf32>
    %82 = arith.addf %80, %81 : vector<2x8x8xf32>
    %cst_25 = arith.constant dense<0xFF800000> : vector<2x8xf32>
    %83 = vector.multi_reduction <maximumf>, %82, %cst_25 [2] : vector<2x8x8xf32> to vector<2x8xf32>
    %84 = vector.shape_cast %83 : vector<2x8xf32> to vector<2x8x1xf32>
    %85 = vector.broadcast %84 : vector<2x8x1xf32> to vector<2x8x8xf32>
    %86 = arith.subf %82, %85 : vector<2x8x8xf32>
    %87 = math.exp %86 : vector<2x8x8xf32>
    %cst_26 = arith.constant dense<0.000000e+00> : vector<2x8xf32>
    %88 = vector.multi_reduction <add>, %87, %cst_26 [2] : vector<2x8x8xf32> to vector<2x8xf32>
    %89 = vector.shape_cast %88 : vector<2x8xf32> to vector<2x8x1xf32>
    %90 = vector.broadcast %89 : vector<2x8x1xf32> to vector<2x8x8xf32>
    %91 = arith.divf %87, %90 : vector<2x8x8xf32>
    %92 = arith.truncf %91 : vector<2x8x8xf32> to vector<2x8x8xbf16>
    %93 = arith.truncf %77 : vector<2x8x64xf32> to vector<2x8x64xbf16>
    "tpu.trace_start"() <{level = 10 : i32, message = "bqk,bkd->bqd"}> : () -> ()
    %cst_27 = arith.constant dense<0.000000e+00> : vector<2x8x64xf32>
    %94 = tpu.matmul %92, %93, %cst_27 {dimension_numbers = #tpu.dot_dimension_numbers<[2], [1], [1], [2], [0, 0, 0, 1, 1, 2], [0], [0]>} : vector<2x8x8xbf16>, vector<2x8x64xbf16>, vector<2x8x64xf32> -> vector<2x8x64xf32>
    "tpu.trace_stop"() : () -> ()
    %95 = vector.extract_strided_slice %10 {offsets = [0, 0, 256], sizes = [2, 8, 64], strides = [1, 1, 1]} : vector<2x8x512xf32> to vector<2x8x64xf32>
    %96 = vector.extract_strided_slice %12 {offsets = [0, 0, 256], sizes = [2, 8, 64], strides = [1, 1, 1]} : vector<2x8x512xf32> to vector<2x8x64xf32>
    %97 = vector.extract_strided_slice %14 {offsets = [0, 0, 256], sizes = [2, 8, 64], strides = [1, 1, 1]} : vector<2x8x512xf32> to vector<2x8x64xf32>
    "tpu.trace_start"() <{level = 10 : i32, message = "bqd,bkd->bqk"}> : () -> ()
    %cst_28 = arith.constant dense<0.000000e+00> : vector<2x8x8xf32>
    %98 = tpu.matmul %95, %96, %cst_28 {dimension_numbers = #tpu.dot_dimension_numbers<[2], [2], [1], [1], [0, 0, 0, 1, 1, 1], [0], [0]>} : vector<2x8x64xf32>, vector<2x8x64xf32>, vector<2x8x8xf32> -> vector<2x8x8xf32>
    "tpu.trace_stop"() : () -> ()
    %cst_29 = arith.constant 1.250000e-01 : f32
    %99 = vector.broadcast %cst_29 : f32 to vector<2x8x8xf32>
    %100 = arith.mulf %98, %99 : vector<2x8x8xf32>
    %101 = vector.broadcast %4 : vector<2x1x8xf32> to vector<2x8x8xf32>
    %102 = arith.addf %100, %101 : vector<2x8x8xf32>
    %cst_30 = arith.constant dense<0xFF800000> : vector<2x8xf32>
    %103 = vector.multi_reduction <maximumf>, %102, %cst_30 [2] : vector<2x8x8xf32> to vector<2x8xf32>
    %104 = vector.shape_cast %103 : vector<2x8xf32> to vector<2x8x1xf32>
    %105 = vector.broadcast %104 : vector<2x8x1xf32> to vector<2x8x8xf32>
    %106 = arith.subf %102, %105 : vector<2x8x8xf32>
    %107 = math.exp %106 : vector<2x8x8xf32>
    %cst_31 = arith.constant dense<0.000000e+00> : vector<2x8xf32>
    %108 = vector.multi_reduction <add>, %107, %cst_31 [2] : vector<2x8x8xf32> to vector<2x8xf32>
    %109 = vector.shape_cast %108 : vector<2x8xf32> to vector<2x8x1xf32>
    %110 = vector.broadcast %109 : vector<2x8x1xf32> to vector<2x8x8xf32>
    %111 = arith.divf %107, %110 : vector<2x8x8xf32>
    %112 = arith.truncf %111 : vector<2x8x8xf32> to vector<2x8x8xbf16>
    %113 = arith.truncf %97 : vector<2x8x64xf32> to vector<2x8x64xbf16>
    "tpu.trace_start"() <{level = 10 : i32, message = "bqk,bkd->bqd"}> : () -> ()
    %cst_32 = arith.constant dense<0.000000e+00> : vector<2x8x64xf32>
    %114 = tpu.matmul %112, %113, %cst_32 {dimension_numbers = #tpu.dot_dimension_numbers<[2], [1], [1], [2], [0, 0, 0, 1, 1, 2], [0], [0]>} : vector<2x8x8xbf16>, vector<2x8x64xbf16>, vector<2x8x64xf32> -> vector<2x8x64xf32>
    "tpu.trace_stop"() : () -> ()
    %115 = vector.extract_strided_slice %10 {offsets = [0, 0, 320], sizes = [2, 8, 64], strides = [1, 1, 1]} : vector<2x8x512xf32> to vector<2x8x64xf32>
    %116 = vector.extract_strided_slice %12 {offsets = [0, 0, 320], sizes = [2, 8, 64], strides = [1, 1, 1]} : vector<2x8x512xf32> to vector<2x8x64xf32>
    %117 = vector.extract_strided_slice %14 {offsets = [0, 0, 320], sizes = [2, 8, 64], strides = [1, 1, 1]} : vector<2x8x512xf32> to vector<2x8x64xf32>
    "tpu.trace_start"() <{level = 10 : i32, message = "bqd,bkd->bqk"}> : () -> ()
    %cst_33 = arith.constant dense<0.000000e+00> : vector<2x8x8xf32>
    %118 = tpu.matmul %115, %116, %cst_33 {dimension_numbers = #tpu.dot_dimension_numbers<[2], [2], [1], [1], [0, 0, 0, 1, 1, 1], [0], [0]>} : vector<2x8x64xf32>, vector<2x8x64xf32>, vector<2x8x8xf32> -> vector<2x8x8xf32>
    "tpu.trace_stop"() : () -> ()
    %cst_34 = arith.constant 1.250000e-01 : f32
    %119 = vector.broadcast %cst_34 : f32 to vector<2x8x8xf32>
    %120 = arith.mulf %118, %119 : vector<2x8x8xf32>
    %121 = vector.broadcast %4 : vector<2x1x8xf32> to vector<2x8x8xf32>
    %122 = arith.addf %120, %121 : vector<2x8x8xf32>
    %cst_35 = arith.constant dense<0xFF800000> : vector<2x8xf32>
    %123 = vector.multi_reduction <maximumf>, %122, %cst_35 [2] : vector<2x8x8xf32> to vector<2x8xf32>
    %124 = vector.shape_cast %123 : vector<2x8xf32> to vector<2x8x1xf32>
    %125 = vector.broadcast %124 : vector<2x8x1xf32> to vector<2x8x8xf32>
    %126 = arith.subf %122, %125 : vector<2x8x8xf32>
    %127 = math.exp %126 : vector<2x8x8xf32>
    %cst_36 = arith.constant dense<0.000000e+00> : vector<2x8xf32>
    %128 = vector.multi_reduction <add>, %127, %cst_36 [2] : vector<2x8x8xf32> to vector<2x8xf32>
    %129 = vector.shape_cast %128 : vector<2x8xf32> to vector<2x8x1xf32>
    %130 = vector.broadcast %129 : vector<2x8x1xf32> to vector<2x8x8xf32>
    %131 = arith.divf %127, %130 : vector<2x8x8xf32>
    %132 = arith.truncf %131 : vector<2x8x8xf32> to vector<2x8x8xbf16>
    %133 = arith.truncf %117 : vector<2x8x64xf32> to vector<2x8x64xbf16>
    "tpu.trace_start"() <{level = 10 : i32, message = "bqk,bkd->bqd"}> : () -> ()
    %cst_37 = arith.constant dense<0.000000e+00> : vector<2x8x64xf32>
    %134 = tpu.matmul %132, %133, %cst_37 {dimension_numbers = #tpu.dot_dimension_numbers<[2], [1], [1], [2], [0, 0, 0, 1, 1, 2], [0], [0]>} : vector<2x8x8xbf16>, vector<2x8x64xbf16>, vector<2x8x64xf32> -> vector<2x8x64xf32>
    "tpu.trace_stop"() : () -> ()
    %135 = vector.extract_strided_slice %10 {offsets = [0, 0, 384], sizes = [2, 8, 64], strides = [1, 1, 1]} : vector<2x8x512xf32> to vector<2x8x64xf32>
    %136 = vector.extract_strided_slice %12 {offsets = [0, 0, 384], sizes = [2, 8, 64], strides = [1, 1, 1]} : vector<2x8x512xf32> to vector<2x8x64xf32>
    %137 = vector.extract_strided_slice %14 {offsets = [0, 0, 384], sizes = [2, 8, 64], strides = [1, 1, 1]} : vector<2x8x512xf32> to vector<2x8x64xf32>
    "tpu.trace_start"() <{level = 10 : i32, message = "bqd,bkd->bqk"}> : () -> ()
    %cst_38 = arith.constant dense<0.000000e+00> : vector<2x8x8xf32>
    %138 = tpu.matmul %135, %136, %cst_38 {dimension_numbers = #tpu.dot_dimension_numbers<[2], [2], [1], [1], [0, 0, 0, 1, 1, 1], [0], [0]>} : vector<2x8x64xf32>, vector<2x8x64xf32>, vector<2x8x8xf32> -> vector<2x8x8xf32>
    "tpu.trace_stop"() : () -> ()
    %cst_39 = arith.constant 1.250000e-01 : f32
    %139 = vector.broadcast %cst_39 : f32 to vector<2x8x8xf32>
    %140 = arith.mulf %138, %139 : vector<2x8x8xf32>
    %141 = vector.broadcast %4 : vector<2x1x8xf32> to vector<2x8x8xf32>
    %142 = arith.addf %140, %141 : vector<2x8x8xf32>
    %cst_40 = arith.constant dense<0xFF800000> : vector<2x8xf32>
    %143 = vector.multi_reduction <maximumf>, %142, %cst_40 [2] : vector<2x8x8xf32> to vector<2x8xf32>
    %144 = vector.shape_cast %143 : vector<2x8xf32> to vector<2x8x1xf32>
    %145 = vector.broadcast %144 : vector<2x8x1xf32> to vector<2x8x8xf32>
    %146 = arith.subf %142, %145 : vector<2x8x8xf32>
    %147 = math.exp %146 : vector<2x8x8xf32>
    %cst_41 = arith.constant dense<0.000000e+00> : vector<2x8xf32>
    %148 = vector.multi_reduction <add>, %147, %cst_41 [2] : vector<2x8x8xf32> to vector<2x8xf32>
    %149 = vector.shape_cast %148 : vector<2x8xf32> to vector<2x8x1xf32>
    %150 = vector.broadcast %149 : vector<2x8x1xf32> to vector<2x8x8xf32>
    %151 = arith.divf %147, %150 : vector<2x8x8xf32>
    %152 = arith.truncf %151 : vector<2x8x8xf32> to vector<2x8x8xbf16>
    %153 = arith.truncf %137 : vector<2x8x64xf32> to vector<2x8x64xbf16>
    "tpu.trace_start"() <{level = 10 : i32, message = "bqk,bkd->bqd"}> : () -> ()
    %cst_42 = arith.constant dense<0.000000e+00> : vector<2x8x64xf32>
    %154 = tpu.matmul %152, %153, %cst_42 {dimension_numbers = #tpu.dot_dimension_numbers<[2], [1], [1], [2], [0, 0, 0, 1, 1, 2], [0], [0]>} : vector<2x8x8xbf16>, vector<2x8x64xbf16>, vector<2x8x64xf32> -> vector<2x8x64xf32>
    "tpu.trace_stop"() : () -> ()
    %155 = vector.extract_strided_slice %10 {offsets = [0, 0, 448], sizes = [2, 8, 64], strides = [1, 1, 1]} : vector<2x8x512xf32> to vector<2x8x64xf32>
    %156 = vector.extract_strided_slice %12 {offsets = [0, 0, 448], sizes = [2, 8, 64], strides = [1, 1, 1]} : vector<2x8x512xf32> to vector<2x8x64xf32>
    %157 = vector.extract_strided_slice %14 {offsets = [0, 0, 448], sizes = [2, 8, 64], strides = [1, 1, 1]} : vector<2x8x512xf32> to vector<2x8x64xf32>
    "tpu.trace_start"() <{level = 10 : i32, message = "bqd,bkd->bqk"}> : () -> ()
    %cst_43 = arith.constant dense<0.000000e+00> : vector<2x8x8xf32>
    %158 = tpu.matmul %155, %156, %cst_43 {dimension_numbers = #tpu.dot_dimension_numbers<[2], [2], [1], [1], [0, 0, 0, 1, 1, 1], [0], [0]>} : vector<2x8x64xf32>, vector<2x8x64xf32>, vector<2x8x8xf32> -> vector<2x8x8xf32>
    "tpu.trace_stop"() : () -> ()
    %cst_44 = arith.constant 1.250000e-01 : f32
    %159 = vector.broadcast %cst_44 : f32 to vector<2x8x8xf32>
    %160 = arith.mulf %158, %159 : vector<2x8x8xf32>
    %161 = vector.broadcast %4 : vector<2x1x8xf32> to vector<2x8x8xf32>
    %162 = arith.addf %160, %161 : vector<2x8x8xf32>
    %cst_45 = arith.constant dense<0xFF800000> : vector<2x8xf32>
    %163 = vector.multi_reduction <maximumf>, %162, %cst_45 [2] : vector<2x8x8xf32> to vector<2x8xf32>
    %164 = vector.shape_cast %163 : vector<2x8xf32> to vector<2x8x1xf32>
    %165 = vector.broadcast %164 : vector<2x8x1xf32> to vector<2x8x8xf32>
    %166 = arith.subf %162, %165 : vector<2x8x8xf32>
    %167 = math.exp %166 : vector<2x8x8xf32>
    %cst_46 = arith.constant dense<0.000000e+00> : vector<2x8xf32>
    %168 = vector.multi_reduction <add>, %167, %cst_46 [2] : vector<2x8x8xf32> to vector<2x8xf32>
    %169 = vector.shape_cast %168 : vector<2x8xf32> to vector<2x8x1xf32>
    %170 = vector.broadcast %169 : vector<2x8x1xf32> to vector<2x8x8xf32>
    %171 = arith.divf %167, %170 : vector<2x8x8xf32>
    %172 = arith.truncf %171 : vector<2x8x8xf32> to vector<2x8x8xbf16>
    %173 = arith.truncf %157 : vector<2x8x64xf32> to vector<2x8x64xbf16>
    "tpu.trace_start"() <{level = 10 : i32, message = "bqk,bkd->bqd"}> : () -> ()
    %cst_47 = arith.constant dense<0.000000e+00> : vector<2x8x64xf32>
    %174 = tpu.matmul %172, %173, %cst_47 {dimension_numbers = #tpu.dot_dimension_numbers<[2], [1], [1], [2], [0, 0, 0, 1, 1, 2], [0], [0]>} : vector<2x8x8xbf16>, vector<2x8x64xbf16>, vector<2x8x64xf32> -> vector<2x8x64xf32>
    "tpu.trace_stop"() : () -> ()
    %175 = vector.shape_cast %31 : vector<2x8x8xf32> to vector<2x1x8x8xf32>
    %176 = vector.shape_cast %51 : vector<2x8x8xf32> to vector<2x1x8x8xf32>
    %177 = vector.shape_cast %71 : vector<2x8x8xf32> to vector<2x1x8x8xf32>
    %178 = vector.shape_cast %91 : vector<2x8x8xf32> to vector<2x1x8x8xf32>
    %179 = vector.shape_cast %111 : vector<2x8x8xf32> to vector<2x1x8x8xf32>
    %180 = vector.shape_cast %131 : vector<2x8x8xf32> to vector<2x1x8x8xf32>
    %181 = vector.shape_cast %151 : vector<2x8x8xf32> to vector<2x1x8x8xf32>
    %182 = vector.shape_cast %171 : vector<2x8x8xf32> to vector<2x1x8x8xf32>
    %183 = tpu.concatenate %175, %176, %177, %178, %179, %180, %181, %182 in 1 : vector<2x1x8x8xf32>, vector<2x1x8x8xf32>, vector<2x1x8x8xf32>, vector<2x1x8x8xf32>, vector<2x1x8x8xf32>, vector<2x1x8x8xf32>, vector<2x1x8x8xf32>, vector<2x1x8x8xf32> -> vector<2x8x8x8xf32>
    %c0_48 = arith.constant 0 : index
    %c0_49 = arith.constant 0 : index
    %c0_50 = arith.constant 0 : index
    %c0_51 = arith.constant 0 : index
    %c0_52 = arith.constant 0 : index
    %184 = vector.load %arg8[%c0_48, %c0_49, %c0_50, %c0_51, %c0_52] : memref<1x2x8x8x8xf32, #tpu.memory_space<vmem>>, vector<1x2x8x8x8xf32>
    %185 = vector.shape_cast %184 : vector<1x2x8x8x8xf32> to vector<2x8x8x8xf32>
    %186 = vector.shape_cast %183 : vector<2x8x8x8xf32> to vector<1x2x8x8x8xf32>
    tpu.vector_store %arg8[%c0_48, %c0_49, %c0_50, %c0_51, %c0_52], %186 {strides = array<i32>} : memref<1x2x8x8x8xf32, #tpu.memory_space<vmem>>, vector<1x2x8x8x8xf32>,
    %187 = tpu.concatenate %34, %54, %74, %94, %114, %134, %154, %174 in 2 : vector<2x8x64xf32>, vector<2x8x64xf32>, vector<2x8x64xf32>, vector<2x8x64xf32>, vector<2x8x64xf32>, vector<2x8x64xf32>, vector<2x8x64xf32>, vector<2x8x64xf32> -> vector<2x8x512xf32>
    %188 = vector.shape_cast %187 : vector<2x8x512xf32> to vector<16x512xf32>
    %189 = arith.truncf %188 : vector<16x512xf32> to vector<16x512xbf16>
    %c0_53 = arith.constant 0 : index
    %c0_54 = arith.constant 0 : index
    %c0_55 = arith.constant 0 : index
    %190 = vector.load %arg4[%c0_53, %c0_54, %c0_55] : memref<1x512x512xbf16, #tpu.memory_space<vmem>>, vector<1x512x512xbf16>
    %191 = vector.shape_cast %190 : vector<1x512x512xbf16> to vector<512x512xbf16>
    %cst_56 = arith.constant dense<0.000000e+00> : vector<16x512xf32>
    %192 = tpu.matmul %189, %191, %cst_56 {dimension_numbers = #tpu.dot_dimension_numbers<[1], [0], [0], [1], [0, 0, 1, 1], [], []>} : vector<16x512xbf16>, vector<512x512xbf16>, vector<16x512xf32> -> vector<16x512xf32>
    %193 = arith.addf %192, %3 : vector<16x512xf32>
    %cst_57 = arith.constant dense<0.000000e+00> : vector<16xf32>
    %194 = vector.multi_reduction <add>, %193, %cst_57 [1] : vector<16x512xf32> to vector<16xf32>
    %195 = vector.shape_cast %194 : vector<16xf32> to vector<16x1xf32>
    %cst_58 = arith.constant 5.120000e+02 : f32
    %196 = vector.broadcast %cst_58 : f32 to vector<16x1xf32>
    %197 = arith.divf %195, %196 : vector<16x1xf32>
    %198 = vector.broadcast %197 : vector<16x1xf32> to vector<16x512xf32>
    %199 = arith.subf %193, %198 : vector<16x512xf32>
    %200 = arith.mulf %199, %199 : vector<16x512xf32>
    %cst_59 = arith.constant dense<0.000000e+00> : vector<16xf32>
    %201 = vector.multi_reduction <add>, %200, %cst_59 [1] : vector<16x512xf32> to vector<16xf32>
    %202 = vector.shape_cast %201 : vector<16xf32> to vector<16x1xf32>
    %cst_60 = arith.constant 5.120000e+02 : f32
    %203 = vector.broadcast %cst_60 : f32 to vector<16x1xf32>
    %204 = arith.divf %202, %203 : vector<16x1xf32>
    %205 = vector.broadcast %197 : vector<16x1xf32> to vector<16x512xf32>
    %206 = arith.subf %193, %205 : vector<16x512xf32>
    %cst_61 = arith.constant 9.99999974E-6 : f32
    %207 = vector.broadcast %cst_61 : f32 to vector<16x1xf32>
    %208 = arith.addf %204, %207 : vector<16x1xf32>
    %209 = math.rsqrt %208 : vector<16x1xf32>
    %210 = vector.broadcast %209 : vector<16x1xf32> to vector<16x512xf32>
    %211 = arith.mulf %206, %210 : vector<16x512xf32>
    %212 = arith.truncf %211 : vector<16x512xf32> to vector<16x512xbf16>
    %c0_62 = arith.constant 0 : index
    %c0_63 = arith.constant 0 : index
    %c0_64 = arith.constant 0 : index
    %213 = vector.load %arg5[%c0_62, %c0_63, %c0_64] : memref<1x512x2048xbf16, #tpu.memory_space<vmem>>, vector<1x512x2048xbf16>
    %214 = vector.shape_cast %213 : vector<1x512x2048xbf16> to vector<512x2048xbf16>
    %cst_65 = arith.constant dense<0.000000e+00> : vector<16x2048xf32>
    %215 = tpu.matmul %212, %214, %cst_65 {dimension_numbers = #tpu.dot_dimension_numbers<[1], [0], [0], [1], [0, 0, 1, 1], [], []>} : vector<16x512xbf16>, vector<512x2048xbf16>, vector<16x2048xf32> -> vector<16x2048xf32>
    %cst_66 = arith.constant 0.000000e+00 : f32
    %216 = vector.broadcast %cst_66 : f32 to vector<16x2048xf32>
    %217 = arith.maximumf %215, %216 : vector<16x2048xf32>
    %218 = arith.truncf %217 : vector<16x2048xf32> to vector<16x2048xbf16>
    %c0_67 = arith.constant 0 : index
    %c0_68 = arith.constant 0 : index
    %c0_69 = arith.constant 0 : index
    %219 = vector.load %arg6[%c0_67, %c0_68, %c0_69] : memref<1x2048x512xbf16, #tpu.memory_space<vmem>>, vector<1x2048x512xbf16>
    %220 = vector.shape_cast %219 : vector<1x2048x512xbf16> to vector<2048x512xbf16>
    %cst_70 = arith.constant dense<0.000000e+00> : vector<16x512xf32>
    %221 = tpu.matmul %218, %220, %cst_70 {dimension_numbers = #tpu.dot_dimension_numbers<[1], [0], [0], [1], [0, 0, 1, 1], [], []>} : vector<16x2048xbf16>, vector<2048x512xbf16>, vector<16x512xf32> -> vector<16x512xf32>
    %222 = arith.addf %221, %211 : vector<16x512xf32>
    %cst_71 = arith.constant dense<0.000000e+00> : vector<16xf32>
    %223 = vector.multi_reduction <add>, %222, %cst_71 [1] : vector<16x512xf32> to vector<16xf32>
    %224 = vector.shape_cast %223 : vector<16xf32> to vector<16x1xf32>
    %cst_72 = arith.constant 5.120000e+02 : f32
    %225 = vector.broadcast %cst_72 : f32 to vector<16x1xf32>
    %226 = arith.divf %224, %225 : vector<16x1xf32>
    %227 = vector.broadcast %226 : vector<16x1xf32> to vector<16x512xf32>
    %228 = arith.subf %222, %227 : vector<16x512xf32>
    %229 = arith.mulf %228, %228 : vector<16x512xf32>
    %cst_73 = arith.constant dense<0.000000e+00> : vector<16xf32>
    %230 = vector.multi_reduction <add>, %229, %cst_73 [1] : vector<16x512xf32> to vector<16xf32>
    %231 = vector.shape_cast %230 : vector<16xf32> to vector<16x1xf32>
    %cst_74 = arith.constant 5.120000e+02 : f32
    %232 = vector.broadcast %cst_74 : f32 to vector<16x1xf32>
    %233 = arith.divf %231, %232 : vector<16x1xf32>
    %234 = vector.broadcast %226 : vector<16x1xf32> to vector<16x512xf32>
    %235 = arith.subf %222, %234 : vector<16x512xf32>
    %cst_75 = arith.constant 9.99999974E-6 : f32
    %236 = vector.broadcast %cst_75 : f32 to vector<16x1xf32>
    %237 = arith.addf %233, %236 : vector<16x1xf32>
    %238 = math.rsqrt %237 : vector<16x1xf32>
    %239 = vector.broadcast %238 : vector<16x1xf32> to vector<16x512xf32>
    %240 = arith.mulf %235, %239 : vector<16x512xf32>
    %c0_76 = arith.constant 0 : index
    %c0_77 = arith.constant 0 : index
    %241 = vector.load %arg9[%c0_76, %c0_77] : memref<16x512xf32, #tpu.memory_space<vmem>>, vector<16x512xf32>
    tpu.vector_store %arg9[%c0_76, %c0_77], %240 {strides = array<i32>} : memref<16x512xf32, #tpu.memory_space<vmem>>, vector<16x512xf32>,
    %c5_i32 = arith.constant 5 : i32
    %242 = arith.cmpi eq, %arg0, %c5_i32 : i32
    %243 = arith.extui %242 : i1 to i32
    %c0_i32_78 = arith.constant 0 : i32
    %244 = arith.cmpi ne, %243, %c0_i32_78 : i32
    scf.if %244 {
      %245 = vector.shape_cast %240 : vector<16x512xf32> to vector<2x8x512xf32>
      %c0_79 = arith.constant 0 : index
      %c0_80 = arith.constant 0 : index
      %c0_81 = arith.constant 0 : index
      %246 = vector.load %arg7[%c0_79, %c0_80, %c0_81] : memref<2x8x512xf32, #tpu.memory_space<vmem>>, vector<2x8x512xf32>
      tpu.vector_store %arg7[%c0_79, %c0_80, %c0_81], %245 {strides = array<i32>} : memref<2x8x512xf32, #tpu.memory_space<vmem>>, vector<2x8x512xf32>,
    } else {
    }
    return
  }
  func.func @transform_0(%arg0: i32) -> (i32, i32, i32) {
    %c0_i32 = arith.constant 0 : i32
    %c0_i32_0 = arith.constant 0 : i32
    %c0_i32_1 = arith.constant 0 : i32
    %c0_i32_2 = arith.constant 0 : i32
    return %c0_i32, %c0_i32_0, %c0_i32_1 : i32, i32, i32
  }
  func.func @transform_1(%arg0: i32) -> (i32, i32, i32) {
    %c0_i32 = arith.constant 0 : i32
    %c0_i32_0 = arith.constant 0 : i32
    %c0_i32_1 = arith.constant 0 : i32
    %c0_i32_2 = arith.constant 0 : i32
    return %c0_i32, %c0_i32_0, %c0_i32_1 : i32, i32, i32
  }
  func.func @transform_2(%arg0: i32) -> (i32, i32, i32) {
    %c0_i32 = arith.constant 0 : i32
    %c0_i32_0 = arith.constant 0 : i32
    %c0_i32_1 = arith.constant 0 : i32
    return %arg0, %c0_i32, %c0_i32_0 : i32, i32, i32
  }
  func.func @transform_3(%arg0: i32) -> (i32, i32, i32) {
    %c0_i32 = arith.constant 0 : i32
    %c0_i32_0 = arith.constant 0 : i32
    %c0_i32_1 = arith.constant 0 : i32
    return %arg0, %c0_i32, %c0_i32_0 : i32, i32, i32
  }
  func.func @transform_4(%arg0: i32) -> (i32, i32, i32) {
    %c0_i32 = arith.constant 0 : i32
    %c0_i32_0 = arith.constant 0 : i32
    %c0_i32_1 = arith.constant 0 : i32
    return %arg0, %c0_i32, %c0_i32_0 : i32, i32, i32
  }
  func.func @transform_5(%arg0: i32) -> (i32, i32, i32) {
    %c0_i32 = arith.constant 0 : i32
    %c0_i32_0 = arith.constant 0 : i32
    %c0_i32_1 = arith.constant 0 : i32
    return %arg0, %c0_i32, %c0_i32_0 : i32, i32, i32
  }
  func.func @transform_6(%arg0: i32) -> (i32, i32, i32) {
    %c0_i32 = arith.constant 0 : i32
    %c0_i32_0 = arith.constant 0 : i32
    %c0_i32_1 = arith.constant 0 : i32
    %c0_i32_2 = arith.constant 0 : i32
    return %c0_i32, %c0_i32_0, %c0_i32_1 : i32, i32, i32
  }
  func.func @transform_7(%arg0: i32) -> (i32, i32, i32, i32, i32) {
    %c0_i32 = arith.constant 0 : i32
    %c0_i32_0 = arith.constant 0 : i32
    %c0_i32_1 = arith.constant 0 : i32
    %c0_i32_2 = arith.constant 0 : i32
    %c0_i32_3 = arith.constant 0 : i32
    return %arg0, %c0_i32, %c0_i32_0, %c0_i32_1, %c0_i32_2 : i32, i32, i32, i32, i32
  }
}

</mosaic_0001>

<bundles_post_ra>
// kernel: encoder_forward.1
= control target key start
LH: loop header
LB: loop body
LE: loop exit
PB: predicated region body
PF: predicated region fallthrough
CT: control target
= control target key end

     0   :  { %s20857_s0 = inlined_call_operand.vmem [shape: f32[2,8,512], index: 0, kind: input, shape index: {}]   ;;  %s20858_s1 = inlined_call_operand.vmem [shape: f32[2,1,8], index: 1, kind: input, shape index: {}]   ;;  %s20859_s2 = inlined_call_operand.hbm [shape: bf16[6,512,1536], index: 2, kind: input, shape index: {}]   ;;  %s20860_s3 = inlined_call_operand.hbm [shape: bf16[6,512,512], index: 3, kind: input, shape index: {}]   ;;  %s20861_s4 = inlined_call_operand.hbm [shape: bf16[6,512,2048], index: 4, kind: input, shape index: {}]   ;;  %s20862_s5 = inlined_call_operand.hbm [shape: bf16[6,2048,512], index: 5, kind: input, shape index: {}]   ;;  %s20863_s6 = inlined_call_operand.hbm [shape: f32[2,8,512], index: 6, kind: output, shape index: {0}]   ;;  %s20864_s7 = inlined_call_operand.vmem [shape: f32[6,2,8,8,8], index: 7, kind: output, shape index: {1}]  }
   0x1   :  { %20868 = sst [smem:[#allocation16_spill]] %s20859_s2 }
   0x2   :  { %20869 = sst [smem:[#allocation17_spill]] %s20860_s3 }
   0x3   :  { %13 = vsyncpa [#allocation4], 0 }
   0x4   :  { %15 = vsyncpa [#allocation4 + $0x1], 0 }
   0x5   :  { %16 = vsyncpa [#allocation7], 0 }
   0x6   :  { %18 = vsyncpa [#allocation7 + $0x1], 0 }
   0x7   :  { %19 = vsyncpa [#allocation10], 0 }
   0x8   :  { %21 = vsyncpa [#allocation10 + $0x1], 0 }
   0x9   :  { %22 = vsyncpa [#allocation5], 0  ;;  %s18317_s24 = smov 0   ;;  %s18319_s25 = smov 0  }
   0xa   :  { %s18321_s26 = smov 0   ;;  %s18323_s27 = smov 0  }
   0xb LB: > { %s18336_s28 = sadd.s32 4294967295, %s18259_s27   ;;  %s18339_s29 = sadd.s32 1, %s18259_s27   ;;  %s18259_s27 = sphi %s18323_s27, %s20883_s27   ;;  %s18255_s26 = sphi %s18321_s26, %s20882_s26   ;;  %s18251_s25 = sphi %s18319_s25, %s20881_s25   ;;  %s18247_s24 = sphi %s18317_s24, %s20880_s24  }
   0xc   : > { %s74_s30 = ssub.s32 %s18259_s27, %s18339_s29  ;;  %s77_s8 = sadd.s32 1, %s18255_s26 }
   0xd   : > { %p75_p0 = scmp.eq.s32.totalorder %s74_s30, 0  ;;  %p84_p1 = scmp.ne.s32.totalorder %s18255_s26, %s18251_s25 }
   0xe   : > { %p85_p2 = scmp.eq.s32.totalorder %s18259_s27, 0  ;;  %p90_p3 = scmp.ne.s32.totalorder %s18251_s25, %s18247_s24 }
   0xf   : > { %s18349_s9 = scalar_select %p75_p0, %s18255_s26, %s77_s8  }
  0x10   : > { %p86_p4 = por %p85_p2, %p84_p1  ;;  %p91_p5 = scmp.eq.s32.totalorder %s18336_s28, 0 }
  0x11   : > { %p16384_p6 = scmp.lt.s32.totalorder %s18259_s27, 6  ;;  %s18358_s11 = sand.u32 1, %s18255_s26  }
  0x12   : > { %p18353_p7 = por %p91_p5, %p90_p3  ;;  %s266_s13 = sand.u32 1, %s18259_s27  }
  0x13   : > { %p18360_p8 = pnand %p16384_p6, %p86_p4  ;;  %s14369_s14 = sshll.u32 %s18358_s11, 10 }
  0x14   : > { %s20870_s10 = scalar_select %p18353_p7, 1, 0 }
  0x15   : > { %s15976_s15 = sshll.u32 %s18259_s27, 14  ;;  %s270_s16 = scalar_lea.vmem [#allocation6], %s14369_s14 }
  0x16   : > { %s277_s17 = sshll.u32 %s270_s16, 4  ;;  %s20872_s3 = sld [smem:[#allocation17_spill]]  ;;  %s18372_s17 = int_to_ptr.vmem [resolvable:$true] %s277_s17 }
  0x17   : > { %s18374_s21 = scalar_lea.sflag [#allocation7], %s266_s13  ;;  %p18380_p10 = pneg %p18360_p8 }
  0x1c   : > { %s18370_s20 = scalar_lea.hbm %s20872_s3, %s15976_s15  ;;  %s18072_s8 = scalar_lea.hbm %s20872_s3, 98304 }
  0x1d   : > { %s18067_s22 = scalar_lea.hbm %s18370_s20, 16384  ;;  %p18073_p13 = scmp.lt.u32.totalorder %s18370_s20, %s20872_s3 }
  0x1e   : > { %p18068_p9 = scmp.ne.s32.totalorder %s18370_s20, %s18067_s22  ;;  %p18074_p0 = scmp.lt.u32.totalorder %s18072_s8, %s18067_s22 }
  0x1f   : > { %p18076_p2 = scmp.lt.u32.totalorder %s18067_s22, %s18370_s20 }
  0x20   : > { %p18070_p11 = pnand %p18380_p10, %p18068_p9  ;;  %p18075_p1 = por %p18074_p0, %p18073_p13 }
  0x22   : > { %p18071_p12 = pneg %p18070_p11  ;;  %p18077_p3 = por %p18076_p2, %p18075_p1 }
  0x24   : > { %p18078_p4 = pnand %p18077_p3, %p18071_p12 }
  0x26   : > { %18081 = shalt.err (!%p18078_p4)
}
  0x27   : > { %s18082_s13 = scalar_lea.vmem %s18372_s17, 16384  ;;  %s18261_s16 = smov [#allocation6]  }
  0x28   : > { %p18083_p5 = scmp.ne.s32.totalorder %s18372_s17, %s18082_s13  ;;  %s18087_s18 = sshll.u32 %s18261_s16, 4  ;;  %s18088_s18 = int_to_ptr.vmem [resolvable:$false] %s18087_s18 }
  0x29   : > { %s18089_s19 = scalar_lea.vmem %s18088_s18, 32768  ;;  %p18090_p11 = scmp.lt.s32.totalorder %s18372_s17, %s18088_s18 }
  0x2a   : > { %p18085_p6 = pnand %p18083_p5, %p18380_p10  ;;  %p18091_p7 = scmp.lt.s32.totalorder %s18089_s19, %s18082_s13 }
  0x2c   : > { %p18086_p9 = pneg %p18085_p6  ;;  %p18092_p13 = por %p18091_p7, %p18090_p11 }
  0x2e   : > { %p18093_p0 = pnand %p18092_p13, %p18086_p9 }
  0x30   : > { %18096 = shalt.err (!%p18093_p0)
}
  0x31   : > { %s20866_s22 = smov 256   ;;  %s20867_s24 = smov 16  }
  0x32   : > { %16377 = dma.hbm_to_vmem [thread:$0]  (!%p18360_p8), %s18370_s20, 16384, %s18372_s17, %s18374_s21, %s20866_s22, %s20866_s22, %s20867_s24  }
  0x33   : > { %p14378_p7 = scmp.ge.s32.totalorder %s18259_s27, 1  ;;  %p327_p12 = scmp.lt.s32.totalorder %s18259_s27, 7 }
  0x34   : > { %s16356_s30 = smul.u32 3072, %s18358_s11  ;;  %s20875_s2 = sld [smem:[#allocation16_spill]] }
  0x35   : > { %p18410_p1 = pnand %p14378_p7, %p327_p12  ;;  %s16357_s14 = smul.u32 49152, %s18259_s27 }
  0x36   : > { %s249_s18 = scalar_lea.vmem [#allocation3], %s16356_s30  ;;  %s246_s17 = scalar_lea.sflag [#allocation4], %s18358_s11 }
  0x37   : > { %s20874_s8 = scalar_select %p18410_p1, 1, 0 }
  0x38   : > { %s256_s19 = sshll.u32 %s249_s18, 4  ;;  %s18420_s19 = int_to_ptr.vmem [resolvable:$true] %s256_s19 }
  0x3a   : > { %s18418_s16 = scalar_lea.hbm %s20875_s2, %s16357_s14  ;;  %s18102_s15 = scalar_lea.hbm %s20875_s2, 294912 }
  0x3b   : > { %s18097_s20 = scalar_lea.hbm %s18418_s16, 49152  ;;  %p18103_p5 = scmp.lt.u32.totalorder %s18418_s16, %s20875_s2 }
  0x3c   : > { %p18098_p2 = scmp.ne.s32.totalorder %s18418_s16, %s18097_s20  ;;  %p18104_p6 = scmp.lt.u32.totalorder %s18102_s15, %s18097_s20 }
  0x3d   : > { %p18106_p11 = scmp.lt.u32.totalorder %s18097_s20, %s18418_s16 }
  0x3e   : > { %p18100_p3 = pnand %p18098_p2, %p18380_p10  ;;  %p18105_p9 = por %p18104_p6, %p18103_p5 }
  0x40   : > { %p18101_p4 = pneg %p18100_p3  ;;  %p18107_p13 = por %p18106_p11, %p18105_p9 }
  0x42   : > { %p18108_p0 = pnand %p18107_p13, %p18101_p4 }
  0x44   : > { %18111 = shalt.err (!%p18108_p0)
}
  0x45   : > { %s18112_s30 = scalar_lea.vmem %s18420_s19, 49152  ;;  %s18264_s22 = smov [#allocation3]  }
  0x46   : > { %p18113_p7 = scmp.ne.s32.totalorder %s18420_s19, %s18112_s30  ;;  %s18117_s24 = sshll.u32 %s18264_s22, 4  ;;  %s18118_s24 = int_to_ptr.vmem [resolvable:$false] %s18117_s24 }
  0x47   : > { %s18119_s18 = scalar_lea.vmem %s18118_s24, 98304  ;;  %p18120_p3 = scmp.lt.s32.totalorder %s18420_s19, %s18118_s24 }
  0x48   : > { %p18115_p12 = pnand %p18113_p7, %p18380_p10  ;;  %p18121_p1 = scmp.lt.s32.totalorder %s18119_s18, %s18112_s30 }
  0x4a   : > { %p18116_p2 = pneg %p18115_p12  ;;  %p18122_p5 = por %p18121_p1, %p18120_p3 }
  0x4c   : > { %p18123_p6 = pnand %p18122_p5, %p18116_p2 }
  0x4e   : > { %18126 = shalt.err (!%p18123_p6)
}
  0x4f   : > { %s18265_s20 = smov 768   ;;  %s18266_s15 = smov 48  }
  0x50   : > { %16374 = dma.hbm_to_vmem [thread:$0]  (!%p18360_p8), %s18418_s16, 49152, %s18420_s19, %s246_s17, %s18265_s20, %s18265_s20, %s18266_s15  }
  0x51   : > { %s14372_s14 = sshll.u32 %s18358_s11, 12  ;;  %s15977_s13 = sshll.u32 %s18259_s27, 16 }
  0x52   : > { %s18453_s24 = scalar_lea.hbm %s20861_s4, %s15977_s13  ;;  %s291_s18 = scalar_lea.vmem [#allocation8], %s14372_s14 }
  0x53   : > { %s298_s2 = sshll.u32 %s291_s18, 4  ;;  %s18127_s3 = scalar_lea.hbm %s18453_s24, 65536  ;;  %s18457_s2 = int_to_ptr.vmem [resolvable:$true] %s298_s2 }
  0x54   : > { %p18128_p1 = scmp.ne.s32.totalorder %s18453_s24, %s18127_s3  ;;  %s18132_s17 = scalar_lea.hbm %s20861_s4, 393216 }
  0x55   : > { %p18133_p11 = scmp.lt.u32.totalorder %s18453_s24, %s20861_s4  ;;  %p18134_p13 = scmp.lt.u32.totalorder %s18132_s17, %s18127_s3 }
  0x56   : > { %p18130_p4 = pnand %p18128_p1, %p18380_p10  ;;  %p18136_p7 = scmp.lt.u32.totalorder %s18127_s3, %s18453_s24 }
  0x57   : > { %p18135_p0 = por %p18134_p13, %p18133_p11 }
  0x58   : > { %p18131_p9 = pneg %p18130_p4 }
  0x59   : > { %p18137_p12 = por %p18136_p7, %p18135_p0 }
  0x5b   : > { %p18138_p2 = pnand %p18137_p12, %p18131_p9 }
  0x5d   : > { %18141 = shalt.err (!%p18138_p2)
}
  0x5e   : > { %s18142_s30 = scalar_lea.vmem %s18457_s2, 65536  ;;  %s18267_s22 = smov [#allocation8]  }
  0x5f   : > { %p18143_p3 = scmp.ne.s32.totalorder %s18457_s2, %s18142_s30  ;;  %s18147_s18 = sshll.u32 %s18267_s22, 4  ;;  %s18148_s18 = int_to_ptr.vmem [resolvable:$false] %s18147_s18 }
  0x60   : > { %s18149_s16 = scalar_lea.vmem %s18148_s18, 131072  ;;  %p18150_p1 = scmp.lt.s32.totalorder %s18457_s2, %s18148_s18 }
  0x61   : > { %p18145_p5 = pnand %p18143_p3, %p18380_p10  ;;  %p18151_p4 = scmp.lt.s32.totalorder %s18149_s16, %s18142_s30 }
  0x63   : > { %p18146_p6 = pneg %p18145_p5  ;;  %p18152_p11 = por %p18151_p4, %p18150_p1 }
  0x65   : > { %p18153_p13 = pnand %p18152_p11, %p18146_p6 }
  0x67   : > { %18156 = shalt.err (!%p18153_p13)
}
  0x68   : > { %s18268_s3 = smov 1024   ;;  %s18269_s19 = smov 64  }
  0x69   : > { %16380 = dma.hbm_to_vmem [thread:$0]  (!%p18360_p8), %s18453_s24, 65536, %s18457_s2, %s18374_s21, %s18268_s3, %s18268_s3, %s18269_s19  }
  0x6a   : > { %s18486_s15 = scalar_lea.hbm %s20862_s5, %s15977_s13  ;;  %s312_s30 = scalar_lea.vmem [#allocation9], %s14372_s14 }
  0x6b   : > { %s319_s22 = sshll.u32 %s312_s30, 4  ;;  %s309_s18 = scalar_lea.sflag [#allocation10], %s18358_s11  ;;  %s18490_s22 = int_to_ptr.vmem [resolvable:$true] %s319_s22 }
  0x6c   : > { %s18157_s16 = scalar_lea.hbm %s18486_s15, 65536  ;;  %s18162_s21 = scalar_lea.hbm %s20862_s5, 393216 }
  0x6d   : > { %p18158_p9 = scmp.ne.s32.totalorder %s18486_s15, %s18157_s16  ;;  %p18163_p12 = scmp.lt.u32.totalorder %s18486_s15, %s20862_s5 }
  0x6e   : > { %p18164_p2 = scmp.lt.u32.totalorder %s18162_s21, %s18157_s16  ;;  %p18166_p5 = scmp.lt.u32.totalorder %s18157_s16, %s18486_s15 }
  0x6f   : > { %p18160_p0 = pnand %p18158_p9, %p18380_p10 }
  0x70   : > { %p18165_p3 = por %p18164_p2, %p18163_p12 }
  0x71   : > { %p18161_p7 = pneg %p18160_p0 }
  0x72   : > { %p18167_p6 = por %p18166_p5, %p18165_p3 }
  0x74   : > { %p18168_p1 = pnand %p18167_p6, %p18161_p7 }
  0x76   : > { %18171 = shalt.err (!%p18168_p1)
}
  0x77   : > { %s18172_s14 = scalar_lea.vmem %s18490_s22, 65536  ;;  %s18270_s3 = smov [#allocation9]  }
  0x78   : > { %p18173_p4 = scmp.ne.s32.totalorder %s18490_s22, %s18172_s14  ;;  %s18177_s19 = sshll.u32 %s18270_s3, 4  ;;  %s18178_s19 = int_to_ptr.vmem [resolvable:$false] %s18177_s19 }
  0x79   : > { %s18179_s17 = scalar_lea.vmem %s18178_s19, 131072  ;;  %p18180_p9 = scmp.lt.s32.totalorder %s18490_s22, %s18178_s19 }
  0x7a   : > { %p18175_p11 = pnand %p18173_p4, %p18380_p10  ;;  %p18181_p0 = scmp.lt.s32.totalorder %s18179_s17, %s18172_s14 }
  0x7c   : > { %p18176_p13 = pneg %p18175_p11  ;;  %p18182_p12 = por %p18181_p0, %p18180_p9 }
  0x7e   : > { %p18183_p2 = pnand %p18182_p12, %p18176_p13 }
  0x80   : > { %18186 = shalt.err (!%p18183_p2)
}
  0x81   : > { %s20876_s20 = smov 16   ;;  %s20877_s30 = smov 256  }
  0x82   : > { %16383 = dma.hbm_to_vmem [thread:$0]  (!%p18360_p8), %s18486_s15, 65536, %s18490_s22, %s309_s18, %s20877_s30, %s20877_s30, %s20876_s20  }
  0x83   : > { %p20878_p10 = scmp.ne.s32.totalorder %s20874_s8, 0 }
  0x84   : > { %s333_s23 = sand.u32 (!%p20878_p10), 1, %s18251_s25   ;;  %p20879_p7 = scmp.ne.s32.totalorder (!%p20878_p10), %s20870_s10, 0 }
  0x85   : > { %331 = sbr.rel (%p20878_p10) target bundleno = 7349 (0x1cb5), region = 44  ;;  %s334_s2 = scalar_lea.sflag (!%p20878_p10), [#allocation4], %s333_s23 }
  0x86   : > { %s16358_s16 = smul.u32 (!%p20878_p10), 3072, %s333_s23 }
  0x88   : > { %s18522_s27 = scalar_lea.vmem (!%p20878_p10), [#allocation3], %s16358_s16 }
  0x8c   : > { %18230 = dma.done.wait (%p20879_p7), %s334_s2, 49152  }
  0x8d   : > { %18232 = vsyncadd (%p20879_p7), %s334_s2, 4294918144  ;;  %s342_s11 = sand.u32 1, %s18336_s28   ;;  %s14379_s12 = sshll.u32 %s333_s23, 10 }
  0x8e   : > { %s343_s15 = scalar_lea.sflag [#allocation7], %s342_s11  ;;  %s18529_s22 = scalar_lea.vmem [#allocation6], %s14379_s12 }
  0x8f   : > { %18234 = dma.done.wait (%p20879_p7), %s343_s15, 81920  }
  0x90   : > { %18236 = vsyncadd (%p20879_p7), %s343_s15, 4294885376  ;;  %s14380_s8 = sshll.u32 %s333_s23, 12  ;;  %s361_s21 = scalar_lea.sflag [#allocation10], %s333_s23 }
  0x91   : > { %s18535_s18 = scalar_lea.vmem [#allocation8], %s14380_s8  ;;  %s18537_s13 = scalar_lea.vmem [#allocation9], %s14380_s8 }
  0x92   : > { %18238 = dma.done.wait (%p20879_p7), %s361_s21, 65536  }
  0x93   : > { %18240 = vsyncadd (%p20879_p7), %s361_s21, 4294901760  ;;  %p410_p8 = scmp.lt.s32.totalorder %s18336_s28, 5  ;;  %p14384_p3 = scmp.ne.s32.totalorder %s18336_s28, 0 }
  0x94   : > { %v420_v0 = vld [vmem:[%s20857_s0] sm:$0xff] (!%p14384_p3)  ;;  %v421_v1 = vld [vmem:[%s20857_s0 + $0x8] sm:$0xff] (!%p14384_p3)  ;;  %v422_v2 = vld [vmem:[%s20857_s0 + $0x10] sm:$0xff] (!%p14384_p3) }
  0x95   : > { %s411_s24 = scalar_select %p410_p8, %s18336_s28, 5 }
  0x96   : > { %419 = sbr.rel (%p14384_p3) target bundleno = 157 (0x9d), region = 64  ;;  %428 = vst [vmem:[#allocation2] sm:$0xff] (!%p14384_p3), %v420_v0  ;;  %429 = vst [vmem:[#allocation2 + $0x8] sm:$0xff] (!%p14384_p3), %v421_v1  ;;  %v423_v3 = vld [vmem:[%s20857_s0 + $0x18] sm:$0xff] (!%p14384_p3)  ;;  %v424_v4 = vld [vmem:[%s20857_s0 + $0x20] sm:$0xff] (!%p14384_p3) }
  0x97   : > { %s15979_s14 = sshll.u32 %s411_s24, 7  ;;  %430 = vst [vmem:[#allocation2 + $0x10] sm:$0xff] (!%p14384_p3), %v422_v2  ;;  %v425_v5 = vld [vmem:[%s20857_s0 + $0x28] sm:$0xff] (!%p14384_p3)  ;;  %431 = vst [vmem:[#allocation2 + $0x18] sm:$0xff] (!%p14384_p3), %v423_v3  ;;  %v426_v6 = vld [vmem:[%s20857_s0 + $0x30] sm:$0xff] (!%p14384_p3) }
  0x98   : > { %s18548_s17 = scalar_lea.vmem %s20864_s7, %s15979_s14  ;;  %432 = vst [vmem:[#allocation2 + $0x20] sm:$0xff] (!%p14384_p3), %v424_v4  ;;  %433 = vst [vmem:[#allocation2 + $0x28] sm:$0xff] (!%p14384_p3), %v425_v5  ;;  %v427_v7 = vld [vmem:[%s20857_s0 + $0x38] sm:$0xff] (!%p14384_p3) }
  0x99   : > { %434 = vst [vmem:[#allocation2 + $0x30] sm:$0xff] (!%p14384_p3), %v426_v6  ;;  %435 = vst [vmem:[#allocation2 + $0x38] sm:$0xff] (!%p14384_p3), %v427_v7 }
  0x9d PF: > { %v16451_v8 = vld [vmem:[%s18522_s27 + $0x4] ss:$48 sps:$4 sm:$0xff]   ;;  %v16453_v9 = vld [vmem:[%s18522_s27] ss:$48 sps:$4 sm:$0xff]   ;;  %v16465_v14 = vld [vmem:[%s18522_s27 + $0xc] ss:$48 sps:$4 sm:$0xff]  }
  0x9e   : > { %2754 = vmatprep.subr.bf16.mxu0 %v16451_v8  ;;  %v16454_v10 = vld [vmem:[%s18522_s27 + $0x64] ss:$48 sps:$4 sm:$0xff]   ;;  %v16456_v11 = vld [vmem:[%s18522_s27 + $0x60] ss:$48 sps:$4 sm:$0xff]   ;;  %v16468_v15 = vld [vmem:[%s18522_s27 + $0x8] ss:$48 sps:$4 sm:$0xff]   ;;  %2840 = vmatprep.subr.bf16.mxu1 %v16465_v14 }
  0x9f   : > { %2755 = vmatpush1.bf16.msra.mxu0 %v16453_v9  ;;  %v16457_v12 = vld [vmem:[%s18522_s27 + $0xc4] ss:$48 sps:$4 sm:$0xff]   ;;  %v16459_v13 = vld [vmem:[%s18522_s27 + $0xc0] ss:$48 sps:$4 sm:$0xff]   ;;  %v16471_v17 = vld [vmem:[%s18522_s27 + $0x6c] ss:$48 sps:$4 sm:$0xff]   ;;  %2841 = vmatpush1.bf16.msra.mxu1 %v16468_v15 }
  0xa0   : > { %2756 = vmatprep.subr.bf16.mxu0 %v16454_v10  ;;  %v16460_v16 = vld [vmem:[%s18522_s27 + $0x124] ss:$48 sps:$4 sm:$0xff]   ;;  %v16474_v18 = vld [vmem:[%s18522_s27 + $0x68] ss:$48 sps:$4 sm:$0xff]   ;;  %v16462_v19 = vld [vmem:[%s18522_s27 + $0x120] ss:$48 sps:$4 sm:$0xff]   ;;  %2842 = vmatprep.subr.bf16.mxu1 %v16471_v17 }
  0xa1   : > { %v16463_v20 = vld [vmem:[%s18522_s27 + $0x184] ss:$48 sps:$4 sm:$0xff]   ;;  %v16477_v21 = vld [vmem:[%s18522_s27 + $0xcc] ss:$48 sps:$4 sm:$0xff]   ;;  %v16480_v22 = vld [vmem:[%s18522_s27 + $0xc8] ss:$48 sps:$4 sm:$0xff]  }
  0xa2   : > { %v16467_v23 = vld [vmem:[%s18522_s27 + $0x180] ss:$48 sps:$4 sm:$0xff]   ;;  %v16483_v24 = vld [vmem:[%s18522_s27 + $0x12c] ss:$48 sps:$4 sm:$0xff]   ;;  %v16469_v25 = vld [vmem:[%s18522_s27 + $0x1e4] ss:$48 sps:$4 sm:$0xff]  }
  0xa3   : > { %2757 = vmatpush1.bf16.msra.mxu0 %v16456_v11  ;;  %2843 = vmatpush1.bf16.msra.mxu1 %v16474_v18  ;;  %v16473_v26 = vld [vmem:[%s18522_s27 + $0x1e0] ss:$48 sps:$4 sm:$0xff]   ;;  %v16486_v27 = vld [vmem:[%s18522_s27 + $0x128] ss:$48 sps:$4 sm:$0xff]   ;;  %v16489_v28 = vld [vmem:[%s18522_s27 + $0x18c] ss:$48 sps:$4 sm:$0xff]  }
  0xa4   : > { %2758 = vmatprep.subr.bf16.mxu0 %v16457_v12  ;;  %2844 = vmatprep.subr.bf16.mxu1 %v16477_v21  ;;  %v16475_v29 = vld [vmem:[%s18522_s27 + $0x244] ss:$48 sps:$4 sm:$0xff]   ;;  %v16492_v30 = vld [vmem:[%s18522_s27 + $0x188] ss:$48 sps:$4 sm:$0xff]   ;;  %v16479_v31 = vld [vmem:[%s18522_s27 + $0x240] ss:$48 sps:$4 sm:$0xff]  }
  0xa5   : > { %v16495_v32 = vld [vmem:[%s18522_s27 + $0x1ec] ss:$48 sps:$4 sm:$0xff]   ;;  %v16481_v33 = vld [vmem:[%s18522_s27 + $0x2a4] ss:$48 sps:$4 sm:$0xff]   ;;  %v16485_v34 = vld [vmem:[%s18522_s27 + $0x2a0] ss:$48 sps:$4 sm:$0xff]  }
  0xa6   : > { %v16498_v35 = vld [vmem:[%s18522_s27 + $0x1e8] ss:$48 sps:$4 sm:$0xff]   ;;  %v16501_v36 = vld [vmem:[%s18522_s27 + $0x24c] ss:$48 sps:$4 sm:$0xff]   ;;  %v16487_v37 = vld [vmem:[%s18522_s27 + $0x304] ss:$48 sps:$4 sm:$0xff]  }
  0xa7   : > { %2759 = vmatpush1.bf16.msra.mxu0 %v16459_v13  ;;  %2845 = vmatpush1.bf16.msra.mxu1 %v16480_v22  ;;  %v16504_v38 = vld [vmem:[%s18522_s27 + $0x248] ss:$48 sps:$4 sm:$0xff]   ;;  %v16491_v39 = vld [vmem:[%s18522_s27 + $0x300] ss:$48 sps:$4 sm:$0xff]   ;;  %v16507_v40 = vld [vmem:[%s18522_s27 + $0x2ac] ss:$48 sps:$4 sm:$0xff]  }
  0xa8   : > { %2760 = vmatprep.subr.bf16.mxu0 %v16460_v16  ;;  %2846 = vmatprep.subr.bf16.mxu1 %v16483_v24  ;;  %v16493_v41 = vld [vmem:[%s18522_s27 + $0x364] ss:$48 sps:$4 sm:$0xff]   ;;  %v16497_v42 = vld [vmem:[%s18522_s27 + $0x360] ss:$48 sps:$4 sm:$0xff]   ;;  %v16510_v43 = vld [vmem:[%s18522_s27 + $0x2a8] ss:$48 sps:$4 sm:$0xff]  }
  0xa9   : > { %v16513_v44 = vld [vmem:[%s18522_s27 + $0x30c] ss:$48 sps:$4 sm:$0xff]   ;;  %v16499_v45 = vld [vmem:[%s18522_s27 + $0x3c4] ss:$48 sps:$4 sm:$0xff]   ;;  %v16503_v46 = vld [vmem:[%s18522_s27 + $0x3c0] ss:$48 sps:$4 sm:$0xff]  }
  0xaa   : > { %v437_v47 = vld [vmem:[#allocation2 + $0x8] sm:$0xff]  ;;  %v16505_v52 = vld [vmem:[%s18522_s27 + $0x424] ss:$48 sps:$4 sm:$0xff]   ;;  %v16509_v54 = vld [vmem:[%s18522_s27 + $0x420] ss:$48 sps:$4 sm:$0xff]   ;;  %vm18272_vm0 = vmmov 0  }
  0xab   : > { %2761 = vmatpush1.bf16.msra.mxu0 %v16462_v19  ;;  %2847 = vmatpush1.bf16.msra.mxu1 %v16486_v27  ;;  %v441_v48 = vld [vmem:[#allocation2 + $0x28] sm:$0xff]  ;;  %v16511_v56 = vld [vmem:[%s18522_s27 + $0x484] ss:$48 sps:$4 sm:$0xff]   ;;  %v16515_v58 = vld [vmem:[%s18522_s27 + $0x480] ss:$48 sps:$4 sm:$0xff]   ;;  %vm3270_vm1 = vcmask 523264  }
  0xac   : > { %2762 = vmatprep.subr.bf16.mxu0 %v16463_v20  ;;  %2848 = vmatprep.subr.bf16.mxu1 %v16489_v28  ;;  %v16516_v49 = vld [vmem:[%s18522_s27 + $0x308] ss:$48 sps:$4 sm:$0xff]   ;;  %v18615_v50 = vpack.c.bf16 %v441_v48, %v437_v47  ;;  %v16519_v51 = vld [vmem:[%s18522_s27 + $0x36c] ss:$48 sps:$4 sm:$0xff]   ;;  %v16517_v60 = vld [vmem:[%s18522_s27 + $0x4e4] ss:$48 sps:$4 sm:$0xff]  }
  0xad   : > { %v16522_v53 = vld [vmem:[%s18522_s27 + $0x368] ss:$48 sps:$4 sm:$0xff]   ;;  %v16525_v55 = vld [vmem:[%s18522_s27 + $0x3cc] ss:$48 sps:$4 sm:$0xff]   ;;  %v16521_v62 = vld [vmem:[%s18522_s27 + $0x4e0] ss:$48 sps:$4 sm:$0xff]  }
  0xae   : > { %2786 = vmatprep.mubr.bf16.mxu0 %v18615_v50  ;;  %2872 = vmatprep.mubr.bf16.mxu1 %v18615_v50  ;;  %v16528_v57 = vld [vmem:[%s18522_s27 + $0x3c8] ss:$48 sps:$4 sm:$0xff]   ;;  %v16531_v59 = vld [vmem:[%s18522_s27 + $0x42c] ss:$48 sps:$4 sm:$0xff]   ;;  %v16523_v0 = vld [vmem:[%s18522_s27 + $0x544] ss:$48 sps:$4 sm:$0xff]  }
  0xaf   : > { %2763 = vmatpush1.bf16.msra.mxu0 %v16467_v23  ;;  %2849 = vmatpush1.bf16.msra.mxu1 %v16492_v30  ;;  %v16534_v61 = vld [vmem:[%s18522_s27 + $0x428] ss:$48 sps:$4 sm:$0xff]   ;;  %v16538_v63 = vld [vmem:[%s18522_s27 + $0x48c] ss:$48 sps:$4 sm:$0xff]   ;;  %v16527_v2 = vld [vmem:[%s18522_s27 + $0x540] ss:$48 sps:$4 sm:$0xff]  }
  0xb0   : > { %2764 = vmatprep.subr.bf16.mxu0 %v16469_v25  ;;  %2850 = vmatprep.subr.bf16.mxu1 %v16495_v32  ;;  %v16540_v1 = vld [vmem:[%s18522_s27 + $0x488] ss:$48 sps:$4 sm:$0xff]   ;;  %v16544_v3 = vld [vmem:[%s18522_s27 + $0x4ec] ss:$48 sps:$4 sm:$0xff]   ;;  %v16529_v4 = vld [vmem:[%s18522_s27 + $0x5a4] ss:$48 sps:$4 sm:$0xff]  }
  0xb1   : > { %v16533_v5 = vld [vmem:[%s18522_s27 + $0x5a0] ss:$48 sps:$4 sm:$0xff]   ;;  %v16546_v7 = vld [vmem:[%s18522_s27 + $0x4e8] ss:$48 sps:$4 sm:$0xff]   ;;  %v16550_v9 = vld [vmem:[%s18522_s27 + $0x54c] ss:$48 sps:$4 sm:$0xff]  }
  0xb2   : > { %v436_v6 = vld [vmem:[#allocation2] sm:$0xff]  ;;  %v16552_v12 = vld [vmem:[%s18522_s27 + $0x548] ss:$48 sps:$4 sm:$0xff]   ;;  %v16556_v14 = vld [vmem:[%s18522_s27 + $0x5ac] ss:$48 sps:$4 sm:$0xff]   ;;  %vm3469_vm2 = vcmask 1043456  }
  0xb3   : > { %2765 = vmatpush1.bf16.msra.mxu0 %v16473_v26  ;;  %2851 = vmatpush1.bf16.msra.mxu1 %v16498_v35  ;;  %v440_v8 = vld [vmem:[#allocation2 + $0x20] sm:$0xff]  ;;  %v16558_v16 = vld [vmem:[%s18522_s27 + $0x5a8] ss:$48 sps:$4 sm:$0xff]   ;;  %v16564_v18 = vld [vmem:[%s18522_s27 + $0x60c] ss:$48 sps:$4 sm:$0xff]   ;;  %vm3439_vm3 = vcmask 64512  }
  0xb4   : > { %2766 = vmatprep.subr.bf16.mxu0 %v16475_v29  ;;  %2852 = vmatprep.subr.bf16.mxu1 %v16501_v36  ;;  %v16537_v10 = vld [vmem:[%s18522_s27 + $0x604] ss:$48 sps:$4 sm:$0xff]   ;;  %v18641_v11 = vpack.c.bf16 %v440_v8, %v436_v6  ;;  %v16535_v13 = vld [vmem:[%s18522_s27 + $0x600] ss:$48 sps:$4 sm:$0xff]   ;;  %v16562_v20 = vld [vmem:[%s18522_s27 + $0x608] ss:$48 sps:$4 sm:$0xff]  }
  0xb5   : > { %v16543_v15 = vld [vmem:[%s18522_s27 + $0x664] ss:$48 sps:$4 sm:$0xff]   ;;  %v16541_v17 = vld [vmem:[%s18522_s27 + $0x660] ss:$48 sps:$4 sm:$0xff]   ;;  %v16570_v22 = vld [vmem:[%s18522_s27 + $0x66c] ss:$48 sps:$4 sm:$0xff]  }
  0xb6   : > { %v16549_v19 = vld [vmem:[%s18522_s27 + $0x6c4] ss:$48 sps:$4 sm:$0xff]   ;;  %v16547_v21 = vld [vmem:[%s18522_s27 + $0x6c0] ss:$48 sps:$4 sm:$0xff]   ;;  %v16568_v24 = vld [vmem:[%s18522_s27 + $0x668] ss:$48 sps:$4 sm:$0xff]  }
  0xb7   : > { %2767 = vmatpush1.bf16.msra.mxu0 %v16479_v31  ;;  %2853 = vmatpush1.bf16.msra.mxu1 %v16504_v38  ;;  %v16555_v23 = vld [vmem:[%s18522_s27 + $0x724] ss:$48 sps:$4 sm:$0xff]   ;;  %v16553_v25 = vld [vmem:[%s18522_s27 + $0x720] ss:$48 sps:$4 sm:$0xff]   ;;  %v16576_v26 = vld [vmem:[%s18522_s27 + $0x6cc] ss:$48 sps:$4 sm:$0xff]  }
  0xb8   : > { %2768 = vmatprep.subr.bf16.mxu0 %v16481_v33  ;;  %2854 = vmatprep.subr.bf16.mxu1 %v16507_v40  ;;  %v16561_v27 = vld [vmem:[%s18522_s27 + $0x784] ss:$48 sps:$4 sm:$0xff]   ;;  %v16574_v28 = vld [vmem:[%s18522_s27 + $0x6c8] ss:$48 sps:$4 sm:$0xff]   ;;  %v16559_v29 = vld [vmem:[%s18522_s27 + $0x780] ss:$48 sps:$4 sm:$0xff]  }
  0xb9   : > { %v16582_v30 = vld [vmem:[%s18522_s27 + $0x72c] ss:$48 sps:$4 sm:$0xff]   ;;  %v16567_v31 = vld [vmem:[%s18522_s27 + $0x7e4] ss:$48 sps:$4 sm:$0xff]   ;;  %v16565_v36 = vld [vmem:[%s18522_s27 + $0x7e0] ss:$48 sps:$4 sm:$0xff]  }
  0xba   : > { %v439_v32 = vld [vmem:[#allocation2 + $0x18] sm:$0xff]  ;;  %v16573_v38 = vld [vmem:[%s18522_s27 + $0x844] ss:$48 sps:$4 sm:$0xff]   ;;  %v16571_v40 = vld [vmem:[%s18522_s27 + $0x840] ss:$48 sps:$4 sm:$0xff]   ;;  %p15971_p5 = scmp.ne.s32.totalorder %s18336_s28, 5 }
  0xbb   : > { %2769 = vmatpush1.bf16.msra.mxu0 %v16485_v34  ;;  %2855 = vmatpush1.bf16.msra.mxu1 %v16510_v43  ;;  %v443_v33 = vld [vmem:[#allocation2 + $0x38] sm:$0xff]  ;;  %v16583_v48 = vld [vmem:[%s18522_s27 + $0x900] ss:$48 sps:$4 sm:$0xff]  }
  0xbc   : > { %2770 = vmatprep.subr.bf16.mxu0 %v16487_v37  ;;  %2856 = vmatprep.subr.bf16.mxu1 %v16513_v44  ;;  %v16580_v34 = vld [vmem:[%s18522_s27 + $0x728] ss:$48 sps:$4 sm:$0xff]   ;;  %v18666_v35 = vpack.c.bf16 %v443_v33, %v439_v32  ;;  %v16588_v37 = vld [vmem:[%s18522_s27 + $0x78c] ss:$48 sps:$4 sm:$0xff]   ;;  %v16577_v44 = vld [vmem:[%s18522_s27 + $0x8a0] ss:$48 sps:$4 sm:$0xff]  }
  0xbd   : > { %v16592_v43 = vld [vmem:[%s18522_s27 + $0x7e8] ss:$48 sps:$4 sm:$0xff]   ;;  %v16633_v6 = vld [vmem:[%s18522_s27 + $0xa8c] ss:$48 sps:$4 sm:$0xff]   ;;  %v16652_v33 = vld [vmem:[%s18522_s27 + $0x130] ss:$48 sps:$4 sm:$0xff]  }
  0xbe   : > { %v16598_v47 = vld [vmem:[%s18522_s27 + $0x848] ss:$48 sps:$4 sm:$0xff]  }
  0xbf   : > { %2771 = vmatpush1.bf16.msra.mxu0 %v16491_v39  ;;  %2857 = vmatpush1.bf16.msra.mxu1 %v16516_v49  ;;  %v16586_v39 = vld [vmem:[%s18522_s27 + $0x788] ss:$48 sps:$4 sm:$0xff]   ;;  %v16606_v49 = vld [vmem:[%s18522_s27 + $0x8ac] ss:$48 sps:$4 sm:$0xff]  }
  0xc0   : > { %2772 = vmatprep.subr.bf16.mxu0 %v16493_v41  ;;  %2858 = vmatprep.subr.bf16.mxu1 %v16519_v51  ;;  %v16594_v41 = vld [vmem:[%s18522_s27 + $0x7ec] ss:$48 sps:$4 sm:$0xff]   ;;  %v16591_v51 = vld [vmem:[%s18522_s27 + $0x964] ss:$48 sps:$4 sm:$0xff]   ;;  %v16631_v8 = vld [vmem:[%s18522_s27 + $0xa88] ss:$48 sps:$4 sm:$0xff]  }
  0xc1   : > { %v16664_v32 = vld [vmem:[%s18522_s27 + $0x78] ss:$48 sps:$4 sm:$0xff]  }
  0xc3   : > { %2773 = vmatpush1.bf16.msra.mxu0 %v16497_v42  ;;  %2859 = vmatpush1.bf16.msra.mxu1 %v16522_v53  ;;  %v16579_v42 = vld [vmem:[%s18522_s27 + $0x8a4] ss:$48 sps:$4 sm:$0xff]   ;;  %v16589_v53 = vld [vmem:[%s18522_s27 + $0x960] ss:$48 sps:$4 sm:$0xff]  }
  0xc4   : > { %2774 = vmatprep.subr.bf16.mxu0 %v16499_v45  ;;  %2860 = vmatprep.subr.bf16.mxu1 %v16525_v55  ;;  %v16600_v45 = vld [vmem:[%s18522_s27 + $0x84c] ss:$48 sps:$4 sm:$0xff]   ;;  %v16597_v55 = vld [vmem:[%s18522_s27 + $0x9c4] ss:$48 sps:$4 sm:$0xff]  }
  0xc7   : > { %2775 = vmatpush1.bf16.msra.mxu0 %v16503_v46  ;;  %2861 = vmatpush1.bf16.msra.mxu1 %v16528_v57  ;;  %v16585_v46 = vld [vmem:[%s18522_s27 + $0x904] ss:$48 sps:$4 sm:$0xff]   ;;  %v16595_v57 = vld [vmem:[%s18522_s27 + $0x9c0] ss:$48 sps:$4 sm:$0xff]  }
  0xc8   : > { %2776 = vmatprep.subr.bf16.mxu0 %v16505_v52  ;;  %2862 = vmatprep.subr.bf16.mxu1 %v16531_v59  ;;  %v16604_v52 = vld [vmem:[%s18522_s27 + $0x8a8] ss:$48 sps:$4 sm:$0xff]   ;;  %v16603_v59 = vld [vmem:[%s18522_s27 + $0xa24] ss:$48 sps:$4 sm:$0xff]  }
  0xcb   : > { %2777 = vmatpush1.bf16.msra.mxu0 %v16509_v54  ;;  %2863 = vmatpush1.bf16.msra.mxu1 %v16534_v61  ;;  %v16612_v54 = vld [vmem:[%s18522_s27 + $0x90c] ss:$48 sps:$4 sm:$0xff]   ;;  %v16601_v61 = vld [vmem:[%s18522_s27 + $0xa20] ss:$48 sps:$4 sm:$0xff]  }
  0xcc   : > { %2778 = vmatprep.subr.bf16.mxu0 %v16511_v56  ;;  %2864 = vmatprep.subr.bf16.mxu1 %v16538_v63  ;;  %v16610_v56 = vld [vmem:[%s18522_s27 + $0x908] ss:$48 sps:$4 sm:$0xff]   ;;  %v16609_v63 = vld [vmem:[%s18522_s27 + $0xa84] ss:$48 sps:$4 sm:$0xff]  }
  0xcf   : > { %2779 = vmatpush1.bf16.msra.mxu0 %v16515_v58  ;;  %2865 = vmatpush1.bf16.msra.mxu1 %v16540_v1  ;;  %v16618_v58 = vld [vmem:[%s18522_s27 + $0x96c] ss:$48 sps:$4 sm:$0xff]   ;;  %v16607_v1 = vld [vmem:[%s18522_s27 + $0xa80] ss:$48 sps:$4 sm:$0xff]  }
  0xd0   : > { %2780 = vmatprep.subr.bf16.mxu0 %v16517_v60  ;;  %2866 = vmatprep.subr.bf16.mxu1 %v16544_v3  ;;  %v16616_v60 = vld [vmem:[%s18522_s27 + $0x968] ss:$48 sps:$4 sm:$0xff]   ;;  %v16615_v3 = vld [vmem:[%s18522_s27 + $0xae4] ss:$48 sps:$4 sm:$0xff]  }
  0xd3   : > { %2781 = vmatpush1.bf16.msra.mxu0 %v16521_v62  ;;  %2867 = vmatpush1.bf16.msra.mxu1 %v16546_v7  ;;  %v16624_v62 = vld [vmem:[%s18522_s27 + $0x9cc] ss:$48 sps:$4 sm:$0xff]   ;;  %v16621_v7 = vld [vmem:[%s18522_s27 + $0xb44] ss:$48 sps:$4 sm:$0xff]  }
  0xd4   : > { %2782 = vmatprep.subr.bf16.mxu0 %v16523_v0  ;;  %2868 = vmatprep.subr.bf16.mxu1 %v16550_v9  ;;  %v16622_v0 = vld [vmem:[%s18522_s27 + $0x9c8] ss:$48 sps:$4 sm:$0xff]   ;;  %v16619_v9 = vld [vmem:[%s18522_s27 + $0xb40] ss:$48 sps:$4 sm:$0xff]  }
  0xd7   : > { %2783 = vmatpush1.bf16.msra.mxu0 %v16527_v2  ;;  %2869 = vmatpush1.bf16.msra.mxu1 %v16552_v12  ;;  %v16630_v2 = vld [vmem:[%s18522_s27 + $0xa2c] ss:$48 sps:$4 sm:$0xff]   ;;  %v16627_v12 = vld [vmem:[%s18522_s27 + $0xba4] ss:$48 sps:$4 sm:$0xff]  }
  0xd8   : > { %2784 = vmatprep.subr.bf16.mxu0 %v16529_v4  ;;  %2870 = vmatprep.subr.bf16.mxu1 %v16556_v14  ;;  %v16628_v4 = vld [vmem:[%s18522_s27 + $0xa28] ss:$48 sps:$4 sm:$0xff]   ;;  %v438_v14 = vld [vmem:[#allocation2 + $0x10] sm:$0xff] }
  0xdb   : > { %2785 = vmatpush1.bf16.msra.mxu0 %v16533_v5  ;;  %2871 = vmatpush1.bf16.msra.mxu1 %v16558_v16  ;;  %v16613_v5 = vld [vmem:[%s18522_s27 + $0xae0] ss:$48 sps:$4 sm:$0xff]  }
  0xdc   : > { %2797 = vmatprep.subr.bf16.mxu0 %v16537_v10  ;;  %2883 = vmatprep.subr.bf16.mxu1 %v16564_v18  ;;  %v16639_v10 = vld [vmem:[%s18522_s27 + $0xaec] ss:$48 sps:$4 sm:$0xff]   ;;  %v442_v16 = vld [vmem:[#allocation2 + $0x30] sm:$0xff] }
  0xdd   : > { %v16636_v18 = vld [vmem:[%s18522_s27 + $0x14] ss:$48 sps:$4 sm:$0xff]  }
  0xde   : > { %2787 = vmatmul.mubr.bf16.vlgmr.msra.gmra.mrb[0].mxu0 %v18641_v11  ;;  %2873 = vmatmul.mubr.bf16.vlgmr.msra.gmra.mrb[0].mxu1 %v18641_v11 }
  0xdf   : > { %2798 = vmatpush1.bf16.msra.mxu0 %v16535_v13  ;;  %2884 = vmatpush1.bf16.msra.mxu1 %v16562_v20  ;;  %v16625_v13 = vld [vmem:[%s18522_s27 + $0xba0] ss:$48 sps:$4 sm:$0xff]   ;;  %v16643_v20 = vld [vmem:[%s18522_s27 + $0xb48] ss:$48 sps:$4 sm:$0xff]  }
  0xe0   : > { %2799 = vmatprep.subr.bf16.mxu0 %v16543_v15  ;;  %2885 = vmatprep.subr.bf16.mxu1 %v16570_v22  ;;  %v16637_v15 = vld [vmem:[%s18522_s27 + $0xae8] ss:$48 sps:$4 sm:$0xff]   ;;  %v16651_v22 = vld [vmem:[%s18522_s27 + $0xbac] ss:$48 sps:$4 sm:$0xff]  }
  0xe1   : > { %2829 = vmatprep.mubr.bf16.mxu0 %v18666_v35  ;;  %2915 = vmatprep.mubr.bf16.mxu1 %v18666_v35 }
  0xe3   : > { %2800 = vmatpush1.bf16.msra.mxu0 %v16541_v17  ;;  %2886 = vmatpush1.bf16.msra.mxu1 %v16568_v24  ;;  %v16645_v17 = vld [vmem:[%s18522_s27 + $0xb4c] ss:$48 sps:$4 sm:$0xff]   ;;  %v16649_v24 = vld [vmem:[%s18522_s27 + $0xba8] ss:$48 sps:$4 sm:$0xff]  }
  0xe4   : > { %2801 = vmatprep.subr.bf16.mxu0 %v16549_v19  ;;  %2887 = vmatprep.subr.bf16.mxu1 %v16576_v26  ;;  %v18713_v19 = vpack.c.bf16 %v442_v16, %v438_v14  ;;  %v16660_v26 = vld [vmem:[%s18522_s27 + $0x1c] ss:$48 sps:$4 sm:$0xff]   ;;  %v16717_v14 = vld [vmem:[%s18522_s27 + $0x554] ss:$48 sps:$4 sm:$0xff]   ;;  %v16715_v16 = vld [vmem:[%s18522_s27 + $0x550] ss:$48 sps:$4 sm:$0xff]  }
  0xe7   : > { %2802 = vmatpush1.bf16.msra.mxu0 %v16547_v21  ;;  %2888 = vmatpush1.bf16.msra.mxu1 %v16574_v28  ;;  %v16634_v21 = vld [vmem:[%s18522_s27 + $0x10] ss:$48 sps:$4 sm:$0xff]   ;;  %v16658_v28 = vld [vmem:[%s18522_s27 + $0x18] ss:$48 sps:$4 sm:$0xff]  }
  0xe8   : > { %2803 = vmatprep.subr.bf16.mxu0 %v16555_v23  ;;  %2889 = vmatprep.subr.bf16.mxu1 %v16582_v30  ;;  %v16642_v23 = vld [vmem:[%s18522_s27 + $0x74] ss:$48 sps:$4 sm:$0xff]   ;;  %v16666_v30 = vld [vmem:[%s18522_s27 + $0x7c] ss:$48 sps:$4 sm:$0xff]  }
  0xeb   : > { %2804 = vmatpush1.bf16.msra.mxu0 %v16553_v25  ;;  %2890 = vmatpush1.bf16.msra.mxu1 %v16580_v34  ;;  %v16640_v25 = vld [vmem:[%s18522_s27 + $0x70] ss:$48 sps:$4 sm:$0xff]   ;;  %v16672_v34 = vld [vmem:[%s18522_s27 + $0xdc] ss:$48 sps:$4 sm:$0xff]  }
  0xec   : > { %2805 = vmatprep.subr.bf16.mxu0 %v16561_v27  ;;  %2891 = vmatprep.subr.bf16.mxu1 %v16588_v37  ;;  %v16648_v27 = vld [vmem:[%s18522_s27 + $0xd4] ss:$48 sps:$4 sm:$0xff]   ;;  %v16670_v37 = vld [vmem:[%s18522_s27 + $0xd8] ss:$48 sps:$4 sm:$0xff]  }
  0xef   : > { %2806 = vmatpush1.bf16.msra.mxu0 %v16559_v29  ;;  %2892 = vmatpush1.bf16.msra.mxu1 %v16586_v39  ;;  %v16646_v29 = vld [vmem:[%s18522_s27 + $0xd0] ss:$48 sps:$4 sm:$0xff]   ;;  %v16678_v39 = vld [vmem:[%s18522_s27 + $0x13c] ss:$48 sps:$4 sm:$0xff]  }
  0xf0   : > { %2807 = vmatprep.subr.bf16.mxu0 %v16567_v31  ;;  %2893 = vmatprep.subr.bf16.mxu1 %v16594_v41  ;;  %v16654_v31 = vld [vmem:[%s18522_s27 + $0x134] ss:$48 sps:$4 sm:$0xff]   ;;  %v16676_v41 = vld [vmem:[%s18522_s27 + $0x138] ss:$48 sps:$4 sm:$0xff]  }
  0xf3   : > { %2808 = vmatpush1.bf16.msra.mxu0 %v16565_v36  ;;  %2894 = vmatpush1.bf16.msra.mxu1 %v16592_v43  ;;  %v16657_v36 = vld [vmem:[%s18522_s27 + $0x194] ss:$48 sps:$4 sm:$0xff]   ;;  %v16684_v43 = vld [vmem:[%s18522_s27 + $0x19c] ss:$48 sps:$4 sm:$0xff]  }
  0xf4   : > { %2809 = vmatprep.subr.bf16.mxu0 %v16573_v38  ;;  %2895 = vmatprep.subr.bf16.mxu1 %v16600_v45  ;;  %v16655_v38 = vld [vmem:[%s18522_s27 + $0x190] ss:$48 sps:$4 sm:$0xff]   ;;  %v16682_v45 = vld [vmem:[%s18522_s27 + $0x198] ss:$48 sps:$4 sm:$0xff]  }
  0xf7   : > { %2810 = vmatpush1.bf16.msra.mxu0 %v16571_v40  ;;  %2896 = vmatpush1.bf16.msra.mxu1 %v16598_v47  ;;  %v16663_v40 = vld [vmem:[%s18522_s27 + $0x1f4] ss:$48 sps:$4 sm:$0xff]   ;;  %v16690_v47 = vld [vmem:[%s18522_s27 + $0x1fc] ss:$48 sps:$4 sm:$0xff]  }
  0xf8   : > { %2811 = vmatprep.subr.bf16.mxu0 %v16579_v42  ;;  %2897 = vmatprep.subr.bf16.mxu1 %v16606_v49  ;;  %v16661_v42 = vld [vmem:[%s18522_s27 + $0x1f0] ss:$48 sps:$4 sm:$0xff]   ;;  %v16688_v49 = vld [vmem:[%s18522_s27 + $0x1f8] ss:$48 sps:$4 sm:$0xff]  }
  0xfb   : > { %2812 = vmatpush1.bf16.msra.mxu0 %v16577_v44  ;;  %2898 = vmatpush1.bf16.msra.mxu1 %v16604_v52  ;;  %v16669_v44 = vld [vmem:[%s18522_s27 + $0x254] ss:$48 sps:$4 sm:$0xff]   ;;  %v16696_v52 = vld [vmem:[%s18522_s27 + $0x25c] ss:$48 sps:$4 sm:$0xff]  }
  0xfc   : > { %2813 = vmatprep.subr.bf16.mxu0 %v16585_v46  ;;  %2899 = vmatprep.subr.bf16.mxu1 %v16612_v54  ;;  %v16667_v46 = vld [vmem:[%s18522_s27 + $0x250] ss:$48 sps:$4 sm:$0xff]   ;;  %v16694_v54 = vld [vmem:[%s18522_s27 + $0x258] ss:$48 sps:$4 sm:$0xff]  }
  0xff   : > { %2814 = vmatpush1.bf16.msra.mxu0 %v16583_v48  ;;  %2900 = vmatpush1.bf16.msra.mxu1 %v16610_v56  ;;  %v16675_v48 = vld [vmem:[%s18522_s27 + $0x2b4] ss:$48 sps:$4 sm:$0xff]   ;;  %v16702_v56 = vld [vmem:[%s18522_s27 + $0x2bc] ss:$48 sps:$4 sm:$0xff]  }
 0x100   : > { %2815 = vmatprep.subr.bf16.mxu0 %v16591_v51  ;;  %2901 = vmatprep.subr.bf16.mxu1 %v16618_v58  ;;  %v16673_v51 = vld [vmem:[%s18522_s27 + $0x2b0] ss:$48 sps:$4 sm:$0xff]   ;;  %v16700_v58 = vld [vmem:[%s18522_s27 + $0x2b8] ss:$48 sps:$4 sm:$0xff]  }
 0x103   : > { %2816 = vmatpush1.bf16.msra.mxu0 %v16589_v53  ;;  %2902 = vmatpush1.bf16.msra.mxu1 %v16616_v60  ;;  %v16681_v53 = vld [vmem:[%s18522_s27 + $0x314] ss:$48 sps:$4 sm:$0xff]   ;;  %v16708_v60 = vld [vmem:[%s18522_s27 + $0x31c] ss:$48 sps:$4 sm:$0xff]  }
 0x104   : > { %2817 = vmatprep.subr.bf16.mxu0 %v16597_v55  ;;  %2903 = vmatprep.subr.bf16.mxu1 %v16624_v62  ;;  %v16679_v55 = vld [vmem:[%s18522_s27 + $0x310] ss:$48 sps:$4 sm:$0xff]   ;;  %v16706_v62 = vld [vmem:[%s18522_s27 + $0x318] ss:$48 sps:$4 sm:$0xff]  }
 0x107   : > { %2818 = vmatpush1.bf16.msra.mxu0 %v16595_v57  ;;  %2904 = vmatpush1.bf16.msra.mxu1 %v16622_v0  ;;  %v16687_v57 = vld [vmem:[%s18522_s27 + $0x374] ss:$48 sps:$4 sm:$0xff]   ;;  %v16714_v0 = vld [vmem:[%s18522_s27 + $0x37c] ss:$48 sps:$4 sm:$0xff]  }
 0x108   : > { %2819 = vmatprep.subr.bf16.mxu0 %v16603_v59  ;;  %2905 = vmatprep.subr.bf16.mxu1 %v16630_v2  ;;  %v16685_v59 = vld [vmem:[%s18522_s27 + $0x370] ss:$48 sps:$4 sm:$0xff]   ;;  %v16712_v2 = vld [vmem:[%s18522_s27 + $0x378] ss:$48 sps:$4 sm:$0xff]  }
 0x10b   : > { %2820 = vmatpush1.bf16.msra.mxu0 %v16601_v61  ;;  %2906 = vmatpush1.bf16.msra.mxu1 %v16628_v4  ;;  %v16693_v61 = vld [vmem:[%s18522_s27 + $0x3d4] ss:$48 sps:$4 sm:$0xff]   ;;  %v16720_v4 = vld [vmem:[%s18522_s27 + $0x3dc] ss:$48 sps:$4 sm:$0xff]  }
 0x10c   : > { %2821 = vmatprep.subr.bf16.mxu0 %v16609_v63  ;;  %2907 = vmatprep.subr.bf16.mxu1 %v16633_v6  ;;  %v16691_v63 = vld [vmem:[%s18522_s27 + $0x3d0] ss:$48 sps:$4 sm:$0xff]   ;;  %v16718_v6 = vld [vmem:[%s18522_s27 + $0x3d8] ss:$48 sps:$4 sm:$0xff]  }
 0x10f   : > { %2822 = vmatpush1.bf16.msra.mxu0 %v16607_v1  ;;  %2908 = vmatpush1.bf16.msra.mxu1 %v16631_v8  ;;  %v16699_v1 = vld [vmem:[%s18522_s27 + $0x434] ss:$48 sps:$4 sm:$0xff]   ;;  %v16726_v8 = vld [vmem:[%s18522_s27 + $0x43c] ss:$48 sps:$4 sm:$0xff]  }
 0x110   : > { %2823 = vmatprep.subr.bf16.mxu0 %v16615_v3  ;;  %2909 = vmatprep.subr.bf16.mxu1 %v16639_v10  ;;  %v16697_v3 = vld [vmem:[%s18522_s27 + $0x430] ss:$48 sps:$4 sm:$0xff]   ;;  %v16724_v10 = vld [vmem:[%s18522_s27 + $0x438] ss:$48 sps:$4 sm:$0xff]  }
 0x113   : > { %2824 = vmatpush1.bf16.msra.mxu0 %v16613_v5  ;;  %2910 = vmatpush1.bf16.msra.mxu1 %v16637_v15  ;;  %v16705_v5 = vld [vmem:[%s18522_s27 + $0x494] ss:$48 sps:$4 sm:$0xff]   ;;  %v16730_v15 = vld [vmem:[%s18522_s27 + $0x498] ss:$48 sps:$4 sm:$0xff]  }
 0x114   : > { %2825 = vmatprep.subr.bf16.mxu0 %v16621_v7  ;;  %2911 = vmatprep.subr.bf16.mxu1 %v16645_v17  ;;  %v16703_v7 = vld [vmem:[%s18522_s27 + $0x490] ss:$48 sps:$4 sm:$0xff]   ;;  %v16738_v17 = vld [vmem:[%s18522_s27 + $0x4fc] ss:$48 sps:$4 sm:$0xff]  }
 0x117   : > { %2826 = vmatpush1.bf16.msra.mxu0 %v16619_v9  ;;  %2912 = vmatpush1.bf16.msra.mxu1 %v16643_v20  ;;  %v16711_v9 = vld [vmem:[%s18522_s27 + $0x4f4] ss:$48 sps:$4 sm:$0xff]   ;;  %v16736_v20 = vld [vmem:[%s18522_s27 + $0x4f8] ss:$48 sps:$4 sm:$0xff]  }
 0x118   : > { %2827 = vmatprep.subr.bf16.mxu0 %v16627_v12  ;;  %2913 = vmatprep.subr.bf16.mxu1 %v16651_v22  ;;  %v16709_v12 = vld [vmem:[%s18522_s27 + $0x4f0] ss:$48 sps:$4 sm:$0xff]   ;;  %v16744_v22 = vld [vmem:[%s18522_s27 + $0x55c] ss:$48 sps:$4 sm:$0xff]  }
 0x11b   : > { %2828 = vmatpush1.bf16.msra.mxu0 %v16625_v13  ;;  %2914 = vmatpush1.bf16.msra.mxu1 %v16649_v24  ;;  %v16732_v13 = vld [vmem:[%s18522_s27 + $0x49c] ss:$48 sps:$4 sm:$0xff]   ;;  %v16742_v24 = vld [vmem:[%s18522_s27 + $0x558] ss:$48 sps:$4 sm:$0xff]  }
 0x11c   : > { %2926 = vmatprep.subr.bf16.mxu0 %v16636_v18  ;;  %3012 = vmatprep.subr.bf16.mxu1 %v16660_v26  ;;  %v16723_v18 = vld [vmem:[%s18522_s27 + $0x5b4] ss:$48 sps:$4 sm:$0xff]   ;;  %v16750_v26 = vld [vmem:[%s18522_s27 + $0x5bc] ss:$48 sps:$4 sm:$0xff]  }
 0x11e   : > { %2830 = vmatmul.mubr.bf16.vlgmr.msra.gmra.mrb[0].mxu0 %v18713_v19  ;;  %2916 = vmatmul.mubr.bf16.vlgmr.msra.gmra.mrb[0].mxu1 %v18713_v19 }
 0x11f   : > { %2927 = vmatpush1.bf16.msra.mxu0 %v16634_v21  ;;  %2958 = vmatprep.mubr.bf16.mxu0 %v18615_v50  ;;  %v16721_v21 = vld [vmem:[%s18522_s27 + $0x5b0] ss:$48 sps:$4 sm:$0xff]  }
 0x120   : > { %2928 = vmatprep.subr.bf16.mxu0 %v16642_v23  ;;  %3013 = vmatpush1.bf16.msra.mxu1 %v16658_v28  ;;  %v16729_v23 = vld [vmem:[%s18522_s27 + $0x614] ss:$48 sps:$4 sm:$0xff]   ;;  %v16748_v28 = vld [vmem:[%s18522_s27 + $0x5b8] ss:$48 sps:$4 sm:$0xff]  }
 0x121   : > { %3044 = vmatprep.mubr.bf16.mxu1 %v18615_v50  ;;  %3014 = vmatprep.subr.bf16.mxu1 %v16666_v30  ;;  %v16756_v30 = vld [vmem:[%s18522_s27 + $0x61c] ss:$48 sps:$4 sm:$0xff]  }
 0x123   : > { %2929 = vmatpush1.bf16.msra.mxu0 %v16640_v25  ;;  %v16727_v25 = vld [vmem:[%s18522_s27 + $0x610] ss:$48 sps:$4 sm:$0xff]  }
 0x124   : > { %2930 = vmatprep.subr.bf16.mxu0 %v16648_v27  ;;  %3015 = vmatpush1.bf16.msra.mxu1 %v16664_v32  ;;  %v16735_v27 = vld [vmem:[%s18522_s27 + $0x674] ss:$48 sps:$4 sm:$0xff]   ;;  %v16754_v32 = vld [vmem:[%s18522_s27 + $0x618] ss:$48 sps:$4 sm:$0xff]  }
 0x125   : > { %3016 = vmatprep.subr.bf16.mxu1 %v16672_v34  ;;  %v16762_v34 = vld [vmem:[%s18522_s27 + $0x67c] ss:$48 sps:$4 sm:$0xff]  }
 0x127   : > { %2931 = vmatpush1.bf16.msra.mxu0 %v16646_v29  ;;  %v16733_v29 = vld [vmem:[%s18522_s27 + $0x670] ss:$48 sps:$4 sm:$0xff]  }
 0x128   : > { %2932 = vmatprep.subr.bf16.mxu0 %v16654_v31  ;;  %3017 = vmatpush1.bf16.msra.mxu1 %v16670_v37  ;;  %v16741_v31 = vld [vmem:[%s18522_s27 + $0x6d4] ss:$48 sps:$4 sm:$0xff]   ;;  %v16760_v37 = vld [vmem:[%s18522_s27 + $0x678] ss:$48 sps:$4 sm:$0xff]  }
 0x129   : > { %3018 = vmatprep.subr.bf16.mxu1 %v16678_v39  ;;  %v16768_v39 = vld [vmem:[%s18522_s27 + $0x6dc] ss:$48 sps:$4 sm:$0xff]  }
 0x12b   : > { %2933 = vmatpush1.bf16.msra.mxu0 %v16652_v33  ;;  %v16739_v33 = vld [vmem:[%s18522_s27 + $0x6d0] ss:$48 sps:$4 sm:$0xff]  }
 0x12c   : > { %2934 = vmatprep.subr.bf16.mxu0 %v16657_v36  ;;  %3019 = vmatpush1.bf16.msra.mxu1 %v16676_v41  ;;  %v16747_v36 = vld [vmem:[%s18522_s27 + $0x734] ss:$48 sps:$4 sm:$0xff]   ;;  %v16766_v41 = vld [vmem:[%s18522_s27 + $0x6d8] ss:$48 sps:$4 sm:$0xff]  }
 0x12d   : > { %3020 = vmatprep.subr.bf16.mxu1 %v16684_v43  ;;  %v16774_v43 = vld [vmem:[%s18522_s27 + $0x73c] ss:$48 sps:$4 sm:$0xff]  }
 0x12f   : > { %2935 = vmatpush1.bf16.msra.mxu0 %v16655_v38  ;;  %v16745_v38 = vld [vmem:[%s18522_s27 + $0x730] ss:$48 sps:$4 sm:$0xff]  }
 0x130   : > { %2936 = vmatprep.subr.bf16.mxu0 %v16663_v40  ;;  %3021 = vmatpush1.bf16.msra.mxu1 %v16682_v45  ;;  %v16753_v40 = vld [vmem:[%s18522_s27 + $0x794] ss:$48 sps:$4 sm:$0xff]   ;;  %v16772_v45 = vld [vmem:[%s18522_s27 + $0x738] ss:$48 sps:$4 sm:$0xff]  }
 0x131   : > { %3022 = vmatprep.subr.bf16.mxu1 %v16690_v47  ;;  %v16780_v47 = vld [vmem:[%s18522_s27 + $0x79c] ss:$48 sps:$4 sm:$0xff]  }
 0x133   : > { %2937 = vmatpush1.bf16.msra.mxu0 %v16661_v42  ;;  %v16751_v42 = vld [vmem:[%s18522_s27 + $0x790] ss:$48 sps:$4 sm:$0xff]  }
 0x134   : > { %2938 = vmatprep.subr.bf16.mxu0 %v16669_v44  ;;  %3023 = vmatpush1.bf16.msra.mxu1 %v16688_v49  ;;  %v16759_v44 = vld [vmem:[%s18522_s27 + $0x7f4] ss:$48 sps:$4 sm:$0xff]   ;;  %v16778_v49 = vld [vmem:[%s18522_s27 + $0x798] ss:$48 sps:$4 sm:$0xff]  }
 0x135   : > { %3024 = vmatprep.subr.bf16.mxu1 %v16696_v52  ;;  %v16786_v52 = vld [vmem:[%s18522_s27 + $0x7fc] ss:$48 sps:$4 sm:$0xff]  }
 0x137   : > { %2939 = vmatpush1.bf16.msra.mxu0 %v16667_v46  ;;  %v16757_v46 = vld [vmem:[%s18522_s27 + $0x7f0] ss:$48 sps:$4 sm:$0xff]  }
 0x138   : > { %2940 = vmatprep.subr.bf16.mxu0 %v16675_v48  ;;  %3025 = vmatpush1.bf16.msra.mxu1 %v16694_v54  ;;  %v16765_v48 = vld [vmem:[%s18522_s27 + $0x854] ss:$48 sps:$4 sm:$0xff]   ;;  %v16784_v54 = vld [vmem:[%s18522_s27 + $0x7f8] ss:$48 sps:$4 sm:$0xff]  }
 0x139   : > { %3026 = vmatprep.subr.bf16.mxu1 %v16702_v56  ;;  %v16792_v56 = vld [vmem:[%s18522_s27 + $0x85c] ss:$48 sps:$4 sm:$0xff]  }
 0x13b   : > { %2941 = vmatpush1.bf16.msra.mxu0 %v16673_v51  ;;  %v16763_v51 = vld [vmem:[%s18522_s27 + $0x850] ss:$48 sps:$4 sm:$0xff]  }
 0x13c   : > { %2942 = vmatprep.subr.bf16.mxu0 %v16681_v53  ;;  %3027 = vmatpush1.bf16.msra.mxu1 %v16700_v58  ;;  %v16771_v53 = vld [vmem:[%s18522_s27 + $0x8b4] ss:$48 sps:$4 sm:$0xff]   ;;  %v16790_v58 = vld [vmem:[%s18522_s27 + $0x858] ss:$48 sps:$4 sm:$0xff]  }
 0x13d   : > { %3028 = vmatprep.subr.bf16.mxu1 %v16708_v60  ;;  %v16798_v60 = vld [vmem:[%s18522_s27 + $0x8bc] ss:$48 sps:$4 sm:$0xff]  }
 0x13f   : > { %2943 = vmatpush1.bf16.msra.mxu0 %v16679_v55  ;;  %v16769_v55 = vld [vmem:[%s18522_s27 + $0x8b0] ss:$48 sps:$4 sm:$0xff]  }
 0x140   : > { %2944 = vmatprep.subr.bf16.mxu0 %v16687_v57  ;;  %3029 = vmatpush1.bf16.msra.mxu1 %v16706_v62  ;;  %v16777_v57 = vld [vmem:[%s18522_s27 + $0x914] ss:$48 sps:$4 sm:$0xff]   ;;  %v16796_v62 = vld [vmem:[%s18522_s27 + $0x8b8] ss:$48 sps:$4 sm:$0xff]  }
 0x141   : > { %3030 = vmatprep.subr.bf16.mxu1 %v16714_v0  ;;  %v16804_v0 = vld [vmem:[%s18522_s27 + $0x91c] ss:$48 sps:$4 sm:$0xff]  }
 0x143   : > { %2945 = vmatpush1.bf16.msra.mxu0 %v16685_v59  ;;  %v16775_v59 = vld [vmem:[%s18522_s27 + $0x910] ss:$48 sps:$4 sm:$0xff]  }
 0x144   : > { %2946 = vmatprep.subr.bf16.mxu0 %v16693_v61  ;;  %3031 = vmatpush1.bf16.msra.mxu1 %v16712_v2  ;;  %v16783_v61 = vld [vmem:[%s18522_s27 + $0x974] ss:$48 sps:$4 sm:$0xff]   ;;  %v16802_v2 = vld [vmem:[%s18522_s27 + $0x918] ss:$48 sps:$4 sm:$0xff]  }
 0x145   : > { %3032 = vmatprep.subr.bf16.mxu1 %v16720_v4  ;;  %v16810_v4 = vld [vmem:[%s18522_s27 + $0x97c] ss:$48 sps:$4 sm:$0xff]  }
 0x147   : > { %2947 = vmatpush1.bf16.msra.mxu0 %v16691_v63  ;;  %v16781_v63 = vld [vmem:[%s18522_s27 + $0x970] ss:$48 sps:$4 sm:$0xff]  }
 0x148   : > { %2948 = vmatprep.subr.bf16.mxu0 %v16699_v1  ;;  %3033 = vmatpush1.bf16.msra.mxu1 %v16718_v6  ;;  %v16789_v1 = vld [vmem:[%s18522_s27 + $0x9d4] ss:$48 sps:$4 sm:$0xff]   ;;  %v16808_v6 = vld [vmem:[%s18522_s27 + $0x978] ss:$48 sps:$4 sm:$0xff]  }
 0x149   : > { %3034 = vmatprep.subr.bf16.mxu1 %v16726_v8  ;;  %v16816_v8 = vld [vmem:[%s18522_s27 + $0x9dc] ss:$48 sps:$4 sm:$0xff]  }
 0x14b   : > { %2949 = vmatpush1.bf16.msra.mxu0 %v16697_v3  ;;  %v16787_v3 = vld [vmem:[%s18522_s27 + $0x9d0] ss:$48 sps:$4 sm:$0xff]  }
 0x14c   : > { %2950 = vmatprep.subr.bf16.mxu0 %v16705_v5  ;;  %3035 = vmatpush1.bf16.msra.mxu1 %v16724_v10  ;;  %v16795_v5 = vld [vmem:[%s18522_s27 + $0xa34] ss:$48 sps:$4 sm:$0xff]   ;;  %v16814_v10 = vld [vmem:[%s18522_s27 + $0x9d8] ss:$48 sps:$4 sm:$0xff]  }
 0x14d   : > { %3036 = vmatprep.subr.bf16.mxu1 %v16732_v13  ;;  %v16822_v13 = vld [vmem:[%s18522_s27 + $0xa3c] ss:$48 sps:$4 sm:$0xff]  }
 0x14f   : > { %2951 = vmatpush1.bf16.msra.mxu0 %v16703_v7  ;;  %v16793_v7 = vld [vmem:[%s18522_s27 + $0xa30] ss:$48 sps:$4 sm:$0xff]  }
 0x150   : > { %2952 = vmatprep.subr.bf16.mxu0 %v16711_v9  ;;  %3037 = vmatpush1.bf16.msra.mxu1 %v16730_v15  ;;  %v16801_v9 = vld [vmem:[%s18522_s27 + $0xa94] ss:$48 sps:$4 sm:$0xff]   ;;  %v16820_v15 = vld [vmem:[%s18522_s27 + $0xa38] ss:$48 sps:$4 sm:$0xff]  }
 0x151   : > { %3038 = vmatprep.subr.bf16.mxu1 %v16738_v17  ;;  %v16825_v17 = vld [vmem:[%s18522_s27 + $0xa9c] ss:$48 sps:$4 sm:$0xff]  }
 0x153   : > { %2953 = vmatpush1.bf16.msra.mxu0 %v16709_v12  ;;  %v16799_v12 = vld [vmem:[%s18522_s27 + $0xa90] ss:$48 sps:$4 sm:$0xff]  }
 0x154   : > { %2954 = vmatprep.subr.bf16.mxu0 %v16717_v14  ;;  %3039 = vmatpush1.bf16.msra.mxu1 %v16736_v20  ;;  %v16807_v14 = vld [vmem:[%s18522_s27 + $0xaf4] ss:$48 sps:$4 sm:$0xff]   ;;  %v16823_v20 = vld [vmem:[%s18522_s27 + $0xa98] ss:$48 sps:$4 sm:$0xff]  }
 0x155   : > { %3040 = vmatprep.subr.bf16.mxu1 %v16744_v22  ;;  %v16828_v22 = vld [vmem:[%s18522_s27 + $0xafc] ss:$48 sps:$4 sm:$0xff]  }
 0x157   : > { %2955 = vmatpush1.bf16.msra.mxu0 %v16715_v16  ;;  %v16805_v16 = vld [vmem:[%s18522_s27 + $0xaf0] ss:$48 sps:$4 sm:$0xff]  }
 0x158   : > { %2956 = vmatprep.subr.bf16.mxu0 %v16723_v18  ;;  %3041 = vmatpush1.bf16.msra.mxu1 %v16742_v24  ;;  %v16813_v18 = vld [vmem:[%s18522_s27 + $0xb54] ss:$48 sps:$4 sm:$0xff]   ;;  %v16826_v24 = vld [vmem:[%s18522_s27 + $0xaf8] ss:$48 sps:$4 sm:$0xff]  }
 0x159   : > { %3042 = vmatprep.subr.bf16.mxu1 %v16750_v26  ;;  %v16831_v26 = vld [vmem:[%s18522_s27 + $0xb5c] ss:$48 sps:$4 sm:$0xff]  }
 0x15b   : > { %2957 = vmatpush1.bf16.msra.mxu0 %v16721_v21  ;;  %v16811_v21 = vld [vmem:[%s18522_s27 + $0xb50] ss:$48 sps:$4 sm:$0xff]  }
 0x15c   : > { %2969 = vmatprep.subr.bf16.mxu0 %v16729_v23  ;;  %3043 = vmatpush1.bf16.msra.mxu1 %v16748_v28  ;;  %v16819_v23 = vld [vmem:[%s18522_s27 + $0xbb4] ss:$48 sps:$4 sm:$0xff]   ;;  %v16829_v28 = vld [vmem:[%s18522_s27 + $0xb58] ss:$48 sps:$4 sm:$0xff]  }
 0x15d   : > { %3055 = vmatprep.subr.bf16.mxu1 %v16756_v30  ;;  %v16835_v30 = vld [vmem:[%s18522_s27 + $0x20] ss:$48 sps:$4 sm:$0xff]  }
 0x15e   : > { %2959 = vmatmul.mubr.bf16.vlgmr.msra.gmra.mrb[4].mxu0 %v18641_v11 }
 0x15f   : > { %2970 = vmatpush1.bf16.msra.mxu0 %v16727_v25  ;;  %3001 = vmatprep.mubr.bf16.mxu0 %v18666_v35  ;;  %v16817_v25 = vld [vmem:[%s18522_s27 + $0xbb0] ss:$48 sps:$4 sm:$0xff]  }
 0x160   : > { %2971 = vmatprep.subr.bf16.mxu0 %v16735_v27  ;;  %3045 = vmatmul.mubr.bf16.vlgmr.msra.gmra.mrb[4].mxu1 %v18641_v11  ;;  %v16837_v27 = vld [vmem:[%s18522_s27 + $0x24] ss:$48 sps:$4 sm:$0xff]  }
 0x161   : > { %3056 = vmatpush1.bf16.msra.mxu1 %v16754_v32  ;;  %3087 = vmatprep.mubr.bf16.mxu1 %v18666_v35  ;;  %v16840_v32 = vld [vmem:[%s18522_s27 + $0x84] ss:$48 sps:$4 sm:$0xff]  }
 0x162   : > { %3057 = vmatprep.subr.bf16.mxu1 %v16762_v34  ;;  %v16843_v34 = vld [vmem:[%s18522_s27 + $0x2c] ss:$48 sps:$4 sm:$0xff]  }
 0x163   : > { %2972 = vmatpush1.bf16.msra.mxu0 %v16733_v29  ;;  %v16834_v29 = vld [vmem:[%s18522_s27 + $0xbbc] ss:$48 sps:$4 sm:$0xff]  }
 0x164   : > { %2973 = vmatprep.subr.bf16.mxu0 %v16741_v31  ;;  %v16832_v31 = vld [vmem:[%s18522_s27 + $0xbb8] ss:$48 sps:$4 sm:$0xff]  }
 0x165   : > { %3058 = vmatpush1.bf16.msra.mxu1 %v16760_v37  ;;  %v16841_v37 = vld [vmem:[%s18522_s27 + $0x28] ss:$48 sps:$4 sm:$0xff]  }
 0x166   : > { %3059 = vmatprep.subr.bf16.mxu1 %v16768_v39  ;;  %v16849_v39 = vld [vmem:[%s18522_s27 + $0x8c] ss:$48 sps:$4 sm:$0xff]  }
 0x167   : > { %2974 = vmatpush1.bf16.msra.mxu0 %v16739_v33  ;;  %v16838_v33 = vld [vmem:[%s18522_s27 + $0x80] ss:$48 sps:$4 sm:$0xff]  }
 0x168   : > { %2975 = vmatprep.subr.bf16.mxu0 %v16747_v36  ;;  %v16846_v36 = vld [vmem:[%s18522_s27 + $0xe4] ss:$48 sps:$4 sm:$0xff]  }
 0x169   : > { %3060 = vmatpush1.bf16.msra.mxu1 %v16766_v41  ;;  %v16847_v41 = vld [vmem:[%s18522_s27 + $0x88] ss:$48 sps:$4 sm:$0xff]  }
 0x16a   : > { %3061 = vmatprep.subr.bf16.mxu1 %v16774_v43  ;;  %v16855_v43 = vld [vmem:[%s18522_s27 + $0xec] ss:$48 sps:$4 sm:$0xff]  }
 0x16b   : > { %2976 = vmatpush1.bf16.msra.mxu0 %v16745_v38  ;;  %v16844_v38 = vld [vmem:[%s18522_s27 + $0xe0] ss:$48 sps:$4 sm:$0xff]  }
 0x16c   : > { %2977 = vmatprep.subr.bf16.mxu0 %v16753_v40  ;;  %v16852_v40 = vld [vmem:[%s18522_s27 + $0x144] ss:$48 sps:$4 sm:$0xff]  }
 0x16d   : > { %3062 = vmatpush1.bf16.msra.mxu1 %v16772_v45  ;;  %v16853_v45 = vld [vmem:[%s18522_s27 + $0xe8] ss:$48 sps:$4 sm:$0xff]  }
 0x16e   : > { %3063 = vmatprep.subr.bf16.mxu1 %v16780_v47  ;;  %v16861_v47 = vld [vmem:[%s18522_s27 + $0x14c] ss:$48 sps:$4 sm:$0xff]  }
 0x16f   : > { %2978 = vmatpush1.bf16.msra.mxu0 %v16751_v42  ;;  %v16850_v42 = vld [vmem:[%s18522_s27 + $0x140] ss:$48 sps:$4 sm:$0xff]  }
 0x170   : > { %2979 = vmatprep.subr.bf16.mxu0 %v16759_v44  ;;  %v16858_v44 = vld [vmem:[%s18522_s27 + $0x1a4] ss:$48 sps:$4 sm:$0xff]  }
 0x171   : > { %3064 = vmatpush1.bf16.msra.mxu1 %v16778_v49  ;;  %v16859_v49 = vld [vmem:[%s18522_s27 + $0x148] ss:$48 sps:$4 sm:$0xff]  }
 0x172   : > { %3065 = vmatprep.subr.bf16.mxu1 %v16786_v52  ;;  %v16870_v52 = vld [vmem:[%s18522_s27 + $0x264] ss:$48 sps:$4 sm:$0xff]  }
 0x173   : > { %2980 = vmatpush1.bf16.msra.mxu0 %v16757_v46  ;;  %v16856_v46 = vld [vmem:[%s18522_s27 + $0x1a0] ss:$48 sps:$4 sm:$0xff]  }
 0x174   : > { %2981 = vmatprep.subr.bf16.mxu0 %v16765_v48  ;;  %v16864_v48 = vld [vmem:[%s18522_s27 + $0x204] ss:$48 sps:$4 sm:$0xff]  }
 0x175   : > { %3066 = vmatpush1.bf16.msra.mxu1 %v16784_v54  ;;  %v16868_v54 = vld [vmem:[%s18522_s27 + $0x260] ss:$48 sps:$4 sm:$0xff]  }
 0x176   : > { %3067 = vmatprep.subr.bf16.mxu1 %v16792_v56  ;;  %v16876_v56 = vld [vmem:[%s18522_s27 + $0x2c4] ss:$48 sps:$4 sm:$0xff]  }
 0x177   : > { %2982 = vmatpush1.bf16.msra.mxu0 %v16763_v51  ;;  %v16862_v51 = vld [vmem:[%s18522_s27 + $0x200] ss:$48 sps:$4 sm:$0xff]  }
 0x178   : > { %2983 = vmatprep.subr.bf16.mxu0 %v16771_v53  ;;  %v16865_v53 = vld [vmem:[%s18522_s27 + $0x1a8] ss:$48 sps:$4 sm:$0xff]  }
 0x179   : > { %3068 = vmatpush1.bf16.msra.mxu1 %v16790_v58  ;;  %v16874_v58 = vld [vmem:[%s18522_s27 + $0x2c0] ss:$48 sps:$4 sm:$0xff]  }
 0x17a   : > { %3069 = vmatprep.subr.bf16.mxu1 %v16798_v60  ;;  %v16882_v60 = vld [vmem:[%s18522_s27 + $0x324] ss:$48 sps:$4 sm:$0xff]  }
 0x17b   : > { %2984 = vmatpush1.bf16.msra.mxu0 %v16769_v55  ;;  %v16873_v55 = vld [vmem:[%s18522_s27 + $0x20c] ss:$48 sps:$4 sm:$0xff]  }
 0x17c   : > { %2985 = vmatprep.subr.bf16.mxu0 %v16777_v57  ;;  %v16871_v57 = vld [vmem:[%s18522_s27 + $0x208] ss:$48 sps:$4 sm:$0xff]  }
 0x17d   : > { %3070 = vmatpush1.bf16.msra.mxu1 %v16796_v62  ;;  %v16880_v62 = vld [vmem:[%s18522_s27 + $0x320] ss:$48 sps:$4 sm:$0xff]  }
 0x17e   : > { %3071 = vmatprep.subr.bf16.mxu1 %v16804_v0  ;;  %v16888_v0 = vld [vmem:[%s18522_s27 + $0x384] ss:$48 sps:$4 sm:$0xff]  }
 0x17f   : > { %2986 = vmatpush1.bf16.msra.mxu0 %v16775_v59  ;;  %v16879_v59 = vld [vmem:[%s18522_s27 + $0x26c] ss:$48 sps:$4 sm:$0xff]  }
 0x180   : > { %2987 = vmatprep.subr.bf16.mxu0 %v16783_v61  ;;  %v16877_v61 = vld [vmem:[%s18522_s27 + $0x268] ss:$48 sps:$4 sm:$0xff]  }
 0x181   : > { %3072 = vmatpush1.bf16.msra.mxu1 %v16802_v2  ;;  %v16886_v2 = vld [vmem:[%s18522_s27 + $0x380] ss:$48 sps:$4 sm:$0xff]  }
 0x182   : > { %3073 = vmatprep.subr.bf16.mxu1 %v16810_v4  ;;  %v16894_v4 = vld [vmem:[%s18522_s27 + $0x3e4] ss:$48 sps:$4 sm:$0xff]  }
 0x183   : > { %2988 = vmatpush1.bf16.msra.mxu0 %v16781_v63  ;;  %v16885_v63 = vld [vmem:[%s18522_s27 + $0x2cc] ss:$48 sps:$4 sm:$0xff]  }
 0x184   : > { %2989 = vmatprep.subr.bf16.mxu0 %v16789_v1  ;;  %v16883_v1 = vld [vmem:[%s18522_s27 + $0x2c8] ss:$48 sps:$4 sm:$0xff]  }
 0x185   : > { %3074 = vmatpush1.bf16.msra.mxu1 %v16808_v6  ;;  %v16892_v6 = vld [vmem:[%s18522_s27 + $0x3e0] ss:$48 sps:$4 sm:$0xff]  }
 0x186   : > { %3075 = vmatprep.subr.bf16.mxu1 %v16816_v8  ;;  %v16900_v8 = vld [vmem:[%s18522_s27 + $0x444] ss:$48 sps:$4 sm:$0xff]  }
 0x187   : > { %2990 = vmatpush1.bf16.msra.mxu0 %v16787_v3  ;;  %v16891_v3 = vld [vmem:[%s18522_s27 + $0x32c] ss:$48 sps:$4 sm:$0xff]  }
 0x188   : > { %2991 = vmatprep.subr.bf16.mxu0 %v16795_v5  ;;  %v16889_v5 = vld [vmem:[%s18522_s27 + $0x328] ss:$48 sps:$4 sm:$0xff]  }
 0x189   : > { %3076 = vmatpush1.bf16.msra.mxu1 %v16814_v10  ;;  %v16898_v10 = vld [vmem:[%s18522_s27 + $0x440] ss:$48 sps:$4 sm:$0xff]  }
 0x18a   : > { %3077 = vmatprep.subr.bf16.mxu1 %v16822_v13  ;;  %v16906_v13 = vld [vmem:[%s18522_s27 + $0x4a4] ss:$48 sps:$4 sm:$0xff]  }
 0x18b   : > { %2992 = vmatpush1.bf16.msra.mxu0 %v16793_v7  ;;  %v16897_v7 = vld [vmem:[%s18522_s27 + $0x38c] ss:$48 sps:$4 sm:$0xff]  }
 0x18c   : > { %2993 = vmatprep.subr.bf16.mxu0 %v16801_v9  ;;  %v16895_v9 = vld [vmem:[%s18522_s27 + $0x388] ss:$48 sps:$4 sm:$0xff]  }
 0x18d   : > { %3078 = vmatpush1.bf16.msra.mxu1 %v16820_v15  ;;  %v16904_v15 = vld [vmem:[%s18522_s27 + $0x4a0] ss:$48 sps:$4 sm:$0xff]  }
 0x18e   : > { %3079 = vmatprep.subr.bf16.mxu1 %v16825_v17  ;;  %v16912_v17 = vld [vmem:[%s18522_s27 + $0x504] ss:$48 sps:$4 sm:$0xff]  }
 0x18f   : > { %2994 = vmatpush1.bf16.msra.mxu0 %v16799_v12  ;;  %v16903_v12 = vld [vmem:[%s18522_s27 + $0x3ec] ss:$48 sps:$4 sm:$0xff]  }
 0x190   : > { %2995 = vmatprep.subr.bf16.mxu0 %v16807_v14  ;;  %v16901_v14 = vld [vmem:[%s18522_s27 + $0x3e8] ss:$48 sps:$4 sm:$0xff]  }
 0x191   : > { %3080 = vmatpush1.bf16.msra.mxu1 %v16823_v20  ;;  %v16910_v20 = vld [vmem:[%s18522_s27 + $0x500] ss:$48 sps:$4 sm:$0xff]  }
 0x192   : > { %3081 = vmatprep.subr.bf16.mxu1 %v16828_v22  ;;  %v16918_v22 = vld [vmem:[%s18522_s27 + $0x564] ss:$48 sps:$4 sm:$0xff]  }
 0x193   : > { %2996 = vmatpush1.bf16.msra.mxu0 %v16805_v16  ;;  %v16909_v16 = vld [vmem:[%s18522_s27 + $0x44c] ss:$48 sps:$4 sm:$0xff]  }
 0x194   : > { %2997 = vmatprep.subr.bf16.mxu0 %v16813_v18  ;;  %v16907_v18 = vld [vmem:[%s18522_s27 + $0x448] ss:$48 sps:$4 sm:$0xff]  }
 0x195   : > { %3082 = vmatpush1.bf16.msra.mxu1 %v16826_v24  ;;  %v16916_v24 = vld [vmem:[%s18522_s27 + $0x560] ss:$48 sps:$4 sm:$0xff]  }
 0x196   : > { %3083 = vmatprep.subr.bf16.mxu1 %v16831_v26  ;;  %v16924_v26 = vld [vmem:[%s18522_s27 + $0x5c4] ss:$48 sps:$4 sm:$0xff]  }
 0x197   : > { %2998 = vmatpush1.bf16.msra.mxu0 %v16811_v21  ;;  %v16915_v21 = vld [vmem:[%s18522_s27 + $0x4ac] ss:$48 sps:$4 sm:$0xff]  }
 0x198   : > { %2999 = vmatprep.subr.bf16.mxu0 %v16819_v23  ;;  %v16913_v23 = vld [vmem:[%s18522_s27 + $0x4a8] ss:$48 sps:$4 sm:$0xff]  }
 0x199   : > { %3084 = vmatpush1.bf16.msra.mxu1 %v16829_v28  ;;  %v16922_v28 = vld [vmem:[%s18522_s27 + $0x5c0] ss:$48 sps:$4 sm:$0xff]  }
 0x19a   : > { %3085 = vmatprep.subr.bf16.mxu1 %v16834_v29  ;;  %v16927_v29 = vld [vmem:[%s18522_s27 + $0x56c] ss:$48 sps:$4 sm:$0xff]  }
 0x19b   : > { %3000 = vmatpush1.bf16.msra.mxu0 %v16817_v25  ;;  %v16921_v25 = vld [vmem:[%s18522_s27 + $0x50c] ss:$48 sps:$4 sm:$0xff]  }
 0x19c   : > { %3098 = vmatprep.subr.bf16.mxu0 %v16837_v27  ;;  %v16919_v27 = vld [vmem:[%s18522_s27 + $0x508] ss:$48 sps:$4 sm:$0xff]  }
 0x19d   : > { %3086 = vmatpush1.bf16.msra.mxu1 %v16832_v31  ;;  %v16925_v31 = vld [vmem:[%s18522_s27 + $0x568] ss:$48 sps:$4 sm:$0xff]  }
 0x19e   : > { %3002 = vmatmul.mubr.bf16.vlgmr.msra.gmra.mrb[4].mxu0 %v18713_v19  ;;  %3184 = vmatprep.subr.bf16.mxu1 %v16843_v34  ;;  %v16936_v34 = vld [vmem:[%s18522_s27 + $0x684] ss:$48 sps:$4 sm:$0xff]  }
 0x19f   : > { %3099 = vmatpush1.bf16.msra.mxu0 %v16835_v30  ;;  %3130 = vmatprep.mubr.bf16.mxu0 %v18615_v50  ;;  %v16930_v30 = vld [vmem:[%s18522_s27 + $0x624] ss:$48 sps:$4 sm:$0xff]  }
 0x1a0   : > { %3100 = vmatprep.subr.bf16.mxu0 %v16840_v32  ;;  %3088 = vmatmul.mubr.bf16.vlgmr.msra.gmra.mrb[4].mxu1 %v18713_v19  ;;  %v16928_v32 = vld [vmem:[%s18522_s27 + $0x620] ss:$48 sps:$4 sm:$0xff]  }
 0x1a1   : > { %3185 = vmatpush1.bf16.msra.mxu1 %v16841_v37  ;;  %3216 = vmatprep.mubr.bf16.mxu1 %v18615_v50  ;;  %v16867_v50 = vld [vmem:[%s18522_s27 + $0x1ac] ss:$48 sps:$4 sm:$0xff]   ;;  %v16934_v37 = vld [vmem:[%s18522_s27 + $0x680] ss:$48 sps:$4 sm:$0xff]  }
 0x1a2   : > { %3186 = vmatprep.subr.bf16.mxu1 %v16849_v39  ;;  %v16942_v39 = vld [vmem:[%s18522_s27 + $0x6e4] ss:$48 sps:$4 sm:$0xff]  }
 0x1a3   : > { %3101 = vmatpush1.bf16.msra.mxu0 %v16838_v33  ;;  %v16933_v33 = vld [vmem:[%s18522_s27 + $0x5cc] ss:$48 sps:$4 sm:$0xff]  }
 0x1a4   : > { %3102 = vmatprep.subr.bf16.mxu0 %v16846_v36  ;;  %v16931_v36 = vld [vmem:[%s18522_s27 + $0x5c8] ss:$48 sps:$4 sm:$0xff]  }
 0x1a5   : > { %3187 = vmatpush1.bf16.msra.mxu1 %v16847_v41  ;;  %v16940_v41 = vld [vmem:[%s18522_s27 + $0x6e0] ss:$48 sps:$4 sm:$0xff]  }
 0x1a6   : > { %3188 = vmatprep.subr.bf16.mxu1 %v16855_v43  ;;  %v16948_v43 = vld [vmem:[%s18522_s27 + $0x744] ss:$48 sps:$4 sm:$0xff]  }
 0x1a7   : > { %3103 = vmatpush1.bf16.msra.mxu0 %v16844_v38  ;;  %v16939_v38 = vld [vmem:[%s18522_s27 + $0x62c] ss:$48 sps:$4 sm:$0xff]  }
 0x1a8   : > { %3104 = vmatprep.subr.bf16.mxu0 %v16852_v40  ;;  %v16937_v40 = vld [vmem:[%s18522_s27 + $0x628] ss:$48 sps:$4 sm:$0xff]  }
 0x1a9   : > { %3189 = vmatpush1.bf16.msra.mxu1 %v16853_v45  ;;  %v16946_v45 = vld [vmem:[%s18522_s27 + $0x740] ss:$48 sps:$4 sm:$0xff]  }
 0x1aa   : > { %3190 = vmatprep.subr.bf16.mxu1 %v16861_v47  ;;  %v16954_v47 = vld [vmem:[%s18522_s27 + $0x7a4] ss:$48 sps:$4 sm:$0xff]  }
 0x1ab   : > { %3105 = vmatpush1.bf16.msra.mxu0 %v16850_v42  ;;  %v16945_v42 = vld [vmem:[%s18522_s27 + $0x68c] ss:$48 sps:$4 sm:$0xff]  }
 0x1ac   : > { %3106 = vmatprep.subr.bf16.mxu0 %v16858_v44  ;;  %v16943_v44 = vld [vmem:[%s18522_s27 + $0x688] ss:$48 sps:$4 sm:$0xff]  }
 0x1ad   : > { %3191 = vmatpush1.bf16.msra.mxu1 %v16859_v49  ;;  %v16952_v49 = vld [vmem:[%s18522_s27 + $0x7a0] ss:$48 sps:$4 sm:$0xff]  }
 0x1ae   : > { %3192 = vmatprep.subr.bf16.mxu1 %v16867_v50  ;;  %v16955_v50 = vld [vmem:[%s18522_s27 + $0x748] ss:$48 sps:$4 sm:$0xff]  }
 0x1af   : > { %3107 = vmatpush1.bf16.msra.mxu0 %v16856_v46  ;;  %v16951_v46 = vld [vmem:[%s18522_s27 + $0x6ec] ss:$48 sps:$4 sm:$0xff]  }
 0x1b0   : > { %3108 = vmatprep.subr.bf16.mxu0 %v16864_v48  ;;  %v16949_v48 = vld [vmem:[%s18522_s27 + $0x6e8] ss:$48 sps:$4 sm:$0xff]  }
 0x1b1   : > { %3193 = vmatpush1.bf16.msra.mxu1 %v16865_v53  ;;  %v16963_v53 = vld [vmem:[%s18522_s27 + $0x7ac] ss:$48 sps:$4 sm:$0xff]  }
 0x1b2   : > { %3194 = vmatprep.subr.bf16.mxu1 %v16873_v55 }
 0x1b3   : > { %3109 = vmatpush1.bf16.msra.mxu0 %v16862_v51  ;;  %v16957_v51 = vld [vmem:[%s18522_s27 + $0x74c] ss:$48 sps:$4 sm:$0xff]  }
 0x1b4   : > { %3110 = vmatprep.subr.bf16.mxu0 %v16870_v52  ;;  %v16958_v52 = vld [vmem:[%s18522_s27 + $0x800] ss:$48 sps:$4 sm:$0xff]  }
 0x1b5   : > { %3195 = vmatpush1.bf16.msra.mxu1 %v16871_v57  ;;  %v16969_v57 = vld [vmem:[%s18522_s27 + $0x80c] ss:$48 sps:$4 sm:$0xff]  }
 0x1b6   : > { %3196 = vmatprep.subr.bf16.mxu1 %v16879_v59  ;;  %v16972_v59 = vld [vmem:[%s18522_s27 + $0x8c4] ss:$48 sps:$4 sm:$0xff]  }
 0x1b7   : > { %3111 = vmatpush1.bf16.msra.mxu0 %v16868_v54  ;;  %v16961_v54 = vld [vmem:[%s18522_s27 + $0x7a8] ss:$48 sps:$4 sm:$0xff]  }
 0x1b8   : > { %3112 = vmatprep.subr.bf16.mxu0 %v16876_v56  ;;  %v16964_v56 = vld [vmem:[%s18522_s27 + $0x860] ss:$48 sps:$4 sm:$0xff]  }
 0x1b9   : > { %3197 = vmatpush1.bf16.msra.mxu1 %v16877_v61 }
 0x1ba   : > { %3198 = vmatprep.subr.bf16.mxu1 %v16885_v63  ;;  %v16970_v63 = vld [vmem:[%s18522_s27 + $0x8c0] ss:$48 sps:$4 sm:$0xff]  }
 0x1bb   : > { %3113 = vmatpush1.bf16.msra.mxu0 %v16874_v58 }
 0x1bc   : > { %3114 = vmatprep.subr.bf16.mxu0 %v16882_v60 }
 0x1bd   : > { %3199 = vmatpush1.bf16.msra.mxu1 %v16883_v1  ;;  %v16978_v1 = vld [vmem:[%s18522_s27 + $0x924] ss:$48 sps:$4 sm:$0xff]  }
 0x1be   : > { %3200 = vmatprep.subr.bf16.mxu1 %v16891_v3  ;;  %v16973_v3 = vld [vmem:[%s18522_s27 + $0x868] ss:$48 sps:$4 sm:$0xff]  }
 0x1bf   : > { %3115 = vmatpush1.bf16.msra.mxu0 %v16880_v62  ;;  %v16967_v62 = vld [vmem:[%s18522_s27 + $0x808] ss:$48 sps:$4 sm:$0xff]  }
 0x1c0   : > { %3116 = vmatprep.subr.bf16.mxu0 %v16888_v0  ;;  %v16975_v0 = vld [vmem:[%s18522_s27 + $0x86c] ss:$48 sps:$4 sm:$0xff]  }
 0x1c1   : > { %3201 = vmatpush1.bf16.msra.mxu1 %v16889_v5  ;;  %v16976_v5 = vld [vmem:[%s18522_s27 + $0x920] ss:$48 sps:$4 sm:$0xff]  }
 0x1c2   : > { %3202 = vmatprep.subr.bf16.mxu1 %v16897_v7 }
 0x1c3   : > { %3117 = vmatpush1.bf16.msra.mxu0 %v16886_v2 }
 0x1c4   : > { %3118 = vmatprep.subr.bf16.mxu0 %v16894_v4 }
 0x1c5   : > { %3203 = vmatpush1.bf16.msra.mxu1 %v16895_v9 }
 0x1c6   : > { %3204 = vmatprep.subr.bf16.mxu1 %v16903_v12  ;;  %v16982_v12 = vld [vmem:[%s18522_s27 + $0x980] ss:$48 sps:$4 sm:$0xff]  }
 0x1c7   : > { %3119 = vmatpush1.bf16.msra.mxu0 %v16892_v6  ;;  %v16981_v6 = vld [vmem:[%s18522_s27 + $0x8cc] ss:$48 sps:$4 sm:$0xff]  }
 0x1c8   : > { %3120 = vmatprep.subr.bf16.mxu0 %v16900_v8  ;;  %v16984_v8 = vld [vmem:[%s18522_s27 + $0x984] ss:$48 sps:$4 sm:$0xff]  }
 0x1c9   : > { %3205 = vmatpush1.bf16.msra.mxu1 %v16901_v14  ;;  %v16990_v14 = vld [vmem:[%s18522_s27 + $0x9e4] ss:$48 sps:$4 sm:$0xff]  }
 0x1ca   : > { %3206 = vmatprep.subr.bf16.mxu1 %v16909_v16  ;;  %v16988_v16 = vld [vmem:[%s18522_s27 + $0x9e0] ss:$48 sps:$4 sm:$0xff]  }
 0x1cb   : > { %3121 = vmatpush1.bf16.msra.mxu0 %v16898_v10  ;;  %v16979_v10 = vld [vmem:[%s18522_s27 + $0x8c8] ss:$48 sps:$4 sm:$0xff]  }
 0x1cc   : > { %3122 = vmatprep.subr.bf16.mxu0 %v16906_v13  ;;  %v16987_v13 = vld [vmem:[%s18522_s27 + $0x92c] ss:$48 sps:$4 sm:$0xff]  }
 0x1cd   : > { %3207 = vmatpush1.bf16.msra.mxu1 %v16907_v18  ;;  %v16996_v18 = vld [vmem:[%s18522_s27 + $0xa44] ss:$48 sps:$4 sm:$0xff]  }
 0x1ce   : > { %3208 = vmatprep.subr.bf16.mxu1 %v16915_v21  ;;  %v16994_v21 = vld [vmem:[%s18522_s27 + $0xa40] ss:$48 sps:$4 sm:$0xff]  }
 0x1cf   : > { %3123 = vmatpush1.bf16.msra.mxu0 %v16904_v15  ;;  %v16985_v15 = vld [vmem:[%s18522_s27 + $0x928] ss:$48 sps:$4 sm:$0xff]  }
 0x1d0   : > { %3124 = vmatprep.subr.bf16.mxu0 %v16912_v17  ;;  %v16993_v17 = vld [vmem:[%s18522_s27 + $0x98c] ss:$48 sps:$4 sm:$0xff]  }
 0x1d1   : > { %3209 = vmatpush1.bf16.msra.mxu1 %v16913_v23  ;;  %v17002_v23 = vld [vmem:[%s18522_s27 + $0xaa4] ss:$48 sps:$4 sm:$0xff]  }
 0x1d2   : > { %3210 = vmatprep.subr.bf16.mxu1 %v16921_v25  ;;  %v17000_v25 = vld [vmem:[%s18522_s27 + $0xaa0] ss:$48 sps:$4 sm:$0xff]  }
 0x1d3   : > { %3125 = vmatpush1.bf16.msra.mxu0 %v16910_v20  ;;  %v16991_v20 = vld [vmem:[%s18522_s27 + $0x988] ss:$48 sps:$4 sm:$0xff]  }
 0x1d4   : > { %3126 = vmatprep.subr.bf16.mxu0 %v16918_v22  ;;  %v16999_v22 = vld [vmem:[%s18522_s27 + $0x9ec] ss:$48 sps:$4 sm:$0xff]  }
 0x1d5   : > { %3211 = vmatpush1.bf16.msra.mxu1 %v16919_v27  ;;  %v17008_v27 = vld [vmem:[%s18522_s27 + $0xb04] ss:$48 sps:$4 sm:$0xff]  }
 0x1d6   : > { %3212 = vmatprep.subr.bf16.mxu1 %v16927_v29  ;;  %v17006_v29 = vld [vmem:[%s18522_s27 + $0xb00] ss:$48 sps:$4 sm:$0xff]  }
 0x1d7   : > { %3127 = vmatpush1.bf16.msra.mxu0 %v16916_v24  ;;  %v16997_v24 = vld [vmem:[%s18522_s27 + $0x9e8] ss:$48 sps:$4 sm:$0xff]  }
 0x1d8   : > { %3128 = vmatprep.subr.bf16.mxu0 %v16924_v26  ;;  %v17005_v26 = vld [vmem:[%s18522_s27 + $0xa4c] ss:$48 sps:$4 sm:$0xff]  }
 0x1d9   : > { %3213 = vmatpush1.bf16.msra.mxu1 %v16925_v31  ;;  %v17014_v31 = vld [vmem:[%s18522_s27 + $0xb64] ss:$48 sps:$4 sm:$0xff]  }
 0x1da   : > { %3214 = vmatprep.subr.bf16.mxu1 %v16933_v33  ;;  %v17012_v33 = vld [vmem:[%s18522_s27 + $0xb60] ss:$48 sps:$4 sm:$0xff]  }
 0x1db   : > { %3129 = vmatpush1.bf16.msra.mxu0 %v16922_v28  ;;  %v17003_v28 = vld [vmem:[%s18522_s27 + $0xa48] ss:$48 sps:$4 sm:$0xff]  }
 0x1dc   : > { %3141 = vmatprep.subr.bf16.mxu0 %v16930_v30  ;;  %v17011_v30 = vld [vmem:[%s18522_s27 + $0xaac] ss:$48 sps:$4 sm:$0xff]  }
 0x1dd   : > { %3215 = vmatpush1.bf16.msra.mxu1 %v16931_v36  ;;  %v17020_v36 = vld [vmem:[%s18522_s27 + $0xbc4] ss:$48 sps:$4 sm:$0xff]  }
 0x1de   : > { %3131 = vmatmul.mubr.bf16.vlgmr.msra.gmra.mrb[8].mxu0 %v18641_v11  ;;  %3227 = vmatprep.subr.bf16.mxu1 %v16939_v38  ;;  %v17018_v38 = vld [vmem:[%s18522_s27 + $0xbc0] ss:$48 sps:$4 sm:$0xff]  }
 0x1df   : > { %3142 = vmatpush1.bf16.msra.mxu0 %v16928_v32  ;;  %3173 = vmatprep.mubr.bf16.mxu0 %v18666_v35  ;;  %v17009_v32 = vld [vmem:[%s18522_s27 + $0xaa8] ss:$48 sps:$4 sm:$0xff]  }
 0x1e0   : > { %3143 = vmatprep.subr.bf16.mxu0 %v16936_v34  ;;  %3217 = vmatmul.mubr.bf16.vlgmr.msra.gmra.mrb[8].mxu1 %v18641_v11  ;;  %v16960_v11 = vld [vmem:[%s18522_s27 + $0x804] ss:$48 sps:$4 sm:$0xff]   ;;  %v17017_v34 = vld [vmem:[%s18522_s27 + $0xb0c] ss:$48 sps:$4 sm:$0xff]  }
 0x1e1   : > { %3228 = vmatpush1.bf16.msra.mxu1 %v16937_v40  ;;  %3259 = vmatprep.mubr.bf16.mxu1 %v18666_v35  ;;  %v16966_v35 = vld [vmem:[%s18522_s27 + $0x864] ss:$48 sps:$4 sm:$0xff]   ;;  %v17021_v40 = vld [vmem:[%s18522_s27 + $0xb68] ss:$48 sps:$4 sm:$0xff]  }
 0x1e2   : > { %3229 = vmatprep.subr.bf16.mxu1 %v16945_v42  ;;  %v17024_v42 = vld [vmem:[%s18522_s27 + $0xbc8] ss:$48 sps:$4 sm:$0xff]  }
 0x1e3   : > { %3144 = vmatpush1.bf16.msra.mxu0 %v16934_v37  ;;  %v17015_v37 = vld [vmem:[%s18522_s27 + $0xb08] ss:$48 sps:$4 sm:$0xff]  }
 0x1e4   : > { %3145 = vmatprep.subr.bf16.mxu0 %v16942_v39  ;;  %v17023_v39 = vld [vmem:[%s18522_s27 + $0xb6c] ss:$48 sps:$4 sm:$0xff]  }
 0x1e5   : > { %3230 = vmatpush1.bf16.msra.mxu1 %v16943_v44 }
 0x1e6   : > { %3231 = vmatprep.subr.bf16.mxu1 %v16951_v46 }
 0x1e7   : > { %3146 = vmatpush1.bf16.msra.mxu0 %v16940_v41  ;;  %v17026_v41 = vld [vmem:[%s18522_s27 + $0xbcc] ss:$48 sps:$4 sm:$0xff]   ;;  %s18273_s27 = smov 64  }
 0x1e8   : > { %3147 = vmatprep.subr.bf16.mxu0 %v16948_v43  ;;  %v18271_v43 = vmov 0.0  }
 0x1e9   : > { %3232 = vmatpush1.bf16.msra.mxu1 %v16949_v48 }
 0x1ea   : > { %3233 = vmatprep.subr.bf16.mxu1 %v16957_v51 }
 0x1eb   : > { %3148 = vmatpush1.bf16.msra.mxu0 %v16946_v45 }
 0x1ec   : > { %3149 = vmatprep.subr.bf16.mxu0 %v16954_v47 }
 0x1ed   : > { %3234 = vmatpush1.bf16.msra.mxu1 %v16955_v50 }
 0x1ee   : > { %3235 = vmatprep.subr.bf16.mxu1 %v16963_v53 }
 0x1ef   : > { %3150 = vmatpush1.bf16.msra.mxu0 %v16952_v49 }
 0x1f0   : > { %3151 = vmatprep.subr.bf16.mxu0 %v16960_v11 }
 0x1f1   : > { %v18948_v55 = vpop.f32.mrb[0].mxu0  ;;  %3236 = vmatpush1.bf16.msra.mxu1 %v16961_v54  ;;  %v18963_v2 = vpop.f32.mrb[0].mxu1 }
 0x1f2   : > { %v18952_v58 = vpop.f32.mrb[1].mxu0  ;;  %3237 = vmatprep.subr.bf16.mxu1 %v16969_v57  ;;  %v18966_v4 = vpop.f32.mrb[1].mxu1 }
 0x1f3   : > { %v18955_v60 = vpop.f32.mrb[2].mxu0  ;;  %3152 = vmatpush1.bf16.msra.mxu0 %v16958_v52  ;;  %v18970_v7 = vpop.f32.mrb[2].mxu1 }
 0x1f4   : > { %v18957_v61 = vpop.f32.mrb[3].mxu0  ;;  %3153 = vmatprep.subr.bf16.mxu0 %v16966_v35  ;;  %v18973_v9 = vpop.f32.mrb[3].mxu1 }
 0x1f5   : > { %3238 = vmatpush1.bf16.msra.mxu1 %v16967_v62 }
 0x1f6   : > { %3239 = vmatprep.subr.bf16.mxu1 %v16975_v0 }
 0x1f7   : > { %3154 = vmatpush1.bf16.msra.mxu0 %v16964_v56 }
 0x1f8   : > { %3155 = vmatprep.subr.bf16.mxu0 %v16972_v59 }
 0x1f9   : > { %3240 = vmatpush1.bf16.msra.mxu1 %v16973_v3  ;;  %v19063_v3 = vld [vmem:[%s20858_s1] ss:$0 sm:$0xff] }
 0x1fa   : > { %3241 = vmatprep.subr.bf16.mxu1 %v16981_v6 }
 0x1fb   : > { %3156 = vmatpush1.bf16.msra.mxu0 %v16970_v63 }
 0x1fc   : > { %3157 = vmatprep.subr.bf16.mxu0 %v16978_v1 }
 0x1fd   : > { %3242 = vmatpush1.bf16.msra.mxu1 %v16979_v10  ;;  %v19068_v10 = vld [vmem:[%s20858_s1 + $0x1] ss:$0 sm:$0xff] }
 0x1fe   : > { %3243 = vmatprep.subr.bf16.mxu1 %v16987_v13 }
 0x1ff   : > { %3158 = vmatpush1.bf16.msra.mxu0 %v16976_v5 }
 0x200   : > { %3159 = vmatprep.subr.bf16.mxu0 %v16984_v8 }
 0x201   : > { %3244 = vmatpush1.bf16.msra.mxu1 %v16985_v15 }
 0x202   : > { %3245 = vmatprep.subr.bf16.mxu1 %v16993_v17 }
 0x203   : > { %3160 = vmatpush1.bf16.msra.mxu0 %v16982_v12 }
 0x204   : > { %3161 = vmatprep.subr.bf16.mxu0 %v16990_v14 }
 0x205   : > { %3246 = vmatpush1.bf16.msra.mxu1 %v16991_v20 }
 0x206   : > { %3247 = vmatprep.subr.bf16.mxu1 %v16999_v22 }
 0x207   : > { %3162 = vmatpush1.bf16.msra.mxu0 %v16988_v16 }
 0x208   : > { %3163 = vmatprep.subr.bf16.mxu0 %v16996_v18 }
 0x209   : > { %3248 = vmatpush1.bf16.msra.mxu1 %v16997_v24 }
 0x20a   : > { %3249 = vmatprep.subr.bf16.mxu1 %v17005_v26 }
 0x20b   : > { %3164 = vmatpush1.bf16.msra.mxu0 %v16994_v21 }
 0x20c   : > { %3165 = vmatprep.subr.bf16.mxu0 %v17002_v23 }
 0x20d   : > { %3250 = vmatpush1.bf16.msra.mxu1 %v17003_v28 }
 0x20e   : > { %3251 = vmatprep.subr.bf16.mxu1 %v17011_v30 }
 0x20f   : > { %3166 = vmatpush1.bf16.msra.mxu0 %v17000_v25 }
 0x210   : > { %3167 = vmatprep.subr.bf16.mxu0 %v17008_v27 }
 0x211   : > { %3252 = vmatpush1.bf16.msra.mxu1 %v17009_v32 }
 0x212   : > { %3253 = vmatprep.subr.bf16.mxu1 %v17017_v34 }
 0x213   : > { %3168 = vmatpush1.bf16.msra.mxu0 %v17006_v29 }
 0x214   : > { %3169 = vmatprep.subr.bf16.mxu0 %v17014_v31 }
 0x215   : > { %3254 = vmatpush1.bf16.msra.mxu1 %v17015_v37 }
 0x216   : > { %3255 = vmatprep.subr.bf16.mxu1 %v17023_v39 }
 0x217   : > { %3170 = vmatpush1.bf16.msra.mxu0 %v17012_v33 }
 0x218   : > { %3171 = vmatprep.subr.bf16.mxu0 %v17020_v36 }
 0x219   : > { %3256 = vmatpush1.bf16.msra.mxu1 %v17021_v40 }
 0x21a   : > { %3257 = vmatprep.subr.bf16.mxu1 %v17026_v41 }
 0x21b   : > { %3172 = vmatpush1.bf16.msra.mxu0 %v17018_v38 }
 0x21c   : > { %16044 = vmatprep.subr.mxu0 %v18271_v43 }
 0x21d   : > { %3258 = vmatpush1.bf16.msra.mxu1 %v17024_v42 }
 0x21e   : > { %3174 = vmatmul.mubr.bf16.vlgmr.msra.gmra.mrb[8].mxu0 %v18713_v19  ;;  %16049 = vmatprep.subr.mxu1 %v18271_v43 }
 0x21f   : > { %16046 = vmatprep.mubr.msk.f32.mxu0 %vm18272_vm0, %v18271_v43 }
 0x220   : > { %3260 = vmatmul.mubr.bf16.vlgmr.msra.gmra.mrb[8].mxu1 %v18713_v19 }
 0x221   : > { %16051 = vmatprep.mubr.msk.f32.mxu1 %vm18272_vm0, %v18271_v43 }
 0x271   : > { %v3003_v44 = vpop.f32.mrb[4].mxu0 }
 0x272   : > { %v19013_v45 = vpop.f32.mrb[5].mxu0  ;;  %16045 = vmatpush3.xpose.msk.msra.mxu0 %vm3270_vm1, %v3003_v44 }
 0x273   : > { %v3007_v46 = vpop.f32.mrb[6].mxu0  ;;  %16054 = vmatprep.subr.bf16.mxu0 %v18271_v43  ;;  %v19028_v19 = vpop.f32.mrb[4].mxu1 }
 0x274   : > { %3639 = vrot.lane.b32.xlu1 %v3007_v46, %s18273_s27  ;;  %v19018_v47 = vpop.f32.mrb[7].mxu0  ;;  %16050 = vmatpush3.xpose.msk.msra.mxu1 %vm3270_vm1, %v3007_v46  ;;  %v19032_v48 = vpop.f32.mrb[5].mxu1 }
 0x275   : > { %16047 = vmatmul.mubr.msk.f32.vlgmr.msra.gmra.mrb[12].mxu0 %vm3270_vm1, %v18948_v55  ;;  %16060 = vmatprep.subr.bf16.mxu1 %v18271_v43  ;;  %v19034_v49 = vpop.f32.mrb[6].mxu1 }
 0x276   : > { %16056 = vmatprep.mubr.msk.bf16.mxu0 %vm18272_vm0, %v18271_v43  ;;  %v19036_v51 = vpop.f32.mrb[7].mxu1 }
 0x277   : > { %16052 = vmatmul.mubr.msk.f32.vlgmr.msra.gmra.mrb[12].mxu1 %vm3270_vm1, %v18955_v60 }
 0x278   : > { %16062 = vmatprep.mubr.msk.bf16.mxu1 %vm18272_vm0, %v18271_v43 }
 0x2e6   : > { %v3640_v29 = vpop.permute.xlu1 %3639 }
 0x2f1   : > { %v3175_v11 = vpop.f32.mrb[8].mxu0 }
 0x2f2   : > { %v19038_v50 = vpack.c.bf16 %v3175_v11, %v3175_v11  ;;  %v19040_v52 = vpop.f32.mrb[9].mxu0 }
 0x2f3   : > { %v3179_v53 = vpop.f32.mrb[10].mxu0  ;;  %v19051_v59 = vpop.f32.mrb[8].mxu1 }
 0x2f4   : > { %v3471_v35 = vsel %vm3469_vm2, %v19038_v50, 0  ;;  %v19044_v54 = vpack.c.bf16 %v3179_v53, %v3179_v53  ;;  %v19046_v56 = vpop.f32.mrb[11].mxu0  ;;  %v19054_v62 = vpop.f32.mrb[9].mxu1 }
 0x2f5   : > { %16055 = vmatpush3.bf16.msra.mxu0 %v3471_v35  ;;  %v19056_v63 = vpop.f32.mrb[10].mxu1 }
 0x2f6   : > { %v3517_v57 = vsel %vm3469_vm2, %v19044_v54, 0  ;;  %16066 = vmatprep.subr.mxu0 %v18271_v43  ;;  %v19058_v0 = vpop.f32.mrb[11].mxu1 }
 0x2f7   : > { %16061 = vmatpush3.bf16.msra.mxu1 %v3517_v57 }
 0x2f8   : > { %16071 = vmatprep.subr.mxu1 %v18271_v43 }
 0x348   : > { %v3343_v1 = vpop.f32.mrb[12].mxu0 }
 0x349   : > { %v3423_v5 = vmul.f32 0.125, %v3343_v1  ;;  %v16048_v6 = vpop.f32.mrb[13].mxu0 }
 0x34a   : > { %v3419_v8 = vpop.f32.mrb[12].mxu1 }
 0x34b   : > { %v3424_v12 = vmul.f32 0.125, %v3419_v8  ;;  %v16053_v13 = vpop.f32.mrb[13].mxu1  ;;  %v3437_v14 = vadd.f32 %v19063_v3, %v3423_v5 }
 0x34d   : > { %v3440_v15 = vsel %vm3439_vm3, %v3437_v14, -inf  ;;  %v3438_v16 = vadd.f32 %v19068_v10, %v3424_v12 }
 0x34e   : > { %3441 = vmax.xlane.f32.xlu0 %v3440_v15 }
 0x34f   : > { %v3443_v17 = vsel %vm3439_vm3, %v3438_v16, -inf }
 0x352   : > { %3444 = vmax.xlane.f32.xlu0 %v3443_v17 }
 0x368   : > { %3561 = vrot.lane.b32.xlu0 %v3003_v44, %s18273_s27 }
 0x3db   : > { %v3442_v18 = vpop.xlane.xlu0 %3441 }
 0x3dc   : > { %v3446_v20 = vsub.f32 %v3437_v14, %v3442_v18 }
 0x3de   : > { %v3448_v21 = vmul.f32 1.442695, %v3446_v20 }
 0x3df   : > { %v3445_v22 = vpop.xlane.xlu0 %3444 }
 0x3e0   : > { %17987 = vpow2.f32 %v3448_v21  ;;  %v3447_v23 = vsub.f32 %v3438_v16, %v3445_v22 }
 0x3e2   : > { %v3450_v24 = vmul.f32 1.442695, %v3447_v23 }
 0x3e3   : > { %v3562_v37 = vpop.permute.xlu0 %3561 }
 0x3e4   : > { %17989 = vpow2.f32 %v3450_v24 }
 0x3ea   : > { %v17988_v25 = vpop.eup %17987 }
 0x3eb   : > { %v3452_v26 = vsel %vm3439_vm3, %v17988_v25, 0.0 }
 0x3ec   : > { %3453 = vadd.xlane.f32.xlu1 %v3452_v26 }
 0x3ee   : > { %v17990_v27 = vpop.eup %17989 }
 0x3ef   : > { %v3455_v28 = vsel %vm3439_vm3, %v17990_v27, 0.0 }
 0x3f0   : > { %3456 = vadd.xlane.f32.xlu1 %v3455_v28 }
 0x401   : > { %3559 = vrot.lane.b32.xlu1 %v18948_v55, %s18273_s27 }
 0x405   : > { %3637 = vrot.lane.b32.xlu1 %v18955_v60, %s18273_s27 }
 0x479   : > { %v3454_v30 = vpop.xlane.xlu1 %3453 }
 0x47a   : > { %17991 = vrcp.f32 %v3454_v30 }
 0x47d   : > { %v3457_v31 = vpop.xlane.xlu1 %3456 }
 0x47e   : > { %17993 = vrcp.f32 %v3457_v31 }
 0x481   : > { %v3560_v60 = vpop.permute.xlu1 %3559 }
 0x484   : > { %v17992_v32 = vpop.eup %17991 }
 0x485   : > { %v3459_v33 = vmul.f32 %v17992_v32, %v17988_v25  ;;  %v3638_v39 = vpop.permute.xlu1 %3637 }
 0x487   : > { %5509 = vst.msk [vmem:[%s18548_s17] sm:$0xff] %vm3439_vm3, %v3459_v33  ;;  %v3462_v34 = vpack.c.bf16 %v3459_v33, %v3459_v33 }
 0x488   : > { %v17994_v36 = vpop.eup %17993 }
 0x489   : > { %v3461_v38 = vmul.f32 %v17994_v36, %v17990_v27  ;;  %16057 = vmatmul.mubr.msk.bf16.vlgmr.msra.gmra.mrb[16].mxu0 %vm3439_vm3, %v3462_v34 }
 0x48a   : > { %16067 = vmatpush3.xpose.msk.msra.mxu0 %vm3270_vm1, %v3562_v37  ;;  %16068 = vmatprep.mubr.msk.f32.mxu0 %vm18272_vm0, %v18271_v43 }
 0x48b   : > { %5517 = vst.msk [vmem:[%s18548_s17 + $0x40] sm:$0xff] %vm3439_vm3, %v3461_v38  ;;  %v3463_v55 = vpack.c.bf16 %v3461_v38, %v3461_v38  ;;  %16076 = vmatprep.subr.bf16.mxu0 %v18271_v43 }
 0x48d   : > { %16063 = vmatmul.mubr.msk.bf16.vlgmr.msra.gmra.mrb[16].mxu1 %vm3439_vm3, %v3463_v55  ;;  %v19130_v55 = vpack.c.bf16 %v19040_v52, %v19040_v52 }
 0x48e   : > { %16072 = vmatpush3.xpose.msk.msra.mxu1 %vm3270_vm1, %v3640_v29  ;;  %16073 = vmatprep.mubr.msk.f32.mxu1 %vm18272_vm0, %v18271_v43 }
 0x48f   : > { %16082 = vmatprep.subr.bf16.mxu1 %v18271_v43 }
 0x491   : > { %16069 = vmatmul.mubr.msk.f32.vlgmr.msra.gmra.mrb[14].mxu0 %vm3270_vm1, %v3560_v60  ;;  %v4027_v60 = vsel %vm3469_vm2, %v19130_v55, 0 }
 0x492   : > { %16078 = vmatprep.mubr.msk.bf16.mxu0 %vm18272_vm0, %v18271_v43 }
 0x495   : > { %16074 = vmatmul.mubr.msk.f32.vlgmr.msra.gmra.mrb[14].mxu1 %vm3270_vm1, %v3638_v39  ;;  %v19143_v39 = vpack.c.bf16 %v19046_v56, %v19046_v56 }
 0x496   : > { %16084 = vmatprep.mubr.msk.bf16.mxu1 %vm18272_vm0, %v18271_v43 }
 0x497   : > { %v4073_v52 = vsel %vm3469_vm2, %v19143_v39, 0 }
 0x55c   : > { %v19101_v40 = vpop.f32.mrb[16].mxu0 }
 0x55d   : > { %v16058_v41 = vpop.f32.mrb[17].mxu0 }
 0x55e   : > { %v3510_v42 = vpop.f32.mrb[18].mxu0 }
 0x55f   : > { %v16059_v44 = vpop.f32.mrb[19].mxu0 }
 0x560   : > { %v19103_v46 = vpop.f32.mrb[16].mxu1 }
 0x561   : > { %v16064_v11 = vpop.f32.mrb[17].mxu1 }
 0x562   : > { %v3556_v53 = vpop.f32.mrb[18].mxu1 }
 0x563   : > { %v16065_v35 = vpop.f32.mrb[19].mxu1 }
 0x564   : > { %v3633_v57 = vpop.f32.mrb[14].mxu0 }
 0x565   : > { %v3715_v1 = vmul.f32 0.125, %v3633_v57  ;;  %v16070_v5 = vpop.f32.mrb[15].mxu0 }
 0x567   : > { %v3717_v6 = vadd.f32 %v19063_v3, %v3715_v1 }
 0x568   : > { %v3711_v8 = vpop.f32.mrb[14].mxu1 }
 0x569   : > { %v3716_v12 = vmul.f32 0.125, %v3711_v8  ;;  %v16075_v13 = vpop.f32.mrb[15].mxu1  ;;  %v3719_v14 = vsel %vm3439_vm3, %v3717_v6, -inf }
 0x56a   : > { %3720 = vmax.xlane.f32.xlu0 %v3719_v14 }
 0x56b   : > { %v3718_v15 = vadd.f32 %v19068_v10, %v3716_v12 }
 0x56d   : > { %v3722_v16 = vsel %vm3439_vm3, %v3718_v15, -inf }
 0x56e   : > { %3723 = vmax.xlane.f32.xlu1 %v3722_v16 }
 0x57f   : > { %3793 = vrot.lane.b32.xlu1 %v19044_v54, %s18273_s27 }
 0x5f7   : > { %v3721_v17 = vpop.xlane.xlu0 %3720 }
 0x5f8   : > { %v3725_v18 = vsub.f32 %v3717_v6, %v3721_v17 }
 0x5fa   : > { %v3727_v20 = vmul.f32 1.442695, %v3725_v18 }
 0x5fb   : > { %v3724_v21 = vpop.xlane.xlu1 %3723 }
 0x5fc   : > { %17995 = vpow2.f32 %v3727_v20  ;;  %v3726_v22 = vsub.f32 %v3718_v15, %v3724_v21 }
 0x5fe   : > { %v3729_v23 = vmul.f32 1.442695, %v3726_v22 }
 0x5ff   : > { %v3794_v24 = vpop.permute.xlu1 %3793 }
 0x600   : > { %17997 = vpow2.f32 %v3729_v23  ;;  %v3799_v25 = vsel %vm3469_vm2, %v3794_v24, 0 }
 0x601   : > { %16083 = vmatpush3.bf16.msra.mxu1 %v3799_v25 }
 0x602   : > { %16093 = vmatprep.subr.mxu1 %v18271_v43 }
 0x606   : > { %v17996_v26 = vpop.eup %17995 }
 0x607   : > { %v3731_v27 = vsel %vm3439_vm3, %v17996_v26, 0.0 }
 0x608   : > { %3732 = vadd.xlane.f32.xlu0 %v3731_v27 }
 0x60a   : > { %v17998_v54 = vpop.eup %17997 }
 0x60b   : > { %v3734_v28 = vsel %vm3439_vm3, %v17998_v54, 0.0 }
 0x60c   : > { %3735 = vadd.xlane.f32.xlu0 %v3734_v28 }
 0x622   : > { %3744 = vrot.lane.b32.xlu0 %v19038_v50, %s18273_s27 }
 0x695   : > { %v3733_v29 = vpop.xlane.xlu0 %3732 }
 0x696   : > { %17999 = vrcp.f32 %v3733_v29 }
 0x699   : > { %v3736_v30 = vpop.xlane.xlu0 %3735 }
 0x69a   : > { %18001 = vrcp.f32 %v3736_v30 }
 0x69d   : > { %v3745_v31 = vpop.permute.xlu0 %3744 }
 0x69e   : > { %v3750_v32 = vsel %vm3469_vm2, %v3745_v31, 0 }
 0x69f   : > { %16077 = vmatpush3.bf16.msra.mxu0 %v3750_v32 }
 0x6a0   : > { %v18000_v33 = vpop.eup %17999  ;;  %16088 = vmatprep.subr.mxu0 %v18271_v43 }
 0x6a1   : > { %v3738_v34 = vmul.f32 %v18000_v33, %v17996_v26 }
 0x6a3   : > { %5510 = vst.msk [vmem:[%s18548_s17 + $0x8] sm:$0xff] %vm3439_vm3, %v3738_v34  ;;  %v3741_v36 = vpack.c.bf16 %v3738_v34, %v3738_v34 }
 0x6a4   : > { %v18002_v37 = vpop.eup %18001 }
 0x6a5   : > { %v3740_v38 = vmul.f32 %v18002_v37, %v17998_v54  ;;  %16079 = vmatmul.mubr.msk.bf16.vlgmr.msra.gmra.mrb[20].mxu0 %vm3439_vm3, %v3741_v36 }
 0x6a6   : > { %16090 = vmatprep.mubr.msk.f32.mxu0 %vm18272_vm0, %v18271_v43 }
 0x6a7   : > { %5518 = vst.msk [vmem:[%s18548_s17 + $0x48] sm:$0xff] %vm3439_vm3, %v3740_v38  ;;  %v3742_v50 = vpack.c.bf16 %v3740_v38, %v3740_v38 }
 0x6a8   : > { %16089 = vmatpush3.xpose.msk.msra.mxu0 %vm3270_vm1, %v19013_v45 }
 0x6a9   : > { %16085 = vmatmul.mubr.msk.bf16.vlgmr.msra.gmra.mrb[20].mxu1 %vm3439_vm3, %v3742_v50  ;;  %16098 = vmatprep.subr.bf16.mxu0 %v18271_v43 }
 0x6aa   : > { %16094 = vmatpush3.xpose.msk.msra.mxu1 %vm3270_vm1, %v19018_v47  ;;  %16095 = vmatprep.mubr.msk.f32.mxu1 %vm18272_vm0, %v18271_v43 }
 0x6ab   : > { %16104 = vmatprep.subr.bf16.mxu1 %v18271_v43 }
 0x6ad   : > { %16091 = vmatmul.mubr.msk.f32.vlgmr.msra.gmra.mrb[24].mxu0 %vm3270_vm1, %v18952_v58 }
 0x6ae   : > { %16099 = vmatpush3.bf16.msra.mxu0 %v4027_v60  ;;  %16100 = vmatprep.mubr.msk.bf16.mxu0 %vm18272_vm0, %v18271_v43 }
 0x6af   : > { %16110 = vmatprep.subr.mxu0 %v18271_v43 }
 0x6b1   : > { %16096 = vmatmul.mubr.msk.f32.vlgmr.msra.gmra.mrb[24].mxu1 %vm3270_vm1, %v18957_v61 }
 0x6b2   : > { %16105 = vmatpush3.bf16.msra.mxu1 %v4073_v52  ;;  %16106 = vmatprep.mubr.msk.bf16.mxu1 %vm18272_vm0, %v18271_v43 }
 0x6b3   : > { %16115 = vmatprep.subr.mxu1 %v18271_v43 }
 0x778   : > { %v19157_v56 = vpop.f32.mrb[20].mxu0 }
 0x779   : > { %v16080_v41 = vpop.f32.mrb[21].mxu0 }
 0x77a   : > { %v3789_v42 = vpop.f32.mrb[22].mxu0 }
 0x77b   : > { %v16081_v44 = vpop.f32.mrb[23].mxu0 }
 0x77c   : > { %v19159_v11 = vpop.f32.mrb[20].mxu1 }
 0x77d   : > { %v16436_v53 = vpack.i.bf16 %v19159_v11, %v19157_v56  ;;  %v16086_v35 = vpop.f32.mrb[21].mxu1 }
 0x77e   : > { %v3838_v57 = vpop.f32.mrb[22].mxu1 }
 0x77f   : > { %v16087_v1 = vpop.f32.mrb[23].mxu1 }
 0x780   : > { %v3913_v5 = vpop.f32.mrb[24].mxu0 }
 0x781   : > { %v3993_v6 = vmul.f32 0.125, %v3913_v5  ;;  %v16092_v8 = vpop.f32.mrb[25].mxu0 }
 0x783   : > { %v3995_v12 = vadd.f32 %v19063_v3, %v3993_v6 }
 0x784   : > { %v3989_v13 = vpop.f32.mrb[24].mxu1 }
 0x785   : > { %v3994_v14 = vmul.f32 0.125, %v3989_v13  ;;  %v16097_v15 = vpop.f32.mrb[25].mxu1  ;;  %v3997_v16 = vsel %vm3439_vm3, %v3995_v12, -inf }
 0x786   : > { %3998 = vmax.xlane.f32.xlu1 %v3997_v16 }
 0x787   : > { %v3996_v17 = vadd.f32 %v19068_v10, %v3994_v14 }
 0x789   : > { %v4000_v18 = vsel %vm3439_vm3, %v3996_v17, -inf }
 0x78a   : > { %4001 = vmax.xlane.f32.xlu0 %v4000_v18 }
 0x797   : > { %4195 = vrot.lane.b32.xlu1 %v19018_v47, %s18273_s27 }
 0x813   : > { %v3999_v20 = vpop.xlane.xlu1 %3998 }
 0x814   : > { %v4003_v21 = vsub.f32 %v3995_v12, %v3999_v20 }
 0x816   : > { %v4005_v22 = vmul.f32 1.442695, %v4003_v21 }
 0x817   : > { %v4002_v23 = vpop.xlane.xlu0 %4001  ;;  %v4196_v47 = vpop.permute.xlu1 %4195 }
 0x818   : > { %18003 = vpow2.f32 %v4005_v22  ;;  %v4004_v24 = vsub.f32 %v3996_v17, %v4002_v23 }
 0x81a   : > { %v4007_v25 = vmul.f32 1.442695, %v4004_v24 }
 0x81c   : > { %18005 = vpow2.f32 %v4007_v25 }
 0x822   : > { %v18004_v26 = vpop.eup %18003 }
 0x823   : > { %v4009_v27 = vsel %vm3439_vm3, %v18004_v26, 0.0 }
 0x824   : > { %4010 = vadd.xlane.f32.xlu0 %v4009_v27 }
 0x826   : > { %v18006_v54 = vpop.eup %18005 }
 0x827   : > { %v4012_v28 = vsel %vm3439_vm3, %v18006_v54, 0.0 }
 0x828   : > { %4013 = vadd.xlane.f32.xlu1 %v4012_v28 }
 0x839   : > { %4115 = vrot.lane.b32.xlu1 %v18952_v58, %s18273_s27 }
 0x83a   : > { %4117 = vrot.lane.b32.xlu0 %v19013_v45, %s18273_s27 }
 0x83d   : > { %4193 = vrot.lane.b32.xlu1 %v18957_v61, %s18273_s27 }
 0x8b1   : > { %v4011_v29 = vpop.xlane.xlu0 %4010 }
 0x8b2   : > { %18007 = vrcp.f32 %v4011_v29 }
 0x8b5   : > { %v4014_v30 = vpop.xlane.xlu1 %4013  ;;  %v4118_v36 = vpop.permute.xlu0 %4117 }
 0x8b6   : > { %18009 = vrcp.f32 %v4014_v30 }
 0x8b9   : > { %v4116_v45 = vpop.permute.xlu1 %4115 }
 0x8bc   : > { %v18008_v31 = vpop.eup %18007 }
 0x8bd   : > { %v4016_v32 = vmul.f32 %v18008_v31, %v18004_v26  ;;  %v4194_v37 = vpop.permute.xlu1 %4193 }
 0x8bf   : > { %5511 = vst.msk [vmem:[%s18548_s17 + $0x10] sm:$0xff] %vm3439_vm3, %v4016_v32  ;;  %v4019_v33 = vpack.c.bf16 %v4016_v32, %v4016_v32 }
 0x8c0   : > { %v18010_v34 = vpop.eup %18009 }
 0x8c1   : > { %v4018_v58 = vmul.f32 %v18010_v34, %v18006_v54  ;;  %16101 = vmatmul.mubr.msk.bf16.vlgmr.msra.gmra.mrb[28].mxu0 %vm3439_vm3, %v4019_v33 }
 0x8c2   : > { %16111 = vmatpush3.xpose.msk.msra.mxu0 %vm3270_vm1, %v4118_v36  ;;  %16112 = vmatprep.mubr.msk.f32.mxu0 %vm18272_vm0, %v18271_v43 }
 0x8c3   : > { %5519 = vst.msk [vmem:[%s18548_s17 + $0x50] sm:$0xff] %vm3439_vm3, %v4018_v58  ;;  %v4020_v61 = vpack.c.bf16 %v4018_v58, %v4018_v58  ;;  %16120 = vmatprep.subr.bf16.mxu0 %v18271_v43  ;;  %v19226_v58 = vpack.c.bf16 %v19051_v59, %v19051_v59 }
 0x8c5   : > { %16107 = vmatmul.mubr.msk.bf16.vlgmr.msra.gmra.mrb[28].mxu1 %vm3439_vm3, %v4020_v61  ;;  %v4583_v61 = vsel %vm3469_vm2, %v19226_v58, 0 }
 0x8c6   : > { %16116 = vmatpush3.xpose.msk.msra.mxu1 %vm3270_vm1, %v4196_v47  ;;  %16117 = vmatprep.mubr.msk.f32.mxu1 %vm18272_vm0, %v18271_v43 }
 0x8c7   : > { %16126 = vmatprep.subr.bf16.mxu1 %v18271_v43 }
 0x8c9   : > { %16113 = vmatmul.mubr.msk.f32.vlgmr.msra.gmra.mrb[26].mxu0 %vm3270_vm1, %v4116_v45  ;;  %v19239_v45 = vpack.c.bf16 %v19056_v63, %v19056_v63 }
 0x8ca   : > { %16122 = vmatprep.mubr.msk.bf16.mxu0 %vm18272_vm0, %v18271_v43 }
 0x8cb   : > { %v4629_v59 = vsel %vm3469_vm2, %v19239_v45, 0 }
 0x8cd   : > { %16118 = vmatmul.mubr.msk.f32.vlgmr.msra.gmra.mrb[26].mxu1 %vm3270_vm1, %v4194_v37 }
 0x8ce   : > { %16128 = vmatprep.mubr.msk.bf16.mxu1 %vm18272_vm0, %v18271_v43 }
 0x994   : > { %v19197_v38 = vpop.f32.mrb[28].mxu0 }
 0x995   : > { %v16102_v50 = vpop.f32.mrb[29].mxu0 }
 0x996   : > { %v4066_v60 = vpop.f32.mrb[30].mxu0 }
 0x997   : > { %v16103_v52 = vpop.f32.mrb[31].mxu0 }
 0x998   : > { %v19199_v41 = vpop.f32.mrb[28].mxu1 }
 0x999   : > { %v16108_v42 = vpop.f32.mrb[29].mxu1 }
 0x99a   : > { %v4112_v44 = vpop.f32.mrb[30].mxu1 }
 0x99b   : > { %v16109_v35 = vpop.f32.mrb[31].mxu1 }
 0x99c   : > { %v4189_v57 = vpop.f32.mrb[26].mxu0 }
 0x99d   : > { %v4271_v1 = vmul.f32 0.125, %v4189_v57  ;;  %v16114_v5 = vpop.f32.mrb[27].mxu0 }
 0x99f   : > { %v4273_v6 = vadd.f32 %v19063_v3, %v4271_v1 }
 0x9a0   : > { %v4267_v8 = vpop.f32.mrb[26].mxu1 }
 0x9a1   : > { %v4272_v12 = vmul.f32 0.125, %v4267_v8  ;;  %v16119_v13 = vpop.f32.mrb[27].mxu1  ;;  %v4275_v14 = vsel %vm3439_vm3, %v4273_v6, -inf }
 0x9a2   : > { %4276 = vmax.xlane.f32.xlu0 %v4275_v14 }
 0x9a3   : > { %v4274_v15 = vadd.f32 %v19068_v10, %v4272_v12 }
 0x9a5   : > { %v4278_v16 = vsel %vm3439_vm3, %v4274_v15, -inf }
 0x9a6   : > { %4279 = vmax.xlane.f32.xlu1 %v4278_v16 }
 0x9b7   : > { %4349 = vrot.lane.b32.xlu1 %v19143_v39, %s18273_s27 }
 0xa2f   : > { %v4277_v17 = vpop.xlane.xlu0 %4276 }
 0xa30   : > { %v4281_v18 = vsub.f32 %v4273_v6, %v4277_v17 }
 0xa32   : > { %v4283_v20 = vmul.f32 1.442695, %v4281_v18 }
 0xa33   : > { %v4280_v21 = vpop.xlane.xlu1 %4279 }
 0xa34   : > { %18011 = vpow2.f32 %v4283_v20  ;;  %v4282_v22 = vsub.f32 %v4274_v15, %v4280_v21 }
 0xa36   : > { %v4285_v23 = vmul.f32 1.442695, %v4282_v22 }
 0xa37   : > { %v4350_v24 = vpop.permute.xlu1 %4349 }
 0xa38   : > { %18013 = vpow2.f32 %v4285_v23  ;;  %v4355_v25 = vsel %vm3469_vm2, %v4350_v24, 0 }
 0xa39   : > { %16127 = vmatpush3.bf16.msra.mxu1 %v4355_v25 }
 0xa3a   : > { %16137 = vmatprep.subr.mxu1 %v18271_v43 }
 0xa3e   : > { %v18012_v26 = vpop.eup %18011 }
 0xa3f   : > { %v4287_v27 = vsel %vm3439_vm3, %v18012_v26, 0.0 }
 0xa40   : > { %4288 = vadd.xlane.f32.xlu0 %v4287_v27 }
 0xa42   : > { %v18014_v39 = vpop.eup %18013 }
 0xa43   : > { %v4290_v54 = vsel %vm3439_vm3, %v18014_v39, 0.0 }
 0xa44   : > { %4291 = vadd.xlane.f32.xlu0 %v4290_v54 }
 0xa5a   : > { %4300 = vrot.lane.b32.xlu0 %v19130_v55, %s18273_s27 }
 0xacd   : > { %v4289_v28 = vpop.xlane.xlu0 %4288 }
 0xace   : > { %18015 = vrcp.f32 %v4289_v28 }
 0xad1   : > { %v4292_v47 = vpop.xlane.xlu0 %4291 }
 0xad2   : > { %18017 = vrcp.f32 %v4292_v47 }
 0xad5   : > { %v4301_v29 = vpop.permute.xlu0 %4300 }
 0xad6   : > { %v4306_v30 = vsel %vm3469_vm2, %v4301_v29, 0 }
 0xad7   : > { %16121 = vmatpush3.bf16.msra.mxu0 %v4306_v30 }
 0xad8   : > { %v18016_v31 = vpop.eup %18015  ;;  %16132 = vmatprep.subr.mxu0 %v18271_v43 }
 0xad9   : > { %v4294_v32 = vmul.f32 %v18016_v31, %v18012_v26 }
 0xadb   : > { %5512 = vst.msk [vmem:[%s18548_s17 + $0x18] sm:$0xff] %vm3439_vm3, %v4294_v32  ;;  %v4297_v33 = vpack.c.bf16 %v4294_v32, %v4294_v32 }
 0xadc   : > { %v18018_v34 = vpop.eup %18017 }
 0xadd   : > { %v4296_v36 = vmul.f32 %v18018_v34, %v18014_v39  ;;  %16123 = vmatmul.mubr.msk.bf16.vlgmr.msra.gmra.mrb[32].mxu0 %vm3439_vm3, %v4297_v33 }
 0xade   : > { %16134 = vmatprep.mubr.msk.f32.mxu0 %vm18272_vm0, %v18271_v43 }
 0xadf   : > { %5520 = vst.msk [vmem:[%s18548_s17 + $0x58] sm:$0xff] %vm3439_vm3, %v4296_v36  ;;  %v4298_v55 = vpack.c.bf16 %v4296_v36, %v4296_v36 }
 0xae0   : > { %16133 = vmatpush3.xpose.msk.msra.mxu0 %vm3270_vm1, %v19028_v19 }
 0xae1   : > { %16129 = vmatmul.mubr.msk.bf16.vlgmr.msra.gmra.mrb[32].mxu1 %vm3439_vm3, %v4298_v55  ;;  %16142 = vmatprep.subr.bf16.mxu0 %v18271_v43 }
 0xae2   : > { %16138 = vmatpush3.xpose.msk.msra.mxu1 %vm3270_vm1, %v19034_v49  ;;  %16139 = vmatprep.mubr.msk.f32.mxu1 %vm18272_vm0, %v18271_v43 }
 0xae3   : > { %16148 = vmatprep.subr.bf16.mxu1 %v18271_v43 }
 0xae5   : > { %16135 = vmatmul.mubr.msk.f32.vlgmr.msra.gmra.mrb[36].mxu0 %vm3270_vm1, %v18963_v2 }
 0xae6   : > { %16143 = vmatpush3.bf16.msra.mxu0 %v4583_v61  ;;  %16144 = vmatprep.mubr.msk.bf16.mxu0 %vm18272_vm0, %v18271_v43 }
 0xae7   : > { %16154 = vmatprep.subr.mxu0 %v18271_v43 }
 0xae9   : > { %16140 = vmatmul.mubr.msk.f32.vlgmr.msra.gmra.mrb[36].mxu1 %vm3270_vm1, %v18970_v7 }
 0xaea   : > { %16149 = vmatpush3.bf16.msra.mxu1 %v4629_v59  ;;  %16150 = vmatprep.mubr.msk.bf16.mxu1 %vm18272_vm0, %v18271_v43 }
 0xaeb   : > { %16159 = vmatprep.subr.mxu1 %v18271_v43 }
 0xbb0   : > { %v19253_v63 = vpop.f32.mrb[32].mxu0 }
 0xbb1   : > { %v16124_v37 = vpop.f32.mrb[33].mxu0 }
 0xbb2   : > { %v4345_v50 = vpop.f32.mrb[34].mxu0 }
 0xbb3   : > { %v16125_v60 = vpop.f32.mrb[35].mxu0 }
 0xbb4   : > { %v19255_v52 = vpop.f32.mrb[32].mxu1 }
 0xbb5   : > { %v16431_v42 = vpack.i.bf16 %v19255_v52, %v19253_v63  ;;  %v16130_v44 = vpop.f32.mrb[33].mxu1 }
 0xbb6   : > { %v4394_v35 = vpop.f32.mrb[34].mxu1 }
 0xbb7   : > { %v16131_v57 = vpop.f32.mrb[35].mxu1 }
 0xbb8   : > { %v4469_v1 = vpop.f32.mrb[36].mxu0 }
 0xbb9   : > { %v4549_v5 = vmul.f32 0.125, %v4469_v1  ;;  %v16136_v6 = vpop.f32.mrb[37].mxu0 }
 0xbbb   : > { %v4551_v8 = vadd.f32 %v19063_v3, %v4549_v5 }
 0xbbc   : > { %v4545_v12 = vpop.f32.mrb[36].mxu1 }
 0xbbd   : > { %v4550_v13 = vmul.f32 0.125, %v4545_v12  ;;  %v16141_v14 = vpop.f32.mrb[37].mxu1  ;;  %v4553_v15 = vsel %vm3439_vm3, %v4551_v8, -inf }
 0xbbe   : > { %4554 = vmax.xlane.f32.xlu1 %v4553_v15 }
 0xbbf   : > { %v4552_v16 = vadd.f32 %v19068_v10, %v4550_v13 }
 0xbc1   : > { %v4556_v17 = vsel %vm3439_vm3, %v4552_v16, -inf }
 0xbc2   : > { %4557 = vmax.xlane.f32.xlu0 %v4556_v17 }
 0xbcf   : > { %4751 = vrot.lane.b32.xlu1 %v19034_v49, %s18273_s27 }
 0xc4b   : > { %v4555_v18 = vpop.xlane.xlu1 %4554 }
 0xc4c   : > { %v4559_v20 = vsub.f32 %v4551_v8, %v4555_v18 }
 0xc4e   : > { %v4561_v21 = vmul.f32 1.442695, %v4559_v20 }
 0xc4f   : > { %v4558_v22 = vpop.xlane.xlu0 %4557  ;;  %v4752_v49 = vpop.permute.xlu1 %4751 }
 0xc50   : > { %18019 = vpow2.f32 %v4561_v21  ;;  %v4560_v23 = vsub.f32 %v4552_v16, %v4558_v22 }
 0xc52   : > { %v4563_v24 = vmul.f32 1.442695, %v4560_v23 }
 0xc54   : > { %18021 = vpow2.f32 %v4563_v24 }
 0xc5a   : > { %v18020_v25 = vpop.eup %18019 }
 0xc5b   : > { %v4565_v26 = vsel %vm3439_vm3, %v18020_v25, 0.0 }
 0xc5c   : > { %4566 = vadd.xlane.f32.xlu0 %v4565_v26 }
 0xc5e   : > { %v18022_v27 = vpop.eup %18021 }
 0xc5f   : > { %v4568_v39 = vsel %vm3439_vm3, %v18022_v27, 0.0 }
 0xc60   : > { %4569 = vadd.xlane.f32.xlu1 %v4568_v39 }
 0xc71   : > { %4671 = vrot.lane.b32.xlu1 %v18963_v2, %s18273_s27 }
 0xc72   : > { %4673 = vrot.lane.b32.xlu0 %v19028_v19, %s18273_s27 }
 0xc75   : > { %4749 = vrot.lane.b32.xlu1 %v18970_v7, %s18273_s27 }
 0xce9   : > { %v4567_v54 = vpop.xlane.xlu0 %4566 }
 0xcea   : > { %18023 = vrcp.f32 %v4567_v54 }
 0xced   : > { %v4570_v28 = vpop.xlane.xlu1 %4569  ;;  %v4674_v32 = vpop.permute.xlu0 %4673 }
 0xcee   : > { %18025 = vrcp.f32 %v4570_v28 }
 0xcf1   : > { %v4672_v19 = vpop.permute.xlu1 %4671 }
 0xcf4   : > { %v18024_v47 = vpop.eup %18023 }
 0xcf5   : > { %v4572_v29 = vmul.f32 %v18024_v47, %v18020_v25  ;;  %v4750_v33 = vpop.permute.xlu1 %4749 }
 0xcf7   : > { %5513 = vst.msk [vmem:[%s18548_s17 + $0x20] sm:$0xff] %vm3439_vm3, %v4572_v29  ;;  %v4575_v30 = vpack.c.bf16 %v4572_v29, %v4572_v29 }
 0xcf8   : > { %v18026_v31 = vpop.eup %18025 }
 0xcf9   : > { %v4574_v2 = vmul.f32 %v18026_v31, %v18022_v27  ;;  %16145 = vmatmul.mubr.msk.bf16.vlgmr.msra.gmra.mrb[40].mxu0 %vm3439_vm3, %v4575_v30 }
 0xcfa   : > { %16155 = vmatpush3.xpose.msk.msra.mxu0 %vm3270_vm1, %v4674_v32  ;;  %16156 = vmatprep.mubr.msk.f32.mxu0 %vm18272_vm0, %v18271_v43  ;;  %v19322_v32 = vpack.c.bf16 %v19054_v62, %v19054_v62 }
 0xcfb   : > { %5521 = vst.msk [vmem:[%s18548_s17 + $0x60] sm:$0xff] %vm3439_vm3, %v4574_v2  ;;  %v4576_v7 = vpack.c.bf16 %v4574_v2, %v4574_v2  ;;  %16164 = vmatprep.subr.bf16.mxu0 %v18271_v43 }
 0xcfc   : > { %v5139_v2 = vsel %vm3469_vm2, %v19322_v32, 0 }
 0xcfd   : > { %16151 = vmatmul.mubr.msk.bf16.vlgmr.msra.gmra.mrb[40].mxu1 %vm3439_vm3, %v4576_v7  ;;  %v19335_v7 = vpack.c.bf16 %v19058_v0, %v19058_v0 }
 0xcfe   : > { %16160 = vmatpush3.xpose.msk.msra.mxu1 %vm3270_vm1, %v4752_v49  ;;  %16161 = vmatprep.mubr.msk.f32.mxu1 %vm18272_vm0, %v18271_v43 }
 0xcff   : > { %16170 = vmatprep.subr.bf16.mxu1 %v18271_v43  ;;  %v5185_v62 = vsel %vm3469_vm2, %v19335_v7, 0 }
 0xd01   : > { %16157 = vmatmul.mubr.msk.f32.vlgmr.msra.gmra.mrb[38].mxu0 %vm3270_vm1, %v4672_v19 }
 0xd02   : > { %16166 = vmatprep.mubr.msk.bf16.mxu0 %vm18272_vm0, %v18271_v43 }
 0xd05   : > { %16162 = vmatmul.mubr.msk.f32.vlgmr.msra.gmra.mrb[38].mxu1 %vm3270_vm1, %v4750_v33 }
 0xd06   : > { %16172 = vmatprep.mubr.msk.bf16.mxu1 %vm18272_vm0, %v18271_v43 }
 0xdcc   : > { %v19293_v34 = vpop.f32.mrb[40].mxu0 }
 0xdcd   : > { %v16146_v36 = vpop.f32.mrb[41].mxu0 }
 0xdce   : > { %v4622_v55 = vpop.f32.mrb[42].mxu0 }
 0xdcf   : > { %v16147_v61 = vpop.f32.mrb[43].mxu0 }
 0xdd0   : > { %v19295_v59 = vpop.f32.mrb[40].mxu1 }
 0xdd1   : > { %v16152_v37 = vpop.f32.mrb[41].mxu1 }
 0xdd2   : > { %v4668_v50 = vpop.f32.mrb[42].mxu1 }
 0xdd3   : > { %v16153_v60 = vpop.f32.mrb[43].mxu1 }
 0xdd4   : > { %v4745_v44 = vpop.f32.mrb[38].mxu0 }
 0xdd5   : > { %v4827_v35 = vmul.f32 0.125, %v4745_v44  ;;  %v16158_v57 = vpop.f32.mrb[39].mxu0 }
 0xdd7   : > { %v4829_v1 = vadd.f32 %v19063_v3, %v4827_v35 }
 0xdd8   : > { %v4823_v5 = vpop.f32.mrb[38].mxu1 }
 0xdd9   : > { %v4828_v6 = vmul.f32 0.125, %v4823_v5  ;;  %v16163_v8 = vpop.f32.mrb[39].mxu1  ;;  %v4831_v12 = vsel %vm3439_vm3, %v4829_v1, -inf }
 0xdda   : > { %4832 = vmax.xlane.f32.xlu0 %v4831_v12 }
 0xddb   : > { %v4830_v13 = vadd.f32 %v19068_v10, %v4828_v6 }
 0xddd   : > { %v4834_v14 = vsel %vm3439_vm3, %v4830_v13, -inf }
 0xdde   : > { %4835 = vmax.xlane.f32.xlu1 %v4834_v14 }
 0xdef   : > { %4905 = vrot.lane.b32.xlu1 %v19239_v45, %s18273_s27 }
 0xe67   : > { %v4833_v15 = vpop.xlane.xlu0 %4832 }
 0xe68   : > { %v4837_v16 = vsub.f32 %v4829_v1, %v4833_v15 }
 0xe6a   : > { %v4839_v17 = vmul.f32 1.442695, %v4837_v16 }
 0xe6b   : > { %v4836_v18 = vpop.xlane.xlu1 %4835 }
 0xe6c   : > { %18027 = vpow2.f32 %v4839_v17  ;;  %v4838_v20 = vsub.f32 %v4830_v13, %v4836_v18 }
 0xe6e   : > { %v4841_v21 = vmul.f32 1.442695, %v4838_v20 }
 0xe6f   : > { %v4906_v22 = vpop.permute.xlu1 %4905 }
 0xe70   : > { %18029 = vpow2.f32 %v4841_v21  ;;  %v4911_v23 = vsel %vm3469_vm2, %v4906_v22, 0 }
 0xe71   : > { %16171 = vmatpush3.bf16.msra.mxu1 %v4911_v23 }
 0xe72   : > { %16181 = vmatprep.subr.mxu1 %v18271_v43 }
 0xe76   : > { %v18028_v24 = vpop.eup %18027 }
 0xe77   : > { %v4843_v25 = vsel %vm3439_vm3, %v18028_v24, 0.0 }
 0xe78   : > { %4844 = vadd.xlane.f32.xlu0 %v4843_v25 }
 0xe7a   : > { %v18030_v45 = vpop.eup %18029 }
 0xe7b   : > { %v4846_v26 = vsel %vm3439_vm3, %v18030_v45, 0.0 }
 0xe7c   : > { %4847 = vadd.xlane.f32.xlu0 %v4846_v26 }
 0xe92   : > { %4856 = vrot.lane.b32.xlu0 %v19226_v58, %s18273_s27 }
 0xf05   : > { %v4845_v27 = vpop.xlane.xlu0 %4844 }
 0xf06   : > { %18031 = vrcp.f32 %v4845_v27 }
 0xf09   : > { %v4848_v39 = vpop.xlane.xlu0 %4847 }
 0xf0a   : > { %18033 = vrcp.f32 %v4848_v39 }
 0xf0d   : > { %v4857_v49 = vpop.permute.xlu0 %4856 }
 0xf0e   : > { %v4862_v54 = vsel %vm3469_vm2, %v4857_v49, 0 }
 0xf0f   : > { %16165 = vmatpush3.bf16.msra.mxu0 %v4862_v54 }
 0xf10   : > { %v18032_v28 = vpop.eup %18031  ;;  %16176 = vmatprep.subr.mxu0 %v18271_v43 }
 0xf11   : > { %v4850_v47 = vmul.f32 %v18032_v28, %v18028_v24 }
 0xf13   : > { %5514 = vst.msk [vmem:[%s18548_s17 + $0x28] sm:$0xff] %vm3439_vm3, %v4850_v47  ;;  %v4853_v29 = vpack.c.bf16 %v4850_v47, %v4850_v47 }
 0xf14   : > { %v18034_v30 = vpop.eup %18033 }
 0xf15   : > { %v4852_v31 = vmul.f32 %v18034_v30, %v18030_v45  ;;  %16167 = vmatmul.mubr.msk.bf16.vlgmr.msra.gmra.mrb[44].mxu0 %vm3439_vm3, %v4853_v29 }
 0xf16   : > { %16178 = vmatprep.mubr.msk.f32.mxu0 %vm18272_vm0, %v18271_v43 }
 0xf17   : > { %5522 = vst.msk [vmem:[%s18548_s17 + $0x68] sm:$0xff] %vm3439_vm3, %v4852_v31  ;;  %v4854_v58 = vpack.c.bf16 %v4852_v31, %v4852_v31 }
 0xf18   : > { %16177 = vmatpush3.xpose.msk.msra.mxu0 %vm3270_vm1, %v19032_v48 }
 0xf19   : > { %16173 = vmatmul.mubr.msk.bf16.vlgmr.msra.gmra.mrb[44].mxu1 %vm3439_vm3, %v4854_v58  ;;  %16186 = vmatprep.subr.bf16.mxu0 %v18271_v43 }
 0xf1a   : > { %16182 = vmatpush3.xpose.msk.msra.mxu1 %vm3270_vm1, %v19036_v51  ;;  %16183 = vmatprep.mubr.msk.f32.mxu1 %vm18272_vm0, %v18271_v43 }
 0xf1b   : > { %16192 = vmatprep.subr.bf16.mxu1 %v18271_v43 }
 0xf1d   : > { %16179 = vmatmul.mubr.msk.f32.vlgmr.msra.gmra.mrb[48].mxu0 %vm3270_vm1, %v18966_v4 }
 0xf1e   : > { %16187 = vmatpush3.bf16.msra.mxu0 %v5139_v2  ;;  %16188 = vmatprep.mubr.msk.bf16.mxu0 %vm18272_vm0, %v18271_v43 }
 0xf1f   : > { %16198 = vmatprep.subr.mxu0 %v18271_v43 }
 0xf21   : > { %16184 = vmatmul.mubr.msk.f32.vlgmr.msra.gmra.mrb[48].mxu1 %vm3270_vm1, %v18973_v9 }
 0xf22   : > { %16193 = vmatpush3.bf16.msra.mxu1 %v5185_v62  ;;  %16194 = vmatprep.mubr.msk.bf16.mxu1 %vm18272_vm0, %v18271_v43 }
 0xf23   : > { %16203 = vmatprep.subr.mxu1 %v18271_v43 }
 0xfe8   : > { %v19349_v0 = vpop.f32.mrb[44].mxu0 }
 0xfe9   : > { %v16168_v19 = vpop.f32.mrb[45].mxu0 }
 0xfea   : > { %v4901_v33 = vpop.f32.mrb[46].mxu0 }
 0xfeb   : > { %v16169_v36 = vpop.f32.mrb[47].mxu0 }
 0xfec   : > { %v19351_v55 = vpop.f32.mrb[44].mxu1 }
 0xfed   : > { %v16446_v61 = vpack.i.bf16 %v19351_v55, %v19349_v0  ;;  %v16174_v37 = vpop.f32.mrb[45].mxu1 }
 0xfee   : > { %v4950_v50 = vpop.f32.mrb[46].mxu1 }
 0xfef   : > { %v16175_v60 = vpop.f32.mrb[47].mxu1 }
 0xff0   : > { %v5025_v44 = vpop.f32.mrb[48].mxu0 }
 0xff1   : > { %v5105_v35 = vmul.f32 0.125, %v5025_v44  ;;  %v16180_v57 = vpop.f32.mrb[49].mxu0 }
 0xff3   : > { %v5107_v1 = vadd.f32 %v19063_v3, %v5105_v35 }
 0xff4   : > { %v5101_v5 = vpop.f32.mrb[48].mxu1 }
 0xff5   : > { %v5106_v6 = vmul.f32 0.125, %v5101_v5  ;;  %v16185_v8 = vpop.f32.mrb[49].mxu1  ;;  %v5109_v12 = vsel %vm3439_vm3, %v5107_v1, -inf }
 0xff6   : > { %5110 = vmax.xlane.f32.xlu1 %v5109_v12 }
 0xff7   : > { %v5108_v13 = vadd.f32 %v19068_v10, %v5106_v6 }
 0xff9   : > { %v5112_v14 = vsel %vm3439_vm3, %v5108_v13, -inf }
 0xffa   : > { %5113 = vmax.xlane.f32.xlu0 %v5112_v14 }
0x1007   : > { %5307 = vrot.lane.b32.xlu1 %v19036_v51, %s18273_s27 }
0x1083   : > { %v5111_v15 = vpop.xlane.xlu1 %5110 }
0x1084   : > { %v5115_v16 = vsub.f32 %v5107_v1, %v5111_v15 }
0x1086   : > { %v5117_v17 = vmul.f32 1.442695, %v5115_v16 }
0x1087   : > { %v5114_v18 = vpop.xlane.xlu0 %5113  ;;  %v5308_v51 = vpop.permute.xlu1 %5307 }
0x1088   : > { %18035 = vpow2.f32 %v5117_v17  ;;  %v5116_v20 = vsub.f32 %v5108_v13, %v5114_v18 }
0x108a   : > { %v5119_v21 = vmul.f32 1.442695, %v5116_v20 }
0x108c   : > { %18037 = vpow2.f32 %v5119_v21 }
0x1092   : > { %v18036_v22 = vpop.eup %18035 }
0x1093   : > { %v5121_v23 = vsel %vm3439_vm3, %v18036_v22, 0.0 }
0x1094   : > { %5122 = vadd.xlane.f32.xlu0 %v5121_v23 }
0x1096   : > { %v18038_v24 = vpop.eup %18037 }
0x1097   : > { %v5124_v25 = vsel %vm3439_vm3, %v18038_v24, 0.0 }
0x1098   : > { %5125 = vadd.xlane.f32.xlu1 %v5124_v25 }
0x10a9   : > { %5227 = vrot.lane.b32.xlu1 %v18966_v4, %s18273_s27 }
0x10aa   : > { %5229 = vrot.lane.b32.xlu0 %v19032_v48, %s18273_s27 }
0x10ad   : > { %5305 = vrot.lane.b32.xlu1 %v18973_v9, %s18273_s27 }
0x1121   : > { %v5123_v45 = vpop.xlane.xlu0 %5122 }
0x1122   : > { %18039 = vrcp.f32 %v5123_v45 }
0x1125   : > { %v5126_v26 = vpop.xlane.xlu1 %5125  ;;  %v5230_v28 = vpop.permute.xlu0 %5229 }
0x1126   : > { %18041 = vrcp.f32 %v5126_v26  ;;  %v17029_v26 = vld [vmem:[%s18529_s22 + $0x4] ss:$16 sps:$4 sm:$0xff]  }
0x1129   : > { %v5228_v48 = vpop.permute.xlu1 %5227 }
0x112c   : > { %v18040_v27 = vpop.eup %18039 }
0x112d   : > { %v5128_v39 = vmul.f32 %v18040_v27, %v18036_v22  ;;  %v5306_v47 = vpop.permute.xlu1 %5305 }
0x112f   : > { %5515 = vst.msk [vmem:[%s18548_s17 + $0x30] sm:$0xff] %vm3439_vm3, %v5128_v39  ;;  %v5131_v49 = vpack.c.bf16 %v5128_v39, %v5128_v39 }
0x1130   : > { %v18042_v54 = vpop.eup %18041 }
0x1131   : > { %v5130_v4 = vmul.f32 %v18042_v54, %v18038_v24  ;;  %16189 = vmatmul.mubr.msk.bf16.vlgmr.msra.gmra.mrb[52].mxu0 %vm3439_vm3, %v5131_v49  ;;  %v17032_v54 = vld [vmem:[%s18529_s22 + $0x24] ss:$16 sps:$4 sm:$0xff]  }
0x1132   : > { %16199 = vmatpush3.xpose.msk.msra.mxu0 %vm3270_vm1, %v5230_v28  ;;  %16200 = vmatprep.mubr.msk.f32.mxu0 %vm18272_vm0, %v18271_v43 }
0x1133   : > { %5523 = vst.msk [vmem:[%s18548_s17 + $0x70] sm:$0xff] %vm3439_vm3, %v5130_v4  ;;  %v5132_v9 = vpack.c.bf16 %v5130_v4, %v5130_v4  ;;  %16208 = vmatprep.subr.bf16.mxu0 %v18271_v43 }
0x1135   : > { %16195 = vmatmul.mubr.msk.bf16.vlgmr.msra.gmra.mrb[52].mxu1 %vm3439_vm3, %v5132_v9  ;;  %v17030_v9 = vld [vmem:[%s18529_s22 + $0x20] ss:$16 sps:$4 sm:$0xff]  }
0x1136   : > { %16204 = vmatpush3.xpose.msk.msra.mxu1 %vm3270_vm1, %v5308_v51  ;;  %16205 = vmatprep.mubr.msk.f32.mxu1 %vm18272_vm0, %v18271_v43 }
0x1137   : > { %16214 = vmatprep.subr.bf16.mxu1 %v18271_v43 }
0x1139   : > { %16201 = vmatmul.mubr.msk.f32.vlgmr.msra.gmra.mrb[50].mxu0 %vm3270_vm1, %v5228_v48  ;;  %v17033_v48 = vld [vmem:[%s18529_s22 + $0x8] ss:$16 sps:$4 sm:$0xff]  }
0x113a   : > { %16210 = vmatprep.mubr.msk.bf16.mxu0 %vm18272_vm0, %v18271_v43 }
0x113d   : > { %16206 = vmatmul.mubr.msk.f32.vlgmr.msra.gmra.mrb[50].mxu1 %vm3270_vm1, %v5306_v47 }
0x113e   : > { %16216 = vmatprep.mubr.msk.bf16.mxu1 %vm18272_vm0, %v18271_v43 }
0x1204   : > { %v19389_v29 = vpop.f32.mrb[52].mxu0 }
0x1205   : > { %v16190_v30 = vpop.f32.mrb[53].mxu0 }
0x1206   : > { %v5178_v31 = vpop.f32.mrb[54].mxu0  ;;  %v17038_v30 = vld [vmem:[%s18529_s22 + $0x44] ss:$16 sps:$4 sm:$0xff]  }
0x1207   : > { %v16191_v58 = vpop.f32.mrb[55].mxu0  ;;  %v17041_v31 = vld [vmem:[%s18529_s22 + $0x2c] ss:$16 sps:$4 sm:$0xff]  }
0x1208   : > { %v19391_v2 = vpop.f32.mrb[52].mxu1  ;;  %v17036_v58 = vld [vmem:[%s18529_s22 + $0x40] ss:$16 sps:$4 sm:$0xff]  }
0x1209   : > { %v16196_v62 = vpop.f32.mrb[53].mxu1 }
0x120a   : > { %v5224_v19 = vpop.f32.mrb[54].mxu1  ;;  %v17039_v62 = vld [vmem:[%s18529_s22 + $0x28] ss:$16 sps:$4 sm:$0xff]  }
0x120b   : > { %v16197_v33 = vpop.f32.mrb[55].mxu1  ;;  %v17044_v19 = vld [vmem:[%s18529_s22 + $0x64] ss:$16 sps:$4 sm:$0xff]  }
0x120c   : > { %v5301_v36 = vpop.f32.mrb[50].mxu0  ;;  %v17047_v33 = vld [vmem:[%s18529_s22 + $0x4c] ss:$16 sps:$4 sm:$0xff]  }
0x120d   : > { %v5383_v37 = vmul.f32 0.125, %v5301_v36  ;;  %v16202_v50 = vpop.f32.mrb[51].mxu0  ;;  %v17042_v36 = vld [vmem:[%s18529_s22 + $0x60] ss:$16 sps:$4 sm:$0xff]  }
0x120e   : > { %v17050_v50 = vld [vmem:[%s18529_s22 + $0x84] ss:$16 sps:$4 sm:$0xff]  }
0x120f   : > { %v5385_v60 = vadd.f32 %v19063_v3, %v5383_v37  ;;  %v17045_v37 = vld [vmem:[%s18529_s22 + $0x48] ss:$16 sps:$4 sm:$0xff]  }
0x1210   : > { %v5379_v44 = vpop.f32.mrb[50].mxu1 }
0x1211   : > { %v5384_v35 = vmul.f32 0.125, %v5379_v44  ;;  %v16207_v57 = vpop.f32.mrb[51].mxu1  ;;  %v5387_v43 = vsel %vm3439_vm3, %v5385_v60, -inf  ;;  %v17048_v44 = vld [vmem:[%s18529_s22 + $0x80] ss:$16 sps:$4 sm:$0xff]  }
0x1212   : > { %5388 = vmax.xlane.f32.xlu0 %v5387_v43  ;;  %v17056_v57 = vld [vmem:[%s18529_s22 + $0xa4] ss:$16 sps:$4 sm:$0xff]   ;;  %v17059_v43 = vld [vmem:[%s18529_s22 + $0x8c] ss:$16 sps:$4 sm:$0xff]  }
0x1213   : > { %v5386_v1 = vadd.f32 %v19068_v10, %v5384_v35  ;;  %v17051_v35 = vld [vmem:[%s18529_s22 + $0x68] ss:$16 sps:$4 sm:$0xff]  }
0x1215   : > { %v5390_v5 = vsel %vm3439_vm3, %v5386_v1, -inf }
0x1216   : > { %5391 = vmax.xlane.f32.xlu1 %v5390_v5  ;;  %v17057_v5 = vld [vmem:[%s18529_s22 + $0x88] ss:$16 sps:$4 sm:$0xff]  }
0x1227   : > { %5461 = vrot.lane.b32.xlu1 %v19335_v7, %s18273_s27 }
0x122b   : > { %16432 = vrot.lane.b32.xlu1 %v16431_v42, %s18273_s27 }
0x122f   : > { %16437 = vrot.lane.b32.xlu1 %v16436_v53, %s18273_s27 }
0x1233   : > { %16447 = vrot.lane.b32.xlu1 %v16446_v61, %s18273_s27 }
0x129f   : > { %v5389_v3 = vpop.xlane.xlu0 %5388 }
0x12a0   : > { %v5393_v10 = vsub.f32 %v5385_v60, %v5389_v3  ;;  %v17053_v60 = vld [vmem:[%s18529_s22 + $0x6c] ss:$16 sps:$4 sm:$0xff]   ;;  %v17062_v3 = vld [vmem:[%s18529_s22 + $0xc4] ss:$16 sps:$4 sm:$0xff]  }
0x12a2   : > { %v5395_v6 = vmul.f32 1.442695, %v5393_v10  ;;  %v17065_v10 = vld [vmem:[%s18529_s22 + $0xac] ss:$16 sps:$4 sm:$0xff]  }
0x12a3   : > { %v5392_v8 = vpop.xlane.xlu1 %5391 }
0x12a4   : > { %18043 = vpow2.f32 %v5395_v6  ;;  %v5394_v7 = vsub.f32 %v5386_v1, %v5392_v8  ;;  %v17054_v1 = vld [vmem:[%s18529_s22 + $0xa0] ss:$16 sps:$4 sm:$0xff]   ;;  %v17063_v8 = vld [vmem:[%s18529_s22 + $0xa8] ss:$16 sps:$4 sm:$0xff]  }
0x12a5   : > { %v17060_v6 = vld [vmem:[%s18529_s22 + $0xc0] ss:$16 sps:$4 sm:$0xff]  }
0x12a6   : > { %v5397_v12 = vmul.f32 1.442695, %v5394_v7  ;;  %v17068_v7 = vld [vmem:[%s18529_s22 + $0xe4] ss:$16 sps:$4 sm:$0xff]  }
0x12a7   : > { %v5462_v13 = vpop.permute.xlu1 %5461 }
0x12a8   : > { %18045 = vpow2.f32 %v5397_v12  ;;  %v5467_v63 = vsel %vm3469_vm2, %v5462_v13, 0  ;;  %v17071_v12 = vld [vmem:[%s18529_s22 + $0xcc] ss:$16 sps:$4 sm:$0xff]   ;;  %v17066_v13 = vld [vmem:[%s18529_s22 + $0xe0] ss:$16 sps:$4 sm:$0xff]  }
0x12a9   : > { %16215 = vmatpush3.bf16.msra.mxu1 %v5467_v63  ;;  %v17069_v63 = vld [vmem:[%s18529_s22 + $0xc8] ss:$16 sps:$4 sm:$0xff]  }
0x12ab   : > { %v16433_v52 = vpop.permute.xlu1 %16432 }
0x12ac   : > { %v16435_v56 = vunpack.i.h.bf16 %v16433_v52  ;;  %v16434_v11 = vunpack.i.l.bf16 %v16433_v52  ;;  %v17074_v52 = vld [vmem:[%s18529_s22 + $0x104] ss:$16 sps:$4 sm:$0xff]  }
0x12ae   : > { %v18044_v53 = vpop.eup %18043  ;;  %v5559_v42 = vsel %vm3270_vm1, %v19197_v38, %v16434_v11  ;;  %v5560_v0 = vsel %vm3270_vm1, %v19199_v41, %v16435_v56  ;;  %v17077_v56 = vld [vmem:[%s18529_s22 + $0xec] ss:$16 sps:$4 sm:$0xff]   ;;  %v17072_v11 = vld [vmem:[%s18529_s22 + $0x100] ss:$16 sps:$4 sm:$0xff]  }
0x12af   : > { %v16438_v55 = vpop.permute.xlu1 %16437  ;;  %v5399_v61 = vsel %vm3439_vm3, %v18044_v53, 0.0  ;;  %v5566_v14 = vpack.c.bf16 %v5560_v0, %v5559_v42  ;;  %v17080_v42 = vld [vmem:[%s18529_s22 + $0x124] ss:$16 sps:$4 sm:$0xff]   ;;  %v17083_v0 = vld [vmem:[%s18529_s22 + $0x10c] ss:$16 sps:$4 sm:$0xff]  }
0x12b0   : > { %v16440_v15 = vunpack.i.h.bf16 %v16438_v55  ;;  %v16439_v16 = vunpack.i.l.bf16 %v16438_v55  ;;  %5400 = vadd.xlane.f32.xlu0 %v5399_v61  ;;  %v17078_v55 = vld [vmem:[%s18529_s22 + $0x120] ss:$16 sps:$4 sm:$0xff]   ;;  %v17081_v61 = vld [vmem:[%s18529_s22 + $0x108] ss:$16 sps:$4 sm:$0xff]  }
0x12b2   : > { %v18046_v17 = vpop.eup %18045  ;;  %v5558_v18 = vsel %vm3270_vm1, %v19103_v46, %v16440_v15  ;;  %v5557_v20 = vsel %vm3270_vm1, %v19101_v40, %v16439_v16  ;;  %v17035_v40 = vld [vmem:[%s18529_s22 + $0xc] ss:$16 sps:$4 sm:$0xff]   ;;  %v17084_v16 = vld [vmem:[%s18529_s22 + $0x140] ss:$16 sps:$4 sm:$0xff]  }
0x12b3   : > { %v19421_v21 = vpack.c.bf16 %v5558_v18, %v5557_v20  ;;  %v16448_v38 = vpop.permute.xlu1 %16447  ;;  %v5402_v41 = vsel %vm3439_vm3, %v18046_v17, 0.0  ;;  %6423 = vmatprep.subr.bf16.mxu1 %v17035_v40  ;;  %v17089_v15 = vld [vmem:[%s18529_s22 + $0x12c] ss:$16 sps:$4 sm:$0xff]   ;;  %v17092_v18 = vld [vmem:[%s18529_s22 + $0x164] ss:$16 sps:$4 sm:$0xff]  }
0x12b4   : > { %v16450_v22 = vunpack.i.h.bf16 %v16448_v38  ;;  %v16449_v23 = vunpack.i.l.bf16 %v16448_v38  ;;  %5403 = vadd.xlane.f32.xlu0 %v5402_v41  ;;  %v17095_v20 = vld [vmem:[%s18529_s22 + $0x14c] ss:$16 sps:$4 sm:$0xff]   ;;  %v17090_v38 = vld [vmem:[%s18529_s22 + $0x160] ss:$16 sps:$4 sm:$0xff]   ;;  %v17093_v41 = vld [vmem:[%s18529_s22 + $0x148] ss:$16 sps:$4 sm:$0xff]  }
0x12b5   : > { %v17104_v40 = vld [vmem:[%s18529_s22 + $0x1a4] ss:$16 sps:$4 sm:$0xff]  }
0x12b6   : > { %v5562_v24 = vsel %vm3270_vm1, %v19295_v59, %v16450_v22  ;;  %v5561_v25 = vsel %vm3270_vm1, %v19293_v34, %v16449_v23  ;;  %v17098_v22 = vld [vmem:[%s18529_s22 + $0x184] ss:$16 sps:$4 sm:$0xff]   ;;  %v17101_v23 = vld [vmem:[%s18529_s22 + $0x16c] ss:$16 sps:$4 sm:$0xff]  }
0x12b7   : > { %v19428_v46 = vpack.c.bf16 %v5562_v24, %v5561_v25  ;;  %v17096_v24 = vld [vmem:[%s18529_s22 + $0x180] ss:$16 sps:$4 sm:$0xff]   ;;  %v17099_v25 = vld [vmem:[%s18529_s22 + $0x168] ss:$16 sps:$4 sm:$0xff]  }
0x12ca   : > { %5412 = vrot.lane.b32.xlu0 %v19322_v32, %s18273_s27  ;;  %v17027_v32 = vld [vmem:[%s18529_s22] ss:$16 sps:$4 sm:$0xff]  }
0x133d   : > { %v5401_v51 = vpop.xlane.xlu0 %5400 }
0x133e   : > { %18047 = vrcp.f32 %v5401_v51  ;;  %v17107_v51 = vld [vmem:[%s18529_s22 + $0x18c] ss:$16 sps:$4 sm:$0xff]  }
0x1341   : > { %v5404_v45 = vpop.xlane.xlu0 %5403 }
0x1342   : > { %18049 = vrcp.f32 %v5404_v45  ;;  %v17102_v45 = vld [vmem:[%s18529_s22 + $0x1a0] ss:$16 sps:$4 sm:$0xff]  }
0x1345   : > { %v5413_v59 = vpop.permute.xlu0 %5412 }
0x1346   : > { %v5418_v34 = vsel %vm3469_vm2, %v5413_v59, 0  ;;  %v17110_v59 = vld [vmem:[%s18529_s22 + $0x1c4] ss:$16 sps:$4 sm:$0xff]  }
0x1347   : > { %16209 = vmatpush3.bf16.msra.mxu0 %v5418_v34  ;;  %v17113_v34 = vld [vmem:[%s18529_s22 + $0x1ac] ss:$16 sps:$4 sm:$0xff]  }
0x1348   : > { %v18048_v27 = vpop.eup %18047  ;;  %6337 = vmatprep.subr.bf16.mxu0 %v17029_v26  ;;  %v17105_v26 = vld [vmem:[%s18529_s22 + $0x188] ss:$16 sps:$4 sm:$0xff]  }
0x1349   : > { %v5406_v39 = vmul.f32 %v18048_v27, %v18044_v53  ;;  %v17075_v53 = vld [vmem:[%s18529_s22 + $0xe8] ss:$16 sps:$4 sm:$0xff]   ;;  %v17108_v27 = vld [vmem:[%s18529_s22 + $0x1c0] ss:$16 sps:$4 sm:$0xff]  }
0x134b   : > { %5516 = vst.msk [vmem:[%s18548_s17 + $0x38] sm:$0xff] %vm3439_vm3, %v5406_v39  ;;  %v5409_v49 = vpack.c.bf16 %v5406_v39, %v5406_v39  ;;  %v17111_v39 = vld [vmem:[%s18529_s22 + $0x1a8] ss:$16 sps:$4 sm:$0xff]  }
0x134c   : > { %v18050_v28 = vpop.eup %18049 }
0x134d   : > { %v5408_v4 = vmul.f32 %v18050_v28, %v18046_v17  ;;  %16211 = vmatmul.mubr.msk.bf16.vlgmr.msra.gmra.mrb[56].mxu0 %vm3439_vm3, %v5409_v49  ;;  %v17087_v17 = vld [vmem:[%s18529_s22 + $0x128] ss:$16 sps:$4 sm:$0xff]   ;;  %v17119_v49 = vld [vmem:[%s18529_s22 + $0x1cc] ss:$16 sps:$4 sm:$0xff]  }
0x134e   : > { %6338 = vmatpush1.bf16.msra.mxu0 %v17027_v32  ;;  %6369 = vmatprep.mubr.bf16.mxu0 %v5566_v14  ;;  %v17116_v32 = vld [vmem:[%s18529_s22 + $0x1e4] ss:$16 sps:$4 sm:$0xff]   ;;  %v17117_v28 = vld [vmem:[%s18529_s22 + $0x1c8] ss:$16 sps:$4 sm:$0xff]  }
0x134f   : > { %5524 = vst.msk [vmem:[%s18548_s17 + $0x78] sm:$0xff] %vm3439_vm3, %v5408_v4  ;;  %6339 = vmatprep.subr.bf16.mxu0 %v17032_v54  ;;  %v5410_v47 = vpack.c.bf16 %v5408_v4, %v5408_v4  ;;  %v17114_v54 = vld [vmem:[%s18529_s22 + $0x1e0] ss:$16 sps:$4 sm:$0xff]   ;;  %v17122_v4 = vld [vmem:[%s18529_s22 + $0x1ec] ss:$16 sps:$4 sm:$0xff]  }
0x1351   : > { %16217 = vmatmul.mubr.msk.bf16.vlgmr.msra.gmra.mrb[56].mxu1 %vm3439_vm3, %v5410_v47  ;;  %v17125_v47 = vld [vmem:[%s18529_s22 + $0x204] ss:$16 sps:$4 sm:$0xff]  }
0x1352   : > { %6340 = vmatpush1.bf16.msra.mxu0 %v17030_v9  ;;  %6424 = vmatpush1.bf16.msra.mxu1 %v17033_v48  ;;  %v17120_v9 = vld [vmem:[%s18529_s22 + $0x1e8] ss:$16 sps:$4 sm:$0xff]   ;;  %v17123_v48 = vld [vmem:[%s18529_s22 + $0x200] ss:$16 sps:$4 sm:$0xff]  }
0x1353   : > { %6455 = vmatprep.mubr.bf16.mxu1 %v5566_v14  ;;  %6341 = vmatprep.subr.bf16.mxu0 %v17038_v30  ;;  %v17086_v14 = vld [vmem:[%s18529_s22 + $0x144] ss:$16 sps:$4 sm:$0xff]   ;;  %v17126_v30 = vld [vmem:[%s18529_s22 + $0x208] ss:$16 sps:$4 sm:$0xff]  }
0x1354   : > { %6425 = vmatprep.subr.bf16.mxu1 %v17041_v31  ;;  %v17128_v31 = vld [vmem:[%s18529_s22 + $0x20c] ss:$16 sps:$4 sm:$0xff]  }
0x1356   : > { %6342 = vmatpush1.bf16.msra.mxu0 %v17036_v58  ;;  %6426 = vmatpush1.bf16.msra.mxu1 %v17039_v62  ;;  %v17131_v58 = vld [vmem:[%s18529_s22 + $0x224] ss:$16 sps:$4 sm:$0xff]   ;;  %v17134_v62 = vld [vmem:[%s18529_s22 + $0x22c] ss:$16 sps:$4 sm:$0xff]  }
0x1357   : > { %6343 = vmatprep.subr.bf16.mxu0 %v17044_v19  ;;  %6427 = vmatprep.subr.bf16.mxu1 %v17047_v33  ;;  %v17129_v19 = vld [vmem:[%s18529_s22 + $0x220] ss:$16 sps:$4 sm:$0xff]   ;;  %v17132_v33 = vld [vmem:[%s18529_s22 + $0x228] ss:$16 sps:$4 sm:$0xff]  }
0x135a   : > { %6344 = vmatpush1.bf16.msra.mxu0 %v17042_v36  ;;  %6428 = vmatpush1.bf16.msra.mxu1 %v17045_v37  ;;  %v17140_v36 = vld [vmem:[%s18529_s22 + $0x24c] ss:$16 sps:$4 sm:$0xff]   ;;  %v17135_v37 = vld [vmem:[%s18529_s22 + $0x240] ss:$16 sps:$4 sm:$0xff]  }
0x135b   : > { %6345 = vmatprep.subr.bf16.mxu0 %v17050_v50  ;;  %6429 = vmatprep.subr.bf16.mxu1 %v17053_v60  ;;  %v17138_v50 = vld [vmem:[%s18529_s22 + $0x248] ss:$16 sps:$4 sm:$0xff]   ;;  %v17143_v60 = vld [vmem:[%s18529_s22 + $0x264] ss:$16 sps:$4 sm:$0xff]  }
0x135e   : > { %6346 = vmatpush1.bf16.msra.mxu0 %v17048_v44  ;;  %6430 = vmatpush1.bf16.msra.mxu1 %v17051_v35  ;;  %v17146_v44 = vld [vmem:[%s18529_s22 + $0x26c] ss:$16 sps:$4 sm:$0xff]   ;;  %v17141_v35 = vld [vmem:[%s18529_s22 + $0x260] ss:$16 sps:$4 sm:$0xff]  }
0x135f   : > { %6347 = vmatprep.subr.bf16.mxu0 %v17056_v57  ;;  %6431 = vmatprep.subr.bf16.mxu1 %v17059_v43  ;;  %v17144_v57 = vld [vmem:[%s18529_s22 + $0x268] ss:$16 sps:$4 sm:$0xff]   ;;  %v17149_v43 = vld [vmem:[%s18529_s22 + $0x284] ss:$16 sps:$4 sm:$0xff]  }
0x1362   : > { %6348 = vmatpush1.bf16.msra.mxu0 %v17054_v1  ;;  %6432 = vmatpush1.bf16.msra.mxu1 %v17057_v5  ;;  %v17152_v1 = vld [vmem:[%s18529_s22 + $0x28c] ss:$16 sps:$4 sm:$0xff]   ;;  %v17147_v5 = vld [vmem:[%s18529_s22 + $0x280] ss:$16 sps:$4 sm:$0xff]  }
0x1363   : > { %6349 = vmatprep.subr.bf16.mxu0 %v17062_v3  ;;  %6433 = vmatprep.subr.bf16.mxu1 %v17065_v10  ;;  %v17150_v3 = vld [vmem:[%s18529_s22 + $0x288] ss:$16 sps:$4 sm:$0xff]   ;;  %v17155_v10 = vld [vmem:[%s18529_s22 + $0x2a4] ss:$16 sps:$4 sm:$0xff]  }
0x1366   : > { %6350 = vmatpush1.bf16.msra.mxu0 %v17060_v6  ;;  %6434 = vmatpush1.bf16.msra.mxu1 %v17063_v8  ;;  %v17158_v6 = vld [vmem:[%s18529_s22 + $0x2ac] ss:$16 sps:$4 sm:$0xff]   ;;  %v17153_v8 = vld [vmem:[%s18529_s22 + $0x2a0] ss:$16 sps:$4 sm:$0xff]  }
0x1367   : > { %6351 = vmatprep.subr.bf16.mxu0 %v17068_v7  ;;  %6435 = vmatprep.subr.bf16.mxu1 %v17071_v12  ;;  %v17156_v7 = vld [vmem:[%s18529_s22 + $0x2a8] ss:$16 sps:$4 sm:$0xff]   ;;  %v17161_v12 = vld [vmem:[%s18529_s22 + $0x2c4] ss:$16 sps:$4 sm:$0xff]  }
0x136a   : > { %6352 = vmatpush1.bf16.msra.mxu0 %v17066_v13  ;;  %6436 = vmatpush1.bf16.msra.mxu1 %v17069_v63  ;;  %v17164_v13 = vld [vmem:[%s18529_s22 + $0x2cc] ss:$16 sps:$4 sm:$0xff]   ;;  %v17159_v63 = vld [vmem:[%s18529_s22 + $0x2c0] ss:$16 sps:$4 sm:$0xff]  }
0x136b   : > { %6353 = vmatprep.subr.bf16.mxu0 %v17074_v52  ;;  %6437 = vmatprep.subr.bf16.mxu1 %v17077_v56  ;;  %v17162_v52 = vld [vmem:[%s18529_s22 + $0x2c8] ss:$16 sps:$4 sm:$0xff]   ;;  %v17167_v56 = vld [vmem:[%s18529_s22 + $0x2e4] ss:$16 sps:$4 sm:$0xff]  }
0x136e   : > { %6354 = vmatpush1.bf16.msra.mxu0 %v17072_v11  ;;  %6438 = vmatpush1.bf16.msra.mxu1 %v17075_v53  ;;  %v17170_v11 = vld [vmem:[%s18529_s22 + $0x2ec] ss:$16 sps:$4 sm:$0xff]   ;;  %v17165_v53 = vld [vmem:[%s18529_s22 + $0x2e0] ss:$16 sps:$4 sm:$0xff]  }
0x136f   : > { %6355 = vmatprep.subr.bf16.mxu0 %v17080_v42  ;;  %6439 = vmatprep.subr.bf16.mxu1 %v17083_v0  ;;  %v17168_v42 = vld [vmem:[%s18529_s22 + $0x2e8] ss:$16 sps:$4 sm:$0xff]   ;;  %v17173_v0 = vld [vmem:[%s18529_s22 + $0x304] ss:$16 sps:$4 sm:$0xff]  }
0x1372   : > { %6356 = vmatpush1.bf16.msra.mxu0 %v17078_v55  ;;  %6440 = vmatpush1.bf16.msra.mxu1 %v17081_v61  ;;  %v17176_v55 = vld [vmem:[%s18529_s22 + $0x30c] ss:$16 sps:$4 sm:$0xff]   ;;  %v17171_v61 = vld [vmem:[%s18529_s22 + $0x300] ss:$16 sps:$4 sm:$0xff]  }
0x1373   : > { %6357 = vmatprep.subr.bf16.mxu0 %v17086_v14  ;;  %6441 = vmatprep.subr.bf16.mxu1 %v17089_v15  ;;  %v17174_v14 = vld [vmem:[%s18529_s22 + $0x308] ss:$16 sps:$4 sm:$0xff]   ;;  %v17179_v15 = vld [vmem:[%s18529_s22 + $0x324] ss:$16 sps:$4 sm:$0xff]  }
0x1376   : > { %6358 = vmatpush1.bf16.msra.mxu0 %v17084_v16  ;;  %6442 = vmatpush1.bf16.msra.mxu1 %v17087_v17  ;;  %v17182_v16 = vld [vmem:[%s18529_s22 + $0x32c] ss:$16 sps:$4 sm:$0xff]   ;;  %v17177_v17 = vld [vmem:[%s18529_s22 + $0x320] ss:$16 sps:$4 sm:$0xff]  }
0x1377   : > { %6359 = vmatprep.subr.bf16.mxu0 %v17092_v18  ;;  %6443 = vmatprep.subr.bf16.mxu1 %v17095_v20  ;;  %v17180_v18 = vld [vmem:[%s18529_s22 + $0x328] ss:$16 sps:$4 sm:$0xff]   ;;  %v17185_v20 = vld [vmem:[%s18529_s22 + $0x344] ss:$16 sps:$4 sm:$0xff]  }
0x137a   : > { %6360 = vmatpush1.bf16.msra.mxu0 %v17090_v38  ;;  %6444 = vmatpush1.bf16.msra.mxu1 %v17093_v41  ;;  %v17188_v38 = vld [vmem:[%s18529_s22 + $0x34c] ss:$16 sps:$4 sm:$0xff]   ;;  %v17183_v41 = vld [vmem:[%s18529_s22 + $0x340] ss:$16 sps:$4 sm:$0xff]  }
0x137b   : > { %6361 = vmatprep.subr.bf16.mxu0 %v17098_v22  ;;  %6445 = vmatprep.subr.bf16.mxu1 %v17101_v23  ;;  %v17186_v22 = vld [vmem:[%s18529_s22 + $0x348] ss:$16 sps:$4 sm:$0xff]   ;;  %v17191_v23 = vld [vmem:[%s18529_s22 + $0x364] ss:$16 sps:$4 sm:$0xff]  }
0x137e   : > { %6362 = vmatpush1.bf16.msra.mxu0 %v17096_v24  ;;  %6446 = vmatpush1.bf16.msra.mxu1 %v17099_v25  ;;  %v17194_v24 = vld [vmem:[%s18529_s22 + $0x36c] ss:$16 sps:$4 sm:$0xff]   ;;  %v17189_v25 = vld [vmem:[%s18529_s22 + $0x360] ss:$16 sps:$4 sm:$0xff]  }
0x137f   : > { %6363 = vmatprep.subr.bf16.mxu0 %v17104_v40  ;;  %6447 = vmatprep.subr.bf16.mxu1 %v17107_v51  ;;  %v17192_v40 = vld [vmem:[%s18529_s22 + $0x368] ss:$16 sps:$4 sm:$0xff]   ;;  %v17197_v51 = vld [vmem:[%s18529_s22 + $0x384] ss:$16 sps:$4 sm:$0xff]  }
0x1382   : > { %6364 = vmatpush1.bf16.msra.mxu0 %v17102_v45  ;;  %6448 = vmatpush1.bf16.msra.mxu1 %v17105_v26  ;;  %v17200_v45 = vld [vmem:[%s18529_s22 + $0x38c] ss:$16 sps:$4 sm:$0xff]   ;;  %v17195_v26 = vld [vmem:[%s18529_s22 + $0x380] ss:$16 sps:$4 sm:$0xff]  }
0x1383   : > { %6365 = vmatprep.subr.bf16.mxu0 %v17110_v59  ;;  %6449 = vmatprep.subr.bf16.mxu1 %v17113_v34  ;;  %v17198_v59 = vld [vmem:[%s18529_s22 + $0x388] ss:$16 sps:$4 sm:$0xff]   ;;  %v17203_v34 = vld [vmem:[%s18529_s22 + $0x3a4] ss:$16 sps:$4 sm:$0xff]  }
0x1386   : > { %6366 = vmatpush1.bf16.msra.mxu0 %v17108_v27  ;;  %6450 = vmatpush1.bf16.msra.mxu1 %v17111_v39  ;;  %v17206_v27 = vld [vmem:[%s18529_s22 + $0x3ac] ss:$16 sps:$4 sm:$0xff]   ;;  %v17201_v39 = vld [vmem:[%s18529_s22 + $0x3a0] ss:$16 sps:$4 sm:$0xff]  }
0x1387   : > { %6367 = vmatprep.subr.bf16.mxu0 %v17116_v32  ;;  %6451 = vmatprep.subr.bf16.mxu1 %v17119_v49  ;;  %v17204_v32 = vld [vmem:[%s18529_s22 + $0x3a8] ss:$16 sps:$4 sm:$0xff]   ;;  %v17209_v49 = vld [vmem:[%s18529_s22 + $0x3c4] ss:$16 sps:$4 sm:$0xff]  }
0x138a   : > { %6368 = vmatpush1.bf16.msra.mxu0 %v17114_v54  ;;  %6452 = vmatpush1.bf16.msra.mxu1 %v17117_v28  ;;  %v17212_v54 = vld [vmem:[%s18529_s22 + $0x3cc] ss:$16 sps:$4 sm:$0xff]   ;;  %v17207_v28 = vld [vmem:[%s18529_s22 + $0x3c0] ss:$16 sps:$4 sm:$0xff]  }
0x138b   : > { %6453 = vmatprep.subr.bf16.mxu1 %v17122_v4  ;;  %6380 = vmatprep.subr.bf16.mxu0 %v17125_v47  ;;  %v17210_v4 = vld [vmem:[%s18529_s22 + $0x3c8] ss:$16 sps:$4 sm:$0xff]  }
0x138c   : > { %v17216_v47 = vld [vmem:[%s18529_s22 + $0x3e8] ss:$16 sps:$4 sm:$0xff]  }
0x138d   : > { %6370 = vmatmul.mubr.bf16.vlgmr.msra.gmra.mrb[60].mxu0 %v19421_v21 }
0x138e   : > { %6454 = vmatpush1.bf16.msra.mxu1 %v17120_v9  ;;  %6381 = vmatpush1.bf16.msra.mxu0 %v17123_v48  ;;  %v17213_v9 = vld [vmem:[%s18529_s22 + $0x3e0] ss:$16 sps:$4 sm:$0xff]   ;;  %v17215_v48 = vld [vmem:[%s18529_s22 + $0x3e4] ss:$16 sps:$4 sm:$0xff]  }
0x138f   : > { %6466 = vmatprep.subr.bf16.mxu1 %v17128_v31  ;;  %6382 = vmatprep.subr.bf16.mxu0 %v17131_v58 }
0x1391   : > { %6456 = vmatmul.mubr.bf16.vlgmr.msra.gmra.mrb[60].mxu1 %v19421_v21  ;;  %v17137_v21 = vld [vmem:[%s18529_s22 + $0x244] ss:$16 sps:$4 sm:$0xff]  }
0x1392   : > { %6467 = vmatpush1.bf16.msra.mxu1 %v17126_v30  ;;  %6383 = vmatpush1.bf16.msra.mxu0 %v17129_v19  ;;  %v17218_v30 = vld [vmem:[%s18529_s22 + $0x3ec] ss:$16 sps:$4 sm:$0xff]  }
0x1393   : > { %6468 = vmatprep.subr.bf16.mxu1 %v17134_v62  ;;  %6384 = vmatprep.subr.bf16.mxu0 %v17137_v21 }
0x1396   : > { %6469 = vmatpush1.bf16.msra.mxu1 %v17132_v33  ;;  %6385 = vmatpush1.bf16.msra.mxu0 %v17135_v37 }
0x1397   : > { %6470 = vmatprep.subr.bf16.mxu1 %v17140_v36  ;;  %6386 = vmatprep.subr.bf16.mxu0 %v17143_v60 }
0x139a   : > { %6471 = vmatpush1.bf16.msra.mxu1 %v17138_v50  ;;  %6387 = vmatpush1.bf16.msra.mxu0 %v17141_v35 }
0x139b   : > { %6472 = vmatprep.subr.bf16.mxu1 %v17146_v44  ;;  %6388 = vmatprep.subr.bf16.mxu0 %v17149_v43 }
0x139e   : > { %6473 = vmatpush1.bf16.msra.mxu1 %v17144_v57  ;;  %6389 = vmatpush1.bf16.msra.mxu0 %v17147_v5 }
0x139f   : > { %6474 = vmatprep.subr.bf16.mxu1 %v17152_v1  ;;  %6390 = vmatprep.subr.bf16.mxu0 %v17155_v10  ;;  %v18059_v10 = vld [vmem:[#allocation2] sm:$0xff] }
0x13a2   : > { %6475 = vmatpush1.bf16.msra.mxu1 %v17150_v3  ;;  %6391 = vmatpush1.bf16.msra.mxu0 %v17153_v8 }
0x13a3   : > { %6476 = vmatprep.subr.bf16.mxu1 %v17158_v6  ;;  %6392 = vmatprep.subr.bf16.mxu0 %v17161_v12  ;;  %v18060_v12 = vld [vmem:[#allocation2 + $0x8] sm:$0xff] }
0x13a6   : > { %6477 = vmatpush1.bf16.msra.mxu1 %v17156_v7  ;;  %6393 = vmatpush1.bf16.msra.mxu0 %v17159_v63 }
0x13a7   : > { %6478 = vmatprep.subr.bf16.mxu1 %v17164_v13  ;;  %6394 = vmatprep.subr.bf16.mxu0 %v17167_v56 }
0x13aa   : > { %6479 = vmatpush1.bf16.msra.mxu1 %v17162_v52  ;;  %6395 = vmatpush1.bf16.msra.mxu0 %v17165_v53  ;;  %v18062_v53 = vld [vmem:[#allocation2 + $0x10] sm:$0xff] }
0x13ab   : > { %6480 = vmatprep.subr.bf16.mxu1 %v17170_v11  ;;  %6396 = vmatprep.subr.bf16.mxu0 %v17173_v0  ;;  %v18063_v0 = vld [vmem:[#allocation2 + $0x28] sm:$0xff] }
0x13ae   : > { %6481 = vmatpush1.bf16.msra.mxu1 %v17168_v42  ;;  %6397 = vmatpush1.bf16.msra.mxu0 %v17171_v61  ;;  %v18064_v61 = vld [vmem:[#allocation2 + $0x18] sm:$0xff] }
0x13af   : > { %6482 = vmatprep.subr.bf16.mxu1 %v17176_v55  ;;  %6398 = vmatprep.subr.bf16.mxu0 %v17179_v15  ;;  %v18065_v15 = vld [vmem:[#allocation2 + $0x30] sm:$0xff] }
0x13b2   : > { %6483 = vmatpush1.bf16.msra.mxu1 %v17174_v14  ;;  %6399 = vmatpush1.bf16.msra.mxu0 %v17177_v17 }
0x13b3   : > { %6484 = vmatprep.subr.bf16.mxu1 %v17182_v16  ;;  %6400 = vmatprep.subr.bf16.mxu0 %v17185_v20  ;;  %v18066_v20 = vld [vmem:[#allocation2 + $0x38] sm:$0xff] }
0x13b6   : > { %6485 = vmatpush1.bf16.msra.mxu1 %v17180_v18  ;;  %6401 = vmatpush1.bf16.msra.mxu0 %v17183_v41 }
0x13b7   : > { %6486 = vmatprep.subr.bf16.mxu1 %v17188_v38  ;;  %6402 = vmatprep.subr.bf16.mxu0 %v17191_v23 }
0x13ba   : > { %6487 = vmatpush1.bf16.msra.mxu1 %v17186_v22  ;;  %6403 = vmatpush1.bf16.msra.mxu0 %v17189_v25  ;;  %v6574_v25 = vld [vmem:[%s18535_s18 + $0x40] sm:$0xff] }
0x13bb   : > { %6488 = vmatprep.subr.bf16.mxu1 %v17194_v24  ;;  %6404 = vmatprep.subr.bf16.mxu0 %v17197_v51  ;;  %v6566_v24 = vld [vmem:[%s18535_s18] sm:$0xff] }
0x13bc   : > { %v14947_v51 = vcombine.low %v6566_v24, %v6574_v25 }
0x13be   : > { %6489 = vmatpush1.bf16.msra.mxu1 %v17192_v40  ;;  %6405 = vmatpush1.bf16.msra.mxu0 %v17195_v26  ;;  %v6567_v40 = vld [vmem:[%s18535_s18 + $0x8] sm:$0xff] }
0x13bf   : > { %6490 = vmatprep.subr.bf16.mxu1 %v17200_v45  ;;  %6406 = vmatprep.subr.bf16.mxu0 %v17203_v34  ;;  %v14948_v45 = vcombine.high %v6566_v24, %v6574_v25  ;;  %v6575_v26 = vld [vmem:[%s18535_s18 + $0x48] sm:$0xff]  ;;  %v6590_v34 = vld [vmem:[%s18535_s18 + $0xc0] sm:$0xff] }
0x13c0   : > { %v6679_v24 = vld [vmem:[%s18535_s18 + $0x388] sm:$0xff] }
0x13c1   : > { %v6687_v25 = vld [vmem:[%s18535_s18 + $0x3c8] sm:$0xff] }
0x13c2   : > { %6491 = vmatpush1.bf16.msra.mxu1 %v17198_v59  ;;  %6407 = vmatpush1.bf16.msra.mxu0 %v17201_v39  ;;  %v6582_v59 = vld [vmem:[%s18535_s18 + $0x80] sm:$0xff]  ;;  %v14950_v39 = vcombine.high %v6567_v40, %v6575_v26 }
0x13c3   : > { %6492 = vmatprep.subr.bf16.mxu1 %v17206_v27  ;;  %6408 = vmatprep.subr.bf16.mxu0 %v17209_v49  ;;  %v14949_v27 = vcombine.low %v6567_v40, %v6575_v26  ;;  %v6583_v49 = vld [vmem:[%s18535_s18 + $0x88] sm:$0xff]  ;;  %v15062_v26 = vcombine.high %v6679_v24, %v6687_v25 }
0x13c6   : > { %6493 = vmatpush1.bf16.msra.mxu1 %v17204_v32  ;;  %6409 = vmatpush1.bf16.msra.mxu0 %v17207_v28  ;;  %v14964_v32 = vcombine.high %v6582_v59, %v6590_v34  ;;  %v6598_v28 = vld [vmem:[%s18535_s18 + $0x100] sm:$0xff] }
0x13c7   : > { %6494 = vmatprep.subr.bf16.mxu1 %v17212_v54  ;;  %6410 = vmatprep.subr.bf16.mxu0 %v17215_v48  ;;  %v6591_v54 = vld [vmem:[%s18535_s18 + $0xc8] sm:$0xff] }
0x13c8   : > { %v6599_v48 = vld [vmem:[%s18535_s18 + $0x108] sm:$0xff] }
0x13ca   : > { %6495 = vmatpush1.bf16.msra.mxu1 %v17210_v4  ;;  %6411 = vmatpush1.bf16.msra.mxu0 %v17213_v9  ;;  %v14966_v4 = vcombine.high %v6583_v49, %v6591_v54  ;;  %v6606_v9 = vld [vmem:[%s18535_s18 + $0x140] sm:$0xff] }
0x13cb   : > { %6496 = vmatprep.subr.bf16.mxu1 %v17218_v30  ;;  %9638 = vmatprep.subr.bf16.mxu0 %v14948_v45  ;;  %v14963_v30 = vcombine.low %v6582_v59, %v6590_v34  ;;  %v6694_v59 = vld [vmem:[%s18535_s18 + $0x400] sm:$0xff] }
0x13cc   : > { %v6702_v34 = vld [vmem:[%s18535_s18 + $0x440] sm:$0xff] }
0x13ce   : > { %6497 = vmatpush1.bf16.msra.mxu1 %v17216_v47  ;;  %v6607_v47 = vld [vmem:[%s18535_s18 + $0x148] sm:$0xff] }
0x13cf   : > { %9724 = vmatprep.subr.bf16.mxu1 %v14950_v39  ;;  %v6703_v39 = vld [vmem:[%s18535_s18 + $0x448] sm:$0xff] }
0x1420   : > { %v5454_v31 = vpop.f32.mrb[56].mxu0 }
0x1421   : > { %v16212_v58 = vpop.f32.mrb[57].mxu0 }
0x1422   : > { %v5457_v62 = vpop.f32.mrb[58].mxu0  ;;  %v14980_v58 = vcombine.high %v6598_v28, %v6606_v9 }
0x1423   : > { %v16213_v19 = vpop.f32.mrb[59].mxu0  ;;  %v14982_v62 = vcombine.high %v6599_v48, %v6607_v47 }
0x1424   : > { %v5503_v33 = vpop.f32.mrb[56].mxu1  ;;  %v6614_v19 = vld [vmem:[%s18535_s18 + $0x180] sm:$0xff] }
0x1425   : > { %v16441_v21 = vpack.i.bf16 %v5503_v33, %v5454_v31  ;;  %v16218_v36 = vpop.f32.mrb[57].mxu1  ;;  %v14965_v31 = vcombine.low %v6583_v49, %v6591_v54  ;;  %v6622_v33 = vld [vmem:[%s18535_s18 + $0x1c0] sm:$0xff]  ;;  %v15061_v49 = vcombine.low %v6679_v24, %v6687_v25  ;;  %v15076_v54 = vcombine.high %v6694_v59, %v6702_v34 }
0x1426   : > { %v5506_v37 = vpop.f32.mrb[58].mxu1  ;;  %v6623_v36 = vld [vmem:[%s18535_s18 + $0x1c8] sm:$0xff] }
0x1427   : > { %v16219_v50 = vpop.f32.mrb[59].mxu1  ;;  %16442 = vrot.lane.b32.xlu0 %v16441_v21, %s18273_s27  ;;  %v6615_v21 = vld [vmem:[%s18535_s18 + $0x188] sm:$0xff]  ;;  %v14979_v37 = vcombine.low %v6598_v28, %v6606_v9  ;;  %v6718_v9 = vld [vmem:[%s18535_s18 + $0x4c0] sm:$0xff] }
0x1428   : > { %v14981_v50 = vcombine.low %v6599_v48, %v6607_v47  ;;  %v6711_v48 = vld [vmem:[%s18535_s18 + $0x488] sm:$0xff] }
0x1429   : > { %v6719_v47 = vld [vmem:[%s18535_s18 + $0x4c8] sm:$0xff] }
0x1499   : > { %v16443_v60 = vpop.permute.xlu0 %16442 }
0x149a   : > { %v16445_v44 = vunpack.i.h.bf16 %v16443_v60  ;;  %v16444_v35 = vunpack.i.l.bf16 %v16443_v60  ;;  %v14996_v60 = vcombine.high %v6614_v19, %v6622_v33 }
0x149c   : > { %v5563_v57 = vsel %vm3270_vm1, %v19389_v29, %v16444_v35  ;;  %v5564_v43 = vsel %vm3270_vm1, %v19391_v2, %v16445_v44  ;;  %v18061_v2 = vld [vmem:[#allocation2 + $0x20] sm:$0xff]  ;;  %v14998_v44 = vcombine.high %v6615_v21, %v6623_v36 }
0x149d   : > { %v5568_v1 = vpack.c.bf16 %v5564_v43, %v5563_v57  ;;  %v6630_v35 = vld [vmem:[%s18535_s18 + $0x200] sm:$0xff]  ;;  %v6631_v43 = vld [vmem:[%s18535_s18 + $0x208] sm:$0xff] }
0x149e   : > { %v6638_v57 = vld [vmem:[%s18535_s18 + $0x240] sm:$0xff] }
0x149f   : > { %6412 = vmatprep.mubr.bf16.mxu0 %v5568_v1  ;;  %6498 = vmatprep.mubr.bf16.mxu1 %v5568_v1  ;;  %v6639_v1 = vld [vmem:[%s18535_s18 + $0x248] sm:$0xff] }
0x14a0   : > { %6413 = vmatmul.mubr.bf16.vlgmr.msra.gmra.mrb[60].mxu0 %v19428_v46  ;;  %6499 = vmatmul.mubr.bf16.vlgmr.msra.gmra.mrb[60].mxu1 %v19428_v46 }
0x14a1   : > { %9639 = vmatpush1.bf16.msra.mxu0 %v14947_v51  ;;  %9725 = vmatpush1.bf16.msra.mxu1 %v14949_v27  ;;  %v6695_v27 = vld [vmem:[%s18535_s18 + $0x408] sm:$0xff] }
0x14a2   : > { %9640 = vmatprep.subr.bf16.mxu0 %v14964_v32  ;;  %9726 = vmatprep.subr.bf16.mxu1 %v14966_v4  ;;  %v15078_v28 = vcombine.high %v6695_v27, %v6703_v39  ;;  %v6710_v4 = vld [vmem:[%s18535_s18 + $0x480] sm:$0xff] }
0x14a5   : > { %9641 = vmatpush1.bf16.msra.mxu0 %v14963_v30  ;;  %9727 = vmatpush1.bf16.msra.mxu1 %v14965_v31  ;;  %v15075_v30 = vcombine.low %v6694_v59, %v6702_v34  ;;  %v15077_v31 = vcombine.low %v6695_v27, %v6703_v39  ;;  %v6767_v59 = vld [vmem:[%s18535_s18 + $0x648] sm:$0xff] }
0x14a6   : > { %9642 = vmatprep.subr.bf16.mxu0 %v14980_v58  ;;  %9728 = vmatprep.subr.bf16.mxu1 %v14982_v62  ;;  %v15092_v58 = vcombine.high %v6710_v4, %v6718_v9  ;;  %v15094_v62 = vcombine.high %v6711_v48, %v6719_v47 }
0x14a9   : > { %9643 = vmatpush1.bf16.msra.mxu0 %v14979_v37  ;;  %9729 = vmatpush1.bf16.msra.mxu1 %v14981_v50  ;;  %v15091_v37 = vcombine.low %v6710_v4, %v6718_v9  ;;  %v15093_v50 = vcombine.low %v6711_v48, %v6719_v47  ;;  %v6783_v9 = vld [vmem:[%s18535_s18 + $0x6c8] sm:$0xff]  ;;  %v6790_v48 = vld [vmem:[%s18535_s18 + $0x700] sm:$0xff] }
0x14aa   : > { %9644 = vmatprep.subr.bf16.mxu0 %v14996_v60  ;;  %9730 = vmatprep.subr.bf16.mxu1 %v14998_v44  ;;  %v6798_v47 = vld [vmem:[%s18535_s18 + $0x740] sm:$0xff] }
0x1573   : > { %v6414_v5 = vpop.f32.mrb[60].mxu0  ;;  %v6500_v3 = vpop.f32.mrb[60].mxu1 }
0x1574   : > { %v19576_v6 = vadd.f32 %v18059_v10, %v6414_v5  ;;  %v6416_v8 = vpop.f32.mrb[61].mxu0  ;;  %v6502_v7 = vpop.f32.mrb[61].mxu1  ;;  %v19582_v42 = vadd.f32 %v18062_v53, %v6500_v3  ;;  %v14995_v5 = vcombine.low %v6614_v19, %v6622_v33  ;;  %v14997_v3 = vcombine.low %v6615_v21, %v6623_v36  ;;  %v6726_v19 = vld [vmem:[%s18535_s18 + $0x500] sm:$0xff]  ;;  %v6727_v21 = vld [vmem:[%s18535_s18 + $0x508] sm:$0xff] }
0x1575   : > { %v19578_v13 = vadd.f32 %v18060_v12, %v6416_v8  ;;  %v6418_v29 = vpop.f32.mrb[62].mxu0  ;;  %v6504_v63 = vpop.f32.mrb[62].mxu1  ;;  %v19588_v14 = vadd.f32 %v18064_v61, %v6502_v7  ;;  %v15012_v10 = vcombine.high %v6630_v35, %v6638_v57  ;;  %v15014_v8 = vcombine.high %v6631_v43, %v6639_v1  ;;  %v6646_v7 = vld [vmem:[%s18535_s18 + $0x280] sm:$0xff]  ;;  %v6663_v61 = vld [vmem:[%s18535_s18 + $0x308] sm:$0xff] }
0x1576   : > { %v19580_v52 = vadd.f32 %v18061_v2, %v6418_v29  ;;  %v6420_v56 = vpop.f32.mrb[63].mxu0  ;;  %v6506_v11 = vpop.f32.mrb[63].mxu1  ;;  %v19590_v16 = vadd.f32 %v18065_v15, %v6504_v63  ;;  %v6654_v12 = vld [vmem:[%s18535_s18 + $0x2c0] sm:$0xff]  ;;  %v6647_v29 = vld [vmem:[%s18535_s18 + $0x288] sm:$0xff]  ;;  %9645 = vmatpush1.bf16.msra.mxu0 %v14995_v5  ;;  %v15011_v2 = vcombine.low %v6630_v35, %v6638_v57  ;;  %9731 = vmatpush1.bf16.msra.mxu1 %v14997_v3 }
0x1577   : > { %v6509_v46 = vadd.f32 %v19578_v13, %v19576_v6  ;;  %v19586_v55 = vadd.f32 %v18063_v0, %v6420_v56  ;;  %v19595_v38 = vadd.f32 %v18066_v20, %v6506_v11  ;;  %v6655_v63 = vld [vmem:[%s18535_s18 + $0x2c8] sm:$0xff]  ;;  %9646 = vmatprep.subr.bf16.mxu0 %v15012_v10  ;;  %v15013_v56 = vcombine.low %v6631_v43, %v6639_v1  ;;  %v6670_v0 = vld [vmem:[%s18535_s18 + $0x340] sm:$0xff] }
0x1578   : > { %v15028_v11 = vcombine.high %v6646_v7, %v6654_v12  ;;  %9732 = vmatprep.subr.bf16.mxu1 %v15014_v8  ;;  %v15030_v53 = vcombine.high %v6647_v29, %v6655_v63  ;;  %v6671_v15 = vld [vmem:[%s18535_s18 + $0x348] sm:$0xff]  ;;  %v6734_v33 = vld [vmem:[%s18535_s18 + $0x540] sm:$0xff] }
0x1579   : > { %v6514_v17 = vadd.f32 %v19586_v55, %v19580_v52  ;;  %v6510_v18 = vadd.f32 %v19582_v42, %v6509_v46  ;;  %v6662_v46 = vld [vmem:[%s18535_s18 + $0x300] sm:$0xff]  ;;  %v15045_v51 = vcombine.low %v6663_v61, %v6671_v15  ;;  %v6735_v36 = vld [vmem:[%s18535_s18 + $0x548] sm:$0xff]  ;;  %v15108_v60 = vcombine.high %v6726_v19, %v6734_v33 }
0x157a   : > { %9647 = vmatpush1.bf16.msra.mxu0 %v15011_v2  ;;  %9733 = vmatpush1.bf16.msra.mxu1 %v15013_v56  ;;  %v15044_v20 = vcombine.high %v6662_v46, %v6670_v0  ;;  %v15043_v40 = vcombine.low %v6662_v46, %v6670_v0  ;;  %v15110_v44 = vcombine.high %v6727_v21, %v6735_v36 }
0x157b   : > { %v6511_v41 = vadd.f32 %v19588_v14, %v6510_v18  ;;  %v6515_v22 = vadd.f32 %v19590_v16, %v6514_v17  ;;  %v15027_v17 = vcombine.low %v6646_v7, %v6654_v12  ;;  %9648 = vmatprep.subr.bf16.mxu0 %v15028_v11  ;;  %v15029_v18 = vcombine.low %v6647_v29, %v6655_v63 }
0x157c   : > { %9734 = vmatprep.subr.bf16.mxu1 %v15030_v53  ;;  %v15107_v35 = vcombine.low %v6726_v19, %v6734_v33  ;;  %v15109_v57 = vcombine.low %v6727_v21, %v6735_v36  ;;  %v6799_v19 = vld [vmem:[%s18535_s18 + $0x748] sm:$0xff]  ;;  %v6806_v21 = vld [vmem:[%s18535_s18 + $0x780] sm:$0xff] }
0x157d   : > { %6512 = vadd.xlane.f32.xlu0 %v6511_v41  ;;  %v6516_v23 = vadd.f32 %v19595_v38, %v6515_v22  ;;  %v15046_v41 = vcombine.high %v6663_v61, %v6671_v15  ;;  %v6678_v22 = vld [vmem:[%s18535_s18 + $0x380] sm:$0xff] }
0x157e   : > { %9649 = vmatpush1.bf16.msra.mxu0 %v15027_v17  ;;  %9735 = vmatpush1.bf16.msra.mxu1 %v15029_v18  ;;  %v6742_v18 = vld [vmem:[%s18535_s18 + $0x580] sm:$0xff] }
0x157f   : > { %6517 = vadd.xlane.f32.xlu1 %v6516_v23  ;;  %v6686_v23 = vld [vmem:[%s18535_s18 + $0x3c0] sm:$0xff]  ;;  %9650 = vmatprep.subr.bf16.mxu0 %v15044_v20 }
0x1580   : > { %v15060_v45 = vcombine.high %v6678_v22, %v6686_v23  ;;  %9736 = vmatprep.subr.bf16.mxu1 %v15046_v41  ;;  %v15059_v32 = vcombine.low %v6678_v22, %v6686_v23  ;;  %v6750_v20 = vld [vmem:[%s18535_s18 + $0x5c0] sm:$0xff]  ;;  %v6751_v22 = vld [vmem:[%s18535_s18 + $0x5c8] sm:$0xff] }
0x1581   : > { %v15124_v41 = vcombine.high %v6742_v18, %v6750_v20  ;;  %v15123_v23 = vcombine.low %v6742_v18, %v6750_v20  ;;  %v6814_v36 = vld [vmem:[%s18535_s18 + $0x7c0] sm:$0xff] }
0x1582   : > { %9651 = vmatpush1.bf16.msra.mxu0 %v15043_v40  ;;  %9737 = vmatpush1.bf16.msra.mxu1 %v15045_v51  ;;  %v6758_v40 = vld [vmem:[%s18535_s18 + $0x600] sm:$0xff] }
0x1583   : > { %9652 = vmatprep.subr.bf16.mxu0 %v15060_v45  ;;  %9738 = vmatprep.subr.bf16.mxu1 %v15062_v26  ;;  %v6766_v51 = vld [vmem:[%s18535_s18 + $0x640] sm:$0xff]  ;;  %v6759_v45 = vld [vmem:[%s18535_s18 + $0x608] sm:$0xff] }
0x1584   : > { %v15140_v26 = vcombine.high %v6758_v40, %v6766_v51  ;;  %v15139_v34 = vcombine.low %v6758_v40, %v6766_v51  ;;  %v15141_v27 = vcombine.low %v6759_v45, %v6767_v59  ;;  %v15142_v39 = vcombine.high %v6759_v45, %v6767_v59  ;;  %v6854_v40 = vld [vmem:[%s18535_s18 + $0x900] sm:$0xff]  ;;  %v6863_v59 = vld [vmem:[%s18535_s18 + $0x948] sm:$0xff] }
0x1585   : > { %v6862_v45 = vld [vmem:[%s18535_s18 + $0x940] sm:$0xff] }
0x1586   : > { %9653 = vmatpush1.bf16.msra.mxu0 %v15059_v32  ;;  %9739 = vmatpush1.bf16.msra.mxu1 %v15061_v49  ;;  %v6774_v32 = vld [vmem:[%s18535_s18 + $0x680] sm:$0xff] }
0x1587   : > { %9654 = vmatprep.subr.bf16.mxu0 %v15076_v54  ;;  %9740 = vmatprep.subr.bf16.mxu1 %v15078_v28  ;;  %v6782_v49 = vld [vmem:[%s18535_s18 + $0x6c0] sm:$0xff]  ;;  %v6775_v54 = vld [vmem:[%s18535_s18 + $0x688] sm:$0xff] }
0x1588   : > { %v15155_v28 = vcombine.low %v6774_v32, %v6782_v49  ;;  %v15156_v4 = vcombine.high %v6774_v32, %v6782_v49  ;;  %v6870_v49 = vld [vmem:[%s18535_s18 + $0x980] sm:$0xff] }
0x158a   : > { %9655 = vmatpush1.bf16.msra.mxu0 %v15075_v30  ;;  %9741 = vmatpush1.bf16.msra.mxu1 %v15077_v31  ;;  %v15157_v30 = vcombine.low %v6775_v54, %v6783_v9  ;;  %v15158_v31 = vcombine.high %v6775_v54, %v6783_v9  ;;  %v6878_v54 = vld [vmem:[%s18535_s18 + $0x9c0] sm:$0xff]  ;;  %v15235_v9 = vcombine.low %v6854_v40, %v6862_v45 }
0x158b   : > { %9656 = vmatprep.subr.bf16.mxu0 %v15092_v58  ;;  %9742 = vmatprep.subr.bf16.mxu1 %v15094_v62  ;;  %v15172_v58 = vcombine.high %v6790_v48, %v6798_v47  ;;  %v6791_v62 = vld [vmem:[%s18535_s18 + $0x708] sm:$0xff] }
0x158c   : > { %v15174_v33 = vcombine.high %v6791_v62, %v6799_v19 }
0x158e   : > { %9657 = vmatpush1.bf16.msra.mxu0 %v15091_v37  ;;  %9743 = vmatpush1.bf16.msra.mxu1 %v15093_v50  ;;  %v6807_v37 = vld [vmem:[%s18535_s18 + $0x788] sm:$0xff] }
0x158f   : > { %9658 = vmatprep.subr.bf16.mxu0 %v15108_v60  ;;  %9744 = vmatprep.subr.bf16.mxu1 %v15110_v44  ;;  %v6815_v50 = vld [vmem:[%s18535_s18 + $0x7c8] sm:$0xff]  ;;  %v15171_v60 = vcombine.low %v6790_v48, %v6798_v47  ;;  %v15173_v44 = vcombine.low %v6791_v62, %v6799_v19  ;;  %v15252_v47 = vcombine.high %v6870_v49, %v6878_v54 }
0x1590   : > { %v6887_v62 = vld [vmem:[%s18535_s18 + $0xa08] sm:$0xff] }
0x1591   : > { %v6895_v19 = vld [vmem:[%s18535_s18 + $0xa48] sm:$0xff] }
0x1592   : > { %9659 = vmatpush1.bf16.msra.mxu0 %v15107_v35  ;;  %9745 = vmatpush1.bf16.msra.mxu1 %v15109_v57  ;;  %v15188_v35 = vcombine.high %v6806_v21, %v6814_v36  ;;  %v15190_v57 = vcombine.high %v6807_v37, %v6815_v50 }
0x1593   : > { %9660 = vmatprep.subr.bf16.mxu0 %v15124_v41 }
0x1596   : > { %9661 = vmatpush1.bf16.msra.mxu0 %v15123_v23  ;;  %v6846_v23 = vld [vmem:[%s18535_s18 + $0x8c0] sm:$0xff] }
0x1597   : > { %9662 = vmatprep.subr.bf16.mxu0 %v15140_v26  ;;  %v6855_v26 = vld [vmem:[%s18535_s18 + $0x908] sm:$0xff] }
0x1598   : > { %v15238_v32 = vcombine.high %v6855_v26, %v6863_v59  ;;  %v15237_v48 = vcombine.low %v6855_v26, %v6863_v59 }
0x159a   : > { %9663 = vmatpush1.bf16.msra.mxu0 %v15139_v34 }
0x159b   : > { %9664 = vmatprep.subr.bf16.mxu0 %v15156_v4  ;;  %v6879_v4 = vld [vmem:[%s18535_s18 + $0x9c8] sm:$0xff] }
0x159e   : > { %9665 = vmatpush1.bf16.msra.mxu0 %v15155_v28  ;;  %v6871_v28 = vld [vmem:[%s18535_s18 + $0x988] sm:$0xff] }
0x159f   : > { %9666 = vmatprep.subr.bf16.mxu0 %v15172_v58  ;;  %v6894_v58 = vld [vmem:[%s18535_s18 + $0xa40] sm:$0xff] }
0x15a2   : > { %9667 = vmatpush1.bf16.msra.mxu0 %v15171_v60  ;;  %v6910_v60 = vld [vmem:[%s18535_s18 + $0xac0] sm:$0xff] }
0x15a3   : > { %9668 = vmatprep.subr.bf16.mxu0 %v15188_v35  ;;  %v6911_v35 = vld [vmem:[%s18535_s18 + $0xac8] sm:$0xff] }
0x160a   : > { %v6513_v43 = vpop.xlane.xlu0 %6512 }
0x160b   : > { %v6520_v1 = vmul.f32 0.001953125, %v6513_v43  ;;  %v15187_v43 = vcombine.low %v6806_v21, %v6814_v36  ;;  %v15253_v21 = vcombine.low %v6871_v28, %v6879_v4 }
0x160c   : > { %v6518_v5 = vpop.xlane.xlu1 %6517 }
0x160d   : > { %v19645_v3 = vsub.f32 %v19576_v6, %v6520_v1  ;;  %v19648_v10 = vsub.f32 %v19578_v13, %v6520_v1  ;;  %v6521_v8 = vmul.f32 0.001953125, %v6518_v5  ;;  %v19651_v7 = vsub.f32 %v19582_v42, %v6520_v1  ;;  %9669 = vmatpush1.bf16.msra.mxu0 %v15187_v43  ;;  %v6822_v5 = vld [vmem:[%s18535_s18 + $0x800] sm:$0xff] }
0x160e   : > { %v19654_v12 = vsub.f32 %v19588_v14, %v6520_v1  ;;  %v15189_v1 = vcombine.low %v6807_v37, %v6815_v50  ;;  %v15270_v37 = vcombine.high %v6887_v62, %v6895_v19  ;;  %v6902_v50 = vld [vmem:[%s18535_s18 + $0xa80] sm:$0xff]  ;;  %v15269_v43 = vcombine.low %v6887_v62, %v6895_v19 }
0x160f   : > { %v19657_v29 = vsub.f32 %v19580_v52, %v6521_v8  ;;  %v19660_v63 = vsub.f32 %v19586_v55, %v6521_v8  ;;  %v6530_v6 = vmul.f32 %v19645_v3, %v19645_v3  ;;  %v6531_v13 = vmul.f32 %v19648_v10, %v19648_v10 }
0x1610   : > { %v19667_v2 = vsub.f32 %v19590_v16, %v6521_v8  ;;  %v6532_v42 = vmul.f32 %v19651_v7, %v19651_v7  ;;  %v6533_v56 = vmul.f32 %v19654_v12, %v19654_v12  ;;  %v19678_v16 = vsub.f32 %v19595_v38, %v6521_v8  ;;  %v6743_v38 = vld [vmem:[%s18535_s18 + $0x588] sm:$0xff]  ;;  %v6830_v8 = vld [vmem:[%s18535_s18 + $0x840] sm:$0xff] }
0x1611   : > { %v6538_v14 = vadd.f32 %v6531_v13, %v6530_v6  ;;  %v6534_v52 = vmul.f32 %v19657_v29, %v19657_v29  ;;  %v6535_v55 = vmul.f32 %v19660_v63, %v19660_v63  ;;  %v15125_v24 = vcombine.low %v6743_v38, %v6751_v22  ;;  %v6823_v6 = vld [vmem:[%s18535_s18 + $0x808] sm:$0xff] }
0x1612   : > { %v6536_v53 = vmul.f32 %v19667_v2, %v19667_v2  ;;  %v6537_v15 = vmul.f32 %v19678_v16, %v19678_v16  ;;  %v15126_v25 = vcombine.high %v6743_v38, %v6751_v22  ;;  %v15204_v13 = vcombine.high %v6822_v5, %v6830_v8  ;;  %v6838_v22 = vld [vmem:[%s18535_s18 + $0x880] sm:$0xff] }
0x1613   : > { %v6539_v11 = vadd.f32 %v6538_v14, %v6532_v42  ;;  %v6543_v46 = vadd.f32 %v6535_v55, %v6534_v52  ;;  %v6831_v42 = vld [vmem:[%s18535_s18 + $0x848] sm:$0xff]  ;;  %v15203_v14 = vcombine.low %v6822_v5, %v6830_v8  ;;  %v15219_v34 = vcombine.low %v6838_v22, %v6846_v23  ;;  %v6918_v8 = vld [vmem:[%s18535_s18 + $0xb00] sm:$0xff] }
0x1614   : > { %9746 = vmatprep.subr.bf16.mxu1 %v15126_v25  ;;  %v15205_v52 = vcombine.low %v6823_v6, %v6831_v42  ;;  %v15206_v55 = vcombine.high %v6823_v6, %v6831_v42  ;;  %9681 = vmatprep.subr.bf16.mxu0 %v15204_v13  ;;  %v6926_v6 = vld [vmem:[%s18535_s18 + $0xb40] sm:$0xff]  ;;  %v6919_v13 = vld [vmem:[%s18535_s18 + $0xb08] sm:$0xff] }
0x1615   : > { %v6540_v0 = vadd.f32 %v6539_v11, %v6533_v56  ;;  %v6544_v61 = vadd.f32 %v6543_v46, %v6536_v53  ;;  %9747 = vmatpush1.bf16.msra.mxu1 %v15125_v24  ;;  %v6839_v24 = vld [vmem:[%s18535_s18 + $0x888] sm:$0xff] }
0x1616   : > { %9748 = vmatprep.subr.bf16.mxu1 %v15142_v39  ;;  %v15236_v39 = vcombine.high %v6854_v40, %v6862_v45  ;;  %v6927_v42 = vld [vmem:[%s18535_s18 + $0xb48] sm:$0xff]  ;;  %v6958_v40 = vld [vmem:[%s18535_s18 + $0xc40] sm:$0xff] }
0x1617   : > { %6541 = vadd.xlane.f32.xlu0 %v6540_v0  ;;  %v6545_v17 = vadd.f32 %v6544_v61, %v6537_v15 }
0x1619   : > { %9749 = vmatpush1.bf16.msra.mxu1 %v15141_v27 }
0x161a   : > { %9750 = vmatprep.subr.bf16.mxu1 %v15158_v31  ;;  %v6886_v31 = vld [vmem:[%s18535_s18 + $0xa00] sm:$0xff] }
0x161b   : > { %6546 = vadd.xlane.f32.xlu0 %v6545_v17  ;;  %v15268_v36 = vcombine.high %v6886_v31, %v6894_v58 }
0x161d   : > { %9751 = vmatpush1.bf16.msra.mxu1 %v15157_v30  ;;  %v15254_v30 = vcombine.high %v6871_v28, %v6879_v4 }
0x161e   : > { %9752 = vmatprep.subr.bf16.mxu1 %v15174_v33  ;;  %v15251_v33 = vcombine.low %v6870_v49, %v6878_v54  ;;  %v6975_v49 = vld [vmem:[%s18535_s18 + $0xcc8] sm:$0xff] }
0x1621   : > { %9753 = vmatpush1.bf16.msra.mxu1 %v15173_v44  ;;  %v6903_v44 = vld [vmem:[%s18535_s18 + $0xa88] sm:$0xff] }
0x1622   : > { %9754 = vmatprep.subr.bf16.mxu1 %v15190_v57  ;;  %v15267_v57 = vcombine.low %v6886_v31, %v6894_v58  ;;  %v15286_v5 = vcombine.high %v6903_v44, %v6911_v35  ;;  %v6991_v31 = vld [vmem:[%s18535_s18 + $0xd48] sm:$0xff] }
0x1625   : > { %9755 = vmatpush1.bf16.msra.mxu1 %v15189_v1  ;;  %v15284_v1 = vcombine.high %v6902_v50, %v6910_v60 }
0x1626   : > { %9767 = vmatprep.subr.bf16.mxu1 %v15206_v55  ;;  %v15300_v55 = vcombine.high %v6918_v8, %v6926_v6 }
0x16a4   : > { %v6542_v56 = vpop.xlane.xlu0 %6541 }
0x16a5   : > { %v6548_v11 = vmul.f32 0.001953125, %v6542_v56  ;;  %v15302_v56 = vcombine.high %v6919_v13, %v6927_v42 }
0x16a7   : > { %v6550_v53 = vadd.f32 1e-05, %v6548_v11  ;;  %v6934_v11 = vld [vmem:[%s18535_s18 + $0xb80] sm:$0xff] }
0x16a8   : > { %v6547_v46 = vpop.xlane.xlu0 %6546 }
0x16a9   : > { %v6549_v0 = vmul.f32 0.001953125, %v6547_v46  ;;  %18051 = vrsqrt.f32 %v6550_v53  ;;  %v6942_v53 = vld [vmem:[%s18535_s18 + $0xbc0] sm:$0xff]  ;;  %v6935_v46 = vld [vmem:[%s18535_s18 + $0xb88] sm:$0xff] }
0x16aa   : > { %v15315_v45 = vcombine.low %v6934_v11, %v6942_v53 }
0x16ab   : > { %v6551_v61 = vadd.f32 1e-05, %v6549_v0  ;;  %v6943_v0 = vld [vmem:[%s18535_s18 + $0xbc8] sm:$0xff] }
0x16ac   : > { %v15317_v26 = vcombine.low %v6935_v46, %v6943_v0 }
0x16ad   : > { %18053 = vrsqrt.f32 %v6551_v61  ;;  %v15299_v61 = vcombine.low %v6918_v8, %v6926_v6  ;;  %v7023_v8 = vld [vmem:[%s18535_s18 + $0xe48] sm:$0xff] }
0x16b3   : > { %v19708_v15 = vpop.eup %18051 }
0x16b4   : > { %v19714_v18 = vmul.f32 %v19708_v15, %v19648_v10  ;;  %v19722_v38 = vmul.f32 %v19708_v15, %v19645_v3 }
0x16b7   : > { %v19710_v17 = vpop.eup %18053 }
0x16b8   : > { %v19718_v20 = vmul.f32 %v19710_v17, %v19660_v63  ;;  %v19726_v41 = vmul.f32 %v19710_v17, %v19657_v29  ;;  %v19731_v10 = vmul.f32 %v19710_v17, %v19678_v16  ;;  %v6847_v63 = vld [vmem:[%s18535_s18 + $0x8c8] sm:$0xff]  ;;  %v19746_v29 = vmul.f32 %v19708_v15, %v19654_v12 }
0x16b9   : > { %v15220_v16 = vcombine.high %v6838_v22, %v6846_v23  ;;  %v15222_v51 = vcombine.high %v6839_v24, %v6847_v63  ;;  %v15221_v27 = vcombine.low %v6839_v24, %v6847_v63  ;;  %v15301_v22 = vcombine.low %v6919_v13, %v6927_v42  ;;  %v6950_v63 = vld [vmem:[%s18535_s18 + $0xc00] sm:$0xff] }
0x16ba   : > { %v19738_v25 = vpack.c.bf16 %v19718_v20, %v19714_v18  ;;  %v19742_v3 = vpack.c.bf16 %v19726_v41, %v19722_v38  ;;  %v19758_v12 = vpack.c.bf16 %v19731_v10, %v19746_v29  ;;  %v15316_v23 = vcombine.high %v6934_v11, %v6942_v53  ;;  %v7039_v11 = vld [vmem:[%s18535_s18 + $0xec8] sm:$0xff] }
0x16bb   : > { %v15318_v24 = vcombine.high %v6935_v46, %v6943_v0  ;;  %v15332_v59 = vcombine.high %v6950_v63, %v6958_v40  ;;  %v15331_v54 = vcombine.low %v6950_v63, %v6958_v40  ;;  %v7055_v63 = vld [vmem:[%s18535_s18 + $0xf48] sm:$0xff] }
0x16bc   : > { %9670 = vmatprep.mubr.bf16.mxu0 %v19738_v25  ;;  %9756 = vmatprep.mubr.bf16.mxu1 %v19738_v25 }
0x16bd   : > { %9671 = vmatmul.mubr.bf16.vlgmr.msra.gmra.mrb[64].mxu0 %v19742_v3  ;;  %9757 = vmatmul.mubr.bf16.vlgmr.msra.gmra.mrb[64].mxu1 %v19742_v3 }
0x16be   : > { %9682 = vmatpush1.bf16.msra.mxu0 %v15203_v14  ;;  %9768 = vmatpush1.bf16.msra.mxu1 %v15205_v52  ;;  %v15283_v14 = vcombine.low %v6902_v50, %v6910_v60  ;;  %v15285_v52 = vcombine.low %v6903_v44, %v6911_v35  ;;  %v7007_v50 = vld [vmem:[%s18535_s18 + $0xdc8] sm:$0xff] }
0x16bf   : > { %9713 = vmatprep.mubr.bf16.mxu0 %v19758_v12  ;;  %9799 = vmatprep.mubr.bf16.mxu1 %v19758_v12 }
0x16c0   : > { %9683 = vmatprep.subr.bf16.mxu0 %v15220_v16  ;;  %9769 = vmatprep.subr.bf16.mxu1 %v15222_v51  ;;  %v6951_v16 = vld [vmem:[%s18535_s18 + $0xc08] sm:$0xff] }
0x16c1   : > { %v6959_v51 = vld [vmem:[%s18535_s18 + $0xc48] sm:$0xff] }
0x16c2   : > { %9684 = vmatpush1.bf16.msra.mxu0 %v15219_v34  ;;  %9770 = vmatpush1.bf16.msra.mxu1 %v15221_v27  ;;  %v15334_v34 = vcombine.high %v6951_v16, %v6959_v51  ;;  %v6966_v27 = vld [vmem:[%s18535_s18 + $0xc80] sm:$0xff]  ;;  %v15333_v28 = vcombine.low %v6951_v16, %v6959_v51 }
0x16c3   : > { %9685 = vmatprep.subr.bf16.mxu0 %v15236_v39  ;;  %9771 = vmatprep.subr.bf16.mxu1 %v15238_v32  ;;  %v6974_v39 = vld [vmem:[%s18535_s18 + $0xcc0] sm:$0xff]  ;;  %v6967_v32 = vld [vmem:[%s18535_s18 + $0xc88] sm:$0xff] }
0x16c4   : > { %v15348_v4 = vcombine.high %v6966_v27, %v6974_v39  ;;  %v15347_v58 = vcombine.low %v6966_v27, %v6974_v39  ;;  %v15349_v62 = vcombine.low %v6967_v32, %v6975_v49  ;;  %v7071_v27 = vld [vmem:[%s18535_s18 + $0xfc8] sm:$0xff] }
0x16c6   : > { %9686 = vmatpush1.bf16.msra.mxu0 %v15235_v9  ;;  %9772 = vmatpush1.bf16.msra.mxu1 %v15237_v48  ;;  %v15350_v9 = vcombine.high %v6967_v32, %v6975_v49  ;;  %v6982_v48 = vld [vmem:[%s18535_s18 + $0xd00] sm:$0xff] }
0x16c7   : > { %9687 = vmatprep.subr.bf16.mxu0 %v15252_v47  ;;  %9773 = vmatprep.subr.bf16.mxu1 %v15254_v30  ;;  %v6990_v47 = vld [vmem:[%s18535_s18 + $0xd40] sm:$0xff]  ;;  %v6983_v30 = vld [vmem:[%s18535_s18 + $0xd08] sm:$0xff] }
0x16c8   : > { %v15364_v19 = vcombine.high %v6982_v48, %v6990_v47  ;;  %v15363_v60 = vcombine.low %v6982_v48, %v6990_v47  ;;  %v15365_v44 = vcombine.low %v6983_v30, %v6991_v31  ;;  %v6577_v48 = vld [vmem:[%s18535_s18 + $0x58] sm:$0xff] }
0x16ca   : > { %9688 = vmatpush1.bf16.msra.mxu0 %v15251_v33  ;;  %9774 = vmatpush1.bf16.msra.mxu1 %v15253_v21  ;;  %v15366_v33 = vcombine.high %v6983_v30, %v6991_v31  ;;  %v6998_v21 = vld [vmem:[%s18535_s18 + $0xd80] sm:$0xff]  ;;  %v19820_v31 = vmul.f32 %v19710_v17, %v19667_v2 }
0x16cb   : > { %9689 = vmatprep.subr.bf16.mxu0 %v15268_v36  ;;  %9775 = vmatprep.subr.bf16.mxu1 %v15270_v37  ;;  %v7006_v36 = vld [vmem:[%s18535_s18 + $0xdc0] sm:$0xff]  ;;  %v6999_v37 = vld [vmem:[%s18535_s18 + $0xd88] sm:$0xff] }
0x16cc   : > { %v15380_v35 = vcombine.high %v6998_v21, %v7006_v36  ;;  %v15379_v6 = vcombine.low %v6998_v21, %v7006_v36  ;;  %v15381_v13 = vcombine.low %v6999_v37, %v7007_v50  ;;  %v6592_v21 = vld [vmem:[%s18535_s18 + $0xd0] sm:$0xff]  ;;  %v6585_v36 = vld [vmem:[%s18535_s18 + $0x98] sm:$0xff] }
0x16ce   : > { %9690 = vmatpush1.bf16.msra.mxu0 %v15267_v57  ;;  %9776 = vmatpush1.bf16.msra.mxu1 %v15269_v43  ;;  %v15382_v57 = vcombine.high %v6999_v37, %v7007_v50  ;;  %v7014_v43 = vld [vmem:[%s18535_s18 + $0xe00] sm:$0xff]  ;;  %v6593_v37 = vld [vmem:[%s18535_s18 + $0xd8] sm:$0xff] }
0x16cf   : > { %9691 = vmatprep.subr.bf16.mxu0 %v15284_v1  ;;  %9777 = vmatprep.subr.bf16.mxu1 %v15286_v5  ;;  %v7022_v1 = vld [vmem:[%s18535_s18 + $0xe40] sm:$0xff]  ;;  %v7015_v5 = vld [vmem:[%s18535_s18 + $0xe08] sm:$0xff] }
0x16d0   : > { %v15396_v42 = vcombine.high %v7014_v43, %v7022_v1  ;;  %v15395_v53 = vcombine.low %v7014_v43, %v7022_v1  ;;  %v15397_v46 = vcombine.low %v7015_v5, %v7023_v8  ;;  %v14969_v1 = vcombine.low %v6585_v36, %v6593_v37 }
0x16d2   : > { %9692 = vmatpush1.bf16.msra.mxu0 %v15283_v14  ;;  %9778 = vmatpush1.bf16.msra.mxu1 %v15285_v52  ;;  %v15398_v14 = vcombine.high %v7015_v5, %v7023_v8  ;;  %v7030_v52 = vld [vmem:[%s18535_s18 + $0xe80] sm:$0xff] }
0x16d3   : > { %9693 = vmatprep.subr.bf16.mxu0 %v15300_v55  ;;  %9779 = vmatprep.subr.bf16.mxu1 %v15302_v56  ;;  %v7038_v55 = vld [vmem:[%s18535_s18 + $0xec0] sm:$0xff]  ;;  %v7031_v56 = vld [vmem:[%s18535_s18 + $0xe88] sm:$0xff] }
0x16d4   : > { %v15412_v0 = vcombine.high %v7030_v52, %v7038_v55  ;;  %v15411_v40 = vcombine.low %v7030_v52, %v7038_v55  ;;  %v15413_v16 = vcombine.low %v7031_v56, %v7039_v11 }
0x16d6   : > { %9694 = vmatpush1.bf16.msra.mxu0 %v15299_v61  ;;  %9780 = vmatpush1.bf16.msra.mxu1 %v15301_v22  ;;  %v15414_v61 = vcombine.high %v7031_v56, %v7039_v11  ;;  %v7046_v22 = vld [vmem:[%s18535_s18 + $0xf00] sm:$0xff] }
0x16d7   : > { %9695 = vmatprep.subr.bf16.mxu0 %v15316_v23  ;;  %9781 = vmatprep.subr.bf16.mxu1 %v15318_v24  ;;  %v7054_v23 = vld [vmem:[%s18535_s18 + $0xf40] sm:$0xff]  ;;  %v7047_v24 = vld [vmem:[%s18535_s18 + $0xf08] sm:$0xff] }
0x16d8   : > { %v15428_v51 = vcombine.high %v7046_v22, %v7054_v23  ;;  %v15427_v39 = vcombine.low %v7046_v22, %v7054_v23  ;;  %v15429_v32 = vcombine.low %v7047_v24, %v7055_v63 }
0x16da   : > { %9696 = vmatpush1.bf16.msra.mxu0 %v15315_v45  ;;  %9782 = vmatpush1.bf16.msra.mxu1 %v15317_v26  ;;  %v15430_v45 = vcombine.high %v7047_v24, %v7055_v63  ;;  %v7062_v26 = vld [vmem:[%s18535_s18 + $0xf80] sm:$0xff] }
0x16db   : > { %9697 = vmatprep.subr.bf16.mxu0 %v15332_v59  ;;  %9783 = vmatprep.subr.bf16.mxu1 %v15334_v34  ;;  %v7070_v59 = vld [vmem:[%s18535_s18 + $0xfc0] sm:$0xff]  ;;  %v7063_v34 = vld [vmem:[%s18535_s18 + $0xf88] sm:$0xff] }
0x16dc   : > { %v15444_v49 = vcombine.high %v7062_v26, %v7070_v59  ;;  %v15443_v47 = vcombine.low %v7062_v26, %v7070_v59  ;;  %v15445_v30 = vcombine.low %v7063_v34, %v7071_v27 }
0x16de   : > { %9698 = vmatpush1.bf16.msra.mxu0 %v15331_v54  ;;  %9784 = vmatpush1.bf16.msra.mxu1 %v15333_v28  ;;  %v15446_v54 = vcombine.high %v7063_v34, %v7071_v27  ;;  %v6568_v28 = vld [vmem:[%s18535_s18 + $0x10] sm:$0xff] }
0x16df   : > { %9699 = vmatprep.subr.bf16.mxu0 %v15348_v4  ;;  %9785 = vmatprep.subr.bf16.mxu1 %v15350_v9  ;;  %v6576_v4 = vld [vmem:[%s18535_s18 + $0x50] sm:$0xff]  ;;  %v6569_v9 = vld [vmem:[%s18535_s18 + $0x18] sm:$0xff] }
0x16e0   : > { %v14951_v50 = vcombine.low %v6568_v28, %v6576_v4  ;;  %v14953_v17 = vcombine.low %v6569_v9, %v6577_v48 }
0x16e2   : > { %9700 = vmatpush1.bf16.msra.mxu0 %v15347_v58  ;;  %9786 = vmatpush1.bf16.msra.mxu1 %v15349_v62  ;;  %v14952_v58 = vcombine.high %v6568_v28, %v6576_v4  ;;  %v14954_v62 = vcombine.high %v6569_v9, %v6577_v48 }
0x16e3   : > { %9701 = vmatprep.subr.bf16.mxu0 %v15364_v19  ;;  %9787 = vmatprep.subr.bf16.mxu1 %v15366_v33  ;;  %v6584_v19 = vld [vmem:[%s18535_s18 + $0x90] sm:$0xff]  ;;  %v19825_v33 = vmul.f32 %v19708_v15, %v19651_v7  ;;  %v6601_v15 = vld [vmem:[%s18535_s18 + $0x118] sm:$0xff] }
0x16e4   : > { %v6608_v7 = vld [vmem:[%s18535_s18 + $0x150] sm:$0xff]  ;;  %v14967_v43 = vcombine.low %v6584_v19, %v6592_v21 }
0x16e5   : > { %v19832_v2 = vpack.c.bf16 %v19820_v31, %v19825_v33 }
0x16e6   : > { %9702 = vmatpush1.bf16.msra.mxu0 %v15363_v60  ;;  %9788 = vmatpush1.bf16.msra.mxu1 %v15365_v44  ;;  %v14968_v60 = vcombine.high %v6584_v19, %v6592_v21  ;;  %v14970_v44 = vcombine.high %v6585_v36, %v6593_v37 }
0x16e7   : > { %9703 = vmatprep.subr.bf16.mxu0 %v15380_v35  ;;  %9789 = vmatprep.subr.bf16.mxu1 %v15382_v57  ;;  %v6600_v35 = vld [vmem:[%s18535_s18 + $0x110] sm:$0xff]  ;;  %v6609_v57 = vld [vmem:[%s18535_s18 + $0x158] sm:$0xff] }
0x16e8   : > { %v14984_v5 = vcombine.high %v6600_v35, %v6608_v7  ;;  %v14986_v8 = vcombine.high %v6601_v15, %v6609_v57  ;;  %v14983_v52 = vcombine.low %v6600_v35, %v6608_v7  ;;  %v14985_v55 = vcombine.low %v6601_v15, %v6609_v57 }
0x16ea   : > { %9704 = vmatpush1.bf16.msra.mxu0 %v15379_v6  ;;  %9790 = vmatpush1.bf16.msra.mxu1 %v15381_v13  ;;  %v6616_v6 = vld [vmem:[%s18535_s18 + $0x190] sm:$0xff] }
0x16eb   : > { %9705 = vmatprep.subr.bf16.mxu0 %v15396_v42  ;;  %9791 = vmatprep.subr.bf16.mxu1 %v15398_v14  ;;  %v6624_v13 = vld [vmem:[%s18535_s18 + $0x1d0] sm:$0xff]  ;;  %v6617_v42 = vld [vmem:[%s18535_s18 + $0x198] sm:$0xff] }
0x16ec   : > { %v6625_v14 = vld [vmem:[%s18535_s18 + $0x1d8] sm:$0xff]  ;;  %v15000_v56 = vcombine.high %v6616_v6, %v6624_v13  ;;  %v14999_v22 = vcombine.low %v6616_v6, %v6624_v13 }
0x16ed   : > { %v15002_v11 = vcombine.high %v6617_v42, %v6625_v14  ;;  %v15001_v23 = vcombine.low %v6617_v42, %v6625_v14 }
0x16ee   : > { %9706 = vmatpush1.bf16.msra.mxu0 %v15395_v53  ;;  %9792 = vmatpush1.bf16.msra.mxu1 %v15397_v46  ;;  %v6632_v53 = vld [vmem:[%s18535_s18 + $0x210] sm:$0xff] }
0x16ef   : > { %9707 = vmatprep.subr.bf16.mxu0 %v15412_v0  ;;  %9793 = vmatprep.subr.bf16.mxu1 %v15414_v61  ;;  %v6640_v46 = vld [vmem:[%s18535_s18 + $0x250] sm:$0xff]  ;;  %v6633_v0 = vld [vmem:[%s18535_s18 + $0x218] sm:$0xff] }
0x16f0   : > { %v6641_v61 = vld [vmem:[%s18535_s18 + $0x258] sm:$0xff]  ;;  %v15016_v24 = vcombine.high %v6632_v53, %v6640_v46  ;;  %v15015_v26 = vcombine.low %v6632_v53, %v6640_v46 }
0x16f1   : > { %v15018_v63 = vcombine.high %v6633_v0, %v6641_v61  ;;  %v15017_v59 = vcombine.low %v6633_v0, %v6641_v61 }
0x16f2   : > { %9708 = vmatpush1.bf16.msra.mxu0 %v15411_v40  ;;  %9794 = vmatpush1.bf16.msra.mxu1 %v15413_v16  ;;  %v6648_v40 = vld [vmem:[%s18535_s18 + $0x290] sm:$0xff] }
0x16f3   : > { %9709 = vmatprep.subr.bf16.mxu0 %v15428_v51  ;;  %9795 = vmatprep.subr.bf16.mxu1 %v15430_v45  ;;  %v6656_v16 = vld [vmem:[%s18535_s18 + $0x2d0] sm:$0xff]  ;;  %v6649_v51 = vld [vmem:[%s18535_s18 + $0x298] sm:$0xff] }
0x16f4   : > { %v6657_v45 = vld [vmem:[%s18535_s18 + $0x2d8] sm:$0xff]  ;;  %v15032_v34 = vcombine.high %v6648_v40, %v6656_v16  ;;  %v15031_v28 = vcombine.low %v6648_v40, %v6656_v16 }
0x16f5   : > { %v15034_v27 = vcombine.high %v6649_v51, %v6657_v45  ;;  %v15033_v4 = vcombine.low %v6649_v51, %v6657_v45 }
0x16f6   : > { %9710 = vmatpush1.bf16.msra.mxu0 %v15427_v39  ;;  %9796 = vmatpush1.bf16.msra.mxu1 %v15429_v32  ;;  %v6664_v39 = vld [vmem:[%s18535_s18 + $0x310] sm:$0xff] }
0x16f7   : > { %9711 = vmatprep.subr.bf16.mxu0 %v15444_v49  ;;  %9797 = vmatprep.subr.bf16.mxu1 %v15446_v54  ;;  %v6672_v32 = vld [vmem:[%s18535_s18 + $0x350] sm:$0xff]  ;;  %v6665_v49 = vld [vmem:[%s18535_s18 + $0x318] sm:$0xff] }
0x16f8   : > { %v6673_v54 = vld [vmem:[%s18535_s18 + $0x358] sm:$0xff]  ;;  %v15048_v9 = vcombine.high %v6664_v39, %v6672_v32  ;;  %v15047_v19 = vcombine.low %v6664_v39, %v6672_v32 }
0x16f9   : > { %v15050_v48 = vcombine.high %v6665_v49, %v6673_v54  ;;  %v15049_v21 = vcombine.low %v6665_v49, %v6673_v54 }
0x16fa   : > { %9712 = vmatpush1.bf16.msra.mxu0 %v15443_v47  ;;  %9798 = vmatpush1.bf16.msra.mxu1 %v15445_v30  ;;  %v6680_v47 = vld [vmem:[%s18535_s18 + $0x390] sm:$0xff] }
0x16fb   : > { %9810 = vmatprep.subr.bf16.mxu0 %v14952_v58  ;;  %9896 = vmatprep.subr.bf16.mxu1 %v14954_v62  ;;  %v6688_v30 = vld [vmem:[%s18535_s18 + $0x3d0] sm:$0xff]  ;;  %v6681_v58 = vld [vmem:[%s18535_s18 + $0x398] sm:$0xff] }
0x16fc   : > { %v6689_v62 = vld [vmem:[%s18535_s18 + $0x3d8] sm:$0xff]  ;;  %v15064_v36 = vcombine.high %v6680_v47, %v6688_v30  ;;  %v15063_v35 = vcombine.low %v6680_v47, %v6688_v30 }
0x16fd   : > { %9714 = vmatmul.mubr.bf16.vlgmr.msra.gmra.mrb[64].mxu0 %v19832_v2  ;;  %9800 = vmatmul.mubr.bf16.vlgmr.msra.gmra.mrb[64].mxu1 %v19832_v2  ;;  %v15066_v37 = vcombine.high %v6681_v58, %v6689_v62  ;;  %v15065_v7 = vcombine.low %v6681_v58, %v6689_v62 }
0x16fe   : > { %9811 = vmatpush1.bf16.msra.mxu0 %v14951_v50  ;;  %9842 = vmatprep.mubr.bf16.mxu0 %v19738_v25  ;;  %v6696_v50 = vld [vmem:[%s18535_s18 + $0x410] sm:$0xff] }
0x16ff   : > { %9897 = vmatpush1.bf16.msra.mxu1 %v14953_v17  ;;  %9928 = vmatprep.mubr.bf16.mxu1 %v19738_v25  ;;  %v6704_v17 = vld [vmem:[%s18535_s18 + $0x450] sm:$0xff] }
0x1700   : > { %9812 = vmatprep.subr.bf16.mxu0 %v14968_v60  ;;  %9898 = vmatprep.subr.bf16.mxu1 %v14970_v44  ;;  %v6697_v60 = vld [vmem:[%s18535_s18 + $0x418] sm:$0xff]  ;;  %v15080_v15 = vcombine.high %v6696_v50, %v6704_v17  ;;  %v15079_v6 = vcombine.low %v6696_v50, %v6704_v17 }
0x1701   : > { %v6705_v44 = vld [vmem:[%s18535_s18 + $0x458] sm:$0xff] }
0x1702   : > { %9813 = vmatpush1.bf16.msra.mxu0 %v14967_v43  ;;  %v15082_v57 = vcombine.high %v6697_v60, %v6705_v44  ;;  %v6712_v43 = vld [vmem:[%s18535_s18 + $0x490] sm:$0xff]  ;;  %v15081_v13 = vcombine.low %v6697_v60, %v6705_v44 }
0x1703   : > { %9899 = vmatpush1.bf16.msra.mxu1 %v14969_v1  ;;  %9814 = vmatprep.subr.bf16.mxu0 %v14984_v5  ;;  %v6720_v1 = vld [vmem:[%s18535_s18 + $0x4d0] sm:$0xff]  ;;  %v6713_v5 = vld [vmem:[%s18535_s18 + $0x498] sm:$0xff] }
0x1704   : > { %9900 = vmatprep.subr.bf16.mxu1 %v14986_v8  ;;  %v6721_v8 = vld [vmem:[%s18535_s18 + $0x4d8] sm:$0xff]  ;;  %v15096_v42 = vcombine.high %v6712_v43, %v6720_v1  ;;  %v15095_v53 = vcombine.low %v6712_v43, %v6720_v1 }
0x1705   : > { %v15098_v14 = vcombine.high %v6713_v5, %v6721_v8  ;;  %v15097_v46 = vcombine.low %v6713_v5, %v6721_v8 }
0x1706   : > { %9815 = vmatpush1.bf16.msra.mxu0 %v14983_v52  ;;  %v6728_v52 = vld [vmem:[%s18535_s18 + $0x510] sm:$0xff] }
0x1707   : > { %9901 = vmatpush1.bf16.msra.mxu1 %v14985_v55  ;;  %9816 = vmatprep.subr.bf16.mxu0 %v15000_v56  ;;  %v6736_v55 = vld [vmem:[%s18535_s18 + $0x550] sm:$0xff]  ;;  %v6729_v56 = vld [vmem:[%s18535_s18 + $0x518] sm:$0xff] }
0x1708   : > { %9902 = vmatprep.subr.bf16.mxu1 %v15002_v11  ;;  %v6737_v11 = vld [vmem:[%s18535_s18 + $0x558] sm:$0xff]  ;;  %v15112_v0 = vcombine.high %v6728_v52, %v6736_v55  ;;  %v15111_v40 = vcombine.low %v6728_v52, %v6736_v55 }
0x1709   : > { %v15114_v61 = vcombine.high %v6729_v56, %v6737_v11  ;;  %v15113_v16 = vcombine.low %v6729_v56, %v6737_v11 }
0x170a   : > { %9817 = vmatpush1.bf16.msra.mxu0 %v14999_v22  ;;  %v6744_v22 = vld [vmem:[%s18535_s18 + $0x590] sm:$0xff] }
0x170b   : > { %9903 = vmatpush1.bf16.msra.mxu1 %v15001_v23  ;;  %9818 = vmatprep.subr.bf16.mxu0 %v15016_v24  ;;  %v6752_v23 = vld [vmem:[%s18535_s18 + $0x5d0] sm:$0xff]  ;;  %v6745_v24 = vld [vmem:[%s18535_s18 + $0x598] sm:$0xff] }
0x170c   : > { %9904 = vmatprep.subr.bf16.mxu1 %v15018_v63  ;;  %v6753_v63 = vld [vmem:[%s18535_s18 + $0x5d8] sm:$0xff]  ;;  %v15128_v51 = vcombine.high %v6744_v22, %v6752_v23  ;;  %v15127_v39 = vcombine.low %v6744_v22, %v6752_v23 }
0x170d   : > { %v15130_v45 = vcombine.high %v6745_v24, %v6753_v63  ;;  %v15129_v32 = vcombine.low %v6745_v24, %v6753_v63  ;;  %v6849_v22 = vld [vmem:[%s18535_s18 + $0x8d8] sm:$0xff]  ;;  %v6856_v63 = vld [vmem:[%s18535_s18 + $0x910] sm:$0xff] }
0x170e   : > { %9819 = vmatpush1.bf16.msra.mxu0 %v15015_v26  ;;  %v6760_v26 = vld [vmem:[%s18535_s18 + $0x610] sm:$0xff] }
0x170f   : > { %9905 = vmatpush1.bf16.msra.mxu1 %v15017_v59  ;;  %9820 = vmatprep.subr.bf16.mxu0 %v15032_v34  ;;  %v6768_v59 = vld [vmem:[%s18535_s18 + $0x650] sm:$0xff]  ;;  %v6761_v34 = vld [vmem:[%s18535_s18 + $0x618] sm:$0xff] }
0x1710   : > { %9906 = vmatprep.subr.bf16.mxu1 %v15034_v27  ;;  %v6769_v27 = vld [vmem:[%s18535_s18 + $0x658] sm:$0xff]  ;;  %v15144_v49 = vcombine.high %v6760_v26, %v6768_v59  ;;  %v15143_v47 = vcombine.low %v6760_v26, %v6768_v59 }
0x1711   : > { %v15146_v54 = vcombine.high %v6761_v34, %v6769_v27  ;;  %v15145_v30 = vcombine.low %v6761_v34, %v6769_v27 }
0x1712   : > { %9821 = vmatpush1.bf16.msra.mxu0 %v15031_v28  ;;  %v6776_v28 = vld [vmem:[%s18535_s18 + $0x690] sm:$0xff] }
0x1713   : > { %9907 = vmatpush1.bf16.msra.mxu1 %v15033_v4  ;;  %9822 = vmatprep.subr.bf16.mxu0 %v15048_v9  ;;  %v6784_v4 = vld [vmem:[%s18535_s18 + $0x6d0] sm:$0xff]  ;;  %v6777_v9 = vld [vmem:[%s18535_s18 + $0x698] sm:$0xff] }
0x1714   : > { %9908 = vmatprep.subr.bf16.mxu1 %v15050_v48  ;;  %v6785_v48 = vld [vmem:[%s18535_s18 + $0x6d8] sm:$0xff]  ;;  %v15160_v58 = vcombine.high %v6776_v28, %v6784_v4  ;;  %v15159_v50 = vcombine.low %v6776_v28, %v6784_v4 }
0x1715   : > { %v15162_v62 = vcombine.high %v6777_v9, %v6785_v48  ;;  %v15161_v17 = vcombine.low %v6777_v9, %v6785_v48 }
0x1716   : > { %9823 = vmatpush1.bf16.msra.mxu0 %v15047_v19  ;;  %v6792_v19 = vld [vmem:[%s18535_s18 + $0x710] sm:$0xff] }
0x1717   : > { %9909 = vmatpush1.bf16.msra.mxu1 %v15049_v21  ;;  %9824 = vmatprep.subr.bf16.mxu0 %v15064_v36  ;;  %v6800_v21 = vld [vmem:[%s18535_s18 + $0x750] sm:$0xff]  ;;  %v6793_v36 = vld [vmem:[%s18535_s18 + $0x718] sm:$0xff] }
0x1718   : > { %9910 = vmatprep.subr.bf16.mxu1 %v15066_v37  ;;  %v6801_v37 = vld [vmem:[%s18535_s18 + $0x758] sm:$0xff]  ;;  %v15176_v60 = vcombine.high %v6792_v19, %v6800_v21  ;;  %v15175_v43 = vcombine.low %v6792_v19, %v6800_v21 }
0x1719   : > { %v15178_v44 = vcombine.high %v6793_v36, %v6801_v37  ;;  %v15177_v1 = vcombine.low %v6793_v36, %v6801_v37 }
0x171a   : > { %9825 = vmatpush1.bf16.msra.mxu0 %v15063_v35  ;;  %v6808_v35 = vld [vmem:[%s18535_s18 + $0x790] sm:$0xff] }
0x171b   : > { %9911 = vmatpush1.bf16.msra.mxu1 %v15065_v7  ;;  %9826 = vmatprep.subr.bf16.mxu0 %v15080_v15  ;;  %v6816_v7 = vld [vmem:[%s18535_s18 + $0x7d0] sm:$0xff]  ;;  %v6809_v15 = vld [vmem:[%s18535_s18 + $0x798] sm:$0xff] }
0x171c   : > { %9912 = vmatprep.subr.bf16.mxu1 %v15082_v57  ;;  %v6817_v57 = vld [vmem:[%s18535_s18 + $0x7d8] sm:$0xff]  ;;  %v15192_v5 = vcombine.high %v6808_v35, %v6816_v7  ;;  %v15191_v52 = vcombine.low %v6808_v35, %v6816_v7 }
0x171d   : > { %v15194_v8 = vcombine.high %v6809_v15, %v6817_v57  ;;  %v15193_v55 = vcombine.low %v6809_v15, %v6817_v57 }
0x171e   : > { %9827 = vmatpush1.bf16.msra.mxu0 %v15079_v6  ;;  %v6824_v6 = vld [vmem:[%s18535_s18 + $0x810] sm:$0xff] }
0x171f   : > { %9913 = vmatpush1.bf16.msra.mxu1 %v15081_v13  ;;  %9828 = vmatprep.subr.bf16.mxu0 %v15096_v42  ;;  %v6832_v13 = vld [vmem:[%s18535_s18 + $0x850] sm:$0xff]  ;;  %v6825_v42 = vld [vmem:[%s18535_s18 + $0x818] sm:$0xff] }
0x1720   : > { %9914 = vmatprep.subr.bf16.mxu1 %v15098_v14  ;;  %v6833_v14 = vld [vmem:[%s18535_s18 + $0x858] sm:$0xff]  ;;  %v15208_v56 = vcombine.high %v6824_v6, %v6832_v13 }
0x1721   : > { %v15210_v11 = vcombine.high %v6825_v42, %v6833_v14  ;;  %v15209_v23 = vcombine.low %v6825_v42, %v6833_v14 }
0x1722   : > { %9829 = vmatpush1.bf16.msra.mxu0 %v15095_v53  ;;  %v6840_v53 = vld [vmem:[%s18535_s18 + $0x890] sm:$0xff] }
0x1723   : > { %9915 = vmatpush1.bf16.msra.mxu1 %v15097_v46  ;;  %9830 = vmatprep.subr.bf16.mxu0 %v15112_v0  ;;  %v6848_v46 = vld [vmem:[%s18535_s18 + $0x8d0] sm:$0xff]  ;;  %v15207_v0 = vcombine.low %v6824_v6, %v6832_v13 }
0x1724   : > { %9916 = vmatprep.subr.bf16.mxu1 %v15114_v61  ;;  %v6841_v61 = vld [vmem:[%s18535_s18 + $0x898] sm:$0xff]  ;;  %v15224_v24 = vcombine.high %v6840_v53, %v6848_v46  ;;  %v15223_v26 = vcombine.low %v6840_v53, %v6848_v46 }
0x1725   : > { %v15225_v59 = vcombine.low %v6841_v61, %v6849_v22 }
0x1726   : > { %9831 = vmatpush1.bf16.msra.mxu0 %v15111_v40  ;;  %v6864_v40 = vld [vmem:[%s18535_s18 + $0x950] sm:$0xff] }
0x1727   : > { %9917 = vmatpush1.bf16.msra.mxu1 %v15113_v16  ;;  %9832 = vmatprep.subr.bf16.mxu0 %v15128_v51  ;;  %v15226_v16 = vcombine.high %v6841_v61, %v6849_v22  ;;  %v6857_v51 = vld [vmem:[%s18535_s18 + $0x918] sm:$0xff]  ;;  %v15240_v34 = vcombine.high %v6856_v63, %v6864_v40  ;;  %v15239_v28 = vcombine.low %v6856_v63, %v6864_v40  ;;  %v6952_v22 = vld [vmem:[%s18535_s18 + $0xc10] sm:$0xff] }
0x1728   : > { %9918 = vmatprep.subr.bf16.mxu1 %v15130_v45  ;;  %v6865_v45 = vld [vmem:[%s18535_s18 + $0x958] sm:$0xff] }
0x1729   : > { %v15242_v27 = vcombine.high %v6857_v51, %v6865_v45  ;;  %v15241_v4 = vcombine.low %v6857_v51, %v6865_v45  ;;  %v6961_v63 = vld [vmem:[%s18535_s18 + $0xc58] sm:$0xff] }
0x172a   : > { %9833 = vmatpush1.bf16.msra.mxu0 %v15127_v39  ;;  %v6872_v39 = vld [vmem:[%s18535_s18 + $0x990] sm:$0xff] }
0x172b   : > { %9919 = vmatpush1.bf16.msra.mxu1 %v15129_v32  ;;  %9834 = vmatprep.subr.bf16.mxu0 %v15144_v49  ;;  %v6880_v32 = vld [vmem:[%s18535_s18 + $0x9d0] sm:$0xff]  ;;  %v6873_v49 = vld [vmem:[%s18535_s18 + $0x998] sm:$0xff] }
0x172c   : > { %9920 = vmatprep.subr.bf16.mxu1 %v15146_v54  ;;  %v6881_v54 = vld [vmem:[%s18535_s18 + $0x9d8] sm:$0xff]  ;;  %v15256_v9 = vcombine.high %v6872_v39, %v6880_v32  ;;  %v15255_v19 = vcombine.low %v6872_v39, %v6880_v32 }
0x172d   : > { %v15258_v48 = vcombine.high %v6873_v49, %v6881_v54  ;;  %v15257_v21 = vcombine.low %v6873_v49, %v6881_v54 }
0x172e   : > { %9835 = vmatpush1.bf16.msra.mxu0 %v15143_v47  ;;  %v6888_v47 = vld [vmem:[%s18535_s18 + $0xa10] sm:$0xff] }
0x172f   : > { %9921 = vmatpush1.bf16.msra.mxu1 %v15145_v30  ;;  %9836 = vmatprep.subr.bf16.mxu0 %v15160_v58  ;;  %v6896_v30 = vld [vmem:[%s18535_s18 + $0xa50] sm:$0xff]  ;;  %v6889_v58 = vld [vmem:[%s18535_s18 + $0xa18] sm:$0xff] }
0x1730   : > { %9922 = vmatprep.subr.bf16.mxu1 %v15162_v62  ;;  %v6897_v62 = vld [vmem:[%s18535_s18 + $0xa58] sm:$0xff]  ;;  %v15272_v36 = vcombine.high %v6888_v47, %v6896_v30  ;;  %v15271_v35 = vcombine.low %v6888_v47, %v6896_v30 }
0x1731   : > { %v15274_v37 = vcombine.high %v6889_v58, %v6897_v62  ;;  %v15273_v7 = vcombine.low %v6889_v58, %v6897_v62 }
0x1732   : > { %9837 = vmatpush1.bf16.msra.mxu0 %v15159_v50  ;;  %v6904_v50 = vld [vmem:[%s18535_s18 + $0xa90] sm:$0xff] }
0x1733   : > { %9923 = vmatpush1.bf16.msra.mxu1 %v15161_v17  ;;  %9838 = vmatprep.subr.bf16.mxu0 %v15176_v60  ;;  %v6912_v17 = vld [vmem:[%s18535_s18 + $0xad0] sm:$0xff]  ;;  %v6905_v60 = vld [vmem:[%s18535_s18 + $0xa98] sm:$0xff] }
0x1734   : > { %9924 = vmatprep.subr.bf16.mxu1 %v15178_v44  ;;  %v6913_v44 = vld [vmem:[%s18535_s18 + $0xad8] sm:$0xff]  ;;  %v15288_v15 = vcombine.high %v6904_v50, %v6912_v17  ;;  %v15287_v6 = vcombine.low %v6904_v50, %v6912_v17 }
0x1735   : > { %v15290_v57 = vcombine.high %v6905_v60, %v6913_v44  ;;  %v15289_v13 = vcombine.low %v6905_v60, %v6913_v44 }
0x1736   : > { %9839 = vmatpush1.bf16.msra.mxu0 %v15175_v43  ;;  %v6920_v43 = vld [vmem:[%s18535_s18 + $0xb10] sm:$0xff] }
0x1737   : > { %9925 = vmatpush1.bf16.msra.mxu1 %v15177_v1  ;;  %9840 = vmatprep.subr.bf16.mxu0 %v15192_v5  ;;  %v6928_v1 = vld [vmem:[%s18535_s18 + $0xb50] sm:$0xff]  ;;  %v6921_v5 = vld [vmem:[%s18535_s18 + $0xb18] sm:$0xff] }
0x1738   : > { %9926 = vmatprep.subr.bf16.mxu1 %v15194_v8  ;;  %v6929_v8 = vld [vmem:[%s18535_s18 + $0xb58] sm:$0xff]  ;;  %v15304_v42 = vcombine.high %v6920_v43, %v6928_v1  ;;  %v15303_v53 = vcombine.low %v6920_v43, %v6928_v1 }
0x1739   : > { %v15306_v14 = vcombine.high %v6921_v5, %v6929_v8  ;;  %v15305_v46 = vcombine.low %v6921_v5, %v6929_v8 }
0x173a   : > { %9841 = vmatpush1.bf16.msra.mxu0 %v15191_v52  ;;  %v6936_v52 = vld [vmem:[%s18535_s18 + $0xb90] sm:$0xff] }
0x173b   : > { %9927 = vmatpush1.bf16.msra.mxu1 %v15193_v55  ;;  %9853 = vmatprep.subr.bf16.mxu0 %v15208_v56  ;;  %v6944_v55 = vld [vmem:[%s18535_s18 + $0xbd0] sm:$0xff]  ;;  %v6937_v56 = vld [vmem:[%s18535_s18 + $0xb98] sm:$0xff] }
0x173c   : > { %9939 = vmatprep.subr.bf16.mxu1 %v15210_v11  ;;  %v6945_v11 = vld [vmem:[%s18535_s18 + $0xbd8] sm:$0xff]  ;;  %v15319_v40 = vcombine.low %v6936_v52, %v6944_v55 }
0x173d   : > { %9843 = vmatmul.mubr.bf16.vlgmr.msra.gmra.mrb[68].mxu0 %v19742_v3  ;;  %v15322_v61 = vcombine.high %v6937_v56, %v6945_v11 }
0x173e   : > { %9929 = vmatmul.mubr.bf16.vlgmr.msra.gmra.mrb[68].mxu1 %v19742_v3  ;;  %9854 = vmatpush1.bf16.msra.mxu0 %v15207_v0  ;;  %v15320_v0 = vcombine.high %v6936_v52, %v6944_v55 }
0x173f   : > { %9885 = vmatprep.mubr.bf16.mxu0 %v19758_v12  ;;  %9940 = vmatpush1.bf16.msra.mxu1 %v15209_v23  ;;  %v6960_v23 = vld [vmem:[%s18535_s18 + $0xc50] sm:$0xff] }
0x1740   : > { %9971 = vmatprep.mubr.bf16.mxu1 %v19758_v12  ;;  %9855 = vmatprep.subr.bf16.mxu0 %v15224_v24  ;;  %v6953_v24 = vld [vmem:[%s18535_s18 + $0xc18] sm:$0xff]  ;;  %v15336_v51 = vcombine.high %v6952_v22, %v6960_v23  ;;  %v15335_v39 = vcombine.low %v6952_v22, %v6960_v23 }
0x1741   : > { %9941 = vmatprep.subr.bf16.mxu1 %v15226_v16  ;;  %v15321_v16 = vcombine.low %v6937_v56, %v6945_v11  ;;  %v15338_v45 = vcombine.high %v6953_v24, %v6961_v63  ;;  %v15337_v32 = vcombine.low %v6953_v24, %v6961_v63 }
0x1742   : > { %9856 = vmatpush1.bf16.msra.mxu0 %v15223_v26  ;;  %v6968_v26 = vld [vmem:[%s18535_s18 + $0xc90] sm:$0xff] }
0x1743   : > { %9942 = vmatpush1.bf16.msra.mxu1 %v15225_v59  ;;  %9857 = vmatprep.subr.bf16.mxu0 %v15240_v34  ;;  %v6976_v59 = vld [vmem:[%s18535_s18 + $0xcd0] sm:$0xff]  ;;  %v6969_v34 = vld [vmem:[%s18535_s18 + $0xc98] sm:$0xff] }
0x1744   : > { %9943 = vmatprep.subr.bf16.mxu1 %v15242_v27  ;;  %v6977_v27 = vld [vmem:[%s18535_s18 + $0xcd8] sm:$0xff]  ;;  %v15352_v49 = vcombine.high %v6968_v26, %v6976_v59  ;;  %v15351_v47 = vcombine.low %v6968_v26, %v6976_v59 }
0x1745   : > { %v15354_v54 = vcombine.high %v6969_v34, %v6977_v27  ;;  %v15353_v30 = vcombine.low %v6969_v34, %v6977_v27 }
0x1746   : > { %9858 = vmatpush1.bf16.msra.mxu0 %v15239_v28  ;;  %v6984_v28 = vld [vmem:[%s18535_s18 + $0xd10] sm:$0xff] }
0x1747   : > { %9944 = vmatpush1.bf16.msra.mxu1 %v15241_v4  ;;  %9859 = vmatprep.subr.bf16.mxu0 %v15256_v9  ;;  %v6992_v4 = vld [vmem:[%s18535_s18 + $0xd50] sm:$0xff]  ;;  %v6985_v9 = vld [vmem:[%s18535_s18 + $0xd18] sm:$0xff] }
0x1748   : > { %9945 = vmatprep.subr.bf16.mxu1 %v15258_v48  ;;  %v6993_v48 = vld [vmem:[%s18535_s18 + $0xd58] sm:$0xff]  ;;  %v15368_v58 = vcombine.high %v6984_v28, %v6992_v4  ;;  %v15367_v50 = vcombine.low %v6984_v28, %v6992_v4 }
0x1749   : > { %v15370_v62 = vcombine.high %v6985_v9, %v6993_v48  ;;  %v15369_v17 = vcombine.low %v6985_v9, %v6993_v48 }
0x174a   : > { %9860 = vmatpush1.bf16.msra.mxu0 %v15255_v19  ;;  %v7000_v19 = vld [vmem:[%s18535_s18 + $0xd90] sm:$0xff] }
0x174b   : > { %9946 = vmatpush1.bf16.msra.mxu1 %v15257_v21  ;;  %9861 = vmatprep.subr.bf16.mxu0 %v15272_v36  ;;  %v7008_v21 = vld [vmem:[%s18535_s18 + $0xdd0] sm:$0xff]  ;;  %v7001_v36 = vld [vmem:[%s18535_s18 + $0xd98] sm:$0xff] }
0x174c   : > { %9947 = vmatprep.subr.bf16.mxu1 %v15274_v37  ;;  %v7009_v37 = vld [vmem:[%s18535_s18 + $0xdd8] sm:$0xff]  ;;  %v15384_v60 = vcombine.high %v7000_v19, %v7008_v21  ;;  %v15383_v43 = vcombine.low %v7000_v19, %v7008_v21  ;;  %v6595_v19 = vld [vmem:[%s18535_s18 + $0xe8] sm:$0xff] }
0x174d   : > { %v15386_v44 = vcombine.high %v7001_v36, %v7009_v37  ;;  %v15385_v1 = vcombine.low %v7001_v36, %v7009_v37  ;;  %v6602_v37 = vld [vmem:[%s18535_s18 + $0x120] sm:$0xff] }
0x174e   : > { %9862 = vmatpush1.bf16.msra.mxu0 %v15271_v35  ;;  %v7016_v35 = vld [vmem:[%s18535_s18 + $0xe10] sm:$0xff] }
0x174f   : > { %9948 = vmatpush1.bf16.msra.mxu1 %v15273_v7  ;;  %9863 = vmatprep.subr.bf16.mxu0 %v15288_v15  ;;  %v7024_v7 = vld [vmem:[%s18535_s18 + $0xe50] sm:$0xff]  ;;  %v7017_v15 = vld [vmem:[%s18535_s18 + $0xe18] sm:$0xff] }
0x1750   : > { %9949 = vmatprep.subr.bf16.mxu1 %v15290_v57  ;;  %v7025_v57 = vld [vmem:[%s18535_s18 + $0xe58] sm:$0xff]  ;;  %v15400_v5 = vcombine.high %v7016_v35, %v7024_v7  ;;  %v15399_v52 = vcombine.low %v7016_v35, %v7024_v7 }
0x1751   : > { %v15402_v8 = vcombine.high %v7017_v15, %v7025_v57  ;;  %v15401_v55 = vcombine.low %v7017_v15, %v7025_v57 }
0x1752   : > { %9864 = vmatpush1.bf16.msra.mxu0 %v15287_v6  ;;  %v7032_v6 = vld [vmem:[%s18535_s18 + $0xe90] sm:$0xff] }
0x1753   : > { %9950 = vmatpush1.bf16.msra.mxu1 %v15289_v13  ;;  %9865 = vmatprep.subr.bf16.mxu0 %v15304_v42  ;;  %v7040_v13 = vld [vmem:[%s18535_s18 + $0xed0] sm:$0xff]  ;;  %v7033_v42 = vld [vmem:[%s18535_s18 + $0xe98] sm:$0xff] }
0x1754   : > { %9951 = vmatprep.subr.bf16.mxu1 %v15306_v14  ;;  %v7041_v14 = vld [vmem:[%s18535_s18 + $0xed8] sm:$0xff]  ;;  %v15416_v56 = vcombine.high %v7032_v6, %v7040_v13  ;;  %v15415_v22 = vcombine.low %v7032_v6, %v7040_v13 }
0x1755   : > { %v15418_v11 = vcombine.high %v7033_v42, %v7041_v14  ;;  %v15417_v23 = vcombine.low %v7033_v42, %v7041_v14 }
0x1756   : > { %9866 = vmatpush1.bf16.msra.mxu0 %v15303_v53  ;;  %v7048_v53 = vld [vmem:[%s18535_s18 + $0xf10] sm:$0xff] }
0x1757   : > { %9952 = vmatpush1.bf16.msra.mxu1 %v15305_v46  ;;  %9867 = vmatprep.subr.bf16.mxu0 %v15320_v0  ;;  %v7056_v46 = vld [vmem:[%s18535_s18 + $0xf50] sm:$0xff]  ;;  %v7049_v0 = vld [vmem:[%s18535_s18 + $0xf18] sm:$0xff] }
0x1758   : > { %9953 = vmatprep.subr.bf16.mxu1 %v15322_v61  ;;  %v7057_v61 = vld [vmem:[%s18535_s18 + $0xf58] sm:$0xff]  ;;  %v15432_v24 = vcombine.high %v7048_v53, %v7056_v46  ;;  %v15431_v26 = vcombine.low %v7048_v53, %v7056_v46 }
0x1759   : > { %v15434_v63 = vcombine.high %v7049_v0, %v7057_v61  ;;  %v15433_v59 = vcombine.low %v7049_v0, %v7057_v61 }
0x175a   : > { %9868 = vmatpush1.bf16.msra.mxu0 %v15319_v40  ;;  %v7064_v40 = vld [vmem:[%s18535_s18 + $0xf90] sm:$0xff] }
0x175b   : > { %9954 = vmatpush1.bf16.msra.mxu1 %v15321_v16  ;;  %9869 = vmatprep.subr.bf16.mxu0 %v15336_v51  ;;  %v7072_v16 = vld [vmem:[%s18535_s18 + $0xfd0] sm:$0xff]  ;;  %v7065_v51 = vld [vmem:[%s18535_s18 + $0xf98] sm:$0xff] }
0x175c   : > { %9955 = vmatprep.subr.bf16.mxu1 %v15338_v45  ;;  %v7073_v45 = vld [vmem:[%s18535_s18 + $0xfd8] sm:$0xff]  ;;  %v15448_v34 = vcombine.high %v7064_v40, %v7072_v16  ;;  %v15447_v28 = vcombine.low %v7064_v40, %v7072_v16 }
0x175d   : > { %v15450_v27 = vcombine.high %v7065_v51, %v7073_v45  ;;  %v15449_v4 = vcombine.low %v7065_v51, %v7073_v45 }
0x175e   : > { %9870 = vmatpush1.bf16.msra.mxu0 %v15335_v39  ;;  %v6570_v39 = vld [vmem:[%s18535_s18 + $0x20] sm:$0xff] }
0x175f   : > { %9956 = vmatpush1.bf16.msra.mxu1 %v15337_v32  ;;  %9871 = vmatprep.subr.bf16.mxu0 %v15352_v49  ;;  %v6578_v32 = vld [vmem:[%s18535_s18 + $0x60] sm:$0xff]  ;;  %v6571_v49 = vld [vmem:[%s18535_s18 + $0x28] sm:$0xff] }
0x1760   : > { %9957 = vmatprep.subr.bf16.mxu1 %v15354_v54  ;;  %v6579_v54 = vld [vmem:[%s18535_s18 + $0x68] sm:$0xff]  ;;  %v14956_v9 = vcombine.high %v6570_v39, %v6578_v32 }
0x1761   : > { %v14958_v48 = vcombine.high %v6571_v49, %v6579_v54  ;;  %v14957_v21 = vcombine.low %v6571_v49, %v6579_v54 }
0x1762   : > { %9872 = vmatpush1.bf16.msra.mxu0 %v15351_v47  ;;  %v6586_v47 = vld [vmem:[%s18535_s18 + $0xa0] sm:$0xff] }
0x1763   : > { %9958 = vmatpush1.bf16.msra.mxu1 %v15353_v30  ;;  %9873 = vmatprep.subr.bf16.mxu0 %v15368_v58  ;;  %v6594_v30 = vld [vmem:[%s18535_s18 + $0xe0] sm:$0xff]  ;;  %v14955_v58 = vcombine.low %v6570_v39, %v6578_v32 }
0x1764   : > { %9959 = vmatprep.subr.bf16.mxu1 %v15370_v62  ;;  %v6587_v62 = vld [vmem:[%s18535_s18 + $0xa8] sm:$0xff]  ;;  %v14972_v36 = vcombine.high %v6586_v47, %v6594_v30  ;;  %v14971_v35 = vcombine.low %v6586_v47, %v6594_v30 }
0x1765   : > { %v14973_v7 = vcombine.low %v6587_v62, %v6595_v19 }
0x1766   : > { %9874 = vmatpush1.bf16.msra.mxu0 %v15367_v50  ;;  %v6610_v50 = vld [vmem:[%s18535_s18 + $0x160] sm:$0xff] }
0x1767   : > { %9960 = vmatpush1.bf16.msra.mxu1 %v15369_v17  ;;  %9875 = vmatprep.subr.bf16.mxu0 %v15384_v60  ;;  %v14974_v17 = vcombine.high %v6587_v62, %v6595_v19  ;;  %v6603_v60 = vld [vmem:[%s18535_s18 + $0x128] sm:$0xff]  ;;  %v14988_v15 = vcombine.high %v6602_v37, %v6610_v50  ;;  %v14987_v6 = vcombine.low %v6602_v37, %v6610_v50  ;;  %v6698_v19 = vld [vmem:[%s18535_s18 + $0x420] sm:$0xff] }
0x1768   : > { %9961 = vmatprep.subr.bf16.mxu1 %v15386_v44  ;;  %v6611_v44 = vld [vmem:[%s18535_s18 + $0x168] sm:$0xff] }
0x1769   : > { %v14990_v57 = vcombine.high %v6603_v60, %v6611_v44  ;;  %v14989_v13 = vcombine.low %v6603_v60, %v6611_v44  ;;  %v6707_v37 = vld [vmem:[%s18535_s18 + $0x468] sm:$0xff] }
0x176a   : > { %9876 = vmatpush1.bf16.msra.mxu0 %v15383_v43  ;;  %v6618_v43 = vld [vmem:[%s18535_s18 + $0x1a0] sm:$0xff] }
0x176b   : > { %9962 = vmatpush1.bf16.msra.mxu1 %v15385_v1  ;;  %9877 = vmatprep.subr.bf16.mxu0 %v15400_v5  ;;  %v6626_v1 = vld [vmem:[%s18535_s18 + $0x1e0] sm:$0xff]  ;;  %v6619_v5 = vld [vmem:[%s18535_s18 + $0x1a8] sm:$0xff] }
0x176c   : > { %9963 = vmatprep.subr.bf16.mxu1 %v15402_v8  ;;  %v6627_v8 = vld [vmem:[%s18535_s18 + $0x1e8] sm:$0xff]  ;;  %v15004_v42 = vcombine.high %v6618_v43, %v6626_v1  ;;  %v15003_v53 = vcombine.low %v6618_v43, %v6626_v1 }
0x176d   : > { %v15006_v14 = vcombine.high %v6619_v5, %v6627_v8  ;;  %v15005_v46 = vcombine.low %v6619_v5, %v6627_v8 }
0x176e   : > { %9878 = vmatpush1.bf16.msra.mxu0 %v15399_v52  ;;  %v6634_v52 = vld [vmem:[%s18535_s18 + $0x220] sm:$0xff] }
0x176f   : > { %9964 = vmatpush1.bf16.msra.mxu1 %v15401_v55  ;;  %9879 = vmatprep.subr.bf16.mxu0 %v15416_v56  ;;  %v6642_v55 = vld [vmem:[%s18535_s18 + $0x260] sm:$0xff]  ;;  %v6635_v56 = vld [vmem:[%s18535_s18 + $0x228] sm:$0xff] }
0x1770   : > { %9965 = vmatprep.subr.bf16.mxu1 %v15418_v11  ;;  %v6643_v11 = vld [vmem:[%s18535_s18 + $0x268] sm:$0xff]  ;;  %v15020_v0 = vcombine.high %v6634_v52, %v6642_v55  ;;  %v15019_v40 = vcombine.low %v6634_v52, %v6642_v55 }
0x1771   : > { %v15022_v61 = vcombine.high %v6635_v56, %v6643_v11  ;;  %v15021_v16 = vcombine.low %v6635_v56, %v6643_v11 }
0x1772   : > { %9880 = vmatpush1.bf16.msra.mxu0 %v15415_v22  ;;  %v6650_v22 = vld [vmem:[%s18535_s18 + $0x2a0] sm:$0xff] }
0x1773   : > { %9966 = vmatpush1.bf16.msra.mxu1 %v15417_v23  ;;  %9881 = vmatprep.subr.bf16.mxu0 %v15432_v24  ;;  %v6658_v23 = vld [vmem:[%s18535_s18 + $0x2e0] sm:$0xff]  ;;  %v6651_v24 = vld [vmem:[%s18535_s18 + $0x2a8] sm:$0xff] }
0x1774   : > { %9967 = vmatprep.subr.bf16.mxu1 %v15434_v63  ;;  %v6659_v63 = vld [vmem:[%s18535_s18 + $0x2e8] sm:$0xff]  ;;  %v15036_v51 = vcombine.high %v6650_v22, %v6658_v23  ;;  %v15035_v39 = vcombine.low %v6650_v22, %v6658_v23 }
0x1775   : > { %v15038_v45 = vcombine.high %v6651_v24, %v6659_v63  ;;  %v15037_v32 = vcombine.low %v6651_v24, %v6659_v63 }
0x1776   : > { %9882 = vmatpush1.bf16.msra.mxu0 %v15431_v26  ;;  %v6666_v26 = vld [vmem:[%s18535_s18 + $0x320] sm:$0xff] }
0x1777   : > { %9968 = vmatpush1.bf16.msra.mxu1 %v15433_v59  ;;  %9883 = vmatprep.subr.bf16.mxu0 %v15448_v34  ;;  %v6674_v59 = vld [vmem:[%s18535_s18 + $0x360] sm:$0xff]  ;;  %v6667_v34 = vld [vmem:[%s18535_s18 + $0x328] sm:$0xff] }
0x1778   : > { %9969 = vmatprep.subr.bf16.mxu1 %v15450_v27  ;;  %v6675_v27 = vld [vmem:[%s18535_s18 + $0x368] sm:$0xff]  ;;  %v15052_v49 = vcombine.high %v6666_v26, %v6674_v59  ;;  %v15051_v47 = vcombine.low %v6666_v26, %v6674_v59 }
0x1779   : > { %v15054_v54 = vcombine.high %v6667_v34, %v6675_v27  ;;  %v15053_v30 = vcombine.low %v6667_v34, %v6675_v27 }
0x177a   : > { %9884 = vmatpush1.bf16.msra.mxu0 %v15447_v28  ;;  %v6682_v28 = vld [vmem:[%s18535_s18 + $0x3a0] sm:$0xff] }
0x177b   : > { %9970 = vmatpush1.bf16.msra.mxu1 %v15449_v4  ;;  %9982 = vmatprep.subr.bf16.mxu0 %v14956_v9  ;;  %v6690_v4 = vld [vmem:[%s18535_s18 + $0x3e0] sm:$0xff]  ;;  %v6683_v9 = vld [vmem:[%s18535_s18 + $0x3a8] sm:$0xff] }
0x177c   : > { %10068 = vmatprep.subr.bf16.mxu1 %v14958_v48  ;;  %v6691_v48 = vld [vmem:[%s18535_s18 + $0x3e8] sm:$0xff]  ;;  %v15067_v50 = vcombine.low %v6682_v28, %v6690_v4 }
0x177d   : > { %9886 = vmatmul.mubr.bf16.vlgmr.msra.gmra.mrb[68].mxu0 %v19832_v2  ;;  %v15070_v62 = vcombine.high %v6683_v9, %v6691_v48 }
0x177e   : > { %9972 = vmatmul.mubr.bf16.vlgmr.msra.gmra.mrb[68].mxu1 %v19832_v2  ;;  %9983 = vmatpush1.bf16.msra.mxu0 %v14955_v58  ;;  %v15068_v58 = vcombine.high %v6682_v28, %v6690_v4 }
0x177f   : > { %10014 = vmatprep.mubr.bf16.mxu0 %v19738_v25  ;;  %10069 = vmatpush1.bf16.msra.mxu1 %v14957_v21  ;;  %v6706_v21 = vld [vmem:[%s18535_s18 + $0x460] sm:$0xff] }
0x1780   : > { %10100 = vmatprep.mubr.bf16.mxu1 %v19738_v25  ;;  %9984 = vmatprep.subr.bf16.mxu0 %v14972_v36  ;;  %v6699_v36 = vld [vmem:[%s18535_s18 + $0x428] sm:$0xff]  ;;  %v15084_v60 = vcombine.high %v6698_v19, %v6706_v21  ;;  %v15083_v43 = vcombine.low %v6698_v19, %v6706_v21 }
0x1781   : > { %10070 = vmatprep.subr.bf16.mxu1 %v14974_v17  ;;  %v15069_v17 = vcombine.low %v6683_v9, %v6691_v48  ;;  %v15086_v44 = vcombine.high %v6699_v36, %v6707_v37  ;;  %v15085_v1 = vcombine.low %v6699_v36, %v6707_v37 }
0x1782   : > { %9985 = vmatpush1.bf16.msra.mxu0 %v14971_v35  ;;  %v6714_v35 = vld [vmem:[%s18535_s18 + $0x4a0] sm:$0xff] }
0x1783   : > { %10071 = vmatpush1.bf16.msra.mxu1 %v14973_v7  ;;  %9986 = vmatprep.subr.bf16.mxu0 %v14988_v15  ;;  %v6722_v7 = vld [vmem:[%s18535_s18 + $0x4e0] sm:$0xff]  ;;  %v6715_v15 = vld [vmem:[%s18535_s18 + $0x4a8] sm:$0xff] }
0x1784   : > { %10072 = vmatprep.subr.bf16.mxu1 %v14990_v57  ;;  %v6723_v57 = vld [vmem:[%s18535_s18 + $0x4e8] sm:$0xff]  ;;  %v15100_v5 = vcombine.high %v6714_v35, %v6722_v7  ;;  %v15099_v52 = vcombine.low %v6714_v35, %v6722_v7 }
0x1785   : > { %v15102_v8 = vcombine.high %v6715_v15, %v6723_v57  ;;  %v15101_v55 = vcombine.low %v6715_v15, %v6723_v57 }
0x1786   : > { %9987 = vmatpush1.bf16.msra.mxu0 %v14987_v6  ;;  %v6730_v6 = vld [vmem:[%s18535_s18 + $0x520] sm:$0xff] }
0x1787   : > { %10073 = vmatpush1.bf16.msra.mxu1 %v14989_v13  ;;  %9988 = vmatprep.subr.bf16.mxu0 %v15004_v42  ;;  %v6738_v13 = vld [vmem:[%s18535_s18 + $0x560] sm:$0xff]  ;;  %v6731_v42 = vld [vmem:[%s18535_s18 + $0x528] sm:$0xff] }
0x1788   : > { %10074 = vmatprep.subr.bf16.mxu1 %v15006_v14  ;;  %v6739_v14 = vld [vmem:[%s18535_s18 + $0x568] sm:$0xff]  ;;  %v15116_v56 = vcombine.high %v6730_v6, %v6738_v13  ;;  %v15115_v22 = vcombine.low %v6730_v6, %v6738_v13 }
0x1789   : > { %v15118_v11 = vcombine.high %v6731_v42, %v6739_v14  ;;  %v15117_v23 = vcombine.low %v6731_v42, %v6739_v14 }
0x178a   : > { %9989 = vmatpush1.bf16.msra.mxu0 %v15003_v53  ;;  %v6746_v53 = vld [vmem:[%s18535_s18 + $0x5a0] sm:$0xff] }
0x178b   : > { %10075 = vmatpush1.bf16.msra.mxu1 %v15005_v46  ;;  %9990 = vmatprep.subr.bf16.mxu0 %v15020_v0  ;;  %v6754_v46 = vld [vmem:[%s18535_s18 + $0x5e0] sm:$0xff]  ;;  %v6747_v0 = vld [vmem:[%s18535_s18 + $0x5a8] sm:$0xff] }
0x178c   : > { %10076 = vmatprep.subr.bf16.mxu1 %v15022_v61  ;;  %v6755_v61 = vld [vmem:[%s18535_s18 + $0x5e8] sm:$0xff]  ;;  %v15132_v24 = vcombine.high %v6746_v53, %v6754_v46  ;;  %v15131_v26 = vcombine.low %v6746_v53, %v6754_v46 }
0x178d   : > { %v15134_v63 = vcombine.high %v6747_v0, %v6755_v61  ;;  %v15133_v59 = vcombine.low %v6747_v0, %v6755_v61  ;;  %v6851_v53 = vld [vmem:[%s18535_s18 + $0x8e8] sm:$0xff]  ;;  %v6858_v61 = vld [vmem:[%s18535_s18 + $0x920] sm:$0xff] }
0x178e   : > { %9991 = vmatpush1.bf16.msra.mxu0 %v15019_v40  ;;  %v6762_v40 = vld [vmem:[%s18535_s18 + $0x620] sm:$0xff] }
0x178f   : > { %10077 = vmatpush1.bf16.msra.mxu1 %v15021_v16  ;;  %9992 = vmatprep.subr.bf16.mxu0 %v15036_v51  ;;  %v6770_v16 = vld [vmem:[%s18535_s18 + $0x660] sm:$0xff]  ;;  %v6763_v51 = vld [vmem:[%s18535_s18 + $0x628] sm:$0xff] }
0x1790   : > { %10078 = vmatprep.subr.bf16.mxu1 %v15038_v45  ;;  %v6771_v45 = vld [vmem:[%s18535_s18 + $0x668] sm:$0xff]  ;;  %v15148_v34 = vcombine.high %v6762_v40, %v6770_v16  ;;  %v15147_v28 = vcombine.low %v6762_v40, %v6770_v16 }
0x1791   : > { %v15150_v27 = vcombine.high %v6763_v51, %v6771_v45  ;;  %v15149_v4 = vcombine.low %v6763_v51, %v6771_v45 }
0x1792   : > { %9993 = vmatpush1.bf16.msra.mxu0 %v15035_v39  ;;  %v6778_v39 = vld [vmem:[%s18535_s18 + $0x6a0] sm:$0xff] }
0x1793   : > { %10079 = vmatpush1.bf16.msra.mxu1 %v15037_v32  ;;  %9994 = vmatprep.subr.bf16.mxu0 %v15052_v49  ;;  %v6786_v32 = vld [vmem:[%s18535_s18 + $0x6e0] sm:$0xff]  ;;  %v6779_v49 = vld [vmem:[%s18535_s18 + $0x6a8] sm:$0xff] }
0x1794   : > { %10080 = vmatprep.subr.bf16.mxu1 %v15054_v54  ;;  %v6787_v54 = vld [vmem:[%s18535_s18 + $0x6e8] sm:$0xff]  ;;  %v15164_v9 = vcombine.high %v6778_v39, %v6786_v32  ;;  %v15163_v19 = vcombine.low %v6778_v39, %v6786_v32 }
0x1795   : > { %v15166_v48 = vcombine.high %v6779_v49, %v6787_v54  ;;  %v15165_v21 = vcombine.low %v6779_v49, %v6787_v54 }
0x1796   : > { %9995 = vmatpush1.bf16.msra.mxu0 %v15051_v47  ;;  %v6794_v47 = vld [vmem:[%s18535_s18 + $0x720] sm:$0xff] }
0x1797   : > { %10081 = vmatpush1.bf16.msra.mxu1 %v15053_v30  ;;  %9996 = vmatprep.subr.bf16.mxu0 %v15068_v58  ;;  %v6802_v30 = vld [vmem:[%s18535_s18 + $0x760] sm:$0xff]  ;;  %v6795_v58 = vld [vmem:[%s18535_s18 + $0x728] sm:$0xff] }
0x1798   : > { %10082 = vmatprep.subr.bf16.mxu1 %v15070_v62  ;;  %v6803_v62 = vld [vmem:[%s18535_s18 + $0x768] sm:$0xff]  ;;  %v15180_v36 = vcombine.high %v6794_v47, %v6802_v30  ;;  %v15179_v35 = vcombine.low %v6794_v47, %v6802_v30 }
0x1799   : > { %v15182_v37 = vcombine.high %v6795_v58, %v6803_v62  ;;  %v15181_v7 = vcombine.low %v6795_v58, %v6803_v62 }
0x179a   : > { %9997 = vmatpush1.bf16.msra.mxu0 %v15067_v50  ;;  %v6810_v50 = vld [vmem:[%s18535_s18 + $0x7a0] sm:$0xff] }
0x179b   : > { %10083 = vmatpush1.bf16.msra.mxu1 %v15069_v17  ;;  %9998 = vmatprep.subr.bf16.mxu0 %v15084_v60  ;;  %v6818_v17 = vld [vmem:[%s18535_s18 + $0x7e0] sm:$0xff]  ;;  %v6811_v60 = vld [vmem:[%s18535_s18 + $0x7a8] sm:$0xff] }
0x179c   : > { %10084 = vmatprep.subr.bf16.mxu1 %v15086_v44  ;;  %v6819_v44 = vld [vmem:[%s18535_s18 + $0x7e8] sm:$0xff]  ;;  %v15196_v15 = vcombine.high %v6810_v50, %v6818_v17  ;;  %v15195_v6 = vcombine.low %v6810_v50, %v6818_v17 }
0x179d   : > { %v15198_v57 = vcombine.high %v6811_v60, %v6819_v44  ;;  %v15197_v13 = vcombine.low %v6811_v60, %v6819_v44 }
0x179e   : > { %9999 = vmatpush1.bf16.msra.mxu0 %v15083_v43  ;;  %v6826_v43 = vld [vmem:[%s18535_s18 + $0x820] sm:$0xff] }
0x179f   : > { %10085 = vmatpush1.bf16.msra.mxu1 %v15085_v1  ;;  %10000 = vmatprep.subr.bf16.mxu0 %v15100_v5  ;;  %v6834_v1 = vld [vmem:[%s18535_s18 + $0x860] sm:$0xff]  ;;  %v6827_v5 = vld [vmem:[%s18535_s18 + $0x828] sm:$0xff] }
0x17a0   : > { %10086 = vmatprep.subr.bf16.mxu1 %v15102_v8  ;;  %v6835_v8 = vld [vmem:[%s18535_s18 + $0x868] sm:$0xff]  ;;  %v15212_v42 = vcombine.high %v6826_v43, %v6834_v1 }
0x17a1   : > { %v15214_v14 = vcombine.high %v6827_v5, %v6835_v8  ;;  %v15213_v46 = vcombine.low %v6827_v5, %v6835_v8 }
0x17a2   : > { %10001 = vmatpush1.bf16.msra.mxu0 %v15099_v52  ;;  %v6842_v52 = vld [vmem:[%s18535_s18 + $0x8a0] sm:$0xff] }
0x17a3   : > { %10087 = vmatpush1.bf16.msra.mxu1 %v15101_v55  ;;  %10002 = vmatprep.subr.bf16.mxu0 %v15116_v56  ;;  %v6850_v55 = vld [vmem:[%s18535_s18 + $0x8e0] sm:$0xff]  ;;  %v15211_v56 = vcombine.low %v6826_v43, %v6834_v1 }
0x17a4   : > { %10088 = vmatprep.subr.bf16.mxu1 %v15118_v11  ;;  %v6843_v11 = vld [vmem:[%s18535_s18 + $0x8a8] sm:$0xff]  ;;  %v15228_v0 = vcombine.high %v6842_v52, %v6850_v55  ;;  %v15227_v40 = vcombine.low %v6842_v52, %v6850_v55  ;;  %v6938_v1 = vld [vmem:[%s18535_s18 + $0xba0] sm:$0xff] }
0x17a5   : > { %v15229_v16 = vcombine.low %v6843_v11, %v6851_v53 }
0x17a6   : > { %10003 = vmatpush1.bf16.msra.mxu0 %v15115_v22  ;;  %v6866_v22 = vld [vmem:[%s18535_s18 + $0x960] sm:$0xff] }
0x17a7   : > { %10089 = vmatpush1.bf16.msra.mxu1 %v15117_v23  ;;  %10004 = vmatprep.subr.bf16.mxu0 %v15132_v24  ;;  %v15230_v23 = vcombine.high %v6843_v11, %v6851_v53  ;;  %v6859_v24 = vld [vmem:[%s18535_s18 + $0x928] sm:$0xff]  ;;  %v15244_v51 = vcombine.high %v6858_v61, %v6866_v22  ;;  %v15243_v39 = vcombine.low %v6858_v61, %v6866_v22 }
0x17a8   : > { %10090 = vmatprep.subr.bf16.mxu1 %v15134_v63  ;;  %v6867_v63 = vld [vmem:[%s18535_s18 + $0x968] sm:$0xff] }
0x17a9   : > { %v15246_v45 = vcombine.high %v6859_v24, %v6867_v63  ;;  %v15245_v32 = vcombine.low %v6859_v24, %v6867_v63 }
0x17aa   : > { %10005 = vmatpush1.bf16.msra.mxu0 %v15131_v26  ;;  %v6874_v26 = vld [vmem:[%s18535_s18 + $0x9a0] sm:$0xff] }
0x17ab   : > { %10091 = vmatpush1.bf16.msra.mxu1 %v15133_v59  ;;  %10006 = vmatprep.subr.bf16.mxu0 %v15148_v34  ;;  %v6882_v59 = vld [vmem:[%s18535_s18 + $0x9e0] sm:$0xff]  ;;  %v6875_v34 = vld [vmem:[%s18535_s18 + $0x9a8] sm:$0xff] }
0x17ac   : > { %10092 = vmatprep.subr.bf16.mxu1 %v15150_v27  ;;  %v6883_v27 = vld [vmem:[%s18535_s18 + $0x9e8] sm:$0xff]  ;;  %v15260_v49 = vcombine.high %v6874_v26, %v6882_v59  ;;  %v15259_v47 = vcombine.low %v6874_v26, %v6882_v59 }
0x17ad   : > { %v15262_v54 = vcombine.high %v6875_v34, %v6883_v27  ;;  %v15261_v30 = vcombine.low %v6875_v34, %v6883_v27 }
0x17ae   : > { %10007 = vmatpush1.bf16.msra.mxu0 %v15147_v28  ;;  %v6890_v28 = vld [vmem:[%s18535_s18 + $0xa20] sm:$0xff] }
0x17af   : > { %10093 = vmatpush1.bf16.msra.mxu1 %v15149_v4  ;;  %10008 = vmatprep.subr.bf16.mxu0 %v15164_v9  ;;  %v6898_v4 = vld [vmem:[%s18535_s18 + $0xa60] sm:$0xff]  ;;  %v6891_v9 = vld [vmem:[%s18535_s18 + $0xa28] sm:$0xff] }
0x17b0   : > { %10094 = vmatprep.subr.bf16.mxu1 %v15166_v48  ;;  %v6899_v48 = vld [vmem:[%s18535_s18 + $0xa68] sm:$0xff]  ;;  %v15276_v58 = vcombine.high %v6890_v28, %v6898_v4  ;;  %v15275_v50 = vcombine.low %v6890_v28, %v6898_v4 }
0x17b1   : > { %v15278_v62 = vcombine.high %v6891_v9, %v6899_v48  ;;  %v15277_v17 = vcombine.low %v6891_v9, %v6899_v48  ;;  %v6955_v28 = vld [vmem:[%s18535_s18 + $0xc28] sm:$0xff] }
0x17b2   : > { %10009 = vmatpush1.bf16.msra.mxu0 %v15163_v19  ;;  %v6906_v19 = vld [vmem:[%s18535_s18 + $0xaa0] sm:$0xff]  ;;  %v6963_v4 = vld [vmem:[%s18535_s18 + $0xc68] sm:$0xff] }
0x17b3   : > { %10095 = vmatpush1.bf16.msra.mxu1 %v15165_v21  ;;  %10010 = vmatprep.subr.bf16.mxu0 %v15180_v36  ;;  %v6914_v21 = vld [vmem:[%s18535_s18 + $0xae0] sm:$0xff]  ;;  %v6907_v36 = vld [vmem:[%s18535_s18 + $0xaa8] sm:$0xff] }
0x17b4   : > { %10096 = vmatprep.subr.bf16.mxu1 %v15182_v37  ;;  %v6915_v37 = vld [vmem:[%s18535_s18 + $0xae8] sm:$0xff]  ;;  %v15292_v60 = vcombine.high %v6906_v19, %v6914_v21  ;;  %v15291_v43 = vcombine.low %v6906_v19, %v6914_v21  ;;  %v6970_v19 = vld [vmem:[%s18535_s18 + $0xca0] sm:$0xff] }
0x17b5   : > { %v15294_v44 = vcombine.high %v6907_v36, %v6915_v37  ;;  %v15293_v5 = vcombine.low %v6907_v36, %v6915_v37  ;;  %v6978_v21 = vld [vmem:[%s18535_s18 + $0xce0] sm:$0xff]  ;;  %v6971_v36 = vld [vmem:[%s18535_s18 + $0xca8] sm:$0xff] }
0x17b6   : > { %10011 = vmatpush1.bf16.msra.mxu0 %v15179_v35  ;;  %v6922_v35 = vld [vmem:[%s18535_s18 + $0xb20] sm:$0xff]  ;;  %v6979_v37 = vld [vmem:[%s18535_s18 + $0xce8] sm:$0xff] }
0x17b7   : > { %10097 = vmatpush1.bf16.msra.mxu1 %v15181_v7  ;;  %10012 = vmatprep.subr.bf16.mxu0 %v15196_v15  ;;  %v6930_v7 = vld [vmem:[%s18535_s18 + $0xb60] sm:$0xff]  ;;  %v6923_v15 = vld [vmem:[%s18535_s18 + $0xb28] sm:$0xff] }
0x17b8   : > { %10098 = vmatprep.subr.bf16.mxu1 %v15198_v57  ;;  %v6931_v57 = vld [vmem:[%s18535_s18 + $0xb68] sm:$0xff]  ;;  %v15308_v8 = vcombine.high %v6922_v35, %v6930_v7 }
0x17b9   : > { %v15310_v55 = vcombine.high %v6923_v15, %v6931_v57  ;;  %v15309_v61 = vcombine.low %v6923_v15, %v6931_v57  ;;  %v6987_v15 = vld [vmem:[%s18535_s18 + $0xd28] sm:$0xff] }
0x17ba   : > { %10013 = vmatpush1.bf16.msra.mxu0 %v15195_v6  ;;  %v6946_v6 = vld [vmem:[%s18535_s18 + $0xbe0] sm:$0xff]  ;;  %v6995_v57 = vld [vmem:[%s18535_s18 + $0xd68] sm:$0xff] }
0x17bb   : > { %10099 = vmatpush1.bf16.msra.mxu1 %v15197_v13  ;;  %10025 = vmatprep.subr.bf16.mxu0 %v15212_v42  ;;  %v6939_v13 = vld [vmem:[%s18535_s18 + $0xba8] sm:$0xff]  ;;  %v15324_v22 = vcombine.high %v6938_v1, %v6946_v6 }
0x17bc   : > { %10111 = vmatprep.subr.bf16.mxu1 %v15214_v14  ;;  %v6947_v42 = vld [vmem:[%s18535_s18 + $0xbe8] sm:$0xff] }
0x17bd   : > { %10015 = vmatmul.mubr.bf16.vlgmr.msra.gmra.mrb[72].mxu0 %v19742_v3 }
0x17be   : > { %10101 = vmatmul.mubr.bf16.vlgmr.msra.gmra.mrb[72].mxu1 %v19742_v3  ;;  %10026 = vmatpush1.bf16.msra.mxu0 %v15211_v56 }
0x17bf   : > { %10057 = vmatprep.mubr.bf16.mxu0 %v19758_v12  ;;  %10112 = vmatpush1.bf16.msra.mxu1 %v15213_v46 }
0x17c0   : > { %10143 = vmatprep.mubr.bf16.mxu1 %v19758_v12  ;;  %10027 = vmatprep.subr.bf16.mxu0 %v15228_v0  ;;  %v15307_v0 = vcombine.low %v6922_v35, %v6930_v7  ;;  %v6986_v35 = vld [vmem:[%s18535_s18 + $0xd20] sm:$0xff] }
0x17c1   : > { %10113 = vmatprep.subr.bf16.mxu1 %v15230_v23  ;;  %v15326_v23 = vcombine.high %v6939_v13, %v6947_v42  ;;  %v6994_v7 = vld [vmem:[%s18535_s18 + $0xd60] sm:$0xff] }
0x17c2   : > { %10028 = vmatpush1.bf16.msra.mxu0 %v15227_v40 }
0x17c3   : > { %10114 = vmatpush1.bf16.msra.mxu1 %v15229_v16  ;;  %10029 = vmatprep.subr.bf16.mxu0 %v15244_v51 }
0x17c4   : > { %10115 = vmatprep.subr.bf16.mxu1 %v15246_v45 }
0x17c6   : > { %10030 = vmatpush1.bf16.msra.mxu0 %v15243_v39  ;;  %v6954_v39 = vld [vmem:[%s18535_s18 + $0xc20] sm:$0xff] }
0x17c7   : > { %10116 = vmatpush1.bf16.msra.mxu1 %v15245_v32  ;;  %10031 = vmatprep.subr.bf16.mxu0 %v15260_v49  ;;  %v6962_v32 = vld [vmem:[%s18535_s18 + $0xc60] sm:$0xff] }
0x17c8   : > { %10117 = vmatprep.subr.bf16.mxu1 %v15262_v54 }
0x17ca   : > { %10032 = vmatpush1.bf16.msra.mxu0 %v15259_v47  ;;  %v15323_v47 = vcombine.low %v6938_v1, %v6946_v6  ;;  %v15357_v1 = vcombine.low %v6971_v36, %v6979_v37  ;;  %v7002_v6 = vld [vmem:[%s18535_s18 + $0xda0] sm:$0xff] }
0x17cb   : > { %10118 = vmatpush1.bf16.msra.mxu1 %v15261_v30  ;;  %10033 = vmatprep.subr.bf16.mxu0 %v15276_v58  ;;  %v15325_v30 = vcombine.low %v6939_v13, %v6947_v42  ;;  %v15340_v58 = vcombine.high %v6954_v39, %v6962_v32  ;;  %v7010_v13 = vld [vmem:[%s18535_s18 + $0xde0] sm:$0xff]  ;;  %v7003_v42 = vld [vmem:[%s18535_s18 + $0xda8] sm:$0xff] }
0x17cc   : > { %10119 = vmatprep.subr.bf16.mxu1 %v15278_v62  ;;  %v15342_v62 = vcombine.high %v6955_v28, %v6963_v4 }
0x17ce   : > { %10034 = vmatpush1.bf16.msra.mxu0 %v15275_v50  ;;  %v15339_v50 = vcombine.low %v6954_v39, %v6962_v32  ;;  %v7050_v39 = vld [vmem:[%s18535_s18 + $0xf20] sm:$0xff] }
0x17cf   : > { %10120 = vmatpush1.bf16.msra.mxu1 %v15277_v17  ;;  %10035 = vmatprep.subr.bf16.mxu0 %v15292_v60  ;;  %v15341_v17 = vcombine.low %v6955_v28, %v6963_v4  ;;  %v15356_v60 = vcombine.high %v6970_v19, %v6978_v21  ;;  %v7058_v32 = vld [vmem:[%s18535_s18 + $0xf60] sm:$0xff]  ;;  %v7051_v28 = vld [vmem:[%s18535_s18 + $0xf28] sm:$0xff] }
0x17d0   : > { %v9715_v14 = vpop.f32.mrb[64].mxu0  ;;  %v9801_v52 = vpop.f32.mrb[64].mxu1  ;;  %10121 = vmatprep.subr.bf16.mxu1 %v15294_v44  ;;  %v15358_v44 = vcombine.high %v6971_v36, %v6979_v37  ;;  %v7059_v4 = vld [vmem:[%s18535_s18 + $0xf68] sm:$0xff] }
0x17d1   : > { %v9717_v56 = vpop.f32.mrb[65].mxu0  ;;  %v9803_v11 = vpop.f32.mrb[65].mxu1  ;;  %v10326_v24 = vmax.f32 %v9715_v14, 0.0  ;;  %v10328_v63 = vmax.f32 %v9801_v52, 0.0  ;;  %v7011_v14 = vld [vmem:[%s18535_s18 + $0xde8] sm:$0xff]  ;;  %v15371_v52 = vcombine.low %v6986_v35, %v6994_v7 }
0x17d2   : > { %v9719_v53 = vpop.f32.mrb[66].mxu0  ;;  %v9805_v46 = vpop.f32.mrb[66].mxu1  ;;  %10036 = vmatpush1.bf16.msra.mxu0 %v15291_v43  ;;  %v10327_v26 = vmax.f32 %v9717_v56, 0.0  ;;  %v10329_v59 = vmax.f32 %v9803_v11, 0.0  ;;  %v15355_v43 = vcombine.low %v6970_v19, %v6978_v21  ;;  %v15388_v56 = vcombine.high %v7002_v6, %v7010_v13  ;;  %v7066_v19 = vld [vmem:[%s18535_s18 + $0xfa0] sm:$0xff]  ;;  %v7067_v36 = vld [vmem:[%s18535_s18 + $0xfa8] sm:$0xff] }
0x17d3   : > { %v10342_v40 = vmax.f32 %v9719_v53, 0.0  ;;  %v10344_v16 = vmax.f32 %v9805_v46, 0.0  ;;  %10122 = vmatpush1.bf16.msra.mxu1 %v15293_v5  ;;  %v9721_v51 = vpop.f32.mrb[67].mxu0  ;;  %v9807_v45 = vpop.f32.mrb[67].mxu1  ;;  %10037 = vmatprep.subr.bf16.mxu0 %v15308_v8  ;;  %v15372_v5 = vcombine.high %v6986_v35, %v6994_v7  ;;  %v15374_v8 = vcombine.high %v6987_v15, %v6995_v57  ;;  %v7018_v53 = vld [vmem:[%s18535_s18 + $0xe20] sm:$0xff]  ;;  %v7075_v37 = vld [vmem:[%s18535_s18 + $0xfe8] sm:$0xff] }
0x17d4   : > { %v10343_v34 = vmax.f32 %v9721_v51, 0.0  ;;  %v10345_v27 = vmax.f32 %v9807_v45, 0.0  ;;  %10123 = vmatprep.subr.bf16.mxu1 %v15310_v55  ;;  %v15373_v55 = vcombine.low %v6987_v15, %v6995_v57  ;;  %v15390_v11 = vcombine.high %v7003_v42, %v7011_v14  ;;  %v7026_v46 = vld [vmem:[%s18535_s18 + $0xe60] sm:$0xff]  ;;  %v7035_v51 = vld [vmem:[%s18535_s18 + $0xea8] sm:$0xff]  ;;  %v6572_v35 = vld [vmem:[%s18535_s18 + $0x30] sm:$0xff] }
0x17d5   : > { %v20068_v49 = vpack.c.bf16 %v10342_v40, %v10326_v24  ;;  %v20070_v54 = vpack.c.bf16 %v10344_v16, %v10328_v63  ;;  %v15404_v24 = vcombine.high %v7018_v53, %v7026_v46  ;;  %v7034_v40 = vld [vmem:[%s18535_s18 + $0xea0] sm:$0xff]  ;;  %v7043_v45 = vld [vmem:[%s18535_s18 + $0xee8] sm:$0xff]  ;;  %v6580_v7 = vld [vmem:[%s18535_s18 + $0x70] sm:$0xff] }
0x17d6   : > { %v20074_v9 = vpack.c.bf16 %v10343_v34, %v10327_v26  ;;  %v20076_v48 = vpack.c.bf16 %v10345_v27, %v10329_v59  ;;  %10038 = vmatpush1.bf16.msra.mxu0 %v15307_v0  ;;  %v7019_v0 = vld [vmem:[%s18535_s18 + $0xe28] sm:$0xff]  ;;  %v7042_v16 = vld [vmem:[%s18535_s18 + $0xee0] sm:$0xff]  ;;  %v15403_v26 = vcombine.low %v7018_v53, %v7026_v46  ;;  %v15422_v27 = vcombine.high %v7035_v51, %v7043_v45  ;;  %v6573_v15 = vld [vmem:[%s18535_s18 + $0x38] sm:$0xff] }
0x17d7   : > { %10124 = vmatpush1.bf16.msra.mxu1 %v15309_v61  ;;  %10039 = vmatprep.subr.bf16.mxu0 %v15324_v22  ;;  %v7027_v61 = vld [vmem:[%s18535_s18 + $0xe68] sm:$0xff]  ;;  %v15387_v22 = vcombine.low %v7002_v6, %v7010_v13  ;;  %v15420_v34 = vcombine.high %v7034_v40, %v7042_v16  ;;  %v7074_v21 = vld [vmem:[%s18535_s18 + $0xfe0] sm:$0xff]  ;;  %v6581_v57 = vld [vmem:[%s18535_s18 + $0x78] sm:$0xff] }
0x17d8   : > { %10125 = vmatprep.subr.bf16.mxu1 %v15326_v23  ;;  %v15389_v23 = vcombine.low %v7003_v42, %v7011_v14  ;;  %v15406_v63 = vcombine.high %v7019_v0, %v7027_v61  ;;  %v15405_v59 = vcombine.low %v7019_v0, %v7027_v61  ;;  %v6588_v6 = vld [vmem:[%s18535_s18 + $0xb0] sm:$0xff]  ;;  %v14959_v42 = vcombine.low %v6572_v35, %v6580_v7  ;;  %v6589_v14 = vld [vmem:[%s18535_s18 + $0xb8] sm:$0xff] }
0x17d9   : > { %v6596_v13 = vld [vmem:[%s18535_s18 + $0xf0] sm:$0xff]  ;;  %v6605_v0 = vld [vmem:[%s18535_s18 + $0x138] sm:$0xff] }
0x17da   : > { %10040 = vmatpush1.bf16.msra.mxu0 %v15323_v47  ;;  %v15419_v47 = vcombine.low %v7034_v40, %v7042_v16  ;;  %v6612_v53 = vld [vmem:[%s18535_s18 + $0x170] sm:$0xff]  ;;  %v6613_v61 = vld [vmem:[%s18535_s18 + $0x178] sm:$0xff] }
0x17db   : > { %10126 = vmatpush1.bf16.msra.mxu1 %v15325_v30  ;;  %10041 = vmatprep.subr.bf16.mxu0 %v15340_v58  ;;  %v15421_v30 = vcombine.low %v7035_v51, %v7043_v45  ;;  %v15436_v58 = vcombine.high %v7050_v39, %v7058_v32  ;;  %v6620_v40 = vld [vmem:[%s18535_s18 + $0x1b0] sm:$0xff]  ;;  %v6621_v51 = vld [vmem:[%s18535_s18 + $0x1b8] sm:$0xff] }
0x17dc   : > { %10127 = vmatprep.subr.bf16.mxu1 %v15342_v62  ;;  %v15438_v62 = vcombine.high %v7051_v28, %v7059_v4  ;;  %v6628_v16 = vld [vmem:[%s18535_s18 + $0x1f0] sm:$0xff]  ;;  %v6629_v45 = vld [vmem:[%s18535_s18 + $0x1f8] sm:$0xff] }
0x17de   : > { %10042 = vmatpush1.bf16.msra.mxu0 %v15339_v50  ;;  %v15435_v50 = vcombine.low %v7050_v39, %v7058_v32  ;;  %v6644_v39 = vld [vmem:[%s18535_s18 + $0x270] sm:$0xff]  ;;  %v6637_v32 = vld [vmem:[%s18535_s18 + $0x238] sm:$0xff] }
0x17df   : > { %10128 = vmatpush1.bf16.msra.mxu1 %v15341_v17  ;;  %10043 = vmatprep.subr.bf16.mxu0 %v15356_v60  ;;  %v15437_v17 = vcombine.low %v7051_v28, %v7059_v4  ;;  %v15452_v60 = vcombine.high %v7066_v19, %v7074_v21  ;;  %v6645_v28 = vld [vmem:[%s18535_s18 + $0x278] sm:$0xff]  ;;  %v15007_v4 = vcombine.low %v6620_v40, %v6628_v16 }
0x17e0   : > { %10129 = vmatprep.subr.bf16.mxu1 %v15358_v44  ;;  %v15454_v44 = vcombine.high %v7067_v36, %v7075_v37 }
0x17e2   : > { %10044 = vmatpush1.bf16.msra.mxu0 %v15355_v43  ;;  %v15451_v43 = vcombine.low %v7066_v19, %v7074_v21  ;;  %v6660_v19 = vld [vmem:[%s18535_s18 + $0x2f0] sm:$0xff]  ;;  %v6653_v21 = vld [vmem:[%s18535_s18 + $0x2b8] sm:$0xff] }
0x17e3   : > { %10130 = vmatpush1.bf16.msra.mxu1 %v15357_v1  ;;  %10045 = vmatprep.subr.bf16.mxu0 %v15372_v5  ;;  %v15453_v1 = vcombine.low %v7067_v36, %v7075_v37  ;;  %v14960_v5 = vcombine.high %v6572_v35, %v6580_v7  ;;  %v6661_v36 = vld [vmem:[%s18535_s18 + $0x2f8] sm:$0xff]  ;;  %v6676_v35 = vld [vmem:[%s18535_s18 + $0x370] sm:$0xff] }
0x17e4   : > { %10131 = vmatprep.subr.bf16.mxu1 %v15374_v8  ;;  %v14962_v8 = vcombine.high %v6573_v15, %v6581_v57  ;;  %v6669_v7 = vld [vmem:[%s18535_s18 + $0x338] sm:$0xff] }
0x17e6   : > { %10046 = vmatpush1.bf16.msra.mxu0 %v15371_v52  ;;  %v6597_v52 = vld [vmem:[%s18535_s18 + $0xf8] sm:$0xff] }
0x17e7   : > { %10132 = vmatpush1.bf16.msra.mxu1 %v15373_v55  ;;  %10047 = vmatprep.subr.bf16.mxu0 %v15388_v56  ;;  %v14961_v55 = vcombine.low %v6573_v15, %v6581_v57  ;;  %v14976_v56 = vcombine.high %v6588_v6, %v6596_v13  ;;  %v14978_v46 = vcombine.high %v6589_v14, %v6597_v52  ;;  %v6677_v15 = vld [vmem:[%s18535_s18 + $0x378] sm:$0xff] }
0x17e8   : > { %10133 = vmatprep.subr.bf16.mxu1 %v15390_v11  ;;  %v6604_v11 = vld [vmem:[%s18535_s18 + $0x130] sm:$0xff] }
0x17ea   : > { %10048 = vmatpush1.bf16.msra.mxu0 %v15387_v22  ;;  %v14975_v22 = vcombine.low %v6588_v6, %v6596_v13  ;;  %v6692_v6 = vld [vmem:[%s18535_s18 + $0x3f0] sm:$0xff]  ;;  %v6685_v13 = vld [vmem:[%s18535_s18 + $0x3b8] sm:$0xff] }
0x17eb   : > { %10134 = vmatpush1.bf16.msra.mxu1 %v15389_v23  ;;  %10049 = vmatprep.subr.bf16.mxu0 %v15404_v24  ;;  %v14977_v23 = vcombine.low %v6589_v14, %v6597_v52  ;;  %v14992_v24 = vcombine.high %v6604_v11, %v6612_v53  ;;  %v15057_v52 = vcombine.low %v6669_v7, %v6677_v15 }
0x17ec   : > { %10135 = vmatprep.subr.bf16.mxu1 %v15406_v63  ;;  %v14994_v63 = vcombine.high %v6605_v0, %v6613_v61 }
0x17ee   : > { %10050 = vmatpush1.bf16.msra.mxu0 %v15403_v26  ;;  %v14991_v26 = vcombine.low %v6604_v11, %v6612_v53  ;;  %v6700_v11 = vld [vmem:[%s18535_s18 + $0x430] sm:$0xff] }
0x17ef   : > { %10136 = vmatpush1.bf16.msra.mxu1 %v15405_v59  ;;  %10051 = vmatprep.subr.bf16.mxu0 %v15420_v34  ;;  %v14993_v59 = vcombine.low %v6605_v0, %v6613_v61  ;;  %v15008_v34 = vcombine.high %v6620_v40, %v6628_v16  ;;  %v6708_v53 = vld [vmem:[%s18535_s18 + $0x470] sm:$0xff]  ;;  %v6709_v0 = vld [vmem:[%s18535_s18 + $0x478] sm:$0xff] }
0x17f0   : > { %10137 = vmatprep.subr.bf16.mxu1 %v15422_v27  ;;  %v6636_v27 = vld [vmem:[%s18535_s18 + $0x230] sm:$0xff]  ;;  %v6717_v16 = vld [vmem:[%s18535_s18 + $0x4b8] sm:$0xff] }
0x17f1   : > { %v15023_v37 = vcombine.low %v6636_v27, %v6644_v39  ;;  %v6724_v40 = vld [vmem:[%s18535_s18 + $0x4f0] sm:$0xff] }
0x17f2   : > { %10052 = vmatpush1.bf16.msra.mxu0 %v15419_v47  ;;  %v15009_v47 = vcombine.low %v6621_v51, %v6629_v45 }
0x17f3   : > { %10138 = vmatpush1.bf16.msra.mxu1 %v15421_v30  ;;  %10053 = vmatprep.subr.bf16.mxu0 %v15436_v58  ;;  %v15024_v30 = vcombine.high %v6636_v27, %v6644_v39  ;;  %v15026_v58 = vcombine.high %v6637_v32, %v6645_v28  ;;  %v6740_v27 = vld [vmem:[%s18535_s18 + $0x570] sm:$0xff]  ;;  %v6733_v39 = vld [vmem:[%s18535_s18 + $0x538] sm:$0xff] }
0x17f4   : > { %10139 = vmatprep.subr.bf16.mxu1 %v15438_v62  ;;  %v6652_v62 = vld [vmem:[%s18535_s18 + $0x2b0] sm:$0xff] }
0x17f5   : > { %v15039_v57 = vcombine.low %v6652_v62, %v6660_v19 }
0x17f6   : > { %10054 = vmatpush1.bf16.msra.mxu0 %v15435_v50  ;;  %v15025_v50 = vcombine.low %v6637_v32, %v6645_v28  ;;  %v6741_v32 = vld [vmem:[%s18535_s18 + $0x578] sm:$0xff] }
0x17f7   : > { %10140 = vmatpush1.bf16.msra.mxu1 %v15437_v17  ;;  %10055 = vmatprep.subr.bf16.mxu0 %v15452_v60  ;;  %v15040_v17 = vcombine.high %v6652_v62, %v6660_v19  ;;  %v15042_v60 = vcombine.high %v6653_v21, %v6661_v36  ;;  %v6756_v62 = vld [vmem:[%s18535_s18 + $0x5f0] sm:$0xff]  ;;  %v6749_v19 = vld [vmem:[%s18535_s18 + $0x5b8] sm:$0xff] }
0x17f8   : > { %10141 = vmatprep.subr.bf16.mxu1 %v15454_v44  ;;  %v6668_v44 = vld [vmem:[%s18535_s18 + $0x330] sm:$0xff] }
0x17f9   : > { %v15055_v14 = vcombine.low %v6668_v44, %v6676_v35 }
0x17fa   : > { %10056 = vmatpush1.bf16.msra.mxu0 %v15451_v43  ;;  %v15041_v43 = vcombine.low %v6653_v21, %v6661_v36  ;;  %v6757_v21 = vld [vmem:[%s18535_s18 + $0x5f8] sm:$0xff] }
0x17fb   : > { %10142 = vmatpush1.bf16.msra.mxu1 %v15453_v1  ;;  %10154 = vmatprep.subr.bf16.mxu0 %v14960_v5  ;;  %v15056_v1 = vcombine.high %v6668_v44, %v6676_v35  ;;  %v15058_v5 = vcombine.high %v6669_v7, %v6677_v15  ;;  %v6772_v44 = vld [vmem:[%s18535_s18 + $0x670] sm:$0xff]  ;;  %v6765_v35 = vld [vmem:[%s18535_s18 + $0x638] sm:$0xff] }
0x17fc   : > { %10240 = vmatprep.subr.bf16.mxu1 %v14962_v8  ;;  %v6684_v8 = vld [vmem:[%s18535_s18 + $0x3b0] sm:$0xff]  ;;  %v6773_v7 = vld [vmem:[%s18535_s18 + $0x678] sm:$0xff] }
0x17fd   : > { %10058 = vmatmul.mubr.bf16.vlgmr.msra.gmra.mrb[72].mxu0 %v19832_v2  ;;  %v15071_v61 = vcombine.low %v6684_v8, %v6692_v6 }
0x17fe   : > { %10144 = vmatmul.mubr.bf16.vlgmr.msra.gmra.mrb[72].mxu1 %v19832_v2  ;;  %10155 = vmatpush1.bf16.msra.mxu0 %v14959_v42  ;;  %v6693_v42 = vld [vmem:[%s18535_s18 + $0x3f8] sm:$0xff] }
0x17ff   : > { %10186 = vmatprep.mubr.bf16.mxu0 %v19738_v25  ;;  %10241 = vmatpush1.bf16.msra.mxu1 %v14961_v55  ;;  %v15072_v55 = vcombine.high %v6684_v8, %v6692_v6  ;;  %v6788_v8 = vld [vmem:[%s18535_s18 + $0x6f0] sm:$0xff]  ;;  %v6781_v6 = vld [vmem:[%s18535_s18 + $0x6b8] sm:$0xff] }
0x1800   : > { %10272 = vmatprep.mubr.bf16.mxu1 %v19738_v25  ;;  %10156 = vmatprep.subr.bf16.mxu0 %v14976_v56  ;;  %v15010_v25 = vcombine.high %v6621_v51, %v6629_v45  ;;  %v15074_v56 = vcombine.high %v6685_v13, %v6693_v42  ;;  %v6725_v51 = vld [vmem:[%s18535_s18 + $0x4f8] sm:$0xff]  ;;  %v15087_v45 = vcombine.low %v6700_v11, %v6708_v53 }
0x1801   : > { %10242 = vmatprep.subr.bf16.mxu1 %v14978_v46  ;;  %v6701_v46 = vld [vmem:[%s18535_s18 + $0x438] sm:$0xff] }
0x1802   : > { %10157 = vmatpush1.bf16.msra.mxu0 %v14975_v22  ;;  %v15073_v22 = vcombine.low %v6685_v13, %v6693_v42  ;;  %v6789_v13 = vld [vmem:[%s18535_s18 + $0x6f8] sm:$0xff] }
0x1803   : > { %10243 = vmatpush1.bf16.msra.mxu1 %v14977_v23  ;;  %10158 = vmatprep.subr.bf16.mxu0 %v14992_v24  ;;  %v15088_v23 = vcombine.high %v6700_v11, %v6708_v53  ;;  %v15090_v24 = vcombine.high %v6701_v46, %v6709_v0  ;;  %v6804_v11 = vld [vmem:[%s18535_s18 + $0x770] sm:$0xff]  ;;  %v6797_v53 = vld [vmem:[%s18535_s18 + $0x738] sm:$0xff] }
0x1804   : > { %10244 = vmatprep.subr.bf16.mxu1 %v14994_v63  ;;  %v6716_v63 = vld [vmem:[%s18535_s18 + $0x4b0] sm:$0xff] }
0x1805   : > { %v15103_v28 = vcombine.low %v6716_v63, %v6724_v40 }
0x1806   : > { %10159 = vmatpush1.bf16.msra.mxu0 %v14991_v26  ;;  %v15089_v26 = vcombine.low %v6701_v46, %v6709_v0  ;;  %v6805_v46 = vld [vmem:[%s18535_s18 + $0x778] sm:$0xff] }
0x1807   : > { %10245 = vmatpush1.bf16.msra.mxu1 %v14993_v59  ;;  %10160 = vmatprep.subr.bf16.mxu0 %v15008_v34  ;;  %v15104_v59 = vcombine.high %v6716_v63, %v6724_v40  ;;  %v15106_v34 = vcombine.high %v6717_v16, %v6725_v51  ;;  %v6820_v63 = vld [vmem:[%s18535_s18 + $0x7f0] sm:$0xff]  ;;  %v6813_v40 = vld [vmem:[%s18535_s18 + $0x7b8] sm:$0xff] }
0x1808   : > { %10246 = vmatprep.subr.bf16.mxu1 %v15010_v25  ;;  %v6732_v25 = vld [vmem:[%s18535_s18 + $0x530] sm:$0xff] }
0x1809   : > { %v15119_v36 = vcombine.low %v6732_v25, %v6740_v27 }
0x180a   : > { %10161 = vmatpush1.bf16.msra.mxu0 %v15007_v4  ;;  %v15105_v4 = vcombine.low %v6717_v16, %v6725_v51  ;;  %v6821_v16 = vld [vmem:[%s18535_s18 + $0x7f8] sm:$0xff] }
0x180b   : > { %10247 = vmatpush1.bf16.msra.mxu1 %v15009_v47  ;;  %10162 = vmatprep.subr.bf16.mxu0 %v15024_v30  ;;  %v15120_v47 = vcombine.high %v6732_v25, %v6740_v27  ;;  %v15122_v30 = vcombine.high %v6733_v39, %v6741_v32  ;;  %v6836_v25 = vld [vmem:[%s18535_s18 + $0x870] sm:$0xff]  ;;  %v6829_v27 = vld [vmem:[%s18535_s18 + $0x838] sm:$0xff] }
0x180c   : > { %10248 = vmatprep.subr.bf16.mxu1 %v15026_v58  ;;  %v6748_v58 = vld [vmem:[%s18535_s18 + $0x5b0] sm:$0xff] }
0x180d   : > { %v15135_v15 = vcombine.low %v6748_v58, %v6756_v62 }
0x180e   : > { %10163 = vmatpush1.bf16.msra.mxu0 %v15023_v37  ;;  %v15121_v37 = vcombine.low %v6733_v39, %v6741_v32  ;;  %v6837_v39 = vld [vmem:[%s18535_s18 + $0x878] sm:$0xff] }
0x180f   : > { %10249 = vmatpush1.bf16.msra.mxu1 %v15025_v50  ;;  %10164 = vmatprep.subr.bf16.mxu0 %v15040_v17  ;;  %v15136_v50 = vcombine.high %v6748_v58, %v6756_v62  ;;  %v15138_v17 = vcombine.high %v6749_v19, %v6757_v21  ;;  %v6852_v58 = vld [vmem:[%s18535_s18 + $0x8f0] sm:$0xff] }
0x1810   : > { %10250 = vmatprep.subr.bf16.mxu1 %v15042_v60  ;;  %v6764_v60 = vld [vmem:[%s18535_s18 + $0x630] sm:$0xff] }
0x1811   : > { %v15151_v42 = vcombine.low %v6764_v60, %v6772_v44 }
0x1812   : > { %10165 = vmatpush1.bf16.msra.mxu0 %v15039_v57  ;;  %v15137_v57 = vcombine.low %v6749_v19, %v6757_v21  ;;  %v6845_v19 = vld [vmem:[%s18535_s18 + $0x8b8] sm:$0xff] }
0x1813   : > { %10251 = vmatpush1.bf16.msra.mxu1 %v15041_v43  ;;  %10166 = vmatprep.subr.bf16.mxu0 %v15056_v1  ;;  %v15152_v43 = vcombine.high %v6764_v60, %v6772_v44  ;;  %v15154_v1 = vcombine.high %v6765_v35, %v6773_v7  ;;  %v6853_v21 = vld [vmem:[%s18535_s18 + $0x8f8] sm:$0xff] }
0x1814   : > { %10252 = vmatprep.subr.bf16.mxu1 %v15058_v5  ;;  %v6780_v5 = vld [vmem:[%s18535_s18 + $0x6b0] sm:$0xff]  ;;  %v15234_v60 = vcombine.high %v6845_v19, %v6853_v21  ;;  %v6861_v44 = vld [vmem:[%s18535_s18 + $0x938] sm:$0xff] }
0x1815   : > { %v15167_v0 = vcombine.low %v6780_v5, %v6788_v8 }
0x1816   : > { %10167 = vmatpush1.bf16.msra.mxu0 %v15055_v14  ;;  %v15153_v14 = vcombine.low %v6765_v35, %v6773_v7  ;;  %v6869_v35 = vld [vmem:[%s18535_s18 + $0x978] sm:$0xff] }
0x1817   : > { %10253 = vmatpush1.bf16.msra.mxu1 %v15057_v52  ;;  %10168 = vmatprep.subr.bf16.mxu0 %v15072_v55  ;;  %v15168_v52 = vcombine.high %v6780_v5, %v6788_v8  ;;  %v15170_v55 = vcombine.high %v6781_v6, %v6789_v13  ;;  %v6884_v5 = vld [vmem:[%s18535_s18 + $0x9f0] sm:$0xff]  ;;  %v6877_v8 = vld [vmem:[%s18535_s18 + $0x9b8] sm:$0xff] }
0x1818   : > { %10254 = vmatprep.subr.bf16.mxu1 %v15074_v56  ;;  %v6796_v56 = vld [vmem:[%s18535_s18 + $0x730] sm:$0xff] }
0x1819   : > { %v15183_v51 = vcombine.low %v6796_v56, %v6804_v11 }
0x181a   : > { %10169 = vmatpush1.bf16.msra.mxu0 %v15071_v61  ;;  %v15169_v61 = vcombine.low %v6781_v6, %v6789_v13  ;;  %v15249_v13 = vcombine.low %v6861_v44, %v6869_v35 }
0x181b   : > { %10255 = vmatpush1.bf16.msra.mxu1 %v15073_v22  ;;  %10170 = vmatprep.subr.bf16.mxu0 %v15088_v23  ;;  %v15184_v22 = vcombine.high %v6796_v56, %v6804_v11  ;;  %v15186_v23 = vcombine.high %v6797_v53, %v6805_v46  ;;  %v6901_v56 = vld [vmem:[%s18535_s18 + $0xa78] sm:$0xff] }
0x181c   : > { %10256 = vmatprep.subr.bf16.mxu1 %v15090_v24  ;;  %v6812_v24 = vld [vmem:[%s18535_s18 + $0x7b0] sm:$0xff] }
0x181d   : > { %v15199_v32 = vcombine.low %v6812_v24, %v6820_v63 }
0x181e   : > { %10171 = vmatpush1.bf16.msra.mxu0 %v15087_v45  ;;  %v15185_v45 = vcombine.low %v6797_v53, %v6805_v46 }
0x181f   : > { %10257 = vmatpush1.bf16.msra.mxu1 %v15089_v26  ;;  %10172 = vmatprep.subr.bf16.mxu0 %v15104_v59  ;;  %v15200_v26 = vcombine.high %v6812_v24, %v6820_v63  ;;  %v15202_v59 = vcombine.high %v6813_v40, %v6821_v16  ;;  %v6917_v24 = vld [vmem:[%s18535_s18 + $0xaf8] sm:$0xff] }
0x1820   : > { %10258 = vmatprep.subr.bf16.mxu1 %v15106_v34  ;;  %v6828_v34 = vld [vmem:[%s18535_s18 + $0x830] sm:$0xff] }
0x1821   : > { %v15215_v62 = vcombine.low %v6828_v34, %v6836_v25 }
0x1822   : > { %10173 = vmatpush1.bf16.msra.mxu0 %v15103_v28  ;;  %v15201_v28 = vcombine.low %v6813_v40, %v6821_v16 }
0x1823   : > { %10259 = vmatpush1.bf16.msra.mxu1 %v15105_v4  ;;  %10174 = vmatprep.subr.bf16.mxu0 %v15120_v47  ;;  %v15216_v4 = vcombine.high %v6828_v34, %v6836_v25  ;;  %v15218_v47 = vcombine.high %v6829_v27, %v6837_v39  ;;  %v6933_v34 = vld [vmem:[%s18535_s18 + $0xb78] sm:$0xff] }
0x1824   : > { %10260 = vmatprep.subr.bf16.mxu1 %v15122_v30  ;;  %v6844_v30 = vld [vmem:[%s18535_s18 + $0x8b0] sm:$0xff] }
0x1825   : > { %v15231_v7 = vcombine.low %v6844_v30, %v6852_v58 }
0x1826   : > { %10175 = vmatpush1.bf16.msra.mxu0 %v15119_v36  ;;  %v15217_v36 = vcombine.low %v6829_v27, %v6837_v39 }
0x1827   : > { %10261 = vmatpush1.bf16.msra.mxu1 %v15121_v37  ;;  %10176 = vmatprep.subr.bf16.mxu0 %v15136_v50  ;;  %v15232_v37 = vcombine.high %v6844_v30, %v6852_v58  ;;  %v6860_v50 = vld [vmem:[%s18535_s18 + $0x930] sm:$0xff]  ;;  %v6941_v30 = vld [vmem:[%s18535_s18 + $0xbb8] sm:$0xff] }
0x1828   : > { %10262 = vmatprep.subr.bf16.mxu1 %v15138_v17  ;;  %v6868_v17 = vld [vmem:[%s18535_s18 + $0x970] sm:$0xff]  ;;  %v6949_v58 = vld [vmem:[%s18535_s18 + $0xbf8] sm:$0xff] }
0x1829   : > { %v15247_v6 = vcombine.low %v6860_v50, %v6868_v17 }
0x182a   : > { %10177 = vmatpush1.bf16.msra.mxu0 %v15135_v15  ;;  %v15233_v15 = vcombine.low %v6845_v19, %v6853_v21 }
0x182b   : > { %10263 = vmatpush1.bf16.msra.mxu1 %v15137_v57  ;;  %10178 = vmatprep.subr.bf16.mxu0 %v15152_v43  ;;  %v15248_v57 = vcombine.high %v6860_v50, %v6868_v17  ;;  %v15250_v43 = vcombine.high %v6861_v44, %v6869_v35 }
0x182c   : > { %10264 = vmatprep.subr.bf16.mxu1 %v15154_v1  ;;  %v6876_v1 = vld [vmem:[%s18535_s18 + $0x9b0] sm:$0xff] }
0x182d   : > { %v15263_v11 = vcombine.low %v6876_v1, %v6884_v5 }
0x182e   : > { %10179 = vmatpush1.bf16.msra.mxu0 %v15151_v42  ;;  %v15264_v42 = vcombine.high %v6876_v1, %v6884_v5 }
0x182f   : > { %10265 = vmatpush1.bf16.msra.mxu1 %v15153_v14  ;;  %10180 = vmatprep.subr.bf16.mxu0 %v15168_v52  ;;  %v6892_v14 = vld [vmem:[%s18535_s18 + $0xa30] sm:$0xff] }
0x1830   : > { %10266 = vmatprep.subr.bf16.mxu1 %v15170_v55  ;;  %v6900_v52 = vld [vmem:[%s18535_s18 + $0xa70] sm:$0xff]  ;;  %v6893_v55 = vld [vmem:[%s18535_s18 + $0xa38] sm:$0xff] }
0x1831   : > { %v15280_v46 = vcombine.high %v6892_v14, %v6900_v52  ;;  %v15279_v63 = vcombine.low %v6892_v14, %v6900_v52  ;;  %v15281_v40 = vcombine.low %v6893_v55, %v6901_v56  ;;  %v6957_v14 = vld [vmem:[%s18535_s18 + $0xc38] sm:$0xff] }
0x1832   : > { %10181 = vmatpush1.bf16.msra.mxu0 %v15167_v0  ;;  %v15282_v0 = vcombine.high %v6893_v55, %v6901_v56  ;;  %v6965_v52 = vld [vmem:[%s18535_s18 + $0xc78] sm:$0xff] }
0x1833   : > { %10267 = vmatpush1.bf16.msra.mxu1 %v15169_v61  ;;  %10182 = vmatprep.subr.bf16.mxu0 %v15184_v22  ;;  %v6908_v61 = vld [vmem:[%s18535_s18 + $0xab0] sm:$0xff] }
0x1834   : > { %10268 = vmatprep.subr.bf16.mxu1 %v15186_v23  ;;  %v6916_v22 = vld [vmem:[%s18535_s18 + $0xaf0] sm:$0xff]  ;;  %v6909_v23 = vld [vmem:[%s18535_s18 + $0xab8] sm:$0xff] }
0x1835   : > { %v15296_v16 = vcombine.high %v6908_v61, %v6916_v22  ;;  %v15295_v25 = vcombine.low %v6908_v61, %v6916_v22  ;;  %v15297_v27 = vcombine.low %v6909_v23, %v6917_v24  ;;  %v15346_v61 = vcombine.high %v6957_v14, %v6965_v52  ;;  %v6972_v22 = vld [vmem:[%s18535_s18 + $0xcb0] sm:$0xff] }
0x1836   : > { %10183 = vmatpush1.bf16.msra.mxu0 %v15183_v51  ;;  %v15298_v51 = vcombine.high %v6909_v23, %v6917_v24  ;;  %v6980_v23 = vld [vmem:[%s18535_s18 + $0xcf0] sm:$0xff]  ;;  %v6973_v24 = vld [vmem:[%s18535_s18 + $0xcb8] sm:$0xff] }
0x1837   : > { %10269 = vmatpush1.bf16.msra.mxu1 %v15185_v45  ;;  %10184 = vmatprep.subr.bf16.mxu0 %v15200_v26  ;;  %v6924_v45 = vld [vmem:[%s18535_s18 + $0xb30] sm:$0xff] }
0x1838   : > { %10270 = vmatprep.subr.bf16.mxu1 %v15202_v59  ;;  %v6932_v26 = vld [vmem:[%s18535_s18 + $0xb70] sm:$0xff]  ;;  %v6925_v59 = vld [vmem:[%s18535_s18 + $0xb38] sm:$0xff] }
0x1839   : > { %v15312_v39 = vcombine.high %v6924_v45, %v6932_v26  ;;  %v15313_v50 = vcombine.low %v6925_v59, %v6933_v34 }
0x183a   : > { %10185 = vmatpush1.bf16.msra.mxu0 %v15199_v32  ;;  %v6940_v32 = vld [vmem:[%s18535_s18 + $0xbb0] sm:$0xff] }
0x183b   : > { %10271 = vmatpush1.bf16.msra.mxu1 %v15201_v28  ;;  %10197 = vmatprep.subr.bf16.mxu0 %v15216_v4  ;;  %v15314_v4 = vcombine.high %v6925_v59, %v6933_v34  ;;  %v6996_v59 = vld [vmem:[%s18535_s18 + $0xd70] sm:$0xff]  ;;  %v6989_v34 = vld [vmem:[%s18535_s18 + $0xd38] sm:$0xff] }
0x183c   : > { %10283 = vmatprep.subr.bf16.mxu1 %v15218_v47  ;;  %v6948_v47 = vld [vmem:[%s18535_s18 + $0xbf0] sm:$0xff] }
0x183d   : > { %10187 = vmatmul.mubr.bf16.vlgmr.msra.gmra.mrb[76].mxu0 %v19742_v3 }
0x183e   : > { %10273 = vmatmul.mubr.bf16.vlgmr.msra.gmra.mrb[76].mxu1 %v19742_v3  ;;  %10198 = vmatpush1.bf16.msra.mxu0 %v15215_v62  ;;  %v6885_v3 = vld [vmem:[%s18535_s18 + $0x9f8] sm:$0xff] }
0x183f   : > { %10229 = vmatprep.mubr.bf16.mxu0 %v19758_v12  ;;  %10284 = vmatpush1.bf16.msra.mxu1 %v15217_v36  ;;  %v15265_v53 = vcombine.low %v6877_v8, %v6885_v3 }
0x1840   : > { %10315 = vmatprep.mubr.bf16.mxu1 %v19758_v12  ;;  %10199 = vmatprep.subr.bf16.mxu0 %v15232_v37  ;;  %v15266_v12 = vcombine.high %v6877_v8, %v6885_v3  ;;  %v15311_v37 = vcombine.low %v6924_v45, %v6932_v26  ;;  %v6988_v26 = vld [vmem:[%s18535_s18 + $0xd30] sm:$0xff] }
0x1841   : > { %10285 = vmatprep.subr.bf16.mxu1 %v15234_v60 }
0x1842   : > { %10200 = vmatpush1.bf16.msra.mxu0 %v15231_v7  ;;  %v15328_v7 = vcombine.high %v6940_v32, %v6948_v47 }
0x1843   : > { %10286 = vmatpush1.bf16.msra.mxu1 %v15233_v15  ;;  %10201 = vmatprep.subr.bf16.mxu0 %v15248_v57  ;;  %v15330_v15 = vcombine.high %v6941_v30, %v6949_v58  ;;  %v6956_v57 = vld [vmem:[%s18535_s18 + $0xc30] sm:$0xff] }
0x1844   : > { %10287 = vmatprep.subr.bf16.mxu1 %v15250_v43 }
0x1846   : > { %10202 = vmatpush1.bf16.msra.mxu0 %v15247_v6  ;;  %v6964_v6 = vld [vmem:[%s18535_s18 + $0xc70] sm:$0xff] }
0x1847   : > { %10288 = vmatpush1.bf16.msra.mxu1 %v15249_v13  ;;  %10203 = vmatprep.subr.bf16.mxu0 %v15264_v42 }
0x1848   : > { %10289 = vmatprep.subr.bf16.mxu1 %v15266_v12 }
0x184a   : > { %10204 = vmatpush1.bf16.msra.mxu0 %v15263_v11  ;;  %v15327_v11 = vcombine.low %v6940_v32, %v6948_v47  ;;  %v15376_v32 = vcombine.high %v6988_v26, %v6996_v59  ;;  %v7012_v47 = vld [vmem:[%s18535_s18 + $0xdf0] sm:$0xff] }
0x184b   : > { %10290 = vmatpush1.bf16.msra.mxu1 %v15265_v53  ;;  %10205 = vmatprep.subr.bf16.mxu0 %v15280_v46  ;;  %v15329_v46 = vcombine.low %v6941_v30, %v6949_v58  ;;  %v7005_v30 = vld [vmem:[%s18535_s18 + $0xdb8] sm:$0xff] }
0x184c   : > { %10291 = vmatprep.subr.bf16.mxu1 %v15282_v0  ;;  %v15344_v0 = vcombine.high %v6956_v57, %v6964_v6  ;;  %v7013_v58 = vld [vmem:[%s18535_s18 + $0xdf8] sm:$0xff] }
0x184e   : > { %10206 = vmatpush1.bf16.msra.mxu0 %v15279_v63  ;;  %v6981_v63 = vld [vmem:[%s18535_s18 + $0xcf8] sm:$0xff] }
0x184f   : > { %10292 = vmatpush1.bf16.msra.mxu1 %v15281_v40  ;;  %10207 = vmatprep.subr.bf16.mxu0 %v15296_v16  ;;  %v15343_v40 = vcombine.low %v6956_v57, %v6964_v6  ;;  %v15345_v16 = vcombine.low %v6957_v14, %v6965_v52  ;;  %v15362_v45 = vcombine.high %v6973_v24, %v6981_v63  ;;  %v7036_v57 = vld [vmem:[%s18535_s18 + $0xeb0] sm:$0xff]  ;;  %v7053_v52 = vld [vmem:[%s18535_s18 + $0xf38] sm:$0xff] }
0x1850   : > { %v9887_v28 = vpop.f32.mrb[68].mxu0  ;;  %10293 = vmatprep.subr.bf16.mxu1 %v15298_v51  ;;  %v15360_v51 = vcombine.high %v6972_v22, %v6980_v23  ;;  %v7060_v14 = vld [vmem:[%s18535_s18 + $0xf70] sm:$0xff] }
0x1851   : > { %v9973_v62 = vpop.f32.mrb[68].mxu1  ;;  %v9889_v19 = vpop.f32.mrb[69].mxu0  ;;  %v10330_v17 = vmax.f32 %v9887_v28, 0.0 }
0x1852   : > { %v9975_v21 = vpop.f32.mrb[69].mxu1  ;;  %v9891_v36 = vpop.f32.mrb[70].mxu0  ;;  %10208 = vmatpush1.bf16.msra.mxu0 %v15295_v25  ;;  %v10332_v43 = vmax.f32 %v9973_v62, 0.0  ;;  %v10331_v1 = vmax.f32 %v9889_v19, 0.0  ;;  %v6997_v25 = vld [vmem:[%s18535_s18 + $0xd78] sm:$0xff]  ;;  %v15375_v62 = vcombine.low %v6988_v26, %v6996_v59 }
0x1853   : > { %v10346_v60 = vmax.f32 %v9891_v36, 0.0  ;;  %v9977_v44 = vpop.f32.mrb[70].mxu1  ;;  %10294 = vmatpush1.bf16.msra.mxu1 %v15297_v27  ;;  %v9893_v35 = vpop.f32.mrb[71].mxu0  ;;  %10209 = vmatprep.subr.bf16.mxu0 %v15312_v39  ;;  %v10333_v13 = vmax.f32 %v9975_v21, 0.0  ;;  %v15359_v27 = vcombine.low %v6972_v22, %v6980_v23  ;;  %v15361_v39 = vcombine.low %v6973_v24, %v6981_v63  ;;  %v7068_v23 = vld [vmem:[%s18535_s18 + $0xfb0] sm:$0xff]  ;;  %v7069_v63 = vld [vmem:[%s18535_s18 + $0xfb8] sm:$0xff] }
0x1854   : > { %v10348_v5 = vmax.f32 %v9977_v44, 0.0  ;;  %v10347_v8 = vmax.f32 %v9893_v35, 0.0  ;;  %v9979_v3 = vpop.f32.mrb[71].mxu1  ;;  %10295 = vmatprep.subr.bf16.mxu1 %v15314_v4  ;;  %v15378_v28 = vcombine.high %v6989_v34, %v6997_v25  ;;  %v7004_v4 = vld [vmem:[%s18535_s18 + $0xdb0] sm:$0xff]  ;;  %v15377_v19 = vcombine.low %v6989_v34, %v6997_v25 }
0x1855   : > { %v20212_v42 = vpack.c.bf16 %v10346_v60, %v10330_v17  ;;  %v10349_v12 = vmax.f32 %v9979_v3, 0.0  ;;  %v15392_v21 = vcombine.high %v7004_v4, %v7012_v47  ;;  %v15394_v36 = vcombine.high %v7005_v30, %v7013_v58  ;;  %v7021_v17 = vld [vmem:[%s18535_s18 + $0xe38] sm:$0xff]  ;;  %v7076_v24 = vld [vmem:[%s18535_s18 + $0xff0] sm:$0xff] }
0x1856   : > { %v20216_v55 = vpack.c.bf16 %v10348_v5, %v10332_v43  ;;  %v20218_v56 = vpack.c.bf16 %v10347_v8, %v10331_v1  ;;  %10210 = vmatpush1.bf16.msra.mxu0 %v15311_v37  ;;  %v7020_v37 = vld [vmem:[%s18535_s18 + $0xe30] sm:$0xff]  ;;  %v7029_v60 = vld [vmem:[%s18535_s18 + $0xe78] sm:$0xff]  ;;  %v15391_v44 = vcombine.low %v7004_v4, %v7012_v47  ;;  %v15393_v35 = vcombine.low %v7005_v30, %v7013_v58 }
0x1857   : > { %v20220_v53 = vpack.c.bf16 %v10349_v12, %v10333_v13  ;;  %10296 = vmatpush1.bf16.msra.mxu1 %v15313_v50  ;;  %10211 = vmatprep.subr.bf16.mxu0 %v15328_v7  ;;  %v7028_v50 = vld [vmem:[%s18535_s18 + $0xe70] sm:$0xff]  ;;  %v7037_v1 = vld [vmem:[%s18535_s18 + $0xeb8] sm:$0xff]  ;;  %v15409_v3 = vcombine.low %v7021_v17, %v7029_v60  ;;  %v15455_v59 = vcombine.low %v7068_v23, %v7076_v24 }
0x1858   : > { %10297 = vmatprep.subr.bf16.mxu1 %v15330_v15  ;;  %v15408_v7 = vcombine.high %v7020_v37, %v7028_v50  ;;  %v15410_v15 = vcombine.high %v7021_v17, %v7029_v60  ;;  %v7044_v43 = vld [vmem:[%s18535_s18 + $0xef0] sm:$0xff]  ;;  %v7045_v5 = vld [vmem:[%s18535_s18 + $0xef8] sm:$0xff]  ;;  %v15407_v8 = vcombine.low %v7020_v37, %v7028_v50 }
0x1859   : > { %v15424_v6 = vcombine.high %v7036_v57, %v7044_v43  ;;  %v15426_v13 = vcombine.high %v7037_v1, %v7045_v5  ;;  %v7052_v12 = vld [vmem:[%s18535_s18 + $0xf30] sm:$0xff]  ;;  %v17230_v4 = vld [vmem:[%s18537_s13 + $0x2c] ss:$16 sps:$4 sm:$0xff]   ;;  %v17228_v30 = vld [vmem:[%s18537_s13 + $0x28] ss:$16 sps:$4 sm:$0xff]  }
0x185a   : > { %10212 = vmatpush1.bf16.msra.mxu0 %v15327_v11  ;;  %v7061_v11 = vld [vmem:[%s18535_s18 + $0xf78] sm:$0xff]  ;;  %v17221_v25 = vld [vmem:[%s18537_s13 + $0x4] ss:$16 sps:$4 sm:$0xff]   ;;  %v17225_v47 = vld [vmem:[%s18537_s13 + $0x20] ss:$16 sps:$4 sm:$0xff]  }
0x185b   : > { %10298 = vmatpush1.bf16.msra.mxu1 %v15329_v46  ;;  %10213 = vmatprep.subr.bf16.mxu0 %v15344_v0  ;;  %v15423_v46 = vcombine.low %v7036_v57, %v7044_v43  ;;  %v15425_v0 = vcombine.low %v7037_v1, %v7045_v5  ;;  %v15442_v22 = vcombine.high %v7053_v52, %v7061_v11  ;;  %v17233_v58 = vld [vmem:[%s18537_s13 + $0x44] ss:$16 sps:$4 sm:$0xff]   ;;  %v17240_v37 = vld [vmem:[%s18537_s13 + $0x68] ss:$16 sps:$4 sm:$0xff]   ;;  %v17248_v17 = vld [vmem:[%s18537_s13 + $0x8c] ss:$16 sps:$4 sm:$0xff]  }
0x185c   : > { %10299 = vmatprep.subr.bf16.mxu1 %v15346_v61  ;;  %v15440_v61 = vcombine.high %v7052_v12, %v7060_v14  ;;  %v17245_v50 = vld [vmem:[%s18537_s13 + $0x84] ss:$16 sps:$4 sm:$0xff]   ;;  %v17243_v60 = vld [vmem:[%s18537_s13 + $0x80] ss:$16 sps:$4 sm:$0xff]   ;;  %v17252_v57 = vld [vmem:[%s18537_s13 + $0xa8] ss:$16 sps:$4 sm:$0xff]  }
0x185d   : > { %v17257_v43 = vld [vmem:[%s18537_s13 + $0xc4] ss:$16 sps:$4 sm:$0xff]   ;;  %v17260_v1 = vld [vmem:[%s18537_s13 + $0xcc] ss:$16 sps:$4 sm:$0xff]   ;;  %v17255_v5 = vld [vmem:[%s18537_s13 + $0xc0] ss:$16 sps:$4 sm:$0xff]  }
0x185e   : > { %10214 = vmatpush1.bf16.msra.mxu0 %v15343_v40  ;;  %v7077_v40 = vld [vmem:[%s18535_s18 + $0xff8] sm:$0xff] }
0x185f   : > { %10300 = vmatpush1.bf16.msra.mxu1 %v15345_v16  ;;  %10215 = vmatprep.subr.bf16.mxu0 %v15360_v51  ;;  %v15439_v16 = vcombine.low %v7052_v12, %v7060_v14  ;;  %v15441_v51 = vcombine.low %v7053_v52, %v7061_v11  ;;  %v15458_v26 = vcombine.high %v7069_v63, %v7077_v40  ;;  %v17264_v12 = vld [vmem:[%s18537_s13 + $0xe8] ss:$16 sps:$4 sm:$0xff]   ;;  %v17269_v14 = vld [vmem:[%s18537_s13 + $0x104] ss:$16 sps:$4 sm:$0xff]   ;;  %v17272_v52 = vld [vmem:[%s18537_s13 + $0x10c] ss:$16 sps:$4 sm:$0xff]  }
0x1860   : > { %10301 = vmatprep.subr.bf16.mxu1 %v15362_v45  ;;  %v15456_v45 = vcombine.high %v7068_v23, %v7076_v24  ;;  %v15457_v34 = vcombine.low %v7069_v63, %v7077_v40  ;;  %v17267_v11 = vld [vmem:[%s18537_s13 + $0x100] ss:$16 sps:$4 sm:$0xff]   ;;  %v17276_v23 = vld [vmem:[%s18537_s13 + $0x128] ss:$16 sps:$4 sm:$0xff]   ;;  %v17281_v24 = vld [vmem:[%s18537_s13 + $0x144] ss:$16 sps:$4 sm:$0xff]  }
0x1861   : > { %v17284_v63 = vld [vmem:[%s18537_s13 + $0x14c] ss:$16 sps:$4 sm:$0xff]   ;;  %v17279_v40 = vld [vmem:[%s18537_s13 + $0x140] ss:$16 sps:$4 sm:$0xff]  }
0x1862   : > { %10216 = vmatpush1.bf16.msra.mxu0 %v15359_v27  ;;  %v17224_v27 = vld [vmem:[%s18537_s13 + $0xc] ss:$16 sps:$4 sm:$0xff]  }
0x1863   : > { %10302 = vmatpush1.bf16.msra.mxu1 %v15361_v39  ;;  %10217 = vmatprep.subr.bf16.mxu0 %v15376_v32  ;;  %v17219_v39 = vld [vmem:[%s18537_s13] ss:$16 sps:$4 sm:$0xff]   ;;  %v17222_v32 = vld [vmem:[%s18537_s13 + $0x8] ss:$16 sps:$4 sm:$0xff]  }
0x1864   : > { %10303 = vmatprep.subr.bf16.mxu1 %v15378_v28  ;;  %v17227_v28 = vld [vmem:[%s18537_s13 + $0x24] ss:$16 sps:$4 sm:$0xff]  }
0x1866   : > { %10218 = vmatpush1.bf16.msra.mxu0 %v15375_v62  ;;  %v17236_v62 = vld [vmem:[%s18537_s13 + $0x4c] ss:$16 sps:$4 sm:$0xff]  }
0x1867   : > { %10304 = vmatpush1.bf16.msra.mxu1 %v15377_v19  ;;  %10219 = vmatprep.subr.bf16.mxu0 %v15392_v21  ;;  %v17234_v19 = vld [vmem:[%s18537_s13 + $0x48] ss:$16 sps:$4 sm:$0xff]   ;;  %v17239_v21 = vld [vmem:[%s18537_s13 + $0x64] ss:$16 sps:$4 sm:$0xff]  }
0x1868   : > { %10305 = vmatprep.subr.bf16.mxu1 %v15394_v36  ;;  %v17242_v36 = vld [vmem:[%s18537_s13 + $0x6c] ss:$16 sps:$4 sm:$0xff]  }
0x186a   : > { %10220 = vmatpush1.bf16.msra.mxu0 %v15391_v44  ;;  %v17246_v44 = vld [vmem:[%s18537_s13 + $0x88] ss:$16 sps:$4 sm:$0xff]  }
0x186b   : > { %10306 = vmatpush1.bf16.msra.mxu1 %v15393_v35  ;;  %10221 = vmatprep.subr.bf16.mxu0 %v15408_v7  ;;  %v17251_v35 = vld [vmem:[%s18537_s13 + $0xa4] ss:$16 sps:$4 sm:$0xff]   ;;  %v17254_v7 = vld [vmem:[%s18537_s13 + $0xac] ss:$16 sps:$4 sm:$0xff]  }
0x186c   : > { %10307 = vmatprep.subr.bf16.mxu1 %v15410_v15  ;;  %v17249_v15 = vld [vmem:[%s18537_s13 + $0xa0] ss:$16 sps:$4 sm:$0xff]  }
0x186e   : > { %10222 = vmatpush1.bf16.msra.mxu0 %v15407_v8  ;;  %v17258_v8 = vld [vmem:[%s18537_s13 + $0xc8] ss:$16 sps:$4 sm:$0xff]  }
0x186f   : > { %10308 = vmatpush1.bf16.msra.mxu1 %v15409_v3  ;;  %10223 = vmatprep.subr.bf16.mxu0 %v15424_v6  ;;  %v17263_v3 = vld [vmem:[%s18537_s13 + $0xe4] ss:$16 sps:$4 sm:$0xff]   ;;  %v17266_v6 = vld [vmem:[%s18537_s13 + $0xec] ss:$16 sps:$4 sm:$0xff]  }
0x1870   : > { %10309 = vmatprep.subr.bf16.mxu1 %v15426_v13  ;;  %v17261_v13 = vld [vmem:[%s18537_s13 + $0xe0] ss:$16 sps:$4 sm:$0xff]  }
0x1872   : > { %10224 = vmatpush1.bf16.msra.mxu0 %v15423_v46  ;;  %v17270_v46 = vld [vmem:[%s18537_s13 + $0x108] ss:$16 sps:$4 sm:$0xff]  }
0x1873   : > { %10310 = vmatpush1.bf16.msra.mxu1 %v15425_v0  ;;  %10225 = vmatprep.subr.bf16.mxu0 %v15440_v61  ;;  %v17275_v0 = vld [vmem:[%s18537_s13 + $0x124] ss:$16 sps:$4 sm:$0xff]   ;;  %v17278_v61 = vld [vmem:[%s18537_s13 + $0x12c] ss:$16 sps:$4 sm:$0xff]  }
0x1874   : > { %10311 = vmatprep.subr.bf16.mxu1 %v15442_v22  ;;  %v17273_v22 = vld [vmem:[%s18537_s13 + $0x120] ss:$16 sps:$4 sm:$0xff]  }
0x1876   : > { %10226 = vmatpush1.bf16.msra.mxu0 %v15439_v16  ;;  %v17282_v16 = vld [vmem:[%s18537_s13 + $0x148] ss:$16 sps:$4 sm:$0xff]  }
0x1877   : > { %10312 = vmatpush1.bf16.msra.mxu1 %v15441_v51  ;;  %10227 = vmatprep.subr.bf16.mxu0 %v15456_v45  ;;  %v17287_v51 = vld [vmem:[%s18537_s13 + $0x164] ss:$16 sps:$4 sm:$0xff]   ;;  %v17290_v45 = vld [vmem:[%s18537_s13 + $0x16c] ss:$16 sps:$4 sm:$0xff]  }
0x1878   : > { %10313 = vmatprep.subr.bf16.mxu1 %v15458_v26  ;;  %v17285_v26 = vld [vmem:[%s18537_s13 + $0x160] ss:$16 sps:$4 sm:$0xff]  }
0x187a   : > { %10228 = vmatpush1.bf16.msra.mxu0 %v15455_v59  ;;  %v17288_v59 = vld [vmem:[%s18537_s13 + $0x168] ss:$16 sps:$4 sm:$0xff]  }
0x187b   : > { %10314 = vmatpush1.bf16.msra.mxu1 %v15457_v34  ;;  %13446 = vmatprep.subr.bf16.mxu0 %v17221_v25  ;;  %v17293_v34 = vld [vmem:[%s18537_s13 + $0x184] ss:$16 sps:$4 sm:$0xff]   ;;  %v17296_v25 = vld [vmem:[%s18537_s13 + $0x18c] ss:$16 sps:$4 sm:$0xff]  }
0x187c   : > { %13790 = vmatprep.subr.bf16.mxu1 %v17224_v27  ;;  %v17291_v27 = vld [vmem:[%s18537_s13 + $0x180] ss:$16 sps:$4 sm:$0xff]  }
0x187d   : > { %10230 = vmatmul.mubr.bf16.vlgmr.msra.gmra.mrb[76].mxu0 %v19832_v2 }
0x187e   : > { %10316 = vmatmul.mubr.bf16.vlgmr.msra.gmra.mrb[76].mxu1 %v19832_v2  ;;  %13447 = vmatpush1.bf16.msra.mxu0 %v17219_v39  ;;  %v17231_v2 = vld [vmem:[%s18537_s13 + $0x40] ss:$16 sps:$4 sm:$0xff]   ;;  %v17294_v39 = vld [vmem:[%s18537_s13 + $0x188] ss:$16 sps:$4 sm:$0xff]  }
0x187f   : > { %13478 = vmatprep.mubr.bf16.mxu0 %v20074_v9  ;;  %13791 = vmatpush1.bf16.msra.mxu1 %v17222_v32  ;;  %v17299_v32 = vld [vmem:[%s18537_s13 + $0x1a4] ss:$16 sps:$4 sm:$0xff]  }
0x1880   : > { %13822 = vmatprep.mubr.bf16.mxu1 %v20074_v9  ;;  %13448 = vmatprep.subr.bf16.mxu0 %v17227_v28  ;;  %v17237_v9 = vld [vmem:[%s18537_s13 + $0x60] ss:$16 sps:$4 sm:$0xff]   ;;  %v17302_v28 = vld [vmem:[%s18537_s13 + $0x1ac] ss:$16 sps:$4 sm:$0xff]  }
0x1881   : > { %13792 = vmatprep.subr.bf16.mxu1 %v17230_v4  ;;  %v17297_v4 = vld [vmem:[%s18537_s13 + $0x1a0] ss:$16 sps:$4 sm:$0xff]  }
0x1882   : > { %13449 = vmatpush1.bf16.msra.mxu0 %v17225_v47  ;;  %v17300_v47 = vld [vmem:[%s18537_s13 + $0x1a8] ss:$16 sps:$4 sm:$0xff]  }
0x1883   : > { %13793 = vmatpush1.bf16.msra.mxu1 %v17228_v30  ;;  %13450 = vmatprep.subr.bf16.mxu0 %v17233_v58  ;;  %v17305_v30 = vld [vmem:[%s18537_s13 + $0x1c4] ss:$16 sps:$4 sm:$0xff]   ;;  %v17308_v58 = vld [vmem:[%s18537_s13 + $0x1cc] ss:$16 sps:$4 sm:$0xff]  }
0x1884   : > { %13794 = vmatprep.subr.bf16.mxu1 %v17236_v62  ;;  %v17303_v62 = vld [vmem:[%s18537_s13 + $0x1c0] ss:$16 sps:$4 sm:$0xff]  }
0x1886   : > { %13451 = vmatpush1.bf16.msra.mxu0 %v17231_v2  ;;  %v17306_v2 = vld [vmem:[%s18537_s13 + $0x1c8] ss:$16 sps:$4 sm:$0xff]  }
0x1887   : > { %13795 = vmatpush1.bf16.msra.mxu1 %v17234_v19  ;;  %13452 = vmatprep.subr.bf16.mxu0 %v17239_v21  ;;  %v17311_v19 = vld [vmem:[%s18537_s13 + $0x1e4] ss:$16 sps:$4 sm:$0xff]   ;;  %v17314_v21 = vld [vmem:[%s18537_s13 + $0x1ec] ss:$16 sps:$4 sm:$0xff]  }
0x1888   : > { %13796 = vmatprep.subr.bf16.mxu1 %v17242_v36  ;;  %v17309_v36 = vld [vmem:[%s18537_s13 + $0x1e0] ss:$16 sps:$4 sm:$0xff]  }
0x188a   : > { %13453 = vmatpush1.bf16.msra.mxu0 %v17237_v9  ;;  %v17312_v9 = vld [vmem:[%s18537_s13 + $0x1e8] ss:$16 sps:$4 sm:$0xff]  }
0x188b   : > { %13797 = vmatpush1.bf16.msra.mxu1 %v17240_v37  ;;  %13454 = vmatprep.subr.bf16.mxu0 %v17245_v50  ;;  %v17317_v37 = vld [vmem:[%s18537_s13 + $0x204] ss:$16 sps:$4 sm:$0xff]   ;;  %v17320_v50 = vld [vmem:[%s18537_s13 + $0x20c] ss:$16 sps:$4 sm:$0xff]  }
0x188c   : > { %13798 = vmatprep.subr.bf16.mxu1 %v17248_v17  ;;  %v17315_v17 = vld [vmem:[%s18537_s13 + $0x200] ss:$16 sps:$4 sm:$0xff]  }
0x188e   : > { %13455 = vmatpush1.bf16.msra.mxu0 %v17243_v60  ;;  %v17318_v60 = vld [vmem:[%s18537_s13 + $0x208] ss:$16 sps:$4 sm:$0xff]  }
0x188f   : > { %13799 = vmatpush1.bf16.msra.mxu1 %v17246_v44  ;;  %13456 = vmatprep.subr.bf16.mxu0 %v17251_v35  ;;  %v17323_v44 = vld [vmem:[%s18537_s13 + $0x224] ss:$16 sps:$4 sm:$0xff]   ;;  %v17326_v35 = vld [vmem:[%s18537_s13 + $0x22c] ss:$16 sps:$4 sm:$0xff]  }
0x1890   : > { %13800 = vmatprep.subr.bf16.mxu1 %v17254_v7  ;;  %v17321_v7 = vld [vmem:[%s18537_s13 + $0x220] ss:$16 sps:$4 sm:$0xff]  }
0x1892   : > { %13457 = vmatpush1.bf16.msra.mxu0 %v17249_v15  ;;  %v17324_v15 = vld [vmem:[%s18537_s13 + $0x228] ss:$16 sps:$4 sm:$0xff]  }
0x1893   : > { %13801 = vmatpush1.bf16.msra.mxu1 %v17252_v57  ;;  %13458 = vmatprep.subr.bf16.mxu0 %v17257_v43  ;;  %v17329_v57 = vld [vmem:[%s18537_s13 + $0x244] ss:$16 sps:$4 sm:$0xff]   ;;  %v17332_v43 = vld [vmem:[%s18537_s13 + $0x24c] ss:$16 sps:$4 sm:$0xff]  }
0x1894   : > { %13802 = vmatprep.subr.bf16.mxu1 %v17260_v1  ;;  %v17330_v1 = vld [vmem:[%s18537_s13 + $0x248] ss:$16 sps:$4 sm:$0xff]  }
0x1896   : > { %13459 = vmatpush1.bf16.msra.mxu0 %v17255_v5  ;;  %v17335_v5 = vld [vmem:[%s18537_s13 + $0x264] ss:$16 sps:$4 sm:$0xff]  }
0x1897   : > { %13803 = vmatpush1.bf16.msra.mxu1 %v17258_v8  ;;  %13460 = vmatprep.subr.bf16.mxu0 %v17263_v3  ;;  %v17338_v8 = vld [vmem:[%s18537_s13 + $0x26c] ss:$16 sps:$4 sm:$0xff]   ;;  %v17336_v3 = vld [vmem:[%s18537_s13 + $0x268] ss:$16 sps:$4 sm:$0xff]  }
0x1898   : > { %13804 = vmatprep.subr.bf16.mxu1 %v17266_v6  ;;  %v17341_v6 = vld [vmem:[%s18537_s13 + $0x284] ss:$16 sps:$4 sm:$0xff]  }
0x189a   : > { %13461 = vmatpush1.bf16.msra.mxu0 %v17261_v13  ;;  %v17344_v13 = vld [vmem:[%s18537_s13 + $0x28c] ss:$16 sps:$4 sm:$0xff]  }
0x189b   : > { %13805 = vmatpush1.bf16.msra.mxu1 %v17264_v12  ;;  %13462 = vmatprep.subr.bf16.mxu0 %v17269_v14  ;;  %v17339_v12 = vld [vmem:[%s18537_s13 + $0x280] ss:$16 sps:$4 sm:$0xff]   ;;  %v17342_v14 = vld [vmem:[%s18537_s13 + $0x288] ss:$16 sps:$4 sm:$0xff]  }
0x189c   : > { %13806 = vmatprep.subr.bf16.mxu1 %v17272_v52  ;;  %v17347_v52 = vld [vmem:[%s18537_s13 + $0x2a4] ss:$16 sps:$4 sm:$0xff]  }
0x189e   : > { %13463 = vmatpush1.bf16.msra.mxu0 %v17267_v11  ;;  %v17350_v11 = vld [vmem:[%s18537_s13 + $0x2ac] ss:$16 sps:$4 sm:$0xff]  }
0x189f   : > { %13807 = vmatpush1.bf16.msra.mxu1 %v17270_v46  ;;  %13464 = vmatprep.subr.bf16.mxu0 %v17275_v0  ;;  %v17345_v46 = vld [vmem:[%s18537_s13 + $0x2a0] ss:$16 sps:$4 sm:$0xff]   ;;  %v17348_v0 = vld [vmem:[%s18537_s13 + $0x2a8] ss:$16 sps:$4 sm:$0xff]  }
0x18a0   : > { %13808 = vmatprep.subr.bf16.mxu1 %v17278_v61  ;;  %v17353_v61 = vld [vmem:[%s18537_s13 + $0x2c4] ss:$16 sps:$4 sm:$0xff]  }
0x18a2   : > { %13465 = vmatpush1.bf16.msra.mxu0 %v17273_v22 }
0x18a3   : > { %13809 = vmatpush1.bf16.msra.mxu1 %v17276_v23  ;;  %13466 = vmatprep.subr.bf16.mxu0 %v17281_v24  ;;  %v17356_v23 = vld [vmem:[%s18537_s13 + $0x2cc] ss:$16 sps:$4 sm:$0xff]  }
0x18a4   : > { %13810 = vmatprep.subr.bf16.mxu1 %v17284_v63 }
0x18a6   : > { %13467 = vmatpush1.bf16.msra.mxu0 %v17279_v40  ;;  %v17351_v40 = vld [vmem:[%s18537_s13 + $0x2c0] ss:$16 sps:$4 sm:$0xff]  }
0x18a7   : > { %13811 = vmatpush1.bf16.msra.mxu1 %v17282_v16  ;;  %13468 = vmatprep.subr.bf16.mxu0 %v17287_v51 }
0x18a8   : > { %13812 = vmatprep.subr.bf16.mxu1 %v17290_v45  ;;  %v17354_v45 = vld [vmem:[%s18537_s13 + $0x2c8] ss:$16 sps:$4 sm:$0xff]  }
0x18aa   : > { %13469 = vmatpush1.bf16.msra.mxu0 %v17285_v26  ;;  %v17359_v26 = vld [vmem:[%s18537_s13 + $0x2e4] ss:$16 sps:$4 sm:$0xff]  }
0x18ab   : > { %13813 = vmatpush1.bf16.msra.mxu1 %v17288_v59  ;;  %13470 = vmatprep.subr.bf16.mxu0 %v17293_v34 }
0x18ac   : > { %13814 = vmatprep.subr.bf16.mxu1 %v17296_v25 }
0x18ae   : > { %13471 = vmatpush1.bf16.msra.mxu0 %v17291_v27 }
0x18af   : > { %13815 = vmatpush1.bf16.msra.mxu1 %v17294_v39  ;;  %13472 = vmatprep.subr.bf16.mxu0 %v17299_v32  ;;  %v17362_v39 = vld [vmem:[%s18537_s13 + $0x2ec] ss:$16 sps:$4 sm:$0xff]  }
0x18b0   : > { %13816 = vmatprep.subr.bf16.mxu1 %v17302_v28 }
0x18b2   : > { %13473 = vmatpush1.bf16.msra.mxu0 %v17297_v4 }
0x18b3   : > { %13817 = vmatpush1.bf16.msra.mxu1 %v17300_v47  ;;  %13474 = vmatprep.subr.bf16.mxu0 %v17305_v30 }
0x18b4   : > { %13818 = vmatprep.subr.bf16.mxu1 %v17308_v58 }
0x18b6   : > { %13475 = vmatpush1.bf16.msra.mxu0 %v17303_v62 }
0x18b7   : > { %13819 = vmatpush1.bf16.msra.mxu1 %v17306_v2  ;;  %13476 = vmatprep.subr.bf16.mxu0 %v17311_v19 }
0x18b8   : > { %13820 = vmatprep.subr.bf16.mxu1 %v17314_v21 }
0x18ba   : > { %13477 = vmatpush1.bf16.msra.mxu0 %v17309_v36  ;;  %v17357_v36 = vld [vmem:[%s18537_s13 + $0x2e0] ss:$16 sps:$4 sm:$0xff]  }
0x18bb   : > { %13821 = vmatpush1.bf16.msra.mxu1 %v17312_v9  ;;  %13489 = vmatprep.subr.bf16.mxu0 %v17317_v37  ;;  %v17360_v37 = vld [vmem:[%s18537_s13 + $0x2e8] ss:$16 sps:$4 sm:$0xff]  }
0x18bc   : > { %13833 = vmatprep.subr.bf16.mxu1 %v17320_v50  ;;  %v17365_v50 = vld [vmem:[%s18537_s13 + $0x304] ss:$16 sps:$4 sm:$0xff]  }
0x18bd   : > { %13479 = vmatmul.mubr.bf16.vlgmr.msra.gmra.mrb[80].mxu0 %v20068_v49 }
0x18be   : > { %13823 = vmatmul.mubr.bf16.vlgmr.msra.gmra.mrb[80].mxu1 %v20068_v49  ;;  %13490 = vmatpush1.bf16.msra.mxu0 %v17315_v17  ;;  %v17327_v49 = vld [vmem:[%s18537_s13 + $0x240] ss:$16 sps:$4 sm:$0xff]   ;;  %v17368_v17 = vld [vmem:[%s18537_s13 + $0x30c] ss:$16 sps:$4 sm:$0xff]  }
0x18bf   : > { %13521 = vmatprep.mubr.bf16.mxu0 %v20076_v48  ;;  %13834 = vmatpush1.bf16.msra.mxu1 %v17318_v60  ;;  %v17363_v60 = vld [vmem:[%s18537_s13 + $0x300] ss:$16 sps:$4 sm:$0xff]  }
0x18c0   : > { %13865 = vmatprep.mubr.bf16.mxu1 %v20076_v48  ;;  %13491 = vmatprep.subr.bf16.mxu0 %v17323_v44  ;;  %v17333_v48 = vld [vmem:[%s18537_s13 + $0x260] ss:$16 sps:$4 sm:$0xff]   ;;  %v17366_v44 = vld [vmem:[%s18537_s13 + $0x308] ss:$16 sps:$4 sm:$0xff]  }
0x18c1   : > { %13835 = vmatprep.subr.bf16.mxu1 %v17326_v35  ;;  %v17371_v35 = vld [vmem:[%s18537_s13 + $0x324] ss:$16 sps:$4 sm:$0xff]  }
0x18c2   : > { %13492 = vmatpush1.bf16.msra.mxu0 %v17321_v7  ;;  %v17374_v7 = vld [vmem:[%s18537_s13 + $0x32c] ss:$16 sps:$4 sm:$0xff]  }
0x18c3   : > { %13836 = vmatpush1.bf16.msra.mxu1 %v17324_v15  ;;  %13493 = vmatprep.subr.bf16.mxu0 %v17329_v57  ;;  %v17369_v15 = vld [vmem:[%s18537_s13 + $0x320] ss:$16 sps:$4 sm:$0xff]   ;;  %v17372_v57 = vld [vmem:[%s18537_s13 + $0x328] ss:$16 sps:$4 sm:$0xff]  }
0x18c4   : > { %13837 = vmatprep.subr.bf16.mxu1 %v17332_v43  ;;  %v17377_v43 = vld [vmem:[%s18537_s13 + $0x344] ss:$16 sps:$4 sm:$0xff]  }
0x18c6   : > { %13494 = vmatpush1.bf16.msra.mxu0 %v17327_v49  ;;  %v17380_v49 = vld [vmem:[%s18537_s13 + $0x34c] ss:$16 sps:$4 sm:$0xff]  }
0x18c7   : > { %13838 = vmatpush1.bf16.msra.mxu1 %v17330_v1  ;;  %13495 = vmatprep.subr.bf16.mxu0 %v17335_v5  ;;  %v17375_v1 = vld [vmem:[%s18537_s13 + $0x340] ss:$16 sps:$4 sm:$0xff]   ;;  %v17378_v5 = vld [vmem:[%s18537_s13 + $0x348] ss:$16 sps:$4 sm:$0xff]  }
0x18c8   : > { %13839 = vmatprep.subr.bf16.mxu1 %v17338_v8  ;;  %v17383_v8 = vld [vmem:[%s18537_s13 + $0x364] ss:$16 sps:$4 sm:$0xff]  }
0x18ca   : > { %13496 = vmatpush1.bf16.msra.mxu0 %v17333_v48  ;;  %v17386_v48 = vld [vmem:[%s18537_s13 + $0x36c] ss:$16 sps:$4 sm:$0xff]  }
0x18cb   : > { %13840 = vmatpush1.bf16.msra.mxu1 %v17336_v3  ;;  %13497 = vmatprep.subr.bf16.mxu0 %v17341_v6  ;;  %v17381_v3 = vld [vmem:[%s18537_s13 + $0x360] ss:$16 sps:$4 sm:$0xff]   ;;  %v17384_v6 = vld [vmem:[%s18537_s13 + $0x368] ss:$16 sps:$4 sm:$0xff]  }
0x18cc   : > { %13841 = vmatprep.subr.bf16.mxu1 %v17344_v13  ;;  %v17389_v13 = vld [vmem:[%s18537_s13 + $0x384] ss:$16 sps:$4 sm:$0xff]  }
0x18ce   : > { %13498 = vmatpush1.bf16.msra.mxu0 %v17339_v12  ;;  %v17392_v12 = vld [vmem:[%s18537_s13 + $0x38c] ss:$16 sps:$4 sm:$0xff]  }
0x18cf   : > { %13842 = vmatpush1.bf16.msra.mxu1 %v17342_v14  ;;  %13499 = vmatprep.subr.bf16.mxu0 %v17347_v52  ;;  %v17387_v14 = vld [vmem:[%s18537_s13 + $0x380] ss:$16 sps:$4 sm:$0xff]   ;;  %v17390_v52 = vld [vmem:[%s18537_s13 + $0x388] ss:$16 sps:$4 sm:$0xff]  }
0x18d0   : > { %v10059_v22 = vpop.f32.mrb[72].mxu0  ;;  %13843 = vmatprep.subr.bf16.mxu1 %v17350_v11  ;;  %v17395_v11 = vld [vmem:[%s18537_s13 + $0x3a4] ss:$16 sps:$4 sm:$0xff]  }
0x18d1   : > { %v10145_v24 = vpop.f32.mrb[72].mxu1  ;;  %v10061_v63 = vpop.f32.mrb[73].mxu0  ;;  %v10334_v59 = vmax.f32 %v10059_v22, 0.0  ;;  %v17401_v22 = vld [vmem:[%s18537_s13 + $0x3c4] ss:$16 sps:$4 sm:$0xff]  }
0x18d2   : > { %v10147_v16 = vpop.f32.mrb[73].mxu1  ;;  %v10063_v51 = vpop.f32.mrb[74].mxu0  ;;  %13500 = vmatpush1.bf16.msra.mxu0 %v17345_v46  ;;  %v10336_v32 = vmax.f32 %v10145_v24, 0.0  ;;  %v10335_v28 = vmax.f32 %v10061_v63, 0.0  ;;  %v17398_v46 = vld [vmem:[%s18537_s13 + $0x3ac] ss:$16 sps:$4 sm:$0xff]  }
0x18d3   : > { %v10350_v34 = vmax.f32 %v10063_v51, 0.0  ;;  %v10149_v25 = vpop.f32.mrb[74].mxu1  ;;  %13844 = vmatpush1.bf16.msra.mxu1 %v17348_v0  ;;  %v10065_v27 = vpop.f32.mrb[75].mxu0  ;;  %13501 = vmatprep.subr.bf16.mxu0 %v17353_v61  ;;  %v10337_v58 = vmax.f32 %v10147_v16, 0.0  ;;  %v17393_v0 = vld [vmem:[%s18537_s13 + $0x3a0] ss:$16 sps:$4 sm:$0xff]  }
0x18d4   : > { %v10352_v4 = vmax.f32 %v10149_v25, 0.0  ;;  %v10351_v47 = vmax.f32 %v10065_v27, 0.0  ;;  %v10151_v30 = vpop.f32.mrb[75].mxu1  ;;  %13845 = vmatprep.subr.bf16.mxu1 %v17356_v23  ;;  %v17396_v61 = vld [vmem:[%s18537_s13 + $0x3a8] ss:$16 sps:$4 sm:$0xff]  }
0x18d5   : > { %v20352_v62 = vpack.c.bf16 %v10350_v34, %v10334_v59  ;;  %v10353_v2 = vmax.f32 %v10151_v30, 0.0  ;;  %v17404_v23 = vld [vmem:[%s18537_s13 + $0x3cc] ss:$16 sps:$4 sm:$0xff]   ;;  %v17399_v24 = vld [vmem:[%s18537_s13 + $0x3c0] ss:$16 sps:$4 sm:$0xff]  }
0x18d6   : > { %v20354_v19 = vpack.c.bf16 %v10352_v4, %v10336_v32  ;;  %v20356_v21 = vpack.c.bf16 %v10351_v47, %v10335_v28  ;;  %13502 = vmatpush1.bf16.msra.mxu0 %v17351_v40  ;;  %v17402_v63 = vld [vmem:[%s18537_s13 + $0x3c8] ss:$16 sps:$4 sm:$0xff]   ;;  %v17407_v40 = vld [vmem:[%s18537_s13 + $0x3e4] ss:$16 sps:$4 sm:$0xff]   ;;  %v17410_v16 = vld [vmem:[%s18537_s13 + $0x3ec] ss:$16 sps:$4 sm:$0xff]  }
0x18d7   : > { %v20359_v9 = vpack.c.bf16 %v10353_v2, %v10337_v58  ;;  %13846 = vmatpush1.bf16.msra.mxu1 %v17354_v45  ;;  %13503 = vmatprep.subr.bf16.mxu0 %v17359_v26  ;;  %v17405_v51 = vld [vmem:[%s18537_s13 + $0x3e0] ss:$16 sps:$4 sm:$0xff]   ;;  %v17408_v45 = vld [vmem:[%s18537_s13 + $0x3e8] ss:$16 sps:$4 sm:$0xff]   ;;  %v17413_v26 = vld [vmem:[%s18537_s13 + $0x404] ss:$16 sps:$4 sm:$0xff]  }
0x18d8   : > { %13847 = vmatprep.subr.bf16.mxu1 %v17362_v39  ;;  %v17416_v59 = vld [vmem:[%s18537_s13 + $0x40c] ss:$16 sps:$4 sm:$0xff]   ;;  %v17411_v34 = vld [vmem:[%s18537_s13 + $0x400] ss:$16 sps:$4 sm:$0xff]   ;;  %v17414_v25 = vld [vmem:[%s18537_s13 + $0x408] ss:$16 sps:$4 sm:$0xff]  }
0x18d9   : > { %v17419_v27 = vld [vmem:[%s18537_s13 + $0x424] ss:$16 sps:$4 sm:$0xff]   ;;  %v17422_v39 = vld [vmem:[%s18537_s13 + $0x42c] ss:$16 sps:$4 sm:$0xff]   ;;  %v17417_v32 = vld [vmem:[%s18537_s13 + $0x420] ss:$16 sps:$4 sm:$0xff]  }
0x18da   : > { %13504 = vmatpush1.bf16.msra.mxu0 %v17357_v36  ;;  %v17420_v28 = vld [vmem:[%s18537_s13 + $0x428] ss:$16 sps:$4 sm:$0xff]   ;;  %v17425_v4 = vld [vmem:[%s18537_s13 + $0x444] ss:$16 sps:$4 sm:$0xff]   ;;  %v17428_v47 = vld [vmem:[%s18537_s13 + $0x44c] ss:$16 sps:$4 sm:$0xff]  }
0x18db   : > { %13848 = vmatpush1.bf16.msra.mxu1 %v17360_v37  ;;  %13505 = vmatprep.subr.bf16.mxu0 %v17365_v50  ;;  %v17426_v30 = vld [vmem:[%s18537_s13 + $0x448] ss:$16 sps:$4 sm:$0xff]   ;;  %v17431_v58 = vld [vmem:[%s18537_s13 + $0x464] ss:$16 sps:$4 sm:$0xff]   ;;  %v17434_v2 = vld [vmem:[%s18537_s13 + $0x46c] ss:$16 sps:$4 sm:$0xff]  }
0x18dc   : > { %13849 = vmatprep.subr.bf16.mxu1 %v17368_v17  ;;  %v17432_v36 = vld [vmem:[%s18537_s13 + $0x468] ss:$16 sps:$4 sm:$0xff]   ;;  %v17437_v37 = vld [vmem:[%s18537_s13 + $0x484] ss:$16 sps:$4 sm:$0xff]   ;;  %v17440_v50 = vld [vmem:[%s18537_s13 + $0x48c] ss:$16 sps:$4 sm:$0xff]  }
0x18dd   : > { %v17435_v17 = vld [vmem:[%s18537_s13 + $0x480] ss:$16 sps:$4 sm:$0xff]  }
0x18de   : > { %13506 = vmatpush1.bf16.msra.mxu0 %v17363_v60  ;;  %v17438_v60 = vld [vmem:[%s18537_s13 + $0x488] ss:$16 sps:$4 sm:$0xff]  }
0x18df   : > { %13850 = vmatpush1.bf16.msra.mxu1 %v17366_v44  ;;  %13507 = vmatprep.subr.bf16.mxu0 %v17371_v35  ;;  %v17443_v44 = vld [vmem:[%s18537_s13 + $0x4a4] ss:$16 sps:$4 sm:$0xff]   ;;  %v17446_v35 = vld [vmem:[%s18537_s13 + $0x4ac] ss:$16 sps:$4 sm:$0xff]  }
0x18e0   : > { %13851 = vmatprep.subr.bf16.mxu1 %v17374_v7  ;;  %v17441_v7 = vld [vmem:[%s18537_s13 + $0x4a0] ss:$16 sps:$4 sm:$0xff]  }
0x18e2   : > { %13508 = vmatpush1.bf16.msra.mxu0 %v17369_v15  ;;  %v17444_v15 = vld [vmem:[%s18537_s13 + $0x4a8] ss:$16 sps:$4 sm:$0xff]  }
0x18e3   : > { %13852 = vmatpush1.bf16.msra.mxu1 %v17372_v57  ;;  %13509 = vmatprep.subr.bf16.mxu0 %v17377_v43  ;;  %v17449_v57 = vld [vmem:[%s18537_s13 + $0x4c4] ss:$16 sps:$4 sm:$0xff]   ;;  %v17452_v43 = vld [vmem:[%s18537_s13 + $0x4cc] ss:$16 sps:$4 sm:$0xff]  }
0x18e4   : > { %13853 = vmatprep.subr.bf16.mxu1 %v17380_v49  ;;  %v17447_v49 = vld [vmem:[%s18537_s13 + $0x4c0] ss:$16 sps:$4 sm:$0xff]  }
0x18e6   : > { %13510 = vmatpush1.bf16.msra.mxu0 %v17375_v1  ;;  %v17450_v1 = vld [vmem:[%s18537_s13 + $0x4c8] ss:$16 sps:$4 sm:$0xff]  }
0x18e7   : > { %13854 = vmatpush1.bf16.msra.mxu1 %v17378_v5  ;;  %13511 = vmatprep.subr.bf16.mxu0 %v17383_v8  ;;  %v17455_v5 = vld [vmem:[%s18537_s13 + $0x4e4] ss:$16 sps:$4 sm:$0xff]   ;;  %v17458_v8 = vld [vmem:[%s18537_s13 + $0x4ec] ss:$16 sps:$4 sm:$0xff]  }
0x18e8   : > { %13855 = vmatprep.subr.bf16.mxu1 %v17386_v48  ;;  %v17453_v48 = vld [vmem:[%s18537_s13 + $0x4e0] ss:$16 sps:$4 sm:$0xff]  }
0x18ea   : > { %13512 = vmatpush1.bf16.msra.mxu0 %v17381_v3  ;;  %v17456_v3 = vld [vmem:[%s18537_s13 + $0x4e8] ss:$16 sps:$4 sm:$0xff]  }
0x18eb   : > { %13856 = vmatpush1.bf16.msra.mxu1 %v17384_v6  ;;  %13513 = vmatprep.subr.bf16.mxu0 %v17389_v13  ;;  %v17461_v6 = vld [vmem:[%s18537_s13 + $0x504] ss:$16 sps:$4 sm:$0xff]   ;;  %v17464_v13 = vld [vmem:[%s18537_s13 + $0x50c] ss:$16 sps:$4 sm:$0xff]  }
0x18ec   : > { %13857 = vmatprep.subr.bf16.mxu1 %v17392_v12  ;;  %v17459_v12 = vld [vmem:[%s18537_s13 + $0x500] ss:$16 sps:$4 sm:$0xff]  }
0x18ee   : > { %13514 = vmatpush1.bf16.msra.mxu0 %v17387_v14  ;;  %v17462_v14 = vld [vmem:[%s18537_s13 + $0x508] ss:$16 sps:$4 sm:$0xff]  }
0x18ef   : > { %13858 = vmatpush1.bf16.msra.mxu1 %v17390_v52  ;;  %13515 = vmatprep.subr.bf16.mxu0 %v17395_v11  ;;  %v17467_v52 = vld [vmem:[%s18537_s13 + $0x524] ss:$16 sps:$4 sm:$0xff]   ;;  %v17470_v11 = vld [vmem:[%s18537_s13 + $0x52c] ss:$16 sps:$4 sm:$0xff]  }
0x18f0   : > { %13859 = vmatprep.subr.bf16.mxu1 %v17398_v46  ;;  %v17465_v46 = vld [vmem:[%s18537_s13 + $0x520] ss:$16 sps:$4 sm:$0xff]  }
0x18f2   : > { %13516 = vmatpush1.bf16.msra.mxu0 %v17393_v0  ;;  %v17468_v0 = vld [vmem:[%s18537_s13 + $0x528] ss:$16 sps:$4 sm:$0xff]  }
0x18f3   : > { %13860 = vmatpush1.bf16.msra.mxu1 %v17396_v61  ;;  %13517 = vmatprep.subr.bf16.mxu0 %v17401_v22  ;;  %v17473_v61 = vld [vmem:[%s18537_s13 + $0x544] ss:$16 sps:$4 sm:$0xff]   ;;  %v17476_v22 = vld [vmem:[%s18537_s13 + $0x54c] ss:$16 sps:$4 sm:$0xff]  }
0x18f4   : > { %13861 = vmatprep.subr.bf16.mxu1 %v17404_v23  ;;  %v17471_v23 = vld [vmem:[%s18537_s13 + $0x540] ss:$16 sps:$4 sm:$0xff]  }
0x18f6   : > { %13518 = vmatpush1.bf16.msra.mxu0 %v17399_v24  ;;  %v17474_v24 = vld [vmem:[%s18537_s13 + $0x548] ss:$16 sps:$4 sm:$0xff]  }
0x18f7   : > { %13862 = vmatpush1.bf16.msra.mxu1 %v17402_v63  ;;  %13519 = vmatprep.subr.bf16.mxu0 %v17407_v40  ;;  %v17479_v63 = vld [vmem:[%s18537_s13 + $0x564] ss:$16 sps:$4 sm:$0xff]   ;;  %v17482_v40 = vld [vmem:[%s18537_s13 + $0x56c] ss:$16 sps:$4 sm:$0xff]  }
0x18f8   : > { %13863 = vmatprep.subr.bf16.mxu1 %v17410_v16  ;;  %v17477_v16 = vld [vmem:[%s18537_s13 + $0x560] ss:$16 sps:$4 sm:$0xff]  }
0x18fa   : > { %13520 = vmatpush1.bf16.msra.mxu0 %v17405_v51  ;;  %v17480_v51 = vld [vmem:[%s18537_s13 + $0x568] ss:$16 sps:$4 sm:$0xff]  }
0x18fb   : > { %13864 = vmatpush1.bf16.msra.mxu1 %v17408_v45  ;;  %13532 = vmatprep.subr.bf16.mxu0 %v17413_v26  ;;  %v17485_v45 = vld [vmem:[%s18537_s13 + $0x584] ss:$16 sps:$4 sm:$0xff]   ;;  %v17488_v26 = vld [vmem:[%s18537_s13 + $0x58c] ss:$16 sps:$4 sm:$0xff]  }
0x18fc   : > { %13876 = vmatprep.subr.bf16.mxu1 %v17416_v59  ;;  %v17483_v59 = vld [vmem:[%s18537_s13 + $0x580] ss:$16 sps:$4 sm:$0xff]  }
0x18fd   : > { %13522 = vmatmul.mubr.bf16.vlgmr.msra.gmra.mrb[80].mxu0 %v20070_v54 }
0x18fe   : > { %13866 = vmatmul.mubr.bf16.vlgmr.msra.gmra.mrb[80].mxu1 %v20070_v54  ;;  %13533 = vmatpush1.bf16.msra.mxu0 %v17411_v34  ;;  %v17423_v54 = vld [vmem:[%s18537_s13 + $0x440] ss:$16 sps:$4 sm:$0xff]   ;;  %v17486_v34 = vld [vmem:[%s18537_s13 + $0x588] ss:$16 sps:$4 sm:$0xff]  }
0x18ff   : > { %13564 = vmatprep.mubr.bf16.mxu0 %v20218_v56  ;;  %13877 = vmatpush1.bf16.msra.mxu1 %v17414_v25  ;;  %v17491_v25 = vld [vmem:[%s18537_s13 + $0x5a4] ss:$16 sps:$4 sm:$0xff]  }
0x1900   : > { %13908 = vmatprep.mubr.bf16.mxu1 %v20218_v56  ;;  %13534 = vmatprep.subr.bf16.mxu0 %v17419_v27  ;;  %v17429_v56 = vld [vmem:[%s18537_s13 + $0x460] ss:$16 sps:$4 sm:$0xff]   ;;  %v17494_v27 = vld [vmem:[%s18537_s13 + $0x5ac] ss:$16 sps:$4 sm:$0xff]  }
0x1901   : > { %13878 = vmatprep.subr.bf16.mxu1 %v17422_v39  ;;  %v17489_v39 = vld [vmem:[%s18537_s13 + $0x5a0] ss:$16 sps:$4 sm:$0xff]  }
0x1902   : > { %13535 = vmatpush1.bf16.msra.mxu0 %v17417_v32  ;;  %v17492_v32 = vld [vmem:[%s18537_s13 + $0x5a8] ss:$16 sps:$4 sm:$0xff]  }
0x1903   : > { %13879 = vmatpush1.bf16.msra.mxu1 %v17420_v28  ;;  %13536 = vmatprep.subr.bf16.mxu0 %v17425_v4  ;;  %v17497_v28 = vld [vmem:[%s18537_s13 + $0x5c4] ss:$16 sps:$4 sm:$0xff]   ;;  %v17500_v4 = vld [vmem:[%s18537_s13 + $0x5cc] ss:$16 sps:$4 sm:$0xff]  }
0x1904   : > { %13880 = vmatprep.subr.bf16.mxu1 %v17428_v47  ;;  %v17495_v47 = vld [vmem:[%s18537_s13 + $0x5c0] ss:$16 sps:$4 sm:$0xff]  }
0x1906   : > { %13537 = vmatpush1.bf16.msra.mxu0 %v17423_v54  ;;  %v17498_v54 = vld [vmem:[%s18537_s13 + $0x5c8] ss:$16 sps:$4 sm:$0xff]  }
0x1907   : > { %13881 = vmatpush1.bf16.msra.mxu1 %v17426_v30  ;;  %13538 = vmatprep.subr.bf16.mxu0 %v17431_v58  ;;  %v17503_v30 = vld [vmem:[%s18537_s13 + $0x5e4] ss:$16 sps:$4 sm:$0xff]   ;;  %v17506_v58 = vld [vmem:[%s18537_s13 + $0x5ec] ss:$16 sps:$4 sm:$0xff]  }
0x1908   : > { %13882 = vmatprep.subr.bf16.mxu1 %v17434_v2  ;;  %v17501_v2 = vld [vmem:[%s18537_s13 + $0x5e0] ss:$16 sps:$4 sm:$0xff]  }
0x190a   : > { %13539 = vmatpush1.bf16.msra.mxu0 %v17429_v56  ;;  %v17504_v56 = vld [vmem:[%s18537_s13 + $0x5e8] ss:$16 sps:$4 sm:$0xff]  }
0x190b   : > { %13883 = vmatpush1.bf16.msra.mxu1 %v17432_v36  ;;  %13540 = vmatprep.subr.bf16.mxu0 %v17437_v37  ;;  %v17509_v36 = vld [vmem:[%s18537_s13 + $0x604] ss:$16 sps:$4 sm:$0xff]   ;;  %v17512_v37 = vld [vmem:[%s18537_s13 + $0x60c] ss:$16 sps:$4 sm:$0xff]  }
0x190c   : > { %13884 = vmatprep.subr.bf16.mxu1 %v17440_v50  ;;  %v17507_v50 = vld [vmem:[%s18537_s13 + $0x600] ss:$16 sps:$4 sm:$0xff]  }
0x190e   : > { %13541 = vmatpush1.bf16.msra.mxu0 %v17435_v17  ;;  %v17510_v17 = vld [vmem:[%s18537_s13 + $0x608] ss:$16 sps:$4 sm:$0xff]  }
0x190f   : > { %13885 = vmatpush1.bf16.msra.mxu1 %v17438_v60  ;;  %13542 = vmatprep.subr.bf16.mxu0 %v17443_v44  ;;  %v17515_v60 = vld [vmem:[%s18537_s13 + $0x624] ss:$16 sps:$4 sm:$0xff]   ;;  %v17518_v44 = vld [vmem:[%s18537_s13 + $0x62c] ss:$16 sps:$4 sm:$0xff]  }
0x1910   : > { %13886 = vmatprep.subr.bf16.mxu1 %v17446_v35  ;;  %v17513_v35 = vld [vmem:[%s18537_s13 + $0x620] ss:$16 sps:$4 sm:$0xff]  }
0x1912   : > { %13543 = vmatpush1.bf16.msra.mxu0 %v17441_v7  ;;  %v17516_v7 = vld [vmem:[%s18537_s13 + $0x628] ss:$16 sps:$4 sm:$0xff]  }
0x1913   : > { %13887 = vmatpush1.bf16.msra.mxu1 %v17444_v15  ;;  %13544 = vmatprep.subr.bf16.mxu0 %v17449_v57  ;;  %v17521_v15 = vld [vmem:[%s18537_s13 + $0x644] ss:$16 sps:$4 sm:$0xff]   ;;  %v17524_v57 = vld [vmem:[%s18537_s13 + $0x64c] ss:$16 sps:$4 sm:$0xff]  }
0x1914   : > { %13888 = vmatprep.subr.bf16.mxu1 %v17452_v43  ;;  %v17522_v43 = vld [vmem:[%s18537_s13 + $0x648] ss:$16 sps:$4 sm:$0xff]  }
0x1916   : > { %13545 = vmatpush1.bf16.msra.mxu0 %v17447_v49  ;;  %v17527_v49 = vld [vmem:[%s18537_s13 + $0x664] ss:$16 sps:$4 sm:$0xff]  }
0x1917   : > { %13889 = vmatpush1.bf16.msra.mxu1 %v17450_v1  ;;  %13546 = vmatprep.subr.bf16.mxu0 %v17455_v5  ;;  %v17530_v1 = vld [vmem:[%s18537_s13 + $0x66c] ss:$16 sps:$4 sm:$0xff]   ;;  %v17528_v5 = vld [vmem:[%s18537_s13 + $0x668] ss:$16 sps:$4 sm:$0xff]  }
0x1918   : > { %13890 = vmatprep.subr.bf16.mxu1 %v17458_v8  ;;  %v17533_v8 = vld [vmem:[%s18537_s13 + $0x684] ss:$16 sps:$4 sm:$0xff]  }
0x191a   : > { %13547 = vmatpush1.bf16.msra.mxu0 %v17453_v48  ;;  %v17536_v48 = vld [vmem:[%s18537_s13 + $0x68c] ss:$16 sps:$4 sm:$0xff]  }
0x191b   : > { %13891 = vmatpush1.bf16.msra.mxu1 %v17456_v3  ;;  %13548 = vmatprep.subr.bf16.mxu0 %v17461_v6  ;;  %v17531_v3 = vld [vmem:[%s18537_s13 + $0x680] ss:$16 sps:$4 sm:$0xff]   ;;  %v17534_v6 = vld [vmem:[%s18537_s13 + $0x688] ss:$16 sps:$4 sm:$0xff]  }
0x191c   : > { %13892 = vmatprep.subr.bf16.mxu1 %v17464_v13  ;;  %v17539_v13 = vld [vmem:[%s18537_s13 + $0x6a4] ss:$16 sps:$4 sm:$0xff]  }
0x191e   : > { %13549 = vmatpush1.bf16.msra.mxu0 %v17459_v12  ;;  %v17542_v12 = vld [vmem:[%s18537_s13 + $0x6ac] ss:$16 sps:$4 sm:$0xff]  }
0x191f   : > { %13893 = vmatpush1.bf16.msra.mxu1 %v17462_v14  ;;  %13550 = vmatprep.subr.bf16.mxu0 %v17467_v52  ;;  %v17537_v14 = vld [vmem:[%s18537_s13 + $0x6a0] ss:$16 sps:$4 sm:$0xff]   ;;  %v17540_v52 = vld [vmem:[%s18537_s13 + $0x6a8] ss:$16 sps:$4 sm:$0xff]  }
0x1920   : > { %13894 = vmatprep.subr.bf16.mxu1 %v17470_v11  ;;  %v17545_v11 = vld [vmem:[%s18537_s13 + $0x6c4] ss:$16 sps:$4 sm:$0xff]  }
0x1922   : > { %13551 = vmatpush1.bf16.msra.mxu0 %v17465_v46 }
0x1923   : > { %13895 = vmatpush1.bf16.msra.mxu1 %v17468_v0  ;;  %13552 = vmatprep.subr.bf16.mxu0 %v17473_v61  ;;  %v17548_v0 = vld [vmem:[%s18537_s13 + $0x6cc] ss:$16 sps:$4 sm:$0xff]  }
0x1924   : > { %13896 = vmatprep.subr.bf16.mxu1 %v17476_v22 }
0x1926   : > { %13553 = vmatpush1.bf16.msra.mxu0 %v17471_v23  ;;  %v17543_v23 = vld [vmem:[%s18537_s13 + $0x6c0] ss:$16 sps:$4 sm:$0xff]  }
0x1927   : > { %13897 = vmatpush1.bf16.msra.mxu1 %v17474_v24  ;;  %13554 = vmatprep.subr.bf16.mxu0 %v17479_v63 }
0x1928   : > { %13898 = vmatprep.subr.bf16.mxu1 %v17482_v40  ;;  %v17546_v40 = vld [vmem:[%s18537_s13 + $0x6c8] ss:$16 sps:$4 sm:$0xff]  }
0x192a   : > { %13555 = vmatpush1.bf16.msra.mxu0 %v17477_v16  ;;  %v17551_v16 = vld [vmem:[%s18537_s13 + $0x6e4] ss:$16 sps:$4 sm:$0xff]  }
0x192b   : > { %13899 = vmatpush1.bf16.msra.mxu1 %v17480_v51  ;;  %13556 = vmatprep.subr.bf16.mxu0 %v17485_v45 }
0x192c   : > { %13900 = vmatprep.subr.bf16.mxu1 %v17488_v26 }
0x192e   : > { %13557 = vmatpush1.bf16.msra.mxu0 %v17483_v59 }
0x192f   : > { %13901 = vmatpush1.bf16.msra.mxu1 %v17486_v34  ;;  %13558 = vmatprep.subr.bf16.mxu0 %v17491_v25  ;;  %v17554_v34 = vld [vmem:[%s18537_s13 + $0x6ec] ss:$16 sps:$4 sm:$0xff]  }
0x1930   : > { %13902 = vmatprep.subr.bf16.mxu1 %v17494_v27 }
0x1932   : > { %13559 = vmatpush1.bf16.msra.mxu0 %v17489_v39 }
0x1933   : > { %13903 = vmatpush1.bf16.msra.mxu1 %v17492_v32  ;;  %13560 = vmatprep.subr.bf16.mxu0 %v17497_v28 }
0x1934   : > { %13904 = vmatprep.subr.bf16.mxu1 %v17500_v4 }
0x1936   : > { %13561 = vmatpush1.bf16.msra.mxu0 %v17495_v47 }
0x1937   : > { %13905 = vmatpush1.bf16.msra.mxu1 %v17498_v54  ;;  %13562 = vmatprep.subr.bf16.mxu0 %v17503_v30 }
0x1938   : > { %13906 = vmatprep.subr.bf16.mxu1 %v17506_v58 }
0x193a   : > { %13563 = vmatpush1.bf16.msra.mxu0 %v17501_v2  ;;  %v17549_v2 = vld [vmem:[%s18537_s13 + $0x6e0] ss:$16 sps:$4 sm:$0xff]  }
0x193b   : > { %13907 = vmatpush1.bf16.msra.mxu1 %v17504_v56  ;;  %13575 = vmatprep.subr.bf16.mxu0 %v17509_v36  ;;  %v17552_v36 = vld [vmem:[%s18537_s13 + $0x6e8] ss:$16 sps:$4 sm:$0xff]  }
0x193c   : > { %13919 = vmatprep.subr.bf16.mxu1 %v17512_v37  ;;  %v17557_v37 = vld [vmem:[%s18537_s13 + $0x704] ss:$16 sps:$4 sm:$0xff]  }
0x193d   : > { %13565 = vmatmul.mubr.bf16.vlgmr.msra.gmra.mrb[80].mxu0 %v20212_v42 }
0x193e   : > { %13909 = vmatmul.mubr.bf16.vlgmr.msra.gmra.mrb[80].mxu1 %v20212_v42  ;;  %13576 = vmatpush1.bf16.msra.mxu0 %v17507_v50  ;;  %v17519_v42 = vld [vmem:[%s18537_s13 + $0x640] ss:$16 sps:$4 sm:$0xff]   ;;  %v17560_v50 = vld [vmem:[%s18537_s13 + $0x70c] ss:$16 sps:$4 sm:$0xff]  }
0x193f   : > { %13607 = vmatprep.mubr.bf16.mxu0 %v20220_v53  ;;  %13920 = vmatpush1.bf16.msra.mxu1 %v17510_v17  ;;  %v17555_v17 = vld [vmem:[%s18537_s13 + $0x700] ss:$16 sps:$4 sm:$0xff]  }
0x1940   : > { %13951 = vmatprep.mubr.bf16.mxu1 %v20220_v53  ;;  %13577 = vmatprep.subr.bf16.mxu0 %v17515_v60  ;;  %v17525_v53 = vld [vmem:[%s18537_s13 + $0x660] ss:$16 sps:$4 sm:$0xff]   ;;  %v17558_v60 = vld [vmem:[%s18537_s13 + $0x708] ss:$16 sps:$4 sm:$0xff]  }
0x1941   : > { %13921 = vmatprep.subr.bf16.mxu1 %v17518_v44  ;;  %v17563_v44 = vld [vmem:[%s18537_s13 + $0x724] ss:$16 sps:$4 sm:$0xff]  }
0x1942   : > { %13578 = vmatpush1.bf16.msra.mxu0 %v17513_v35  ;;  %v17566_v35 = vld [vmem:[%s18537_s13 + $0x72c] ss:$16 sps:$4 sm:$0xff]  }
0x1943   : > { %13922 = vmatpush1.bf16.msra.mxu1 %v17516_v7  ;;  %13579 = vmatprep.subr.bf16.mxu0 %v17521_v15  ;;  %v17561_v7 = vld [vmem:[%s18537_s13 + $0x720] ss:$16 sps:$4 sm:$0xff]   ;;  %v17564_v15 = vld [vmem:[%s18537_s13 + $0x728] ss:$16 sps:$4 sm:$0xff]  }
0x1944   : > { %13923 = vmatprep.subr.bf16.mxu1 %v17524_v57  ;;  %v17569_v57 = vld [vmem:[%s18537_s13 + $0x744] ss:$16 sps:$4 sm:$0xff]  }
0x1946   : > { %13580 = vmatpush1.bf16.msra.mxu0 %v17519_v42  ;;  %v17572_v42 = vld [vmem:[%s18537_s13 + $0x74c] ss:$16 sps:$4 sm:$0xff]  }
0x1947   : > { %13924 = vmatpush1.bf16.msra.mxu1 %v17522_v43  ;;  %13581 = vmatprep.subr.bf16.mxu0 %v17527_v49  ;;  %v17567_v43 = vld [vmem:[%s18537_s13 + $0x740] ss:$16 sps:$4 sm:$0xff]   ;;  %v17570_v49 = vld [vmem:[%s18537_s13 + $0x748] ss:$16 sps:$4 sm:$0xff]  }
0x1948   : > { %13925 = vmatprep.subr.bf16.mxu1 %v17530_v1  ;;  %v17575_v1 = vld [vmem:[%s18537_s13 + $0x764] ss:$16 sps:$4 sm:$0xff]  }
0x194a   : > { %13582 = vmatpush1.bf16.msra.mxu0 %v17525_v53  ;;  %v17578_v53 = vld [vmem:[%s18537_s13 + $0x76c] ss:$16 sps:$4 sm:$0xff]  }
0x194b   : > { %13926 = vmatpush1.bf16.msra.mxu1 %v17528_v5  ;;  %13583 = vmatprep.subr.bf16.mxu0 %v17533_v8  ;;  %v17573_v5 = vld [vmem:[%s18537_s13 + $0x760] ss:$16 sps:$4 sm:$0xff]   ;;  %v17576_v8 = vld [vmem:[%s18537_s13 + $0x768] ss:$16 sps:$4 sm:$0xff]  }
0x194c   : > { %13927 = vmatprep.subr.bf16.mxu1 %v17536_v48  ;;  %v17581_v48 = vld [vmem:[%s18537_s13 + $0x784] ss:$16 sps:$4 sm:$0xff]  }
0x194e   : > { %13584 = vmatpush1.bf16.msra.mxu0 %v17531_v3  ;;  %v17584_v3 = vld [vmem:[%s18537_s13 + $0x78c] ss:$16 sps:$4 sm:$0xff]  }
0x194f   : > { %13928 = vmatpush1.bf16.msra.mxu1 %v17534_v6  ;;  %13585 = vmatprep.subr.bf16.mxu0 %v17539_v13  ;;  %v17579_v6 = vld [vmem:[%s18537_s13 + $0x780] ss:$16 sps:$4 sm:$0xff]   ;;  %v17582_v13 = vld [vmem:[%s18537_s13 + $0x788] ss:$16 sps:$4 sm:$0xff]  }
0x1950   : > { %v10231_v46 = vpop.f32.mrb[76].mxu0  ;;  %13929 = vmatprep.subr.bf16.mxu1 %v17542_v12  ;;  %v17587_v12 = vld [vmem:[%s18537_s13 + $0x7a4] ss:$16 sps:$4 sm:$0xff]  }
0x1951   : > { %v10317_v61 = vpop.f32.mrb[76].mxu1  ;;  %v10233_v22 = vpop.f32.mrb[77].mxu0  ;;  %v10338_v51 = vmax.f32 %v10231_v46, 0.0  ;;  %v17593_v46 = vld [vmem:[%s18537_s13 + $0x7c4] ss:$16 sps:$4 sm:$0xff]  }
0x1952   : > { %v10319_v24 = vpop.f32.mrb[77].mxu1  ;;  %v10235_v63 = vpop.f32.mrb[78].mxu0  ;;  %13586 = vmatpush1.bf16.msra.mxu0 %v17537_v14  ;;  %v10340_v25 = vmax.f32 %v10317_v61, 0.0  ;;  %v10339_v27 = vmax.f32 %v10233_v22, 0.0  ;;  %v17590_v14 = vld [vmem:[%s18537_s13 + $0x7ac] ss:$16 sps:$4 sm:$0xff]  }
0x1953   : > { %v10354_v45 = vmax.f32 %v10235_v63, 0.0  ;;  %v10321_v26 = vpop.f32.mrb[78].mxu1  ;;  %13930 = vmatpush1.bf16.msra.mxu1 %v17540_v52  ;;  %v10237_v59 = vpop.f32.mrb[79].mxu0  ;;  %13587 = vmatprep.subr.bf16.mxu0 %v17545_v11  ;;  %v10341_v4 = vmax.f32 %v10319_v24, 0.0  ;;  %v17585_v52 = vld [vmem:[%s18537_s13 + $0x7a0] ss:$16 sps:$4 sm:$0xff]  }
0x1954   : > { %v10356_v39 = vmax.f32 %v10321_v26, 0.0  ;;  %v10355_v32 = vmax.f32 %v10237_v59, 0.0  ;;  %v10323_v28 = vpop.f32.mrb[79].mxu1  ;;  %13931 = vmatprep.subr.bf16.mxu1 %v17548_v0  ;;  %v17588_v11 = vld [vmem:[%s18537_s13 + $0x7a8] ss:$16 sps:$4 sm:$0xff]  }
0x1955   : > { %v20496_v47 = vpack.c.bf16 %v10354_v45, %v10338_v51  ;;  %v10357_v54 = vmax.f32 %v10323_v28, 0.0  ;;  %v17596_v0 = vld [vmem:[%s18537_s13 + $0x7cc] ss:$16 sps:$4 sm:$0xff]   ;;  %v17591_v61 = vld [vmem:[%s18537_s13 + $0x7c0] ss:$16 sps:$4 sm:$0xff]  }
0x1956   : > { %v20498_v30 = vpack.c.bf16 %v10356_v39, %v10340_v25  ;;  %v20500_v58 = vpack.c.bf16 %v10355_v32, %v10339_v27  ;;  %13588 = vmatpush1.bf16.msra.mxu0 %v17543_v23  ;;  %v17594_v22 = vld [vmem:[%s18537_s13 + $0x7c8] ss:$16 sps:$4 sm:$0xff]   ;;  %v17599_v23 = vld [vmem:[%s18537_s13 + $0x7e4] ss:$16 sps:$4 sm:$0xff]   ;;  %v17602_v24 = vld [vmem:[%s18537_s13 + $0x7ec] ss:$16 sps:$4 sm:$0xff]  }
0x1957   : > { %v20503_v56 = vpack.c.bf16 %v10357_v54, %v10341_v4  ;;  %13932 = vmatpush1.bf16.msra.mxu1 %v17546_v40  ;;  %13589 = vmatprep.subr.bf16.mxu0 %v17551_v16  ;;  %v17597_v63 = vld [vmem:[%s18537_s13 + $0x7e0] ss:$16 sps:$4 sm:$0xff]   ;;  %v17600_v40 = vld [vmem:[%s18537_s13 + $0x7e8] ss:$16 sps:$4 sm:$0xff]   ;;  %v17605_v16 = vld [vmem:[%s18537_s13 + $0x804] ss:$16 sps:$4 sm:$0xff]  }
0x1958   : > { %13933 = vmatprep.subr.bf16.mxu1 %v17554_v34  ;;  %v17608_v51 = vld [vmem:[%s18537_s13 + $0x80c] ss:$16 sps:$4 sm:$0xff]   ;;  %v17603_v45 = vld [vmem:[%s18537_s13 + $0x800] ss:$16 sps:$4 sm:$0xff]   ;;  %v17606_v26 = vld [vmem:[%s18537_s13 + $0x808] ss:$16 sps:$4 sm:$0xff]  }
0x1959   : > { %v17611_v59 = vld [vmem:[%s18537_s13 + $0x824] ss:$16 sps:$4 sm:$0xff]   ;;  %v17614_v34 = vld [vmem:[%s18537_s13 + $0x82c] ss:$16 sps:$4 sm:$0xff]   ;;  %v17609_v25 = vld [vmem:[%s18537_s13 + $0x820] ss:$16 sps:$4 sm:$0xff]  }
0x195a   : > { %13590 = vmatpush1.bf16.msra.mxu0 %v17549_v2  ;;  %v17612_v27 = vld [vmem:[%s18537_s13 + $0x828] ss:$16 sps:$4 sm:$0xff]   ;;  %v17617_v39 = vld [vmem:[%s18537_s13 + $0x844] ss:$16 sps:$4 sm:$0xff]   ;;  %v17620_v32 = vld [vmem:[%s18537_s13 + $0x84c] ss:$16 sps:$4 sm:$0xff]  }
0x195b   : > { %13934 = vmatpush1.bf16.msra.mxu1 %v17552_v36  ;;  %13591 = vmatprep.subr.bf16.mxu0 %v17557_v37  ;;  %v17618_v28 = vld [vmem:[%s18537_s13 + $0x848] ss:$16 sps:$4 sm:$0xff]   ;;  %v17623_v4 = vld [vmem:[%s18537_s13 + $0x864] ss:$16 sps:$4 sm:$0xff]   ;;  %v17626_v54 = vld [vmem:[%s18537_s13 + $0x86c] ss:$16 sps:$4 sm:$0xff]  }
0x195c   : > { %13935 = vmatprep.subr.bf16.mxu1 %v17560_v50  ;;  %v17624_v2 = vld [vmem:[%s18537_s13 + $0x868] ss:$16 sps:$4 sm:$0xff]   ;;  %v17629_v36 = vld [vmem:[%s18537_s13 + $0x884] ss:$16 sps:$4 sm:$0xff]   ;;  %v17632_v37 = vld [vmem:[%s18537_s13 + $0x88c] ss:$16 sps:$4 sm:$0xff]  }
0x195d   : > { %v17627_v50 = vld [vmem:[%s18537_s13 + $0x880] ss:$16 sps:$4 sm:$0xff]  }
0x195e   : > { %13592 = vmatpush1.bf16.msra.mxu0 %v17555_v17  ;;  %v17630_v17 = vld [vmem:[%s18537_s13 + $0x888] ss:$16 sps:$4 sm:$0xff]  }
0x195f   : > { %13936 = vmatpush1.bf16.msra.mxu1 %v17558_v60  ;;  %13593 = vmatprep.subr.bf16.mxu0 %v17563_v44  ;;  %v17635_v60 = vld [vmem:[%s18537_s13 + $0x8a4] ss:$16 sps:$4 sm:$0xff]   ;;  %v17638_v44 = vld [vmem:[%s18537_s13 + $0x8ac] ss:$16 sps:$4 sm:$0xff]  }
0x1960   : > { %13937 = vmatprep.subr.bf16.mxu1 %v17566_v35  ;;  %v17633_v35 = vld [vmem:[%s18537_s13 + $0x8a0] ss:$16 sps:$4 sm:$0xff]  }
0x1962   : > { %13594 = vmatpush1.bf16.msra.mxu0 %v17561_v7  ;;  %v17636_v7 = vld [vmem:[%s18537_s13 + $0x8a8] ss:$16 sps:$4 sm:$0xff]  }
0x1963   : > { %13938 = vmatpush1.bf16.msra.mxu1 %v17564_v15  ;;  %13595 = vmatprep.subr.bf16.mxu0 %v17569_v57  ;;  %v17641_v15 = vld [vmem:[%s18537_s13 + $0x8c4] ss:$16 sps:$4 sm:$0xff]   ;;  %v17644_v57 = vld [vmem:[%s18537_s13 + $0x8cc] ss:$16 sps:$4 sm:$0xff]  }
0x1964   : > { %13939 = vmatprep.subr.bf16.mxu1 %v17572_v42  ;;  %v17639_v42 = vld [vmem:[%s18537_s13 + $0x8c0] ss:$16 sps:$4 sm:$0xff]  }
0x1966   : > { %13596 = vmatpush1.bf16.msra.mxu0 %v17567_v43  ;;  %v17642_v43 = vld [vmem:[%s18537_s13 + $0x8c8] ss:$16 sps:$4 sm:$0xff]  }
0x1967   : > { %13940 = vmatpush1.bf16.msra.mxu1 %v17570_v49  ;;  %13597 = vmatprep.subr.bf16.mxu0 %v17575_v1  ;;  %v17647_v49 = vld [vmem:[%s18537_s13 + $0x8e4] ss:$16 sps:$4 sm:$0xff]   ;;  %v17650_v1 = vld [vmem:[%s18537_s13 + $0x8ec] ss:$16 sps:$4 sm:$0xff]  }
0x1968   : > { %13941 = vmatprep.subr.bf16.mxu1 %v17578_v53  ;;  %v17645_v53 = vld [vmem:[%s18537_s13 + $0x8e0] ss:$16 sps:$4 sm:$0xff]  }
0x196a   : > { %13598 = vmatpush1.bf16.msra.mxu0 %v17573_v5  ;;  %v17648_v5 = vld [vmem:[%s18537_s13 + $0x8e8] ss:$16 sps:$4 sm:$0xff]  }
0x196b   : > { %13942 = vmatpush1.bf16.msra.mxu1 %v17576_v8  ;;  %13599 = vmatprep.subr.bf16.mxu0 %v17581_v48  ;;  %v17653_v8 = vld [vmem:[%s18537_s13 + $0x904] ss:$16 sps:$4 sm:$0xff]   ;;  %v17656_v48 = vld [vmem:[%s18537_s13 + $0x90c] ss:$16 sps:$4 sm:$0xff]  }
0x196c   : > { %13943 = vmatprep.subr.bf16.mxu1 %v17584_v3  ;;  %v17651_v3 = vld [vmem:[%s18537_s13 + $0x900] ss:$16 sps:$4 sm:$0xff]  }
0x196e   : > { %13600 = vmatpush1.bf16.msra.mxu0 %v17579_v6  ;;  %v17654_v6 = vld [vmem:[%s18537_s13 + $0x908] ss:$16 sps:$4 sm:$0xff]  }
0x196f   : > { %13944 = vmatpush1.bf16.msra.mxu1 %v17582_v13  ;;  %13601 = vmatprep.subr.bf16.mxu0 %v17587_v12  ;;  %v17659_v13 = vld [vmem:[%s18537_s13 + $0x924] ss:$16 sps:$4 sm:$0xff]   ;;  %v17662_v12 = vld [vmem:[%s18537_s13 + $0x92c] ss:$16 sps:$4 sm:$0xff]  }
0x1970   : > { %13945 = vmatprep.subr.bf16.mxu1 %v17590_v14  ;;  %v17657_v14 = vld [vmem:[%s18537_s13 + $0x920] ss:$16 sps:$4 sm:$0xff]  }
0x1972   : > { %13602 = vmatpush1.bf16.msra.mxu0 %v17585_v52  ;;  %v17660_v52 = vld [vmem:[%s18537_s13 + $0x928] ss:$16 sps:$4 sm:$0xff]  }
0x1973   : > { %13946 = vmatpush1.bf16.msra.mxu1 %v17588_v11  ;;  %13603 = vmatprep.subr.bf16.mxu0 %v17593_v46  ;;  %v17665_v11 = vld [vmem:[%s18537_s13 + $0x944] ss:$16 sps:$4 sm:$0xff]   ;;  %v17668_v46 = vld [vmem:[%s18537_s13 + $0x94c] ss:$16 sps:$4 sm:$0xff]  }
0x1974   : > { %13947 = vmatprep.subr.bf16.mxu1 %v17596_v0  ;;  %v17663_v0 = vld [vmem:[%s18537_s13 + $0x940] ss:$16 sps:$4 sm:$0xff]  }
0x1976   : > { %13604 = vmatpush1.bf16.msra.mxu0 %v17591_v61  ;;  %v17666_v61 = vld [vmem:[%s18537_s13 + $0x948] ss:$16 sps:$4 sm:$0xff]  }
0x1977   : > { %13948 = vmatpush1.bf16.msra.mxu1 %v17594_v22  ;;  %13605 = vmatprep.subr.bf16.mxu0 %v17599_v23  ;;  %v17671_v22 = vld [vmem:[%s18537_s13 + $0x964] ss:$16 sps:$4 sm:$0xff]   ;;  %v17674_v23 = vld [vmem:[%s18537_s13 + $0x96c] ss:$16 sps:$4 sm:$0xff]  }
0x1978   : > { %13949 = vmatprep.subr.bf16.mxu1 %v17602_v24  ;;  %v17669_v24 = vld [vmem:[%s18537_s13 + $0x960] ss:$16 sps:$4 sm:$0xff]  }
0x197a   : > { %13606 = vmatpush1.bf16.msra.mxu0 %v17597_v63  ;;  %v17672_v63 = vld [vmem:[%s18537_s13 + $0x968] ss:$16 sps:$4 sm:$0xff]  }
0x197b   : > { %13950 = vmatpush1.bf16.msra.mxu1 %v17600_v40  ;;  %13618 = vmatprep.subr.bf16.mxu0 %v17605_v16  ;;  %v17677_v40 = vld [vmem:[%s18537_s13 + $0x984] ss:$16 sps:$4 sm:$0xff]   ;;  %v17680_v16 = vld [vmem:[%s18537_s13 + $0x98c] ss:$16 sps:$4 sm:$0xff]  }
0x197c   : > { %13962 = vmatprep.subr.bf16.mxu1 %v17608_v51  ;;  %v17675_v51 = vld [vmem:[%s18537_s13 + $0x980] ss:$16 sps:$4 sm:$0xff]  }
0x197d   : > { %13608 = vmatmul.mubr.bf16.vlgmr.msra.gmra.mrb[80].mxu0 %v20216_v55 }
0x197e   : > { %13952 = vmatmul.mubr.bf16.vlgmr.msra.gmra.mrb[80].mxu1 %v20216_v55  ;;  %13619 = vmatpush1.bf16.msra.mxu0 %v17603_v45  ;;  %v17615_v55 = vld [vmem:[%s18537_s13 + $0x840] ss:$16 sps:$4 sm:$0xff]   ;;  %v17678_v45 = vld [vmem:[%s18537_s13 + $0x988] ss:$16 sps:$4 sm:$0xff]  }
0x197f   : > { %13650 = vmatprep.mubr.bf16.mxu0 %v20356_v21  ;;  %13963 = vmatpush1.bf16.msra.mxu1 %v17606_v26  ;;  %v17683_v26 = vld [vmem:[%s18537_s13 + $0x9a4] ss:$16 sps:$4 sm:$0xff]  }
0x1980   : > { %13994 = vmatprep.mubr.bf16.mxu1 %v20356_v21  ;;  %13620 = vmatprep.subr.bf16.mxu0 %v17611_v59  ;;  %v17621_v21 = vld [vmem:[%s18537_s13 + $0x860] ss:$16 sps:$4 sm:$0xff]   ;;  %v17686_v59 = vld [vmem:[%s18537_s13 + $0x9ac] ss:$16 sps:$4 sm:$0xff]  }
0x1981   : > { %13964 = vmatprep.subr.bf16.mxu1 %v17614_v34  ;;  %v17681_v34 = vld [vmem:[%s18537_s13 + $0x9a0] ss:$16 sps:$4 sm:$0xff]  }
0x1982   : > { %13621 = vmatpush1.bf16.msra.mxu0 %v17609_v25  ;;  %v17684_v25 = vld [vmem:[%s18537_s13 + $0x9a8] ss:$16 sps:$4 sm:$0xff]  }
0x1983   : > { %13965 = vmatpush1.bf16.msra.mxu1 %v17612_v27  ;;  %13622 = vmatprep.subr.bf16.mxu0 %v17617_v39  ;;  %v17689_v27 = vld [vmem:[%s18537_s13 + $0x9c4] ss:$16 sps:$4 sm:$0xff]   ;;  %v17692_v39 = vld [vmem:[%s18537_s13 + $0x9cc] ss:$16 sps:$4 sm:$0xff]  }
0x1984   : > { %13966 = vmatprep.subr.bf16.mxu1 %v17620_v32  ;;  %v17687_v32 = vld [vmem:[%s18537_s13 + $0x9c0] ss:$16 sps:$4 sm:$0xff]  }
0x1986   : > { %13623 = vmatpush1.bf16.msra.mxu0 %v17615_v55  ;;  %v17690_v55 = vld [vmem:[%s18537_s13 + $0x9c8] ss:$16 sps:$4 sm:$0xff]  }
0x1987   : > { %13967 = vmatpush1.bf16.msra.mxu1 %v17618_v28  ;;  %13624 = vmatprep.subr.bf16.mxu0 %v17623_v4  ;;  %v17695_v28 = vld [vmem:[%s18537_s13 + $0x9e4] ss:$16 sps:$4 sm:$0xff]   ;;  %v17698_v4 = vld [vmem:[%s18537_s13 + $0x9ec] ss:$16 sps:$4 sm:$0xff]  }
0x1988   : > { %13968 = vmatprep.subr.bf16.mxu1 %v17626_v54  ;;  %v17693_v54 = vld [vmem:[%s18537_s13 + $0x9e0] ss:$16 sps:$4 sm:$0xff]  }
0x198a   : > { %13625 = vmatpush1.bf16.msra.mxu0 %v17621_v21  ;;  %v17696_v21 = vld [vmem:[%s18537_s13 + $0x9e8] ss:$16 sps:$4 sm:$0xff]  }
0x198b   : > { %13969 = vmatpush1.bf16.msra.mxu1 %v17624_v2  ;;  %13626 = vmatprep.subr.bf16.mxu0 %v17629_v36  ;;  %v17701_v2 = vld [vmem:[%s18537_s13 + $0xa04] ss:$16 sps:$4 sm:$0xff]   ;;  %v17704_v36 = vld [vmem:[%s18537_s13 + $0xa0c] ss:$16 sps:$4 sm:$0xff]  }
0x198c   : > { %13970 = vmatprep.subr.bf16.mxu1 %v17632_v37  ;;  %v17699_v37 = vld [vmem:[%s18537_s13 + $0xa00] ss:$16 sps:$4 sm:$0xff]  }
0x198e   : > { %13627 = vmatpush1.bf16.msra.mxu0 %v17627_v50  ;;  %v17702_v50 = vld [vmem:[%s18537_s13 + $0xa08] ss:$16 sps:$4 sm:$0xff]  }
0x198f   : > { %13971 = vmatpush1.bf16.msra.mxu1 %v17630_v17  ;;  %13628 = vmatprep.subr.bf16.mxu0 %v17635_v60  ;;  %v17707_v17 = vld [vmem:[%s18537_s13 + $0xa24] ss:$16 sps:$4 sm:$0xff]   ;;  %v17710_v60 = vld [vmem:[%s18537_s13 + $0xa2c] ss:$16 sps:$4 sm:$0xff]  }
0x1990   : > { %13972 = vmatprep.subr.bf16.mxu1 %v17638_v44  ;;  %v17705_v44 = vld [vmem:[%s18537_s13 + $0xa20] ss:$16 sps:$4 sm:$0xff]  }
0x1992   : > { %13629 = vmatpush1.bf16.msra.mxu0 %v17633_v35  ;;  %v17708_v35 = vld [vmem:[%s18537_s13 + $0xa28] ss:$16 sps:$4 sm:$0xff]  }
0x1993   : > { %13973 = vmatpush1.bf16.msra.mxu1 %v17636_v7  ;;  %13630 = vmatprep.subr.bf16.mxu0 %v17641_v15  ;;  %v17713_v7 = vld [vmem:[%s18537_s13 + $0xa44] ss:$16 sps:$4 sm:$0xff]   ;;  %v17716_v15 = vld [vmem:[%s18537_s13 + $0xa4c] ss:$16 sps:$4 sm:$0xff]  }
0x1994   : > { %13974 = vmatprep.subr.bf16.mxu1 %v17644_v57  ;;  %v17714_v57 = vld [vmem:[%s18537_s13 + $0xa48] ss:$16 sps:$4 sm:$0xff]  }
0x1996   : > { %13631 = vmatpush1.bf16.msra.mxu0 %v17639_v42  ;;  %v17719_v42 = vld [vmem:[%s18537_s13 + $0xa64] ss:$16 sps:$4 sm:$0xff]  }
0x1997   : > { %13975 = vmatpush1.bf16.msra.mxu1 %v17642_v43  ;;  %13632 = vmatprep.subr.bf16.mxu0 %v17647_v49  ;;  %v17722_v43 = vld [vmem:[%s18537_s13 + $0xa6c] ss:$16 sps:$4 sm:$0xff]   ;;  %v17720_v49 = vld [vmem:[%s18537_s13 + $0xa68] ss:$16 sps:$4 sm:$0xff]  }
0x1998   : > { %13976 = vmatprep.subr.bf16.mxu1 %v17650_v1  ;;  %v17725_v1 = vld [vmem:[%s18537_s13 + $0xa84] ss:$16 sps:$4 sm:$0xff]  }
0x199a   : > { %13633 = vmatpush1.bf16.msra.mxu0 %v17645_v53  ;;  %v17728_v53 = vld [vmem:[%s18537_s13 + $0xa8c] ss:$16 sps:$4 sm:$0xff]  }
0x199b   : > { %13977 = vmatpush1.bf16.msra.mxu1 %v17648_v5  ;;  %13634 = vmatprep.subr.bf16.mxu0 %v17653_v8  ;;  %v17723_v5 = vld [vmem:[%s18537_s13 + $0xa80] ss:$16 sps:$4 sm:$0xff]   ;;  %v17726_v8 = vld [vmem:[%s18537_s13 + $0xa88] ss:$16 sps:$4 sm:$0xff]  }
0x199c   : > { %13978 = vmatprep.subr.bf16.mxu1 %v17656_v48  ;;  %v17731_v48 = vld [vmem:[%s18537_s13 + $0xaa4] ss:$16 sps:$4 sm:$0xff]  }
0x199e   : > { %13635 = vmatpush1.bf16.msra.mxu0 %v17651_v3  ;;  %v17734_v3 = vld [vmem:[%s18537_s13 + $0xaac] ss:$16 sps:$4 sm:$0xff]  }
0x199f   : > { %13979 = vmatpush1.bf16.msra.mxu1 %v17654_v6  ;;  %13636 = vmatprep.subr.bf16.mxu0 %v17659_v13  ;;  %v17729_v6 = vld [vmem:[%s18537_s13 + $0xaa0] ss:$16 sps:$4 sm:$0xff]   ;;  %v17732_v13 = vld [vmem:[%s18537_s13 + $0xaa8] ss:$16 sps:$4 sm:$0xff]  }
0x19a0   : > { %13980 = vmatprep.subr.bf16.mxu1 %v17662_v12  ;;  %v17737_v12 = vld [vmem:[%s18537_s13 + $0xac4] ss:$16 sps:$4 sm:$0xff]  }
0x19a2   : > { %13637 = vmatpush1.bf16.msra.mxu0 %v17657_v14  ;;  %v17740_v14 = vld [vmem:[%s18537_s13 + $0xacc] ss:$16 sps:$4 sm:$0xff]  }
0x19a3   : > { %13981 = vmatpush1.bf16.msra.mxu1 %v17660_v52  ;;  %13638 = vmatprep.subr.bf16.mxu0 %v17665_v11  ;;  %v17735_v52 = vld [vmem:[%s18537_s13 + $0xac0] ss:$16 sps:$4 sm:$0xff]   ;;  %v17738_v11 = vld [vmem:[%s18537_s13 + $0xac8] ss:$16 sps:$4 sm:$0xff]  }
0x19a4   : > { %13982 = vmatprep.subr.bf16.mxu1 %v17668_v46  ;;  %v17743_v46 = vld [vmem:[%s18537_s13 + $0xae4] ss:$16 sps:$4 sm:$0xff]  }
0x19a6   : > { %13639 = vmatpush1.bf16.msra.mxu0 %v17663_v0  ;;  %v17746_v0 = vld [vmem:[%s18537_s13 + $0xaec] ss:$16 sps:$4 sm:$0xff]  }
0x19a7   : > { %13983 = vmatpush1.bf16.msra.mxu1 %v17666_v61  ;;  %13640 = vmatprep.subr.bf16.mxu0 %v17671_v22  ;;  %v17741_v61 = vld [vmem:[%s18537_s13 + $0xae0] ss:$16 sps:$4 sm:$0xff]   ;;  %v17744_v22 = vld [vmem:[%s18537_s13 + $0xae8] ss:$16 sps:$4 sm:$0xff]  }
0x19a8   : > { %13984 = vmatprep.subr.bf16.mxu1 %v17674_v23  ;;  %v17749_v23 = vld [vmem:[%s18537_s13 + $0xb04] ss:$16 sps:$4 sm:$0xff]  }
0x19aa   : > { %13641 = vmatpush1.bf16.msra.mxu0 %v17669_v24  ;;  %v17752_v24 = vld [vmem:[%s18537_s13 + $0xb0c] ss:$16 sps:$4 sm:$0xff]  }
0x19ab   : > { %13985 = vmatpush1.bf16.msra.mxu1 %v17672_v63  ;;  %13642 = vmatprep.subr.bf16.mxu0 %v17677_v40  ;;  %v17747_v63 = vld [vmem:[%s18537_s13 + $0xb00] ss:$16 sps:$4 sm:$0xff]   ;;  %v17750_v40 = vld [vmem:[%s18537_s13 + $0xb08] ss:$16 sps:$4 sm:$0xff]  }
0x19ac   : > { %13986 = vmatprep.subr.bf16.mxu1 %v17680_v16  ;;  %v17755_v16 = vld [vmem:[%s18537_s13 + $0xb24] ss:$16 sps:$4 sm:$0xff]  }
0x19ae   : > { %13643 = vmatpush1.bf16.msra.mxu0 %v17675_v51  ;;  %v17758_v51 = vld [vmem:[%s18537_s13 + $0xb2c] ss:$16 sps:$4 sm:$0xff]  }
0x19af   : > { %13987 = vmatpush1.bf16.msra.mxu1 %v17678_v45  ;;  %13644 = vmatprep.subr.bf16.mxu0 %v17683_v26  ;;  %v17753_v45 = vld [vmem:[%s18537_s13 + $0xb20] ss:$16 sps:$4 sm:$0xff]   ;;  %v17756_v26 = vld [vmem:[%s18537_s13 + $0xb28] ss:$16 sps:$4 sm:$0xff]  }
0x19b0   : > { %13988 = vmatprep.subr.bf16.mxu1 %v17686_v59  ;;  %v17761_v59 = vld [vmem:[%s18537_s13 + $0xb44] ss:$16 sps:$4 sm:$0xff]  }
0x19b2   : > { %13645 = vmatpush1.bf16.msra.mxu0 %v17681_v34  ;;  %v17764_v34 = vld [vmem:[%s18537_s13 + $0xb4c] ss:$16 sps:$4 sm:$0xff]  }
0x19b3   : > { %13989 = vmatpush1.bf16.msra.mxu1 %v17684_v25  ;;  %13646 = vmatprep.subr.bf16.mxu0 %v17689_v27  ;;  %v17759_v25 = vld [vmem:[%s18537_s13 + $0xb40] ss:$16 sps:$4 sm:$0xff]   ;;  %v17762_v27 = vld [vmem:[%s18537_s13 + $0xb48] ss:$16 sps:$4 sm:$0xff]  }
0x19b4   : > { %13990 = vmatprep.subr.bf16.mxu1 %v17692_v39  ;;  %v17767_v39 = vld [vmem:[%s18537_s13 + $0xb64] ss:$16 sps:$4 sm:$0xff]  }
0x19b6   : > { %13647 = vmatpush1.bf16.msra.mxu0 %v17687_v32  ;;  %v17770_v32 = vld [vmem:[%s18537_s13 + $0xb6c] ss:$16 sps:$4 sm:$0xff]  }
0x19b7   : > { %13991 = vmatpush1.bf16.msra.mxu1 %v17690_v55  ;;  %13648 = vmatprep.subr.bf16.mxu0 %v17695_v28  ;;  %v17765_v55 = vld [vmem:[%s18537_s13 + $0xb60] ss:$16 sps:$4 sm:$0xff]   ;;  %v17768_v28 = vld [vmem:[%s18537_s13 + $0xb68] ss:$16 sps:$4 sm:$0xff]  }
0x19b8   : > { %13992 = vmatprep.subr.bf16.mxu1 %v17698_v4  ;;  %v17773_v4 = vld [vmem:[%s18537_s13 + $0xb84] ss:$16 sps:$4 sm:$0xff]  }
0x19ba   : > { %13649 = vmatpush1.bf16.msra.mxu0 %v17693_v54  ;;  %v17776_v54 = vld [vmem:[%s18537_s13 + $0xb8c] ss:$16 sps:$4 sm:$0xff]  }
0x19bb   : > { %13993 = vmatpush1.bf16.msra.mxu1 %v17696_v21  ;;  %13661 = vmatprep.subr.bf16.mxu0 %v17701_v2  ;;  %v17771_v21 = vld [vmem:[%s18537_s13 + $0xb80] ss:$16 sps:$4 sm:$0xff]   ;;  %v17774_v2 = vld [vmem:[%s18537_s13 + $0xb88] ss:$16 sps:$4 sm:$0xff]  }
0x19bc   : > { %14005 = vmatprep.subr.bf16.mxu1 %v17704_v36  ;;  %v17779_v36 = vld [vmem:[%s18537_s13 + $0xba4] ss:$16 sps:$4 sm:$0xff]  }
0x19bd   : > { %13651 = vmatmul.mubr.bf16.vlgmr.msra.gmra.mrb[80].mxu0 %v20352_v62 }
0x19be   : > { %13995 = vmatmul.mubr.bf16.vlgmr.msra.gmra.mrb[80].mxu1 %v20352_v62  ;;  %13662 = vmatpush1.bf16.msra.mxu0 %v17699_v37  ;;  %v17711_v62 = vld [vmem:[%s18537_s13 + $0xa40] ss:$16 sps:$4 sm:$0xff]   ;;  %v17782_v37 = vld [vmem:[%s18537_s13 + $0xbac] ss:$16 sps:$4 sm:$0xff]  }
0x19bf   : > { %13693 = vmatprep.mubr.bf16.mxu0 %v20359_v9  ;;  %14006 = vmatpush1.bf16.msra.mxu1 %v17702_v50  ;;  %v17777_v50 = vld [vmem:[%s18537_s13 + $0xba0] ss:$16 sps:$4 sm:$0xff]  }
0x19c0   : > { %14037 = vmatprep.mubr.bf16.mxu1 %v20359_v9  ;;  %13663 = vmatprep.subr.bf16.mxu0 %v17707_v17  ;;  %v17717_v9 = vld [vmem:[%s18537_s13 + $0xa60] ss:$16 sps:$4 sm:$0xff]   ;;  %v17780_v17 = vld [vmem:[%s18537_s13 + $0xba8] ss:$16 sps:$4 sm:$0xff]  }
0x19c1   : > { %14007 = vmatprep.subr.bf16.mxu1 %v17710_v60  ;;  %v17785_v60 = vld [vmem:[%s18537_s13 + $0xbc4] ss:$16 sps:$4 sm:$0xff]  }
0x19c2   : > { %13664 = vmatpush1.bf16.msra.mxu0 %v17705_v44  ;;  %v17788_v44 = vld [vmem:[%s18537_s13 + $0xbcc] ss:$16 sps:$4 sm:$0xff]  }
0x19c3   : > { %14008 = vmatpush1.bf16.msra.mxu1 %v17708_v35  ;;  %13665 = vmatprep.subr.bf16.mxu0 %v17713_v7  ;;  %v17783_v35 = vld [vmem:[%s18537_s13 + $0xbc0] ss:$16 sps:$4 sm:$0xff]   ;;  %v17786_v7 = vld [vmem:[%s18537_s13 + $0xbc8] ss:$16 sps:$4 sm:$0xff]  }
0x19c4   : > { %14009 = vmatprep.subr.bf16.mxu1 %v17716_v15  ;;  %v17791_v15 = vld [vmem:[%s18537_s13 + $0xbe4] ss:$16 sps:$4 sm:$0xff]  }
0x19c6   : > { %13666 = vmatpush1.bf16.msra.mxu0 %v17711_v62  ;;  %v17794_v62 = vld [vmem:[%s18537_s13 + $0xbec] ss:$16 sps:$4 sm:$0xff]  }
0x19c7   : > { %14010 = vmatpush1.bf16.msra.mxu1 %v17714_v57  ;;  %13667 = vmatprep.subr.bf16.mxu0 %v17719_v42  ;;  %v17789_v57 = vld [vmem:[%s18537_s13 + $0xbe0] ss:$16 sps:$4 sm:$0xff]   ;;  %v17792_v42 = vld [vmem:[%s18537_s13 + $0xbe8] ss:$16 sps:$4 sm:$0xff]  }
0x19c8   : > { %14011 = vmatprep.subr.bf16.mxu1 %v17722_v43  ;;  %v17797_v43 = vld [vmem:[%s18537_s13 + $0xc04] ss:$16 sps:$4 sm:$0xff]  }
0x19ca   : > { %13668 = vmatpush1.bf16.msra.mxu0 %v17717_v9  ;;  %v17800_v9 = vld [vmem:[%s18537_s13 + $0xc0c] ss:$16 sps:$4 sm:$0xff]  }
0x19cb   : > { %14012 = vmatpush1.bf16.msra.mxu1 %v17720_v49  ;;  %13669 = vmatprep.subr.bf16.mxu0 %v17725_v1  ;;  %v17795_v49 = vld [vmem:[%s18537_s13 + $0xc00] ss:$16 sps:$4 sm:$0xff]   ;;  %v17798_v1 = vld [vmem:[%s18537_s13 + $0xc08] ss:$16 sps:$4 sm:$0xff]  }
0x19cc   : > { %14013 = vmatprep.subr.bf16.mxu1 %v17728_v53  ;;  %v17803_v53 = vld [vmem:[%s18537_s13 + $0xc24] ss:$16 sps:$4 sm:$0xff]  }
0x19ce   : > { %13670 = vmatpush1.bf16.msra.mxu0 %v17723_v5  ;;  %v17806_v5 = vld [vmem:[%s18537_s13 + $0xc2c] ss:$16 sps:$4 sm:$0xff]  }
0x19cf   : > { %14014 = vmatpush1.bf16.msra.mxu1 %v17726_v8  ;;  %13671 = vmatprep.subr.bf16.mxu0 %v17731_v48  ;;  %v17801_v8 = vld [vmem:[%s18537_s13 + $0xc20] ss:$16 sps:$4 sm:$0xff]   ;;  %v17804_v48 = vld [vmem:[%s18537_s13 + $0xc28] ss:$16 sps:$4 sm:$0xff]  }
0x19d0   : > { %14015 = vmatprep.subr.bf16.mxu1 %v17734_v3  ;;  %v17809_v3 = vld [vmem:[%s18537_s13 + $0xc44] ss:$16 sps:$4 sm:$0xff]  }
0x19d2   : > { %13672 = vmatpush1.bf16.msra.mxu0 %v17729_v6  ;;  %v17812_v6 = vld [vmem:[%s18537_s13 + $0xc4c] ss:$16 sps:$4 sm:$0xff]  }
0x19d3   : > { %14016 = vmatpush1.bf16.msra.mxu1 %v17732_v13  ;;  %13673 = vmatprep.subr.bf16.mxu0 %v17737_v12  ;;  %v17810_v13 = vld [vmem:[%s18537_s13 + $0xc48] ss:$16 sps:$4 sm:$0xff]   ;;  %v17815_v12 = vld [vmem:[%s18537_s13 + $0xc64] ss:$16 sps:$4 sm:$0xff]  }
0x19d4   : > { %14017 = vmatprep.subr.bf16.mxu1 %v17740_v14  ;;  %v17818_v14 = vld [vmem:[%s18537_s13 + $0xc6c] ss:$16 sps:$4 sm:$0xff]  }
0x19d6   : > { %13674 = vmatpush1.bf16.msra.mxu0 %v17735_v52  ;;  %v17816_v52 = vld [vmem:[%s18537_s13 + $0xc68] ss:$16 sps:$4 sm:$0xff]  }
0x19d7   : > { %14018 = vmatpush1.bf16.msra.mxu1 %v17738_v11  ;;  %13675 = vmatprep.subr.bf16.mxu0 %v17743_v46  ;;  %v17821_v11 = vld [vmem:[%s18537_s13 + $0xc84] ss:$16 sps:$4 sm:$0xff]   ;;  %v17824_v46 = vld [vmem:[%s18537_s13 + $0xc8c] ss:$16 sps:$4 sm:$0xff]  }
0x19d8   : > { %14019 = vmatprep.subr.bf16.mxu1 %v17746_v0  ;;  %v17819_v0 = vld [vmem:[%s18537_s13 + $0xc80] ss:$16 sps:$4 sm:$0xff]  }
0x19da   : > { %13676 = vmatpush1.bf16.msra.mxu0 %v17741_v61  ;;  %v17822_v61 = vld [vmem:[%s18537_s13 + $0xc88] ss:$16 sps:$4 sm:$0xff]  }
0x19db   : > { %14020 = vmatpush1.bf16.msra.mxu1 %v17744_v22  ;;  %13677 = vmatprep.subr.bf16.mxu0 %v17749_v23  ;;  %v17827_v22 = vld [vmem:[%s18537_s13 + $0xca4] ss:$16 sps:$4 sm:$0xff]   ;;  %v17830_v23 = vld [vmem:[%s18537_s13 + $0xcac] ss:$16 sps:$4 sm:$0xff]  }
0x19dc   : > { %14021 = vmatprep.subr.bf16.mxu1 %v17752_v24  ;;  %v17825_v24 = vld [vmem:[%s18537_s13 + $0xca0] ss:$16 sps:$4 sm:$0xff]  }
0x19de   : > { %13678 = vmatpush1.bf16.msra.mxu0 %v17747_v63  ;;  %v17828_v63 = vld [vmem:[%s18537_s13 + $0xca8] ss:$16 sps:$4 sm:$0xff]  }
0x19df   : > { %14022 = vmatpush1.bf16.msra.mxu1 %v17750_v40  ;;  %13679 = vmatprep.subr.bf16.mxu0 %v17755_v16  ;;  %v17833_v40 = vld [vmem:[%s18537_s13 + $0xcc4] ss:$16 sps:$4 sm:$0xff]   ;;  %v17836_v16 = vld [vmem:[%s18537_s13 + $0xccc] ss:$16 sps:$4 sm:$0xff]  }
0x19e0   : > { %14023 = vmatprep.subr.bf16.mxu1 %v17758_v51  ;;  %v17831_v51 = vld [vmem:[%s18537_s13 + $0xcc0] ss:$16 sps:$4 sm:$0xff]  }
0x19e2   : > { %13680 = vmatpush1.bf16.msra.mxu0 %v17753_v45  ;;  %v17834_v45 = vld [vmem:[%s18537_s13 + $0xcc8] ss:$16 sps:$4 sm:$0xff]  }
0x19e3   : > { %14024 = vmatpush1.bf16.msra.mxu1 %v17756_v26  ;;  %13681 = vmatprep.subr.bf16.mxu0 %v17761_v59  ;;  %v17839_v26 = vld [vmem:[%s18537_s13 + $0xce4] ss:$16 sps:$4 sm:$0xff]   ;;  %v17842_v59 = vld [vmem:[%s18537_s13 + $0xcec] ss:$16 sps:$4 sm:$0xff]  }
0x19e4   : > { %14025 = vmatprep.subr.bf16.mxu1 %v17764_v34  ;;  %v17837_v34 = vld [vmem:[%s18537_s13 + $0xce0] ss:$16 sps:$4 sm:$0xff]  }
0x19e6   : > { %13682 = vmatpush1.bf16.msra.mxu0 %v17759_v25  ;;  %v17840_v25 = vld [vmem:[%s18537_s13 + $0xce8] ss:$16 sps:$4 sm:$0xff]  }
0x19e7   : > { %14026 = vmatpush1.bf16.msra.mxu1 %v17762_v27  ;;  %13683 = vmatprep.subr.bf16.mxu0 %v17767_v39  ;;  %v17845_v27 = vld [vmem:[%s18537_s13 + $0xd04] ss:$16 sps:$4 sm:$0xff]   ;;  %v17848_v39 = vld [vmem:[%s18537_s13 + $0xd0c] ss:$16 sps:$4 sm:$0xff]  }
0x19e8   : > { %14027 = vmatprep.subr.bf16.mxu1 %v17770_v32  ;;  %v17843_v32 = vld [vmem:[%s18537_s13 + $0xd00] ss:$16 sps:$4 sm:$0xff]  }
0x19ea   : > { %13684 = vmatpush1.bf16.msra.mxu0 %v17765_v55  ;;  %v17846_v55 = vld [vmem:[%s18537_s13 + $0xd08] ss:$16 sps:$4 sm:$0xff]  }
0x19eb   : > { %14028 = vmatpush1.bf16.msra.mxu1 %v17768_v28  ;;  %13685 = vmatprep.subr.bf16.mxu0 %v17773_v4  ;;  %v17851_v28 = vld [vmem:[%s18537_s13 + $0xd24] ss:$16 sps:$4 sm:$0xff]   ;;  %v17854_v4 = vld [vmem:[%s18537_s13 + $0xd2c] ss:$16 sps:$4 sm:$0xff]  }
0x19ec   : > { %14029 = vmatprep.subr.bf16.mxu1 %v17776_v54  ;;  %v17849_v54 = vld [vmem:[%s18537_s13 + $0xd20] ss:$16 sps:$4 sm:$0xff]  }
0x19ee   : > { %13686 = vmatpush1.bf16.msra.mxu0 %v17771_v21  ;;  %v17852_v21 = vld [vmem:[%s18537_s13 + $0xd28] ss:$16 sps:$4 sm:$0xff]  }
0x19ef   : > { %14030 = vmatpush1.bf16.msra.mxu1 %v17774_v2  ;;  %13687 = vmatprep.subr.bf16.mxu0 %v17779_v36  ;;  %v17857_v2 = vld [vmem:[%s18537_s13 + $0xd44] ss:$16 sps:$4 sm:$0xff]   ;;  %v17860_v36 = vld [vmem:[%s18537_s13 + $0xd4c] ss:$16 sps:$4 sm:$0xff]  }
0x19f0   : > { %14031 = vmatprep.subr.bf16.mxu1 %v17782_v37  ;;  %v17855_v37 = vld [vmem:[%s18537_s13 + $0xd40] ss:$16 sps:$4 sm:$0xff]  }
0x19f2   : > { %13688 = vmatpush1.bf16.msra.mxu0 %v17777_v50  ;;  %v17858_v50 = vld [vmem:[%s18537_s13 + $0xd48] ss:$16 sps:$4 sm:$0xff]  }
0x19f3   : > { %14032 = vmatpush1.bf16.msra.mxu1 %v17780_v17  ;;  %13689 = vmatprep.subr.bf16.mxu0 %v17785_v60  ;;  %v17863_v17 = vld [vmem:[%s18537_s13 + $0xd64] ss:$16 sps:$4 sm:$0xff]   ;;  %v17866_v60 = vld [vmem:[%s18537_s13 + $0xd6c] ss:$16 sps:$4 sm:$0xff]  }
0x19f4   : > { %14033 = vmatprep.subr.bf16.mxu1 %v17788_v44  ;;  %v17861_v44 = vld [vmem:[%s18537_s13 + $0xd60] ss:$16 sps:$4 sm:$0xff]  }
0x19f6   : > { %13690 = vmatpush1.bf16.msra.mxu0 %v17783_v35  ;;  %v17864_v35 = vld [vmem:[%s18537_s13 + $0xd68] ss:$16 sps:$4 sm:$0xff]  }
0x19f7   : > { %14034 = vmatpush1.bf16.msra.mxu1 %v17786_v7  ;;  %13691 = vmatprep.subr.bf16.mxu0 %v17791_v15  ;;  %v17869_v7 = vld [vmem:[%s18537_s13 + $0xd84] ss:$16 sps:$4 sm:$0xff]   ;;  %v17872_v15 = vld [vmem:[%s18537_s13 + $0xd8c] ss:$16 sps:$4 sm:$0xff]  }
0x19f8   : > { %14035 = vmatprep.subr.bf16.mxu1 %v17794_v62  ;;  %v17867_v62 = vld [vmem:[%s18537_s13 + $0xd80] ss:$16 sps:$4 sm:$0xff]  }
0x19fa   : > { %13692 = vmatpush1.bf16.msra.mxu0 %v17789_v57  ;;  %v17870_v57 = vld [vmem:[%s18537_s13 + $0xd88] ss:$16 sps:$4 sm:$0xff]  }
0x19fb   : > { %14036 = vmatpush1.bf16.msra.mxu1 %v17792_v42  ;;  %13704 = vmatprep.subr.bf16.mxu0 %v17797_v43  ;;  %v17875_v42 = vld [vmem:[%s18537_s13 + $0xda4] ss:$16 sps:$4 sm:$0xff]   ;;  %v17878_v43 = vld [vmem:[%s18537_s13 + $0xdac] ss:$16 sps:$4 sm:$0xff]  }
0x19fc   : > { %14048 = vmatprep.subr.bf16.mxu1 %v17800_v9  ;;  %v17873_v9 = vld [vmem:[%s18537_s13 + $0xda0] ss:$16 sps:$4 sm:$0xff]  }
0x19fd   : > { %13694 = vmatmul.mubr.bf16.vlgmr.msra.gmra.mrb[80].mxu0 %v20354_v19 }
0x19fe   : > { %14038 = vmatmul.mubr.bf16.vlgmr.msra.gmra.mrb[80].mxu1 %v20354_v19  ;;  %13705 = vmatpush1.bf16.msra.mxu0 %v17795_v49  ;;  %v17807_v19 = vld [vmem:[%s18537_s13 + $0xc40] ss:$16 sps:$4 sm:$0xff]   ;;  %v17876_v49 = vld [vmem:[%s18537_s13 + $0xda8] ss:$16 sps:$4 sm:$0xff]  }
0x19ff   : > { %13736 = vmatprep.mubr.bf16.mxu0 %v20500_v58  ;;  %14049 = vmatpush1.bf16.msra.mxu1 %v17798_v1  ;;  %v17881_v1 = vld [vmem:[%s18537_s13 + $0xdc4] ss:$16 sps:$4 sm:$0xff]  }
0x1a00   : > { %14080 = vmatprep.mubr.bf16.mxu1 %v20500_v58  ;;  %13706 = vmatprep.subr.bf16.mxu0 %v17803_v53  ;;  %v17813_v58 = vld [vmem:[%s18537_s13 + $0xc60] ss:$16 sps:$4 sm:$0xff]   ;;  %v17884_v53 = vld [vmem:[%s18537_s13 + $0xdcc] ss:$16 sps:$4 sm:$0xff]  }
0x1a01   : > { %14050 = vmatprep.subr.bf16.mxu1 %v17806_v5  ;;  %v17879_v5 = vld [vmem:[%s18537_s13 + $0xdc0] ss:$16 sps:$4 sm:$0xff]  }
0x1a02   : > { %13707 = vmatpush1.bf16.msra.mxu0 %v17801_v8  ;;  %v17882_v8 = vld [vmem:[%s18537_s13 + $0xdc8] ss:$16 sps:$4 sm:$0xff]  }
0x1a03   : > { %14051 = vmatpush1.bf16.msra.mxu1 %v17804_v48  ;;  %13708 = vmatprep.subr.bf16.mxu0 %v17809_v3  ;;  %v17887_v48 = vld [vmem:[%s18537_s13 + $0xde4] ss:$16 sps:$4 sm:$0xff]   ;;  %v17890_v3 = vld [vmem:[%s18537_s13 + $0xdec] ss:$16 sps:$4 sm:$0xff]  }
0x1a04   : > { %14052 = vmatprep.subr.bf16.mxu1 %v17812_v6  ;;  %v17885_v6 = vld [vmem:[%s18537_s13 + $0xde0] ss:$16 sps:$4 sm:$0xff]  }
0x1a06   : > { %13709 = vmatpush1.bf16.msra.mxu0 %v17807_v19  ;;  %v17888_v19 = vld [vmem:[%s18537_s13 + $0xde8] ss:$16 sps:$4 sm:$0xff]  }
0x1a07   : > { %14053 = vmatpush1.bf16.msra.mxu1 %v17810_v13  ;;  %13710 = vmatprep.subr.bf16.mxu0 %v17815_v12  ;;  %v17893_v13 = vld [vmem:[%s18537_s13 + $0xe04] ss:$16 sps:$4 sm:$0xff]   ;;  %v17896_v12 = vld [vmem:[%s18537_s13 + $0xe0c] ss:$16 sps:$4 sm:$0xff]  }
0x1a08   : > { %14054 = vmatprep.subr.bf16.mxu1 %v17818_v14  ;;  %v17891_v14 = vld [vmem:[%s18537_s13 + $0xe00] ss:$16 sps:$4 sm:$0xff]  }
0x1a0a   : > { %13711 = vmatpush1.bf16.msra.mxu0 %v17813_v58  ;;  %v17894_v58 = vld [vmem:[%s18537_s13 + $0xe08] ss:$16 sps:$4 sm:$0xff]  }
0x1a0b   : > { %14055 = vmatpush1.bf16.msra.mxu1 %v17816_v52  ;;  %13712 = vmatprep.subr.bf16.mxu0 %v17821_v11  ;;  %v17899_v52 = vld [vmem:[%s18537_s13 + $0xe24] ss:$16 sps:$4 sm:$0xff]   ;;  %v17902_v11 = vld [vmem:[%s18537_s13 + $0xe2c] ss:$16 sps:$4 sm:$0xff]  }
0x1a0c   : > { %14056 = vmatprep.subr.bf16.mxu1 %v17824_v46  ;;  %v17897_v46 = vld [vmem:[%s18537_s13 + $0xe20] ss:$16 sps:$4 sm:$0xff]  }
0x1a0e   : > { %13713 = vmatpush1.bf16.msra.mxu0 %v17819_v0  ;;  %v17900_v0 = vld [vmem:[%s18537_s13 + $0xe28] ss:$16 sps:$4 sm:$0xff]  }
0x1a0f   : > { %14057 = vmatpush1.bf16.msra.mxu1 %v17822_v61  ;;  %13714 = vmatprep.subr.bf16.mxu0 %v17827_v22  ;;  %v17905_v61 = vld [vmem:[%s18537_s13 + $0xe44] ss:$16 sps:$4 sm:$0xff]   ;;  %v17908_v22 = vld [vmem:[%s18537_s13 + $0xe4c] ss:$16 sps:$4 sm:$0xff]  }
0x1a10   : > { %14058 = vmatprep.subr.bf16.mxu1 %v17830_v23  ;;  %v17906_v23 = vld [vmem:[%s18537_s13 + $0xe48] ss:$16 sps:$4 sm:$0xff]  }
0x1a12   : > { %13715 = vmatpush1.bf16.msra.mxu0 %v17825_v24  ;;  %v17911_v24 = vld [vmem:[%s18537_s13 + $0xe64] ss:$16 sps:$4 sm:$0xff]  }
0x1a13   : > { %14059 = vmatpush1.bf16.msra.mxu1 %v17828_v63  ;;  %13716 = vmatprep.subr.bf16.mxu0 %v17833_v40  ;;  %v17914_v63 = vld [vmem:[%s18537_s13 + $0xe6c] ss:$16 sps:$4 sm:$0xff]   ;;  %v17912_v40 = vld [vmem:[%s18537_s13 + $0xe68] ss:$16 sps:$4 sm:$0xff]  }
0x1a14   : > { %14060 = vmatprep.subr.bf16.mxu1 %v17836_v16  ;;  %v17917_v16 = vld [vmem:[%s18537_s13 + $0xe84] ss:$16 sps:$4 sm:$0xff]  }
0x1a16   : > { %13717 = vmatpush1.bf16.msra.mxu0 %v17831_v51  ;;  %v17920_v51 = vld [vmem:[%s18537_s13 + $0xe8c] ss:$16 sps:$4 sm:$0xff]  }
0x1a17   : > { %14061 = vmatpush1.bf16.msra.mxu1 %v17834_v45  ;;  %13718 = vmatprep.subr.bf16.mxu0 %v17839_v26  ;;  %v17915_v45 = vld [vmem:[%s18537_s13 + $0xe80] ss:$16 sps:$4 sm:$0xff]   ;;  %v17918_v26 = vld [vmem:[%s18537_s13 + $0xe88] ss:$16 sps:$4 sm:$0xff]  }
0x1a18   : > { %14062 = vmatprep.subr.bf16.mxu1 %v17842_v59  ;;  %v17923_v59 = vld [vmem:[%s18537_s13 + $0xea4] ss:$16 sps:$4 sm:$0xff]  }
0x1a1a   : > { %13719 = vmatpush1.bf16.msra.mxu0 %v17837_v34  ;;  %v17926_v34 = vld [vmem:[%s18537_s13 + $0xeac] ss:$16 sps:$4 sm:$0xff]  }
0x1a1b   : > { %14063 = vmatpush1.bf16.msra.mxu1 %v17840_v25  ;;  %13720 = vmatprep.subr.bf16.mxu0 %v17845_v27  ;;  %v17921_v25 = vld [vmem:[%s18537_s13 + $0xea0] ss:$16 sps:$4 sm:$0xff]   ;;  %v17924_v27 = vld [vmem:[%s18537_s13 + $0xea8] ss:$16 sps:$4 sm:$0xff]  }
0x1a1c   : > { %14064 = vmatprep.subr.bf16.mxu1 %v17848_v39  ;;  %v17929_v39 = vld [vmem:[%s18537_s13 + $0xec4] ss:$16 sps:$4 sm:$0xff]  }
0x1a1e   : > { %13721 = vmatpush1.bf16.msra.mxu0 %v17843_v32  ;;  %v17932_v32 = vld [vmem:[%s18537_s13 + $0xecc] ss:$16 sps:$4 sm:$0xff]  }
0x1a1f   : > { %14065 = vmatpush1.bf16.msra.mxu1 %v17846_v55  ;;  %13722 = vmatprep.subr.bf16.mxu0 %v17851_v28  ;;  %v17927_v55 = vld [vmem:[%s18537_s13 + $0xec0] ss:$16 sps:$4 sm:$0xff]   ;;  %v17930_v28 = vld [vmem:[%s18537_s13 + $0xec8] ss:$16 sps:$4 sm:$0xff]  }
0x1a20   : > { %14066 = vmatprep.subr.bf16.mxu1 %v17854_v4  ;;  %v17935_v4 = vld [vmem:[%s18537_s13 + $0xee4] ss:$16 sps:$4 sm:$0xff]  }
0x1a22   : > { %13723 = vmatpush1.bf16.msra.mxu0 %v17849_v54  ;;  %v17938_v54 = vld [vmem:[%s18537_s13 + $0xeec] ss:$16 sps:$4 sm:$0xff]  }
0x1a23   : > { %14067 = vmatpush1.bf16.msra.mxu1 %v17852_v21  ;;  %13724 = vmatprep.subr.bf16.mxu0 %v17857_v2  ;;  %v17933_v21 = vld [vmem:[%s18537_s13 + $0xee0] ss:$16 sps:$4 sm:$0xff]   ;;  %v17936_v2 = vld [vmem:[%s18537_s13 + $0xee8] ss:$16 sps:$4 sm:$0xff]  }
0x1a24   : > { %14068 = vmatprep.subr.bf16.mxu1 %v17860_v36  ;;  %v17941_v36 = vld [vmem:[%s18537_s13 + $0xf04] ss:$16 sps:$4 sm:$0xff]  }
0x1a26   : > { %13725 = vmatpush1.bf16.msra.mxu0 %v17855_v37  ;;  %v17944_v37 = vld [vmem:[%s18537_s13 + $0xf0c] ss:$16 sps:$4 sm:$0xff]  }
0x1a27   : > { %14069 = vmatpush1.bf16.msra.mxu1 %v17858_v50  ;;  %13726 = vmatprep.subr.bf16.mxu0 %v17863_v17  ;;  %v17939_v50 = vld [vmem:[%s18537_s13 + $0xf00] ss:$16 sps:$4 sm:$0xff]   ;;  %v17942_v17 = vld [vmem:[%s18537_s13 + $0xf08] ss:$16 sps:$4 sm:$0xff]  }
0x1a28   : > { %14070 = vmatprep.subr.bf16.mxu1 %v17866_v60  ;;  %v17947_v60 = vld [vmem:[%s18537_s13 + $0xf24] ss:$16 sps:$4 sm:$0xff]  }
0x1a2a   : > { %13727 = vmatpush1.bf16.msra.mxu0 %v17861_v44  ;;  %v17950_v44 = vld [vmem:[%s18537_s13 + $0xf2c] ss:$16 sps:$4 sm:$0xff]  }
0x1a2b   : > { %14071 = vmatpush1.bf16.msra.mxu1 %v17864_v35  ;;  %13728 = vmatprep.subr.bf16.mxu0 %v17869_v7  ;;  %v17945_v35 = vld [vmem:[%s18537_s13 + $0xf20] ss:$16 sps:$4 sm:$0xff]   ;;  %v17948_v7 = vld [vmem:[%s18537_s13 + $0xf28] ss:$16 sps:$4 sm:$0xff]  }
0x1a2c   : > { %14072 = vmatprep.subr.bf16.mxu1 %v17872_v15  ;;  %v17953_v15 = vld [vmem:[%s18537_s13 + $0xf44] ss:$16 sps:$4 sm:$0xff]  }
0x1a2e   : > { %13729 = vmatpush1.bf16.msra.mxu0 %v17867_v62  ;;  %v17956_v62 = vld [vmem:[%s18537_s13 + $0xf4c] ss:$16 sps:$4 sm:$0xff]  }
0x1a2f   : > { %14073 = vmatpush1.bf16.msra.mxu1 %v17870_v57  ;;  %13730 = vmatprep.subr.bf16.mxu0 %v17875_v42  ;;  %v17951_v57 = vld [vmem:[%s18537_s13 + $0xf40] ss:$16 sps:$4 sm:$0xff]   ;;  %v17954_v42 = vld [vmem:[%s18537_s13 + $0xf48] ss:$16 sps:$4 sm:$0xff]  }
0x1a30   : > { %14074 = vmatprep.subr.bf16.mxu1 %v17878_v43  ;;  %v17959_v43 = vld [vmem:[%s18537_s13 + $0xf64] ss:$16 sps:$4 sm:$0xff]  }
0x1a32   : > { %13731 = vmatpush1.bf16.msra.mxu0 %v17873_v9  ;;  %v17962_v9 = vld [vmem:[%s18537_s13 + $0xf6c] ss:$16 sps:$4 sm:$0xff]  }
0x1a33   : > { %14075 = vmatpush1.bf16.msra.mxu1 %v17876_v49  ;;  %13732 = vmatprep.subr.bf16.mxu0 %v17881_v1  ;;  %v17957_v49 = vld [vmem:[%s18537_s13 + $0xf60] ss:$16 sps:$4 sm:$0xff]   ;;  %v17960_v1 = vld [vmem:[%s18537_s13 + $0xf68] ss:$16 sps:$4 sm:$0xff]  }
0x1a34   : > { %14076 = vmatprep.subr.bf16.mxu1 %v17884_v53  ;;  %v17965_v53 = vld [vmem:[%s18537_s13 + $0xf84] ss:$16 sps:$4 sm:$0xff]  }
0x1a36   : > { %13733 = vmatpush1.bf16.msra.mxu0 %v17879_v5  ;;  %v17968_v5 = vld [vmem:[%s18537_s13 + $0xf8c] ss:$16 sps:$4 sm:$0xff]  }
0x1a37   : > { %14077 = vmatpush1.bf16.msra.mxu1 %v17882_v8  ;;  %13734 = vmatprep.subr.bf16.mxu0 %v17887_v48  ;;  %v17963_v8 = vld [vmem:[%s18537_s13 + $0xf80] ss:$16 sps:$4 sm:$0xff]   ;;  %v17966_v48 = vld [vmem:[%s18537_s13 + $0xf88] ss:$16 sps:$4 sm:$0xff]  }
0x1a38   : > { %14078 = vmatprep.subr.bf16.mxu1 %v17890_v3  ;;  %v17971_v3 = vld [vmem:[%s18537_s13 + $0xfa4] ss:$16 sps:$4 sm:$0xff]  }
0x1a3a   : > { %13735 = vmatpush1.bf16.msra.mxu0 %v17885_v6  ;;  %v17974_v6 = vld [vmem:[%s18537_s13 + $0xfac] ss:$16 sps:$4 sm:$0xff]  }
0x1a3b   : > { %14079 = vmatpush1.bf16.msra.mxu1 %v17888_v19  ;;  %13747 = vmatprep.subr.bf16.mxu0 %v17893_v13  ;;  %v17969_v19 = vld [vmem:[%s18537_s13 + $0xfa0] ss:$16 sps:$4 sm:$0xff]   ;;  %v17972_v13 = vld [vmem:[%s18537_s13 + $0xfa8] ss:$16 sps:$4 sm:$0xff]  }
0x1a3c   : > { %14091 = vmatprep.subr.bf16.mxu1 %v17896_v12  ;;  %v17977_v12 = vld [vmem:[%s18537_s13 + $0xfc4] ss:$16 sps:$4 sm:$0xff]  }
0x1a3d   : > { %13737 = vmatmul.mubr.bf16.vlgmr.msra.gmra.mrb[80].mxu0 %v20496_v47 }
0x1a3e   : > { %14081 = vmatmul.mubr.bf16.vlgmr.msra.gmra.mrb[80].mxu1 %v20496_v47  ;;  %13748 = vmatpush1.bf16.msra.mxu0 %v17891_v14  ;;  %v17903_v47 = vld [vmem:[%s18537_s13 + $0xe40] ss:$16 sps:$4 sm:$0xff]   ;;  %v17980_v14 = vld [vmem:[%s18537_s13 + $0xfcc] ss:$16 sps:$4 sm:$0xff]  }
0x1a3f   : > { %13779 = vmatprep.mubr.bf16.mxu0 %v20503_v56  ;;  %14092 = vmatpush1.bf16.msra.mxu1 %v17894_v58  ;;  %v17975_v58 = vld [vmem:[%s18537_s13 + $0xfc0] ss:$16 sps:$4 sm:$0xff]  }
0x1a40   : > { %14123 = vmatprep.mubr.bf16.mxu1 %v20503_v56  ;;  %13749 = vmatprep.subr.bf16.mxu0 %v17899_v52  ;;  %v17909_v56 = vld [vmem:[%s18537_s13 + $0xe60] ss:$16 sps:$4 sm:$0xff]   ;;  %v17978_v52 = vld [vmem:[%s18537_s13 + $0xfc8] ss:$16 sps:$4 sm:$0xff]  }
0x1a41   : > { %14093 = vmatprep.subr.bf16.mxu1 %v17902_v11  ;;  %v17983_v11 = vld [vmem:[%s18537_s13 + $0xfe4] ss:$16 sps:$4 sm:$0xff]  }
0x1a42   : > { %13750 = vmatpush1.bf16.msra.mxu0 %v17897_v46  ;;  %v17986_v46 = vld [vmem:[%s18537_s13 + $0xfec] ss:$16 sps:$4 sm:$0xff]  }
0x1a43   : > { %14094 = vmatpush1.bf16.msra.mxu1 %v17900_v0  ;;  %13751 = vmatprep.subr.bf16.mxu0 %v17905_v61  ;;  %v17981_v0 = vld [vmem:[%s18537_s13 + $0xfe0] ss:$16 sps:$4 sm:$0xff]   ;;  %v17984_v61 = vld [vmem:[%s18537_s13 + $0xfe8] ss:$16 sps:$4 sm:$0xff]  }
0x1a44   : > { %14095 = vmatprep.subr.bf16.mxu1 %v17908_v22 }
0x1a46   : > { %13752 = vmatpush1.bf16.msra.mxu0 %v17903_v47 }
0x1a47   : > { %14096 = vmatpush1.bf16.msra.mxu1 %v17906_v23  ;;  %13753 = vmatprep.subr.bf16.mxu0 %v17911_v24 }
0x1a48   : > { %14097 = vmatprep.subr.bf16.mxu1 %v17914_v63 }
0x1a4a   : > { %13754 = vmatpush1.bf16.msra.mxu0 %v17909_v56 }
0x1a4b   : > { %14098 = vmatpush1.bf16.msra.mxu1 %v17912_v40  ;;  %13755 = vmatprep.subr.bf16.mxu0 %v17917_v16 }
0x1a4c   : > { %14099 = vmatprep.subr.bf16.mxu1 %v17920_v51 }
0x1a4e   : > { %13756 = vmatpush1.bf16.msra.mxu0 %v17915_v45 }
0x1a4f   : > { %14100 = vmatpush1.bf16.msra.mxu1 %v17918_v26  ;;  %13757 = vmatprep.subr.bf16.mxu0 %v17923_v59 }
0x1a50   : > { %14101 = vmatprep.subr.bf16.mxu1 %v17926_v34 }
0x1a52   : > { %13758 = vmatpush1.bf16.msra.mxu0 %v17921_v25 }
0x1a53   : > { %14102 = vmatpush1.bf16.msra.mxu1 %v17924_v27  ;;  %13759 = vmatprep.subr.bf16.mxu0 %v17929_v39 }
0x1a54   : > { %14103 = vmatprep.subr.bf16.mxu1 %v17932_v32 }
0x1a56   : > { %13760 = vmatpush1.bf16.msra.mxu0 %v17927_v55 }
0x1a57   : > { %14104 = vmatpush1.bf16.msra.mxu1 %v17930_v28  ;;  %13761 = vmatprep.subr.bf16.mxu0 %v17935_v4 }
0x1a58   : > { %14105 = vmatprep.subr.bf16.mxu1 %v17938_v54 }
0x1a5a   : > { %13762 = vmatpush1.bf16.msra.mxu0 %v17933_v21 }
0x1a5b   : > { %14106 = vmatpush1.bf16.msra.mxu1 %v17936_v2  ;;  %13763 = vmatprep.subr.bf16.mxu0 %v17941_v36 }
0x1a5c   : > { %14107 = vmatprep.subr.bf16.mxu1 %v17944_v37 }
0x1a5e   : > { %13764 = vmatpush1.bf16.msra.mxu0 %v17939_v50 }
0x1a5f   : > { %14108 = vmatpush1.bf16.msra.mxu1 %v17942_v17  ;;  %13765 = vmatprep.subr.bf16.mxu0 %v17947_v60 }
0x1a60   : > { %14109 = vmatprep.subr.bf16.mxu1 %v17950_v44 }
0x1a62   : > { %13766 = vmatpush1.bf16.msra.mxu0 %v17945_v35 }
0x1a63   : > { %14110 = vmatpush1.bf16.msra.mxu1 %v17948_v7  ;;  %13767 = vmatprep.subr.bf16.mxu0 %v17953_v15 }
0x1a64   : > { %14111 = vmatprep.subr.bf16.mxu1 %v17956_v62 }
0x1a66   : > { %13768 = vmatpush1.bf16.msra.mxu0 %v17951_v57 }
0x1a67   : > { %14112 = vmatpush1.bf16.msra.mxu1 %v17954_v42  ;;  %13769 = vmatprep.subr.bf16.mxu0 %v17959_v43 }
0x1a68   : > { %14113 = vmatprep.subr.bf16.mxu1 %v17962_v9 }
0x1a6a   : > { %13770 = vmatpush1.bf16.msra.mxu0 %v17957_v49 }
0x1a6b   : > { %14114 = vmatpush1.bf16.msra.mxu1 %v17960_v1  ;;  %13771 = vmatprep.subr.bf16.mxu0 %v17965_v53 }
0x1a6c   : > { %14115 = vmatprep.subr.bf16.mxu1 %v17968_v5 }
0x1a6e   : > { %13772 = vmatpush1.bf16.msra.mxu0 %v17963_v8 }
0x1a6f   : > { %14116 = vmatpush1.bf16.msra.mxu1 %v17966_v48  ;;  %13773 = vmatprep.subr.bf16.mxu0 %v17971_v3 }
0x1a70   : > { %14117 = vmatprep.subr.bf16.mxu1 %v17974_v6 }
0x1a72   : > { %13774 = vmatpush1.bf16.msra.mxu0 %v17969_v19 }
0x1a73   : > { %14118 = vmatpush1.bf16.msra.mxu1 %v17972_v13  ;;  %13775 = vmatprep.subr.bf16.mxu0 %v17977_v12 }
0x1a74   : > { %14119 = vmatprep.subr.bf16.mxu1 %v17980_v14 }
0x1a76   : > { %13776 = vmatpush1.bf16.msra.mxu0 %v17975_v58 }
0x1a77   : > { %14120 = vmatpush1.bf16.msra.mxu1 %v17978_v52  ;;  %13777 = vmatprep.subr.bf16.mxu0 %v17983_v11 }
0x1a78   : > { %14121 = vmatprep.subr.bf16.mxu1 %v17986_v46 }
0x1a7a   : > { %13778 = vmatpush1.bf16.msra.mxu0 %v17981_v0 }
0x1a7b   : > { %14122 = vmatpush1.bf16.msra.mxu1 %v17984_v61 }
0x1a7d   : > { %13780 = vmatmul.mubr.bf16.vlgmr.msra.gmra.mrb[80].mxu0 %v20498_v30 }
0x1a7e   : > { %14124 = vmatmul.mubr.bf16.vlgmr.msra.gmra.mrb[80].mxu1 %v20498_v30 }
0x1b50   : > { %v13781_v22 = vpop.f32.mrb[80].mxu0 }
0x1b51   : > { %v16228_v47 = vadd.f32 %v13781_v22, %v19722_v38  ;;  %v14125_v23 = vpop.f32.mrb[80].mxu1  ;;  %v13783_v24 = vpop.f32.mrb[81].mxu0 }
0x1b52   : > { %v16229_v63 = vadd.f32 %v13783_v24, %v19714_v18  ;;  %v14127_v56 = vpop.f32.mrb[81].mxu1  ;;  %v13785_v40 = vpop.f32.mrb[82].mxu0  ;;  %v16232_v26 = vadd.f32 %v14125_v23, %v19825_v33 }
0x1b53   : > { %v16230_v16 = vadd.f32 %v13785_v40, %v19726_v41  ;;  %v14129_v51 = vpop.f32.mrb[82].mxu1  ;;  %v13787_v45 = vpop.f32.mrb[83].mxu0  ;;  %v16233_v30 = vadd.f32 %v14127_v56, %v19746_v29 }
0x1b54   : > { %v14134_v59 = vadd.f32 %v16229_v63, %v16228_v47  ;;  %v16231_v34 = vadd.f32 %v13787_v45, %v19718_v20  ;;  %v14131_v25 = vpop.f32.mrb[83].mxu1  ;;  %v16234_v38 = vadd.f32 %v14129_v51, %v19820_v31 }
0x1b55   : > { %v16235_v18 = vadd.f32 %v14131_v25, %v19731_v10 }
0x1b56   : > { %v14139_v27 = vadd.f32 %v16231_v34, %v16230_v16  ;;  %v14135_v39 = vadd.f32 %v16232_v26, %v14134_v59 }
0x1b58   : > { %v14136_v32 = vadd.f32 %v16233_v30, %v14135_v39  ;;  %v14140_v55 = vadd.f32 %v16234_v38, %v14139_v27 }
0x1b5a   : > { %14137 = vadd.xlane.f32.xlu0 %v14136_v32  ;;  %v14141_v41 = vadd.f32 %v16235_v18, %v14140_v55 }
0x1b5c   : > { %14142 = vadd.xlane.f32.xlu1 %v14141_v41 }
0x1be7   : > { %v14138_v28 = vpop.xlane.xlu0 %14137 }
0x1be8   : > { %v14144_v4 = vmul.f32 0.001953125, %v14138_v28 }
0x1be9   : > { %v14143_v33 = vpop.xlane.xlu1 %14142 }
0x1bea   : > { %v14146_v54 = vsub.f32 %v16228_v47, %v14144_v4  ;;  %v14147_v21 = vsub.f32 %v16229_v63, %v14144_v4  ;;  %v14145_v20 = vmul.f32 0.001953125, %v14143_v33  ;;  %v14148_v2 = vsub.f32 %v16232_v26, %v14144_v4 }
0x1beb   : > { %v14149_v36 = vsub.f32 %v16233_v30, %v14144_v4 }
0x1bec   : > { %v14150_v29 = vsub.f32 %v16230_v16, %v14145_v20  ;;  %v14151_v37 = vsub.f32 %v16231_v34, %v14145_v20  ;;  %v14154_v31 = vmul.f32 %v14146_v54, %v14146_v54  ;;  %v14155_v50 = vmul.f32 %v14147_v21, %v14147_v21 }
0x1bed   : > { %v14156_v17 = vmul.f32 %v14148_v2, %v14148_v2  ;;  %v14152_v60 = vsub.f32 %v16234_v38, %v14145_v20  ;;  %v14153_v44 = vsub.f32 %v16235_v18, %v14145_v20  ;;  %v14157_v15 = vmul.f32 %v14149_v36, %v14149_v36 }
0x1bee   : > { %v14162_v10 = vadd.f32 %v14155_v50, %v14154_v31  ;;  %v14158_v35 = vmul.f32 %v14150_v29, %v14150_v29  ;;  %v14159_v7 = vmul.f32 %v14151_v37, %v14151_v37 }
0x1bef   : > { %v14160_v57 = vmul.f32 %v14152_v60, %v14152_v60  ;;  %v14161_v9 = vmul.f32 %v14153_v44, %v14153_v44 }
0x1bf0   : > { %v14163_v62 = vadd.f32 %v14162_v10, %v14156_v17  ;;  %v14167_v42 = vadd.f32 %v14159_v7, %v14158_v35 }
0x1bf2   : > { %v14164_v43 = vadd.f32 %v14163_v62, %v14157_v15  ;;  %v14168_v49 = vadd.f32 %v14167_v42, %v14160_v57 }
0x1bf4   : > { %14165 = vadd.xlane.f32.xlu0 %v14164_v43  ;;  %v14169_v1 = vadd.f32 %v14168_v49, %v14161_v9 }
0x1bf6   : > { %14170 = vadd.xlane.f32.xlu1 %v14169_v1 }
0x1c81   : > { %v14166_v53 = vpop.xlane.xlu0 %14165 }
0x1c82   : > { %v14172_v5 = vmul.f32 0.001953125, %v14166_v53 }
0x1c83   : > { %v14171_v8 = vpop.xlane.xlu1 %14170 }
0x1c84   : > { %v14174_v48 = vadd.f32 1e-05, %v14172_v5  ;;  %v14173_v3 = vmul.f32 0.001953125, %v14171_v8 }
0x1c86   : > { %18055 = vrsqrt.f32 %v14174_v48  ;;  %v14175_v6 = vadd.f32 1e-05, %v14173_v3 }
0x1c88   : > { %18057 = vrsqrt.f32 %v14175_v6 }
0x1c90   : > { %v18056_v19 = vpop.eup %18055  ;;  %14197 = sbr.rel (%p15971_p5) target bundleno = 7323 (0x1c9b), region = 68 }
0x1c91   : > { %v14178_v13 = vmul.f32 %v18056_v19, %v14146_v54  ;;  %v14179_v12 = vmul.f32 %v18056_v19, %v14147_v21  ;;  %v14180_v14 = vmul.f32 %v18056_v19, %v14148_v2  ;;  %v14181_v58 = vmul.f32 %v18056_v19, %v14149_v36 }
0x1c92   : > { %v18058_v52 = vpop.eup %18057 }
0x1c93   : > { %14186 = vst [vmem:[#allocation2] sm:$0xff] %v14178_v13  ;;  %14187 = vst [vmem:[#allocation2 + $0x8] sm:$0xff] %v14179_v12  ;;  %v14182_v11 = vmul.f32 %v18058_v52, %v14150_v29  ;;  %v14183_v46 = vmul.f32 %v18058_v52, %v14151_v37  ;;  %v14184_v0 = vmul.f32 %v18058_v52, %v14152_v60 }
0x1c94   : > { %14188 = vst [vmem:[#allocation2 + $0x10] sm:$0xff] %v14180_v14  ;;  %14189 = vst [vmem:[#allocation2 + $0x18] sm:$0xff] %v14181_v58  ;;  %v14185_v61 = vmul.f32 %v18058_v52, %v14153_v44 }
0x1c95   : > { %14190 = vst [vmem:[#allocation2 + $0x20] sm:$0xff] %v14182_v11  ;;  %14191 = vst [vmem:[#allocation2 + $0x28] sm:$0xff] %v14183_v46 }
0x1c96   : > { %14192 = vst [vmem:[#allocation2 + $0x30] sm:$0xff] %v14184_v0  ;;  %14193 = vst [vmem:[#allocation2 + $0x38] sm:$0xff] %v14185_v61 }
0x1c97   : > { %14198 = vst [vmem:[#allocation11] sm:$0xff] %v14178_v13  ;;  %14199 = vst [vmem:[#allocation11 + $0x8] sm:$0xff] %v14179_v12 }
0x1c98   : > { %14200 = vst [vmem:[#allocation11 + $0x10] sm:$0xff] %v14180_v14  ;;  %14201 = vst [vmem:[#allocation11 + $0x18] sm:$0xff] %v14181_v58 }
0x1c99   : > { %14202 = vst [vmem:[#allocation11 + $0x20] sm:$0xff] %v14182_v11  ;;  %14203 = vst [vmem:[#allocation11 + $0x28] sm:$0xff] %v14183_v46 }
0x1c9a   : > { %14204 = vst [vmem:[#allocation11 + $0x30] sm:$0xff] %v14184_v0  ;;  %14205 = vst [vmem:[#allocation11 + $0x38] sm:$0xff] %v14185_v61 }
0x1c9b PF: > { %p16385_p6 = scmp.eq.s32.totalorder %s18336_s28, 5  ;;  %s18274_s22 = smov [#allocation11]  }
0x1c9c   : > { %s14217_s18 = sshll.u32 %s18274_s22, 4  ;;  %s14218_s18 = int_to_ptr.vmem [resolvable:$true] %s14217_s18 }
0x1c9d   : > { %s18187_s13 = scalar_lea.vmem %s14218_s18, 1024  ;;  %p18194_p13 = scmp.lt.s32.totalorder %s14218_s18, %s14218_s18 }
0x1c9e   : > { %p18188_p1 = scmp.ne.s32.totalorder %s14218_s18, %s18187_s13  ;;  %p18195_p9 = scmp.lt.s32.totalorder %s18187_s13, %s18187_s13 }
0x1ca0   : > { %p18189_p4 = pnand %p18188_p1, %p16385_p6  ;;  %p18196_p0 = por %p18195_p9, %p18194_p13 }
0x1ca2   : > { %p18190_p11 = pneg %p18189_p4 }
0x1ca4   : > { %p18197_p12 = pnand %p18196_p0, %p18190_p11 }
0x1ca6   : > { %18200 = shalt.err (!%p18197_p12)
}
0x1ca7   : > { %s18201_s11 = scalar_lea.hbm %s20863_s6, 1024 }
0x1ca8   : > { %p18202_p2 = scmp.ne.s32.totalorder %s20863_s6, %s18201_s11  ;;  %p18207_p8 = scmp.lt.u32.totalorder %s18201_s11, %s20863_s6 }
0x1caa   : > { %p18203_p10 = pnand %p18202_p2, %p16385_p6 }
0x1cac   : > { %p18204_p7 = pneg %p18203_p10 }
0x1cae   : > { %p18209_p3 = pnand %p18207_p8, %p18204_p7 }
0x1cb0   : > { %18212 = shalt.err (!%p18209_p3)
}
0x1cb1   : > { %s18275_s24 = smov 512   ;;  %s18276_s14 = smov 32  }
0x1cb2   : > { %16368 = dma.vmem_to_hbm [thread:$0]  (%p16385_p6), %s14218_s18, 1024, %s20863_s6, [#allocation5], %s18275_s24, %s18275_s24, %s18276_s14  }
0x1cb3   : > { %18242 = dma.done.wait (%p16385_p6), [#allocation5], 1024  }
0x1cb4   : > { %18244 = vsyncadd (%p16385_p6), [#allocation5], 4294966272 }
0x1cb5 PF: > { %p25_p5 = scmp.ge.s32.totalorder %s18339_s29, 8   ;;  %s20880_s24 = smov %s18251_s25 }
0x1cb6   : > { %s20881_s25 = smov %s18255_s26  ;;  %s20882_s26 = smov %s18349_s9 }
0x1cb7   : > { %s20883_s27 = smov %s18339_s29  ;;  %27 = sbr.rel (!%p25_p5) target bundleno = 11 (0xb), region = 138 }
0x1cbe   :  { %14244 = vsyncpa [#allocation4], 1 }
0x1cbf   :  { %14246 = vsyncpa [#allocation4 + $0x1], 1 }
0x1cc0   :  { %14247 = vsyncpa [#allocation7], 1 }
0x1cc1   :  { %14249 = vsyncpa [#allocation7 + $0x1], 1 }
0x1cc2   :  { %14250 = vsyncpa [#allocation10], 1 }
0x1cc3   :  { %14252 = vsyncpa [#allocation10 + $0x1], 1 }
0x1cc4   :  { %14253 = vsyncpa [#allocation5], 1 }
0x1cc5   :  { %14255 = vsyncpa [#allocation5 + $0x1], 1 }

</bundles_post_ra>
